<compile_context>
chip_gen: v5e
topology: v5e:2x2
jax: 0.10.0
libtpu: 0.0.40
codegen_flags: <defaults>
</compile_context>

<pallas_src>
import functools
import math

import jax
import jax.numpy as jnp
from jax.experimental import pallas as pl
from jax.experimental.pallas import tpu as pltpu


def _round_up(x, m):
    return ((x + m - 1) // m) * m


# -----------------------------------------------------------------------------
# Single fused kernel:
#   h      = leaky_relu(x @ w1 + b1)            (BN affine pre-folded into w1/b1)
#   feat   = h @ w2 + b2                        -> semantic_features
#   logits = tanh(feat) @ w3 + b3
#   prob   = softmax(logits) over the first `num_classes` (padded cols masked)
# -----------------------------------------------------------------------------
def _fused_kernel(x_ref, w1_ref, b1_ref, w2_ref, b2_ref, w3_ref, b3_ref,
                  feat_ref, prob_ref, *, num_classes, negative_slope):
    x = x_ref[...].astype(jnp.bfloat16)

    # fc01 + LeakyReLU
    h = jnp.dot(x, w1_ref[...], preferred_element_type=jnp.float32) + b1_ref[...]
    h = jnp.where(h >= 0.0, h, negative_slope * h)

    # fc02 (semantic features)
    feat = jnp.dot(h.astype(jnp.bfloat16), w2_ref[...],
                   preferred_element_type=jnp.float32) + b2_ref[...]
    feat_ref[...] = feat.astype(feat_ref.dtype)

    # tanh -> fc03
    t = jnp.tanh(feat)
    logits = jnp.dot(t.astype(jnp.bfloat16), w3_ref[...],
                     preferred_element_type=jnp.float32) + b3_ref[...]

    # masked softmax over the real class columns
    col = jax.lax.broadcasted_iota(jnp.int32, logits.shape, 1)
    mask = col < num_classes
    logits = jnp.where(mask, logits, -1e30)
    m = jnp.max(logits, axis=-1, keepdims=True)
    e = jnp.where(mask, jnp.exp(logits - m), 0.0)
    s = jnp.sum(e, axis=-1, keepdims=True)
    prob_ref[...] = (e * pl.reciprocal(s, approx=False)).astype(prob_ref.dtype)


def fused_forward(x, w1_p, b1_p, w2_p, b2_p, w3_p, b3_p, *, num_classes,
                  negative_slope=0.01):
    """x: (M, K) f32. All weights/biases pre-padded to tile multiples, w* in bf16.

    Returns padded (Mp, Fp) features and (Mp, Cp) probabilities (caller slices).
    """
    M, K = x.shape
    Kp, Hp = w1_p.shape
    Fp = w2_p.shape[1]
    Cp = w3_p.shape[1]

    # Batch (M) is the only grid axis; cap the per-block M so the resident
    # activation footprint stays bounded at large batch.
    tm = min(128, _round_up(M, 8))
    Mp = _round_up(M, tm)
    x_p = jnp.pad(x.astype(jnp.float32), ((0, Mp - M), (0, Kp - K)))

    kernel = functools.partial(_fused_kernel, num_classes=num_classes,
                               negative_slope=negative_slope)
    feat_p, prob_p = pl.pallas_call(
        kernel,
        out_shape=(jax.ShapeDtypeStruct((Mp, Fp), jnp.float32),
                   jax.ShapeDtypeStruct((Mp, Cp), jnp.float32)),
        grid=(Mp // tm,),
        in_specs=[
            pl.BlockSpec((tm, Kp), lambda i: (i, 0)),    # activations
            pl.BlockSpec((Kp, Hp), lambda i: (0, 0)),    # w1 (resident)
            pl.BlockSpec((1, Hp), lambda i: (0, 0)),     # b1
            pl.BlockSpec((Hp, Fp), lambda i: (0, 0)),    # w2 (resident)
            pl.BlockSpec((1, Fp), lambda i: (0, 0)),     # b2
            pl.BlockSpec((Fp, Cp), lambda i: (0, 0)),    # w3 (resident)
            pl.BlockSpec((1, Cp), lambda i: (0, 0)),     # b3
        ],
        out_specs=(pl.BlockSpec((tm, Fp), lambda i: (i, 0)),
                   pl.BlockSpec((tm, Cp), lambda i: (i, 0))),
        compiler_params=pltpu.CompilerParams(
            dimension_semantics=("parallel",),
            vmem_limit_bytes=32 * 1024 * 1024,   # worst-case live tiles ~12 MiB
        ),
    )(x_p, w1_p, b1_p, w2_p, b2_p, w3_p, b3_p)
    return feat_p, prob_p


# -----------------------------------------------------------------------------
# Model
# -----------------------------------------------------------------------------
class SemanticEEGExtractorPallas:
    def __init__(self, eeg_features, eeg_channel, output_class_num,
                 feature_size=200, key=jax.random.PRNGKey(0)):
        self.feature_size = feature_size
        self.num_classes = output_class_num

        in_dim = eeg_features * eeg_channel
        hidden = 4096

        # eval-mode BatchNorm2d(num_features=1) with default params/buffers:
        # gamma=1, beta=0, running_mean=0, running_var=1, eps=1e-5 -> scalar affine.
        gamma, beta, r_mean, r_var, eps = 1.0, 0.0, 0.0, 1.0, 1e-5
        bn_scale = gamma / math.sqrt(r_var + eps)
        bn_shift = beta - r_mean * bn_scale

        kp = _round_up(in_dim, 128)
        fp = _round_up(feature_size, 128)
        cp = _round_up(output_class_num, 128)

        ks = jax.random.split(key, 3)

        def lin_w(k, fan_in, fan_out):
            return (jax.random.normal(k, (fan_in, fan_out), jnp.float32)
                    / jnp.sqrt(fan_in))

        # fc01: Linear(in_dim, 4096)   (Dropout = identity in eval mode)
        # Fold the BatchNorm affine into the weights/bias in f32, THEN quantize.
        w1 = lin_w(ks[0], in_dim, hidden)
        b1 = jnp.zeros((1, hidden), jnp.float32)
        w1_folded = w1 * bn_scale
        b1_folded = b1 + bn_shift * jnp.sum(w1, axis=0, keepdims=True)
        self.w1 = jnp.pad(w1_folded, ((0, kp - in_dim), (0, 0))).astype(jnp.bfloat16)
        self.b1 = b1_folded

        # fc02: Linear(4096, feature_size)   (Dropout = identity in eval mode)
        w2 = lin_w(ks[1], hidden, feature_size)
        self.w2 = jnp.pad(w2, ((0, 0), (0, fp - feature_size))).astype(jnp.bfloat16)
        self.b2 = jnp.zeros((1, fp), jnp.float32)

        # fc03: Linear(feature_size, output_class_num)
        w3 = lin_w(ks[2], feature_size, output_class_num)
        self.w3 = jnp.pad(w3, ((0, fp - feature_size),
                               (0, cp - output_class_num))).astype(jnp.bfloat16)
        self.b3 = jnp.zeros((1, cp), jnp.float32)

    def forward(self, eeg):
        # eeg: [B, eeg_features, eeg_channel].  unsqueeze(1) + BatchNorm2d(1)
        # (eval) is a scalar affine that commutes with flatten; it has been
        # folded into (w1, b1) at init, so the kernel sees the raw flattened eeg.
        b = eeg.shape[0]
        x = eeg.reshape(b, -1).astype(jnp.float32)

        feat_p, prob_p = fused_forward(
            x, self.w1, self.b1, self.w2, self.b2, self.w3, self.b3,
            num_classes=self.num_classes)

        semantic_features = feat_p[:b, :self.feature_size]
        p_label = prob_p[:b, :self.num_classes]
        return semantic_features, p_label


# -----------------------------------------------------------------------------
# Main
# -----------------------------------------------------------------------------
if __name__ == "__main__":
    key = jax.random.PRNGKey(0)
    k_eeg, k_params = jax.random.split(key)

    # Small shapes consistent with the module: expected_shape[1]*expected_shape[2]
    # = eeg_features * eeg_channel feeds fc01; the eeg passed to forward is
    # [B, eeg_features, eeg_channel].
    batch, eeg_features, eeg_channel = 2, 32, 16      # flattened in_dim = 512
    feature_size, num_classes = 32, 10

    eeg = jax.random.normal(k_eeg, (batch, eeg_features, eeg_channel), jnp.float32)

    model = SemanticEEGExtractorPallas(
        eeg_features=eeg_features, eeg_channel=eeg_channel,
        output_class_num=num_classes, feature_size=feature_size, key=k_params)

    fwd = jax.jit(model.forward)
    semantic_features, p_label = fwd(eeg)
    jax.block_until_ready((semantic_features, p_label))

    assert semantic_features.shape == (batch, feature_size)
    assert p_label.shape == (batch, num_classes)
    assert bool(jnp.all(jnp.isfinite(semantic_features)))
    assert bool(jnp.all(p_label >= 0.0))
    assert bool(jnp.allclose(jnp.sum(p_label, axis=-1), 1.0, atol=1e-5))

    print("KERNEL_OK")
</pallas_src>

<mosaic_0001>
module attributes {stable_mosaic.version = 11 : i64} {
  func.func @_fused_kernel(%arg0: i32, %arg1: memref<8x512xf32, #tpu.memory_space<vmem>>, %arg2: memref<512x4096xbf16, #tpu.memory_space<vmem>>, %arg3: memref<1x4096xf32, #tpu.memory_space<vmem>>, %arg4: memref<4096x128xbf16, #tpu.memory_space<vmem>>, %arg5: memref<1x128xf32, #tpu.memory_space<vmem>>, %arg6: memref<128x128xbf16, #tpu.memory_space<vmem>>, %arg7: memref<1x128xf32, #tpu.memory_space<vmem>>, %arg8: memref<8x128xf32, #tpu.memory_space<vmem>>, %arg9: memref<8x128xf32, #tpu.memory_space<vmem>>) attributes {dimension_semantics = [#tpu.dimension_semantics<parallel>], iteration_bounds = array<i64: 1>, scalar_prefetch = 0 : i64, scratch_operands = 0 : i64, tpu.core_type = #tpu.core_type<tc>, window_params = [{transform_indices = @transform_0, window_bounds = array<i64: 8, 512>}, {pipeline_mode = #tpu.pipeline_mode<synchronous>, transform_indices = @transform_1, window_bounds = array<i64: 512, 4096>}, {pipeline_mode = #tpu.pipeline_mode<synchronous>, transform_indices = @transform_2, window_bounds = array<i64: 1, 4096>}, {pipeline_mode = #tpu.pipeline_mode<synchronous>, transform_indices = @transform_3, window_bounds = array<i64: 4096, 128>}, {pipeline_mode = #tpu.pipeline_mode<synchronous>, transform_indices = @transform_4, window_bounds = array<i64: 1, 128>}, {pipeline_mode = #tpu.pipeline_mode<synchronous>, transform_indices = @transform_5, window_bounds = array<i64: 128, 128>}, {pipeline_mode = #tpu.pipeline_mode<synchronous>, transform_indices = @transform_6, window_bounds = array<i64: 1, 128>}, {transform_indices = @transform_7, window_bounds = array<i64: 8, 128>}, {transform_indices = @transform_8, window_bounds = array<i64: 8, 128>}]} {
    %c0 = arith.constant 0 : index
    %c0_0 = arith.constant 0 : index
    %0 = vector.load %arg1[%c0, %c0_0] : memref<8x512xf32, #tpu.memory_space<vmem>>, vector<8x512xf32>
    %1 = arith.truncf %0 : vector<8x512xf32> to vector<8x512xbf16>
    %c0_1 = arith.constant 0 : index
    %c0_2 = arith.constant 0 : index
    %2 = vector.load %arg2[%c0_1, %c0_2] : memref<512x4096xbf16, #tpu.memory_space<vmem>>, vector<512x4096xbf16>
    %cst = arith.constant dense<0.000000e+00> : vector<8x4096xf32>
    %3 = tpu.matmul %1, %2, %cst {dimension_numbers = #tpu.dot_dimension_numbers<[1], [0], [0], [1], [0, 0, 1, 1], [], []>} : vector<8x512xbf16>, vector<512x4096xbf16>, vector<8x4096xf32> -> vector<8x4096xf32>
    %c0_3 = arith.constant 0 : index
    %c0_4 = arith.constant 0 : index
    %4 = vector.load %arg3[%c0_3, %c0_4] : memref<1x4096xf32, #tpu.memory_space<vmem>>, vector<1x4096xf32>
    %5 = vector.broadcast %4 : vector<1x4096xf32> to vector<8x4096xf32>
    %6 = arith.addf %3, %5 : vector<8x4096xf32>
    %cst_5 = arith.constant 0.000000e+00 : f32
    %7 = vector.broadcast %cst_5 : f32 to vector<8x4096xf32>
    %8 = arith.cmpf oge, %6, %7 : vector<8x4096xf32>
    %cst_6 = arith.constant 0.00999999977 : f32
    %9 = vector.broadcast %cst_6 : f32 to vector<8x4096xf32>
    %10 = arith.mulf %9, %6 : vector<8x4096xf32>
    %11 = arith.select %8, %6, %10 : vector<8x4096xi1>, vector<8x4096xf32>
    %12 = arith.truncf %11 : vector<8x4096xf32> to vector<8x4096xbf16>
    %c0_7 = arith.constant 0 : index
    %c0_8 = arith.constant 0 : index
    %13 = vector.load %arg4[%c0_7, %c0_8] : memref<4096x128xbf16, #tpu.memory_space<vmem>>, vector<4096x128xbf16>
    %cst_9 = arith.constant dense<0.000000e+00> : vector<8x128xf32>
    %14 = tpu.matmul %12, %13, %cst_9 {dimension_numbers = #tpu.dot_dimension_numbers<[1], [0], [0], [1], [0, 0, 1, 1], [], []>} : vector<8x4096xbf16>, vector<4096x128xbf16>, vector<8x128xf32> -> vector<8x128xf32>
    %c0_10 = arith.constant 0 : index
    %c0_11 = arith.constant 0 : index
    %15 = vector.load %arg5[%c0_10, %c0_11] : memref<1x128xf32, #tpu.memory_space<vmem>>, vector<1x128xf32>
    %16 = vector.broadcast %15 : vector<1x128xf32> to vector<8x128xf32>
    %17 = arith.addf %14, %16 : vector<8x128xf32>
    %c0_12 = arith.constant 0 : index
    %c0_13 = arith.constant 0 : index
    %18 = vector.load %arg8[%c0_12, %c0_13] : memref<8x128xf32, #tpu.memory_space<vmem>>, vector<8x128xf32>
    tpu.vector_store %arg8[%c0_12, %c0_13], %17 {strides = array<i32>} : memref<8x128xf32, #tpu.memory_space<vmem>>, vector<8x128xf32>,
    %19 = math.tanh %17 : vector<8x128xf32>
    %20 = arith.truncf %19 : vector<8x128xf32> to vector<8x128xbf16>
    %c0_14 = arith.constant 0 : index
    %c0_15 = arith.constant 0 : index
    %21 = vector.load %arg6[%c0_14, %c0_15] : memref<128x128xbf16, #tpu.memory_space<vmem>>, vector<128x128xbf16>
    %cst_16 = arith.constant dense<0.000000e+00> : vector<8x128xf32>
    %22 = tpu.matmul %20, %21, %cst_16 {dimension_numbers = #tpu.dot_dimension_numbers<[1], [0], [0], [1], [0, 0, 1, 1], [], []>} : vector<8x128xbf16>, vector<128x128xbf16>, vector<8x128xf32> -> vector<8x128xf32>
    %c0_17 = arith.constant 0 : index
    %c0_18 = arith.constant 0 : index
    %23 = vector.load %arg7[%c0_17, %c0_18] : memref<1x128xf32, #tpu.memory_space<vmem>>, vector<1x128xf32>
    %24 = vector.broadcast %23 : vector<1x128xf32> to vector<8x128xf32>
    %25 = arith.addf %22, %24 : vector<8x128xf32>
    %26 = tpu.iota {dimensions = array<i32: 1>} : vector<8x128xi32>
    %c10_i32 = arith.constant 10 : i32
    %27 = vector.broadcast %c10_i32 : i32 to vector<8x128xi32>
    %28 = arith.cmpi slt, %26, %27 : vector<8x128xi32>
    %cst_19 = arith.constant -1.000000e+30 : f32
    %29 = vector.broadcast %cst_19 : f32 to vector<8x128xf32>
    %30 = arith.select %28, %25, %29 : vector<8x128xi1>, vector<8x128xf32>
    %cst_20 = arith.constant dense<0xFF800000> : vector<8xf32>
    %31 = vector.multi_reduction <maximumf>, %30, %cst_20 [1] : vector<8x128xf32> to vector<8xf32>
    %32 = vector.shape_cast %31 : vector<8xf32> to vector<8x1xf32>
    %33 = vector.broadcast %32 : vector<8x1xf32> to vector<8x128xf32>
    %34 = arith.subf %30, %33 : vector<8x128xf32>
    %35 = math.exp %34 : vector<8x128xf32>
    %cst_21 = arith.constant 0.000000e+00 : f32
    %36 = vector.broadcast %cst_21 : f32 to vector<8x128xf32>
    %37 = arith.select %28, %35, %36 : vector<8x128xi1>, vector<8x128xf32>
    %cst_22 = arith.constant dense<0.000000e+00> : vector<8xf32>
    %38 = vector.multi_reduction <add>, %37, %cst_22 [1] : vector<8x128xf32> to vector<8xf32>
    %39 = vector.shape_cast %38 : vector<8xf32> to vector<8x1xf32>
    %40 = tpu.reciprocal %39 : vector<8x1xf32> -> vector<8x1xf32>
    %41 = vector.broadcast %40 : vector<8x1xf32> to vector<8x128xf32>
    %42 = arith.mulf %37, %41 : vector<8x128xf32>
    %c0_23 = arith.constant 0 : index
    %c0_24 = arith.constant 0 : index
    %43 = vector.load %arg9[%c0_23, %c0_24] : memref<8x128xf32, #tpu.memory_space<vmem>>, vector<8x128xf32>
    tpu.vector_store %arg9[%c0_23, %c0_24], %42 {strides = array<i32>} : memref<8x128xf32, #tpu.memory_space<vmem>>, vector<8x128xf32>,
    return
  }
  func.func @transform_0(%arg0: i32) -> (i32, i32) {
    %c0_i32 = arith.constant 0 : i32
    %c0_i32_0 = arith.constant 0 : i32
    return %arg0, %c0_i32 : i32, i32
  }
  func.func @transform_1(%arg0: i32) -> (i32, i32) {
    %c0_i32 = arith.constant 0 : i32
    %c0_i32_0 = arith.constant 0 : i32
    %c0_i32_1 = arith.constant 0 : i32
    return %c0_i32, %c0_i32_0 : i32, i32
  }
  func.func @transform_2(%arg0: i32) -> (i32, i32) {
    %c0_i32 = arith.constant 0 : i32
    %c0_i32_0 = arith.constant 0 : i32
    %c0_i32_1 = arith.constant 0 : i32
    return %c0_i32, %c0_i32_0 : i32, i32
  }
  func.func @transform_3(%arg0: i32) -> (i32, i32) {
    %c0_i32 = arith.constant 0 : i32
    %c0_i32_0 = arith.constant 0 : i32
    %c0_i32_1 = arith.constant 0 : i32
    return %c0_i32, %c0_i32_0 : i32, i32
  }
  func.func @transform_4(%arg0: i32) -> (i32, i32) {
    %c0_i32 = arith.constant 0 : i32
    %c0_i32_0 = arith.constant 0 : i32
    %c0_i32_1 = arith.constant 0 : i32
    return %c0_i32, %c0_i32_0 : i32, i32
  }
  func.func @transform_5(%arg0: i32) -> (i32, i32) {
    %c0_i32 = arith.constant 0 : i32
    %c0_i32_0 = arith.constant 0 : i32
    %c0_i32_1 = arith.constant 0 : i32
    return %c0_i32, %c0_i32_0 : i32, i32
  }
  func.func @transform_6(%arg0: i32) -> (i32, i32) {
    %c0_i32 = arith.constant 0 : i32
    %c0_i32_0 = arith.constant 0 : i32
    %c0_i32_1 = arith.constant 0 : i32
    return %c0_i32, %c0_i32_0 : i32, i32
  }
  func.func @transform_7(%arg0: i32) -> (i32, i32) {
    %c0_i32 = arith.constant 0 : i32
    %c0_i32_0 = arith.constant 0 : i32
    return %arg0, %c0_i32 : i32, i32
  }
  func.func @transform_8(%arg0: i32) -> (i32, i32) {
    %c0_i32 = arith.constant 0 : i32
    %c0_i32_0 = arith.constant 0 : i32
    return %arg0, %c0_i32 : i32, i32
  }
}

</mosaic_0001>

<bundles_post_ra>
// kernel: forward.1
= control target key start
LH: loop header
LB: loop body
LE: loop exit
PB: predicated region body
PF: predicated region fallthrough
CT: control target
= control target key end

     0   :  { %14 = vsyncpa [#allocation3], 0  ;;  %s17689_s0 = inlined_call_operand.vmem [shape: f32[8,512], index: 0, kind: input, shape index: {}]   ;;  %s17690_s1 = inlined_call_operand.hbm [shape: bf16[512,4096], index: 1, kind: input, shape index: {}]   ;;  %s17691_s2 = inlined_call_operand.vmem [shape: f32[1,4096], index: 2, kind: input, shape index: {}]   ;;  %s17692_s3 = inlined_call_operand.hbm [shape: bf16[4096,128], index: 3, kind: input, shape index: {}]   ;;  %s17693_s4 = inlined_call_operand.vmem [shape: f32[1,128], index: 4, kind: input, shape index: {}, may-alias: {4,6}]   ;;  %s17694_s5 = inlined_call_operand.hbm [shape: bf16[128,128], index: 5, kind: input, shape index: {}]   ;;  %s17695_s6 = inlined_call_operand.vmem [shape: f32[1,128], index: 6, kind: input, shape index: {}, may-alias: {4,6}]   ;;  %s17696_s7 = inlined_call_operand.vmem [shape: f32[8,128], index: 7, kind: output, shape index: {0}]   ;;  %s17697_s8 = inlined_call_operand.vmem [shape: f32[8,128], index: 8, kind: output, shape index: {1}]  }
   0x1   :  { %15 = vsyncpa [#allocation5], 0  ;;  %s37_s29 = sshll.u32 %s17692_s3, 4  ;;  %s17216_s30 = smov [#allocation4]   ;;  %s38_s29 = int_to_ptr.hbm [resolvable:$true] %s37_s29 }
   0x2   :  { %s39_s9 = sshll.u32 %s17216_s30, 4  ;;  %s22_s12 = sshll.u32 %s17690_s1, 4  ;;  %s40_s9 = int_to_ptr.vmem [resolvable:$true] %s39_s9  ;;  %s23_s12 = int_to_ptr.hbm [resolvable:$true] %s22_s12 }
   0x3   :  { %s17217_s13 = smov 64   ;;  %s17218_s14 = smov 4  }
   0x4   :  { %45 = dma.hbm_to_vmem [thread:$0]  %s38_s29, 32768, %s40_s9, [#allocation5], %s17217_s13, %s17217_s13, %s17218_s14  }
   0x5   :  { %s17219_s15 = smov [#allocation2]   ;;  %s17220_s17 = smov 2048  }
   0x6   :  { %s24_s16 = sshll.u32 %s17219_s15, 4  ;;  %s17221_s18 = smov 128   ;;  %s25_s16 = int_to_ptr.vmem [resolvable:$true] %s24_s16 }
   0x7   :  { %30 = dma.hbm_to_vmem [thread:$0]  %s23_s12, 131072, %s25_s16, [#allocation3], %s17220_s17, %s17220_s17, %s17221_s18  }
   0x8   :  { %s52_s20 = sshll.u32 %s17694_s5, 4  ;;  %s17222_s21 = smov [#allocation6]   ;;  %s53_s20 = int_to_ptr.hbm [resolvable:$true] %s52_s20 }
   0x9   :  { %s54_s22 = sshll.u32 %s17222_s21, 4  ;;  %s55_s22 = int_to_ptr.vmem [resolvable:$true] %s54_s22 }
   0xa   :  { %60 = dma.hbm_to_vmem [thread:$0]  %s53_s20, 1024, %s55_s22, [#allocation5], %s17217_s13, %s17217_s13, %s17218_s14  }
   0xb   :  { %17212 = dma.done.wait [#allocation3], 131072  }
   0xc   :  { %17213 = vsyncadd [#allocation3], 4294836224 }
   0xd   :  { %17214 = dma.done.wait [#allocation5], 33792  }
   0xe   :  { %17215 = vsyncadd [#allocation5], 4294933504  ;;  %v11579_v0 = vld [vmem:[#allocation2 + $0x700] sm:$0xf] }
   0xf   :  { %v16073_v1 = vld [vmem:[#allocation2 + $0x77c] sm:$0xf0] }
  0x10   :  { %v12603_v2 = vld [vmem:[#allocation2 + $0xf00] sm:$0xf]  ;;  %v11580_v3 = vor.u32 %v16073_v1, %v11579_v0 }
  0x11   :  { %v16329_v4 = vld [vmem:[#allocation2 + $0xf7c] sm:$0xf0] }
  0x12   :  { %v13627_v5 = vld [vmem:[#allocation2 + $0x1700] sm:$0xf]  ;;  %v12604_v7 = vor.u32 %v16329_v4, %v12603_v2  ;;  %6299 = vmatpush.bf16.msra.mxu0 %v11580_v3 }
  0x13   :  { %v16585_v6 = vld [vmem:[#allocation2 + $0x177c] sm:$0xf0] }
  0x14   :  { %v13628_v8 = vor.u32 %v16585_v6, %v13627_v5  ;;  %v14651_v9 = vld [vmem:[#allocation2 + $0x1f00] sm:$0xf]  ;;  %6312 = vmatpush.bf16.msra.mxu1 %v12604_v7 }
  0x15   :  { %v16841_v10 = vld [vmem:[#allocation2 + $0x1f7c] sm:$0xf0] }
  0x16   :  { %v11451_v11 = vld [vmem:[#allocation2 + $0x600] sm:$0xf]  ;;  %v14652_v12 = vor.u32 %v16841_v10, %v14651_v9  ;;  %6325 = vmatpush.bf16.msra.mxu2 %v13628_v8 }
  0x17   :  { %v16041_v13 = vld [vmem:[#allocation2 + $0x67c] sm:$0xf0] }
  0x18   :  { %v12475_v14 = vld [vmem:[#allocation2 + $0xe00] sm:$0xf]  ;;  %v11452_v16 = vor.u32 %v16041_v13, %v11451_v11  ;;  %6338 = vmatpush.bf16.msra.mxu3 %v14652_v12 }
  0x19   :  { %v16297_v15 = vld [vmem:[#allocation2 + $0xe7c] sm:$0xf0] }
  0x1a   :  { %v12476_v17 = vor.u32 %v16297_v15, %v12475_v14  ;;  %v13499_v18 = vld [vmem:[#allocation2 + $0x1600] sm:$0xf]  ;;  %6300 = vmatpush.bf16.msra.mxu0 %v11452_v16 }
  0x1b   :  { %v16553_v19 = vld [vmem:[#allocation2 + $0x167c] sm:$0xf0] }
  0x1c   :  { %v14523_v20 = vld [vmem:[#allocation2 + $0x1e00] sm:$0xf]  ;;  %v13500_v21 = vor.u32 %v16553_v19, %v13499_v18  ;;  %6313 = vmatpush.bf16.msra.mxu1 %v12476_v17 }
  0x1d   :  { %v16809_v22 = vld [vmem:[#allocation2 + $0x1e7c] sm:$0xf0] }
  0x1e   :  { %v11323_v23 = vld [vmem:[#allocation2 + $0x500] sm:$0xf]  ;;  %v14524_v25 = vor.u32 %v16809_v22, %v14523_v20  ;;  %6326 = vmatpush.bf16.msra.mxu2 %v13500_v21 }
  0x1f   :  { %v16009_v24 = vld [vmem:[#allocation2 + $0x57c] sm:$0xf0] }
  0x20   :  { %v12347_v26 = vld [vmem:[#allocation2 + $0xd00] sm:$0xf]  ;;  %v11324_v29 = vor.u32 %v16009_v24, %v11323_v23  ;;  %6339 = vmatpush.bf16.msra.mxu3 %v14524_v25 }
  0x21   :  { %v16265_v27 = vld [vmem:[#allocation2 + $0xd7c] sm:$0xf0] }
  0x22   :  { %v13371_v28 = vld [vmem:[#allocation2 + $0x1500] sm:$0xf]  ;;  %v12348_v33 = vor.u32 %v16265_v27, %v12347_v26  ;;  %6301 = vmatpush.bf16.msra.mxu0 %v11324_v29  ;;  %v11581_v29 = vld [vmem:[#allocation2 + $0x780] sm:$0xf0] }
  0x23   :  { %v16521_v30 = vld [vmem:[#allocation2 + $0x157c] sm:$0xf0] }
  0x24   :  { %v14395_v31 = vld [vmem:[#allocation2 + $0x1d00] sm:$0xf]  ;;  %v13372_v34 = vor.u32 %v16521_v30, %v13371_v28  ;;  %6314 = vmatpush.bf16.msra.mxu1 %v12348_v33  ;;  %v16057_v28 = vld [vmem:[#allocation2 + $0x704] sm:$0xf] }
  0x25   :  { %v16777_v32 = vld [vmem:[#allocation2 + $0x1d7c] sm:$0xf0]  ;;  %v16313_v30 = vld [vmem:[#allocation2 + $0xf04] sm:$0xf] }
  0x26   :  { %v11195_v35 = vld [vmem:[#allocation2 + $0x400] sm:$0xf]  ;;  %v14396_v38 = vor.u32 %v16777_v32, %v14395_v31  ;;  %6327 = vmatpush.bf16.msra.mxu2 %v13372_v34  ;;  %v12605_v32 = vld [vmem:[#allocation2 + $0xf80] sm:$0xf0] }
  0x27   :  { %v15977_v36 = vld [vmem:[#allocation2 + $0x47c] sm:$0xf0]  ;;  %v16569_v33 = vld [vmem:[#allocation2 + $0x1704] sm:$0xf] }
  0x28   :  { %v12219_v37 = vld [vmem:[#allocation2 + $0xc00] sm:$0xf]  ;;  %v11196_v44 = vor.u32 %v15977_v36, %v11195_v35  ;;  %6340 = vmatpush.bf16.msra.mxu3 %v14396_v38  ;;  %v13629_v34 = vld [vmem:[#allocation2 + $0x1780] sm:$0xf0] }
  0x29   :  { %v16233_v39 = vld [vmem:[#allocation2 + $0xc7c] sm:$0xf0]  ;;  %v14653_v38 = vld [vmem:[#allocation2 + $0x1f80] sm:$0xf0] }
  0x2a   :  { %v13243_v40 = vld [vmem:[#allocation2 + $0x1400] sm:$0xf]  ;;  %v12220_v45 = vor.u32 %v16233_v39, %v12219_v37  ;;  %6302 = vmatpush.bf16.msra.mxu0 %v11196_v44  ;;  %v16825_v37 = vld [vmem:[#allocation2 + $0x1f04] sm:$0xf] }
  0x2b   :  { %v16489_v41 = vld [vmem:[#allocation2 + $0x147c] sm:$0xf0]  ;;  %v11453_v44 = vld [vmem:[#allocation2 + $0x680] sm:$0xf0] }
  0x2c   :  { %v14267_v42 = vld [vmem:[#allocation2 + $0x1c00] sm:$0xf]  ;;  %v13244_v46 = vor.u32 %v16489_v41, %v13243_v40  ;;  %6315 = vmatpush.bf16.msra.mxu1 %v12220_v45  ;;  %v11584_v40 = vor.u32 %v16057_v28, %v11581_v29  ;;  %v12608_v41 = vor.u32 %v16313_v30, %v12605_v32  ;;  %v16281_v45 = vld [vmem:[#allocation2 + $0xe04] sm:$0xf] }
  0x2d   :  { %v16745_v43 = vld [vmem:[#allocation2 + $0x1c7c] sm:$0xf0]  ;;  %v16441_v28 = vld [vmem:[#allocation2 + $0x1304] sm:$0xf] }
  0x2e   :  { %v11067_v47 = vld [vmem:[#allocation2 + $0x300] sm:$0xf]  ;;  %v14268_v50 = vor.u32 %v16745_v43, %v14267_v42  ;;  %6328 = vmatpush.bf16.msra.mxu2 %v13244_v46  ;;  %v13632_v42 = vor.u32 %v16569_v33, %v13629_v34  ;;  %v16025_v43 = vld [vmem:[#allocation2 + $0x604] sm:$0xf]  ;;  %v14656_v46 = vor.u32 %v16825_v37, %v14653_v38 }
  0x2f   :  { %v15945_v48 = vld [vmem:[#allocation2 + $0x37c] sm:$0xf0]  ;;  %v13117_v29 = vld [vmem:[#allocation2 + $0x1380] sm:$0xf0] }
  0x30   :  { %v12091_v49 = vld [vmem:[#allocation2 + $0xb00] sm:$0xf]  ;;  %v11068_v56 = vor.u32 %v15945_v48, %v11067_v47  ;;  %6341 = vmatpush.bf16.msra.mxu3 %v14268_v50  ;;  %v12477_v47 = vld [vmem:[#allocation2 + $0xe80] sm:$0xf0]  ;;  %v13120_v34 = vor.u32 %v16441_v28, %v13117_v29  ;;  %v13507_v28 = vld [vmem:[#allocation2 + $0x1608] sm:$0xf] }
  0x31   :  { %v16201_v51 = vld [vmem:[#allocation2 + $0xb7c] sm:$0xf0]  ;;  %v16537_v48 = vld [vmem:[#allocation2 + $0x1604] sm:$0xf]  ;;  %v16554_v29 = vld [vmem:[#allocation2 + $0x1684] sm:$0xf0] }
  0x32   :  { %v13115_v52 = vld [vmem:[#allocation2 + $0x1300] sm:$0xf]  ;;  %v12092_v57 = vor.u32 %v16201_v51, %v12091_v49  ;;  %6303 = vmatpush.bf16.msra.mxu0 %v11068_v56  ;;  %v13501_v49 = vld [vmem:[#allocation2 + $0x1680] sm:$0xf0] }
  0x33   :  { %v16457_v53 = vld [vmem:[#allocation2 + $0x137c] sm:$0xf0]  ;;  %v16793_v50 = vld [vmem:[#allocation2 + $0x1e04] sm:$0xf] }
  0x34   :  { %v14139_v54 = vld [vmem:[#allocation2 + $0x1b00] sm:$0xf]  ;;  %v13116_v58 = vor.u32 %v16457_v53, %v13115_v52  ;;  %6316 = vmatpush.bf16.msra.mxu1 %v12092_v57  ;;  %v14525_v51 = vld [vmem:[#allocation2 + $0x1e80] sm:$0xf0]  ;;  %v11456_v52 = vor.u32 %v16025_v43, %v11453_v44 }
  0x35   :  { %v16713_v55 = vld [vmem:[#allocation2 + $0x1b7c] sm:$0xf0]  ;;  %v15993_v53 = vld [vmem:[#allocation2 + $0x504] sm:$0xf] }
  0x36   :  { %v10939_v59 = vld [vmem:[#allocation2 + $0x200] sm:$0xf]  ;;  %v14140_v62 = vor.u32 %v16713_v55, %v14139_v54  ;;  %6329 = vmatpush.bf16.msra.mxu2 %v13116_v58  ;;  %v12480_v54 = vor.u32 %v16281_v45, %v12477_v47  ;;  %v13504_v55 = vor.u32 %v16537_v48, %v13501_v49  ;;  %v11325_v56 = vld [vmem:[#allocation2 + $0x580] sm:$0xf0] }
  0x37   :  { %v15913_v60 = vld [vmem:[#allocation2 + $0x27c] sm:$0xf0]  ;;  %v16249_v57 = vld [vmem:[#allocation2 + $0xd04] sm:$0xf] }
  0x38   :  { %v11963_v61 = vld [vmem:[#allocation2 + $0xa00] sm:$0xf]  ;;  %v10940_v4 = vor.u32 %v15913_v60, %v10939_v59  ;;  %6342 = vmatpush.bf16.msra.mxu3 %v14140_v62  ;;  %v12349_v58 = vld [vmem:[#allocation2 + $0xd80] sm:$0xf0]  ;;  %v14528_v59 = vor.u32 %v16793_v50, %v14525_v51 }
  0x39   :  { %v16169_v63 = vld [vmem:[#allocation2 + $0xa7c] sm:$0xf0]  ;;  %v16505_v60 = vld [vmem:[#allocation2 + $0x1504] sm:$0xf] }
  0x3a   :  { %v12987_v0 = vld [vmem:[#allocation2 + $0x1200] sm:$0xf]  ;;  %v11964_v5 = vor.u32 %v16169_v63, %v11963_v61  ;;  %6304 = vmatpush.bf16.msra.mxu0 %v10940_v4  ;;  %v13373_v61 = vld [vmem:[#allocation2 + $0x1580] sm:$0xf0] }
  0x3b   :  { %v16425_v1 = vld [vmem:[#allocation2 + $0x127c] sm:$0xf0]  ;;  %v16761_v62 = vld [vmem:[#allocation2 + $0x1d04] sm:$0xf] }
  0x3c   :  { %v14011_v2 = vld [vmem:[#allocation2 + $0x1a00] sm:$0xf]  ;;  %v12988_v6 = vor.u32 %v16425_v1, %v12987_v0  ;;  %6317 = vmatpush.bf16.msra.mxu1 %v11964_v5  ;;  %v14397_v63 = vld [vmem:[#allocation2 + $0x1d80] sm:$0xf0]  ;;  %v11328_v0 = vor.u32 %v15993_v53, %v11325_v56  ;;  %v12352_v1 = vor.u32 %v16249_v57, %v12349_v58  ;;  %v13376_v5 = vor.u32 %v16505_v60, %v13373_v61 }
  0x3d   :  { %v16681_v3 = vld [vmem:[#allocation2 + $0x1a7c] sm:$0xf0]  ;;  %v16697_v30 = vld [vmem:[#allocation2 + $0x1b04] sm:$0xf] }
  0x3e   :  { %v10811_v7 = vld [vmem:[#allocation2 + $0x100] sm:$0xf]  ;;  %v14012_v10 = vor.u32 %v16681_v3, %v14011_v2  ;;  %6330 = vmatpush.bf16.msra.mxu2 %v12988_v6  ;;  %v15961_v2 = vld [vmem:[#allocation2 + $0x404] sm:$0xf]  ;;  %v77_v3 = vld [vmem:[%s17689_s0 + $0x10] sm:$0xff] }
  0x3f   :  { %v15881_v8 = vld [vmem:[#allocation2 + $0x17c] sm:$0xf0]  ;;  %v11197_v6 = vld [vmem:[#allocation2 + $0x480] sm:$0xf0] }
  0x40   :  { %v11835_v9 = vld [vmem:[#allocation2 + $0x900] sm:$0xf]  ;;  %v10812_v16 = vor.u32 %v15881_v8, %v10811_v7  ;;  %6343 = vmatpush.bf16.msra.mxu3 %v14012_v10  ;;  %v16217_v7 = vld [vmem:[#allocation2 + $0xc04] sm:$0xf]  ;;  %v17283_v8 = vpack.c.bf16 %v77_v3, %v77_v3  ;;  %v78_v10 = vld [vmem:[%s17689_s0 + $0x18] sm:$0xff] }
  0x41   :  { %v16137_v11 = vld [vmem:[#allocation2 + $0x97c] sm:$0xf0]  ;;  %v16153_v37 = vld [vmem:[#allocation2 + $0xa04] sm:$0xf] }
  0x42   :  { %v12859_v12 = vld [vmem:[#allocation2 + $0x1100] sm:$0xf]  ;;  %v11836_v19 = vor.u32 %v16137_v11, %v11835_v9  ;;  %6305 = vmatpush.bf16.msra.mxu0 %v10812_v16  ;;  %v14400_v11 = vor.u32 %v16761_v62, %v14397_v63  ;;  %v16729_v16 = vld [vmem:[#allocation2 + $0x1c04] sm:$0xf] }
  0x43   :  { %v16393_v13 = vld [vmem:[#allocation2 + $0x117c] sm:$0xf0]  ;;  %v14013_v43 = vld [vmem:[#allocation2 + $0x1a80] sm:$0xf0] }
  0x44   :  { %v13883_v14 = vld [vmem:[#allocation2 + $0x1900] sm:$0xf]  ;;  %v12860_v20 = vor.u32 %v16393_v13, %v12859_v12  ;;  %6318 = vmatpush.bf16.msra.mxu1 %v11836_v19  ;;  %v12221_v12 = vld [vmem:[#allocation2 + $0xc80] sm:$0xf0]  ;;  %v76_v19 = vld [vmem:[%s17689_s0 + $0x8] sm:$0xff] }
  0x45   :  { %v16649_v15 = vld [vmem:[#allocation2 + $0x197c] sm:$0xf0]  ;;  %v16473_v13 = vld [vmem:[#allocation2 + $0x1404] sm:$0xf] }
  0x46   :  { %v10683_v17 = vld [vmem:[#allocation2] sm:$0xf]  ;;  %v13884_v24 = vor.u32 %v16649_v15, %v13883_v14  ;;  %6331 = vmatpush.bf16.msra.mxu2 %v12860_v20  ;;  %v13245_v14 = vld [vmem:[#allocation2 + $0x1480] sm:$0xf0]  ;;  %v17290_v15 = vpack.c.bf16 %v78_v10, %v78_v10  ;;  %v12224_v20 = vor.u32 %v16217_v7, %v12221_v12  ;;  %v16330_v10 = vld [vmem:[#allocation2 + $0xf84] sm:$0xf0] }
  0x47   :  { %v15849_v18 = vld [vmem:[#allocation2 + $0x7c] sm:$0xf0]  ;;  %v15865_v47 = vld [vmem:[#allocation2 + $0x104] sm:$0xf]  ;;  %v16586_v12 = vld [vmem:[#allocation2 + $0x1784] sm:$0xf0] }
  0x48   :  { %v11707_v21 = vld [vmem:[#allocation2 + $0x800] sm:$0xf]  ;;  %v10684_v31 = vor.u32 %v15849_v18, %v10683_v17  ;;  %6344 = vmatpush.bf16.msra.mxu3 %v13884_v24  ;;  %v14269_v17 = vld [vmem:[#allocation2 + $0x1c80] sm:$0xf0]  ;;  %v11200_v18 = vor.u32 %v15961_v2, %v11197_v6  ;;  %v12611_v6 = vld [vmem:[#allocation2 + $0xf08] sm:$0xf] }
  0x49   :  { %v16105_v22 = vld [vmem:[#allocation2 + $0x87c] sm:$0xf0]  ;;  %v16185_v24 = vld [vmem:[#allocation2 + $0xb04] sm:$0xf] }
  0x4a   :  { %v12731_v23 = vld [vmem:[#allocation2 + $0x1000] sm:$0xf]  ;;  %v11708_v35 = vor.u32 %v16105_v22, %v11707_v21  ;;  %6306 = vmatpush.bf16.msra.mxu0 %v10684_v31  ;;  %v13248_v21 = vor.u32 %v16473_v13, %v13245_v14  ;;  %v15929_v22 = vld [vmem:[#allocation2 + $0x304] sm:$0xf] }
  0x4b   :  { %v16361_v25 = vld [vmem:[#allocation2 + $0x107c] sm:$0xf0]  ;;  %v14141_v31 = vld [vmem:[#allocation2 + $0x1b80] sm:$0xf0] }
  0x4c   :  { %v13755_v26 = vld [vmem:[#allocation2 + $0x1800] sm:$0xf]  ;;  %v12732_v36 = vor.u32 %v16361_v25, %v12731_v23  ;;  %6319 = vmatpush.bf16.msra.mxu1 %v11708_v35  ;;  %v11069_v23 = vld [vmem:[#allocation2 + $0x380] sm:$0xf0]  ;;  %v17298_v25 = vpack.c.bf16 %v76_v19, %v76_v19  ;;  %v14144_v38 = vor.u32 %v16697_v30, %v14141_v31  ;;  %v14531_v30 = vld [vmem:[#allocation2 + $0x1e08] sm:$0xf] }
  0x4d   :  { %v16617_v27 = vld [vmem:[#allocation2 + $0x187c] sm:$0xf0]  ;;  %v11072_v32 = vor.u32 %v15929_v22, %v11069_v23  ;;  %v15897_v35 = vld [vmem:[#allocation2 + $0x204] sm:$0xf]  ;;  %v11459_v22 = vld [vmem:[#allocation2 + $0x608] sm:$0xf] }
  0x4e   :  { %v13756_v39 = vor.u32 %v16617_v27, %v13755_v26  ;;  %6332 = vmatpush.bf16.msra.mxu2 %v12732_v36  ;;  %6351 = vmatpush.bf16.msrb.mxu0 %v11584_v40  ;;  %v75_v4 = vld [vmem:[%s17689_s0] sm:$0xff]  ;;  %v14272_v26 = vor.u32 %v16729_v16, %v14269_v17  ;;  %v14659_v16 = vld [vmem:[#allocation2 + $0x1f08] sm:$0xf] }
  0x4f   :  { %v17285_v9 = vpack.c.bf16 %v75_v4, %v75_v4  ;;  %v12093_v27 = vld [vmem:[#allocation2 + $0xb80] sm:$0xf0]  ;;  %6320 = vmatmul.bf16.vlgmr.msra.gmra.mxu1 %v17298_v25  ;;  %v11587_v4 = vld [vmem:[#allocation2 + $0x708] sm:$0xf] }
  0x50   :  { %6345 = vmatpush.bf16.msra.mxu3 %v13756_v39  ;;  %6364 = vmatpush.bf16.msrb.mxu1 %v12608_v41  ;;  %v12096_v33 = vor.u32 %v16185_v24, %v12093_v27  ;;  %v10941_v36 = vld [vmem:[#allocation2 + $0x280] sm:$0xf0]  ;;  %v16842_v17 = vld [vmem:[#allocation2 + $0x1f84] sm:$0xf0] }
  0x51   :  { %6333 = vmatmul.bf16.vlgmr.msra.gmra.mxu2 %v17283_v8  ;;  %6307 = vmatmul.bf16.vlgmr.msra.gmra.mxu0 %v17285_v9  ;;  %v11965_v39 = vld [vmem:[#allocation2 + $0xa80] sm:$0xf0]  ;;  %v10944_v44 = vor.u32 %v15897_v35, %v10941_v36  ;;  %v16042_v23 = vld [vmem:[#allocation2 + $0x684] sm:$0xf0] }
  0x52   :  { %6377 = vmatpush.bf16.msrb.mxu2 %v13632_v42  ;;  %6352 = vmatpush.bf16.msrb.mxu0 %v11456_v52  ;;  %v16409_v40 = vld [vmem:[#allocation2 + $0x1204] sm:$0xf]  ;;  %v11968_v45 = vor.u32 %v16153_v37, %v11965_v39  ;;  %v12483_v24 = vld [vmem:[#allocation2 + $0xe08] sm:$0xf] }
  0x53   :  { %6346 = vmatmul.bf16.vlgmr.msra.gmra.mxu3 %v17290_v15  ;;  %v12989_v41 = vld [vmem:[#allocation2 + $0x1280] sm:$0xf0]  ;;  %v16298_v27 = vld [vmem:[#allocation2 + $0xe84] sm:$0xf0] }
  0x54   :  { %6390 = vmatpush.bf16.msrb.mxu3 %v14656_v46  ;;  %6365 = vmatpush.bf16.msrb.mxu1 %v12480_v54  ;;  %v16665_v42 = vld [vmem:[#allocation2 + $0x1a04] sm:$0xf]  ;;  %v12992_v46 = vor.u32 %v16409_v40, %v12989_v41  ;;  %v16810_v31 = vld [vmem:[#allocation2 + $0x1e84] sm:$0xf0] }
  0x55   :  { %v10813_v48 = vld [vmem:[#allocation2 + $0x180] sm:$0xf0]  ;;  %v14016_v50 = vor.u32 %v16665_v42, %v14013_v43  ;;  %v11331_v35 = vld [vmem:[#allocation2 + $0x508] sm:$0xf] }
  0x56   :  { %6378 = vmatpush.bf16.msrb.mxu2 %v13504_v55  ;;  %6353 = vmatpush.bf16.msrb.mxu0 %v11328_v0  ;;  %v16121_v49 = vld [vmem:[#allocation2 + $0x904] sm:$0xf]  ;;  %v10816_v56 = vor.u32 %v15865_v47, %v10813_v48  ;;  %v16010_v36 = vld [vmem:[#allocation2 + $0x584] sm:$0xf0] }
  0x57   :  { %v11837_v51 = vld [vmem:[#allocation2 + $0x980] sm:$0xf0]  ;;  %v12355_v37 = vld [vmem:[#allocation2 + $0xd08] sm:$0xf] }
  0x58   :  { %6391 = vmatpush.bf16.msrb.mxu3 %v14528_v59  ;;  %6366 = vmatpush.bf16.msrb.mxu1 %v12352_v1  ;;  %v16377_v52 = vld [vmem:[#allocation2 + $0x1104] sm:$0xf]  ;;  %v11840_v59 = vor.u32 %v16121_v49, %v11837_v51  ;;  %v16266_v39 = vld [vmem:[#allocation2 + $0xd84] sm:$0xf0] }
  0x59   :  { %v12861_v53 = vld [vmem:[#allocation2 + $0x1180] sm:$0xf0]  ;;  %v13379_v40 = vld [vmem:[#allocation2 + $0x1508] sm:$0xf] }
  0x5a   :  { %6379 = vmatpush.bf16.msrb.mxu2 %v13376_v5  ;;  %6354 = vmatpush.bf16.msrb.mxu0 %v11200_v18  ;;  %v16633_v54 = vld [vmem:[#allocation2 + $0x1904] sm:$0xf]  ;;  %v12864_v60 = vor.u32 %v16377_v52, %v12861_v53  ;;  %v16074_v5 = vld [vmem:[#allocation2 + $0x784] sm:$0xf0] }
  0x5b   :  { %v13885_v55 = vld [vmem:[#allocation2 + $0x1980] sm:$0xf0]  ;;  %v11588_v19 = vor.u32 %v16074_v5, %v11587_v4  ;;  %v16522_v41 = vld [vmem:[#allocation2 + $0x1584] sm:$0xf0] }
  0x5c   :  { %6392 = vmatpush.bf16.msrb.mxu3 %v14400_v11  ;;  %6367 = vmatpush.bf16.msrb.mxu1 %v12224_v20  ;;  %v15833_v57 = vld [vmem:[#allocation2 + $0x4] sm:$0xf]  ;;  %v13888_v0 = vor.u32 %v16633_v54, %v13885_v55  ;;  %v13635_v11 = vld [vmem:[#allocation2 + $0x1708] sm:$0xf]  ;;  %v12612_v20 = vor.u32 %v16330_v10, %v12611_v6 }
  0x5d   :  { %v10685_v58 = vld [vmem:[#allocation2 + $0x80] sm:$0xf0]  ;;  %v14403_v42 = vld [vmem:[#allocation2 + $0x1d08] sm:$0xf] }
  0x5e   :  { %6380 = vmatpush.bf16.msrb.mxu2 %v13248_v21  ;;  %6355 = vmatpush.bf16.msrb.mxu0 %v11072_v32  ;;  %v16089_v61 = vld [vmem:[#allocation2 + $0x804] sm:$0xf]  ;;  %v10688_v7 = vor.u32 %v15833_v57, %v10685_v58  ;;  %v13636_v21 = vor.u32 %v16586_v12, %v13635_v11  ;;  %v11460_v32 = vor.u32 %v16042_v23, %v11459_v22  ;;  %v16778_v43 = vld [vmem:[#allocation2 + $0x1d84] sm:$0xf0] }
  0x5f   :  { %v11709_v62 = vld [vmem:[#allocation2 + $0x880] sm:$0xf0]  ;;  %v11203_v47 = vld [vmem:[#allocation2 + $0x408] sm:$0xf] }
  0x60   :  { %6393 = vmatpush.bf16.msrb.mxu3 %v14272_v26  ;;  %6368 = vmatpush.bf16.msrb.mxu1 %v12096_v33  ;;  %v16345_v63 = vld [vmem:[#allocation2 + $0x1004] sm:$0xf]  ;;  %v11712_v13 = vor.u32 %v16089_v61, %v11709_v62  ;;  %v14660_v26 = vor.u32 %v16842_v17, %v14659_v16  ;;  %v12484_v33 = vor.u32 %v16298_v27, %v12483_v24  ;;  %v15978_v48 = vld [vmem:[#allocation2 + $0x484] sm:$0xf0] }
  0x61   :  { %v12733_v1 = vld [vmem:[#allocation2 + $0x1080] sm:$0xf0]  ;;  %v12227_v49 = vld [vmem:[#allocation2 + $0xc08] sm:$0xf] }
  0x62   :  { %6381 = vmatpush.bf16.msrb.mxu2 %v13120_v34  ;;  %6356 = vmatpush.bf16.msrb.mxu0 %v10944_v44  ;;  %v16601_v2 = vld [vmem:[#allocation2 + $0x1804] sm:$0xf]  ;;  %v12736_v14 = vor.u32 %v16345_v63, %v12733_v1  ;;  %v13508_v34 = vor.u32 %v16554_v29, %v13507_v28  ;;  %v11332_v44 = vor.u32 %v16010_v36, %v11331_v35  ;;  %v16234_v51 = vld [vmem:[#allocation2 + $0xc84] sm:$0xf0] }
  0x63   :  { %v13757_v3 = vld [vmem:[#allocation2 + $0x1880] sm:$0xf0]  ;;  %v13251_v52 = vld [vmem:[#allocation2 + $0x1408] sm:$0xf]  ;;  %v12228_v57 = vor.u32 %v16234_v51, %v12227_v49  ;;  %v16570_v49 = vld [vmem:[#allocation2 + $0x170c] sm:$0xf] }
  0x64   :  { %6394 = vmatpush.bf16.msrb.mxu3 %v14144_v38  ;;  %6369 = vmatpush.bf16.msrb.mxu1 %v11968_v45  ;;  %v13760_v18 = vor.u32 %v16601_v2, %v13757_v3  ;;  %v14532_v38 = vor.u32 %v16810_v31, %v14531_v30  ;;  %v12356_v45 = vor.u32 %v16266_v39, %v12355_v37  ;;  %v16490_v53 = vld [vmem:[#allocation2 + $0x1484] sm:$0xf0] }
  0x65   :  { %v14275_v54 = vld [vmem:[#allocation2 + $0x1c08] sm:$0xf]  ;;  %v13252_v58 = vor.u32 %v16490_v53, %v13251_v52  ;;  %v16826_v53 = vld [vmem:[#allocation2 + $0x1f0c] sm:$0xf] }
  0x66   :  { %6382 = vmatpush.bf16.msrb.mxu2 %v12992_v46  ;;  %6357 = vmatpush.bf16.msrb.mxu0 %v10816_v56  ;;  %v13380_v46 = vor.u32 %v16522_v41, %v13379_v40  ;;  %v16746_v55 = vld [vmem:[#allocation2 + $0x1c84] sm:$0xf0]  ;;  %v11204_v56 = vor.u32 %v15978_v48, %v11203_v47  ;;  %v12613_v48 = vld [vmem:[#allocation2 + $0xf88] sm:$0xf0] }
  0x67   :  { %v12099_v61 = vld [vmem:[#allocation2 + $0xb08] sm:$0xf]  ;;  %v14276_v62 = vor.u32 %v16746_v55, %v14275_v54  ;;  %v14661_v54 = vld [vmem:[#allocation2 + $0x1f88] sm:$0xf0] }
  0x68   :  { %6395 = vmatpush.bf16.msrb.mxu3 %v14016_v50  ;;  %6370 = vmatpush.bf16.msrb.mxu1 %v11840_v59  ;;  %v14404_v50 = vor.u32 %v16778_v43, %v14403_v42  ;;  %v11075_v59 = vld [vmem:[#allocation2 + $0x308] sm:$0xf] }
  0x69   :  { %v16202_v63 = vld [vmem:[#allocation2 + $0xb84] sm:$0xf0] }
  0x6a   :  { %6383 = vmatpush.bf16.msrb.mxu2 %v12864_v60  ;;  %6358 = vmatpush.bf16.msrb.mxu0 %v10688_v7  ;;  %v15946_v60 = vld [vmem:[#allocation2 + $0x384] sm:$0xf0]  ;;  %v12100_v5 = vor.u32 %v16202_v63, %v12099_v61  ;;  %v16282_v61 = vld [vmem:[#allocation2 + $0xe0c] sm:$0xf] }
  0x6b   :  { %v16458_v1 = vld [vmem:[#allocation2 + $0x1384] sm:$0xf0]  ;;  %v11076_v4 = vor.u32 %v15946_v60, %v11075_v59  ;;  %v16026_v59 = vld [vmem:[#allocation2 + $0x60c] sm:$0xf] }
  0x6c   :  { %6396 = vmatpush.bf16.msrb.mxu3 %v13888_v0  ;;  %6371 = vmatpush.bf16.msrb.mxu1 %v11712_v13  ;;  %v13123_v0 = vld [vmem:[#allocation2 + $0x1308] sm:$0xf]  ;;  %v11461_v60 = vld [vmem:[#allocation2 + $0x688] sm:$0xf0] }
  0x6d   :  { %6359 = vmatmul.bf16.vlgmr.msrb.gmra.mxu0 %v17285_v9  ;;  %v14147_v2 = vld [vmem:[#allocation2 + $0x1b08] sm:$0xf]  ;;  %v13124_v6 = vor.u32 %v16458_v1, %v13123_v0  ;;  %v12485_v63 = vld [vmem:[#allocation2 + $0xe88] sm:$0xf0] }
  0x6e   :  { %6384 = vmatpush.bf16.msrb.mxu2 %v12736_v14  ;;  %6403 = vmatpush.bf16.msra.mxu0 %v11588_v19  ;;  %v16714_v3 = vld [vmem:[#allocation2 + $0x1b84] sm:$0xf0]  ;;  %v16538_v0 = vld [vmem:[#allocation2 + $0x160c] sm:$0xf] }
  0x6f   :  { %6372 = vmatmul.bf16.vlgmr.msrb.gmra.mxu1 %v17298_v25  ;;  %v10947_v7 = vld [vmem:[#allocation2 + $0x208] sm:$0xf]  ;;  %v14148_v12 = vor.u32 %v16714_v3, %v14147_v2  ;;  %v13509_v1 = vld [vmem:[#allocation2 + $0x1688] sm:$0xf0] }
  0x70   :  { %6397 = vmatpush.bf16.msrb.mxu3 %v13760_v18  ;;  %6416 = vmatpush.bf16.msra.mxu1 %v12612_v20  ;;  %v15914_v10 = vld [vmem:[#allocation2 + $0x284] sm:$0xf0]  ;;  %v16794_v2 = vld [vmem:[#allocation2 + $0x1e0c] sm:$0xf] }
  0x71   :  { %6385 = vmatmul.bf16.vlgmr.msrb.gmra.mxu2 %v17283_v8  ;;  %v11971_v11 = vld [vmem:[#allocation2 + $0xa08] sm:$0xf]  ;;  %v10948_v19 = vor.u32 %v15914_v10, %v10947_v7  ;;  %v14533_v3 = vld [vmem:[#allocation2 + $0x1e88] sm:$0xf0] }
  0x72   :  { %6429 = vmatpush.bf16.msra.mxu2 %v13636_v21  ;;  %6404 = vmatpush.bf16.msra.mxu0 %v11460_v32  ;;  %v16170_v13 = vld [vmem:[#allocation2 + $0xa84] sm:$0xf0]  ;;  %v15994_v7 = vld [vmem:[#allocation2 + $0x50c] sm:$0xf] }
  0x73   :  { %6398 = vmatmul.bf16.vlgmr.msrb.gmra.mxu3 %v17290_v15  ;;  %v12995_v14 = vld [vmem:[#allocation2 + $0x1208] sm:$0xf]  ;;  %v11972_v20 = vor.u32 %v16170_v13, %v11971_v11  ;;  %v11333_v10 = vld [vmem:[#allocation2 + $0x588] sm:$0xf0] }
  0x74   :  { %6442 = vmatpush.bf16.msra.mxu3 %v14660_v26  ;;  %6417 = vmatpush.bf16.msra.mxu1 %v12484_v33  ;;  %v16426_v16 = vld [vmem:[#allocation2 + $0x1284] sm:$0xf0]  ;;  %v16250_v11 = vld [vmem:[#allocation2 + $0xd0c] sm:$0xf] }
  0x75   :  { %v14019_v17 = vld [vmem:[#allocation2 + $0x1a08] sm:$0xf]  ;;  %v12996_v21 = vor.u32 %v16426_v16, %v12995_v14  ;;  %v12357_v13 = vld [vmem:[#allocation2 + $0xd88] sm:$0xf0] }
  0x76   :  { %6430 = vmatpush.bf16.msra.mxu2 %v13508_v34  ;;  %6405 = vmatpush.bf16.msra.mxu0 %v11332_v44  ;;  %v16682_v18 = vld [vmem:[#allocation2 + $0x1a84] sm:$0xf0]  ;;  %v16058_v44 = vld [vmem:[#allocation2 + $0x70c] sm:$0xf] }
  0x77   :  { %v10819_v22 = vld [vmem:[#allocation2 + $0x108] sm:$0xf]  ;;  %v14020_v26 = vor.u32 %v16682_v18, %v14019_v17  ;;  %v16506_v14 = vld [vmem:[#allocation2 + $0x150c] sm:$0xf] }
  0x78   :  { %6443 = vmatpush.bf16.msra.mxu3 %v14532_v38  ;;  %6418 = vmatpush.bf16.msra.mxu1 %v12356_v45  ;;  %v15882_v23 = vld [vmem:[#allocation2 + $0x184] sm:$0xf0]  ;;  %v11589_v45 = vld [vmem:[#allocation2 + $0x788] sm:$0xf0] }
  0x79   :  { %v11843_v24 = vld [vmem:[#allocation2 + $0x908] sm:$0xf]  ;;  %v10820_v32 = vor.u32 %v15882_v23, %v10819_v22  ;;  %v13381_v16 = vld [vmem:[#allocation2 + $0x1588] sm:$0xf0] }
  0x7a   :  { %6431 = vmatpush.bf16.msra.mxu2 %v13380_v46  ;;  %6406 = vmatpush.bf16.msra.mxu0 %v11204_v56  ;;  %v16138_v27 = vld [vmem:[#allocation2 + $0x984] sm:$0xf0]  ;;  %v16314_v46 = vld [vmem:[#allocation2 + $0xf0c] sm:$0xf]  ;;  %v11592_v56 = vor.u32 %v16058_v44, %v11589_v45 }
  0x7b   :  { %v12867_v28 = vld [vmem:[#allocation2 + $0x1108] sm:$0xf]  ;;  %v11844_v35 = vor.u32 %v16138_v27, %v11843_v24  ;;  %v16762_v17 = vld [vmem:[#allocation2 + $0x1d0c] sm:$0xf] }
  0x7c   :  { %6444 = vmatpush.bf16.msra.mxu3 %v14404_v50  ;;  %6419 = vmatpush.bf16.msra.mxu1 %v12228_v57  ;;  %v16394_v29 = vld [vmem:[#allocation2 + $0x1184] sm:$0xf0]  ;;  %v13637_v50 = vld [vmem:[#allocation2 + $0x1788] sm:$0xf0]  ;;  %v12616_v57 = vor.u32 %v16314_v46, %v12613_v48 }
  0x7d   :  { %v13891_v30 = vld [vmem:[#allocation2 + $0x1908] sm:$0xf]  ;;  %v12868_v36 = vor.u32 %v16394_v29, %v12867_v28  ;;  %v14405_v18 = vld [vmem:[#allocation2 + $0x1d88] sm:$0xf0] }
  0x7e   :  { %6432 = vmatpush.bf16.msra.mxu2 %v13252_v58  ;;  %6407 = vmatpush.bf16.msra.mxu0 %v11076_v4  ;;  %v16650_v31 = vld [vmem:[#allocation2 + $0x1984] sm:$0xf0]  ;;  %v13640_v58 = vor.u32 %v16570_v49, %v13637_v50  ;;  %v11464_v4 = vor.u32 %v16026_v59, %v11461_v60  ;;  %v15962_v22 = vld [vmem:[#allocation2 + $0x40c] sm:$0xf] }
  0x7f   :  { %v10691_v33 = vld [vmem:[#allocation2 + $0x8] sm:$0xf]  ;;  %v13892_v40 = vor.u32 %v16650_v31, %v13891_v30  ;;  %v11205_v23 = vld [vmem:[#allocation2 + $0x488] sm:$0xf0] }
  0x80   :  { %6445 = vmatpush.bf16.msra.mxu3 %v14276_v62  ;;  %6420 = vmatpush.bf16.msra.mxu1 %v12100_v5  ;;  %v15850_v34 = vld [vmem:[#allocation2 + $0x84] sm:$0xf0]  ;;  %v14664_v62 = vor.u32 %v16826_v53, %v14661_v54  ;;  %v12488_v5 = vor.u32 %v16282_v61, %v12485_v63  ;;  %v16218_v24 = vld [vmem:[#allocation2 + $0xc0c] sm:$0xf] }
  0x81   :  { %v11715_v37 = vld [vmem:[#allocation2 + $0x808] sm:$0xf]  ;;  %v10692_v47 = vor.u32 %v15850_v34, %v10691_v33  ;;  %v12229_v27 = vld [vmem:[#allocation2 + $0xc88] sm:$0xf0] }
  0x82   :  { %6433 = vmatpush.bf16.msra.mxu2 %v13124_v6  ;;  %6408 = vmatpush.bf16.msra.mxu0 %v10948_v19  ;;  %v16106_v38 = vld [vmem:[#allocation2 + $0x884] sm:$0xf0]  ;;  %v13512_v6 = vor.u32 %v16538_v0, %v13509_v1  ;;  %v11336_v19 = vor.u32 %v15994_v7, %v11333_v10  ;;  %v16474_v28 = vld [vmem:[#allocation2 + $0x140c] sm:$0xf]  ;;  %v12232_v33 = vor.u32 %v16218_v24, %v12229_v27  ;;  %v13643_v24 = vld [vmem:[#allocation2 + $0x1710] sm:$0xf] }
  0x83   :  { %v12739_v39 = vld [vmem:[#allocation2 + $0x1008] sm:$0xf]  ;;  %v11716_v51 = vor.u32 %v16106_v38, %v11715_v37  ;;  %v13253_v29 = vld [vmem:[#allocation2 + $0x1488] sm:$0xf0] }
  0x84   :  { %6446 = vmatpush.bf16.msra.mxu3 %v14148_v12  ;;  %6421 = vmatpush.bf16.msra.mxu1 %v11972_v20  ;;  %v16362_v41 = vld [vmem:[#allocation2 + $0x1084] sm:$0xf0]  ;;  %v14536_v12 = vor.u32 %v16794_v2, %v14533_v3  ;;  %v12360_v20 = vor.u32 %v16250_v11, %v12357_v13  ;;  %v16730_v30 = vld [vmem:[#allocation2 + $0x1c0c] sm:$0xf]  ;;  %v13256_v34 = vor.u32 %v16474_v28, %v13253_v29  ;;  %v14667_v29 = vld [vmem:[#allocation2 + $0x1f10] sm:$0xf] }
  0x85   :  { %v13763_v42 = vld [vmem:[#allocation2 + $0x1808] sm:$0xf]  ;;  %v12740_v52 = vor.u32 %v16362_v41, %v12739_v39  ;;  %v14277_v31 = vld [vmem:[#allocation2 + $0x1c88] sm:$0xf0] }
  0x86   :  { %6434 = vmatpush.bf16.msra.mxu2 %v12996_v21  ;;  %v16618_v43 = vld [vmem:[#allocation2 + $0x1884] sm:$0xf0]  ;;  %6409 = vmatpush.bf16.msra.mxu0 %v10820_v32  ;;  %v13384_v21 = vor.u32 %v16506_v14, %v13381_v16  ;;  %v11208_v32 = vor.u32 %v15962_v22, %v11205_v23  ;;  %v16186_v37 = vld [vmem:[#allocation2 + $0xb0c] sm:$0xf]  ;;  %v14280_v38 = vor.u32 %v16730_v30, %v14277_v31  ;;  %v16331_v23 = vld [vmem:[#allocation2 + $0xf8c] sm:$0xf0] }
  0x87   :  { %v13764_v55 = vor.u32 %v16618_v43, %v13763_v42  ;;  %v12101_v39 = vld [vmem:[#allocation2 + $0xb88] sm:$0xf0]  ;;  %v16843_v30 = vld [vmem:[#allocation2 + $0x1f8c] sm:$0xf0] }
  0x88   :  { %6447 = vmatpush.bf16.msra.mxu3 %v14020_v26  ;;  %6422 = vmatpush.bf16.msra.mxu1 %v11844_v35  ;;  %v14408_v26 = vor.u32 %v16762_v17, %v14405_v18  ;;  %v15930_v35 = vld [vmem:[#allocation2 + $0x30c] sm:$0xf]  ;;  %v12104_v45 = vor.u32 %v16186_v37, %v12101_v39  ;;  %v12491_v37 = vld [vmem:[#allocation2 + $0xe10] sm:$0xf] }
  0x89   :  { %v13125_v41 = vld [vmem:[#allocation2 + $0x1388] sm:$0xf0]  ;;  %v16299_v39 = vld [vmem:[#allocation2 + $0xe8c] sm:$0xf0] }
  0x8a   :  { %6435 = vmatpush.bf16.msra.mxu2 %v12868_v36  ;;  %6410 = vmatpush.bf16.msra.mxu0 %v10692_v47  ;;  %v11077_v36 = vld [vmem:[#allocation2 + $0x388] sm:$0xf0] }
  0x8b   :  { %v16698_v42 = vld [vmem:[#allocation2 + $0x1b0c] sm:$0xf]  ;;  %v11080_v44 = vor.u32 %v15930_v35, %v11077_v36  ;;  %v11467_v35 = vld [vmem:[#allocation2 + $0x610] sm:$0xf] }
  0x8c   :  { %6448 = vmatpush.bf16.msra.mxu3 %v13892_v40  ;;  %6423 = vmatpush.bf16.msra.mxu1 %v11716_v51  ;;  %v16442_v40 = vld [vmem:[#allocation2 + $0x130c] sm:$0xf]  ;;  %v16043_v36 = vld [vmem:[#allocation2 + $0x68c] sm:$0xf0] }
  0x8d   :  { %6411 = vmatmul.bf16.vlgmr.msra.gmra.mxu0 %v17285_v9  ;;  %v14149_v43 = vld [vmem:[#allocation2 + $0x1b88] sm:$0xf0]  ;;  %v13128_v46 = vor.u32 %v16442_v40, %v13125_v41  ;;  %v13515_v40 = vld [vmem:[#allocation2 + $0x1610] sm:$0xf] }
  0x8e   :  { %6436 = vmatpush.bf16.msra.mxu2 %v12740_v52  ;;  %6455 = vmatpush.bf16.msrb.mxu0 %v11592_v56  ;;  %v15898_v47 = vld [vmem:[#allocation2 + $0x20c] sm:$0xf]  ;;  %v14152_v50 = vor.u32 %v16698_v42, %v14149_v43  ;;  %v16555_v41 = vld [vmem:[#allocation2 + $0x168c] sm:$0xf0] }
  0x8f   :  { %6424 = vmatmul.bf16.vlgmr.msra.gmra.mxu1 %v17298_v25  ;;  %v10949_v48 = vld [vmem:[#allocation2 + $0x288] sm:$0xf0]  ;;  %v14539_v42 = vld [vmem:[#allocation2 + $0x1e10] sm:$0xf] }
  0x90   :  { %6449 = vmatpush.bf16.msra.mxu3 %v13764_v55  ;;  %6468 = vmatpush.bf16.msrb.mxu1 %v12616_v57  ;;  %v16154_v49 = vld [vmem:[#allocation2 + $0xa0c] sm:$0xf]  ;;  %v10952_v56 = vor.u32 %v15898_v47, %v10949_v48  ;;  %v16811_v43 = vld [vmem:[#allocation2 + $0x1e8c] sm:$0xf0] }
  0x91   :  { %6437 = vmatmul.bf16.vlgmr.msra.gmra.mxu2 %v17283_v8  ;;  %v11973_v51 = vld [vmem:[#allocation2 + $0xa88] sm:$0xf0]  ;;  %v11339_v47 = vld [vmem:[#allocation2 + $0x510] sm:$0xf] }
  0x92   :  { %6481 = vmatpush.bf16.msrb.mxu2 %v13640_v58  ;;  %6456 = vmatpush.bf16.msrb.mxu0 %v11464_v4  ;;  %v16410_v52 = vld [vmem:[#allocation2 + $0x120c] sm:$0xf]  ;;  %v11976_v57 = vor.u32 %v16154_v49, %v11973_v51  ;;  %v16011_v48 = vld [vmem:[#allocation2 + $0x58c] sm:$0xf0] }
  0x93   :  { %6450 = vmatmul.bf16.vlgmr.msra.gmra.mxu3 %v17290_v15  ;;  %v12997_v53 = vld [vmem:[#allocation2 + $0x1288] sm:$0xf0]  ;;  %v12363_v49 = vld [vmem:[#allocation2 + $0xd10] sm:$0xf] }
  0x94   :  { %6494 = vmatpush.bf16.msrb.mxu3 %v14664_v62  ;;  %6469 = vmatpush.bf16.msrb.mxu1 %v12488_v5  ;;  %v16666_v54 = vld [vmem:[#allocation2 + $0x1a0c] sm:$0xf]  ;;  %v13000_v58 = vor.u32 %v16410_v52, %v12997_v53  ;;  %v16267_v51 = vld [vmem:[#allocation2 + $0xd8c] sm:$0xf0] }
  0x95   :  { %v14021_v55 = vld [vmem:[#allocation2 + $0x1a88] sm:$0xf0]  ;;  %v13387_v52 = vld [vmem:[#allocation2 + $0x1510] sm:$0xf] }
  0x96   :  { %6482 = vmatpush.bf16.msrb.mxu2 %v13512_v6  ;;  %6457 = vmatpush.bf16.msrb.mxu0 %v11336_v19  ;;  %v15866_v59 = vld [vmem:[#allocation2 + $0x10c] sm:$0xf]  ;;  %v14024_v62 = vor.u32 %v16666_v54, %v14021_v55  ;;  %v11595_v19 = vld [vmem:[#allocation2 + $0x710] sm:$0xf] }
  0x97   :  { %v10821_v60 = vld [vmem:[#allocation2 + $0x188] sm:$0xf0]  ;;  %v16523_v53 = vld [vmem:[#allocation2 + $0x158c] sm:$0xf0] }
  0x98   :  { %6495 = vmatpush.bf16.msrb.mxu3 %v14536_v12  ;;  %6470 = vmatpush.bf16.msrb.mxu1 %v12360_v20  ;;  %v16122_v61 = vld [vmem:[#allocation2 + $0x90c] sm:$0xf]  ;;  %v10824_v4 = vor.u32 %v15866_v59, %v10821_v60  ;;  %v16075_v20 = vld [vmem:[#allocation2 + $0x78c] sm:$0xf0] }
  0x99   :  { %v11845_v63 = vld [vmem:[#allocation2 + $0x988] sm:$0xf0]  ;;  %v14411_v54 = vld [vmem:[#allocation2 + $0x1d10] sm:$0xf] }
  0x9a   :  { %6483 = vmatpush.bf16.msrb.mxu2 %v13384_v21  ;;  %6458 = vmatpush.bf16.msrb.mxu0 %v11208_v32  ;;  %v16378_v0 = vld [vmem:[#allocation2 + $0x110c] sm:$0xf]  ;;  %v11848_v7 = vor.u32 %v16122_v61, %v11845_v63  ;;  %v12619_v21 = vld [vmem:[#allocation2 + $0xf10] sm:$0xf]  ;;  %v11596_v32 = vor.u32 %v16075_v20, %v11595_v19 }
  0x9b   :  { %v12869_v1 = vld [vmem:[#allocation2 + $0x1188] sm:$0xf0]  ;;  %v16779_v55 = vld [vmem:[#allocation2 + $0x1d8c] sm:$0xf0] }
  0x9c   :  { %6496 = vmatpush.bf16.msrb.mxu3 %v14408_v26  ;;  %6471 = vmatpush.bf16.msrb.mxu1 %v12232_v33  ;;  %v16634_v2 = vld [vmem:[#allocation2 + $0x190c] sm:$0xf]  ;;  %v12872_v10 = vor.u32 %v16378_v0, %v12869_v1  ;;  %v16587_v26 = vld [vmem:[#allocation2 + $0x178c] sm:$0xf0]  ;;  %v12620_v33 = vor.u32 %v16331_v23, %v12619_v21 }
  0x9d   :  { %v13893_v3 = vld [vmem:[#allocation2 + $0x1988] sm:$0xf0]  ;;  %v11211_v59 = vld [vmem:[#allocation2 + $0x410] sm:$0xf] }
  0x9e   :  { %6484 = vmatpush.bf16.msrb.mxu2 %v13256_v34  ;;  %6459 = vmatpush.bf16.msrb.mxu0 %v11080_v44  ;;  %v15834_v5 = vld [vmem:[#allocation2 + $0xc] sm:$0xf]  ;;  %v13896_v14 = vor.u32 %v16634_v2, %v13893_v3  ;;  %v13644_v34 = vor.u32 %v16587_v26, %v13643_v24  ;;  %v11468_v44 = vor.u32 %v16043_v36, %v11467_v35  ;;  %v15979_v60 = vld [vmem:[#allocation2 + $0x48c] sm:$0xf0] }
  0x9f   :  { %v10693_v6 = vld [vmem:[#allocation2 + $0x88] sm:$0xf0]  ;;  %v12235_v61 = vld [vmem:[#allocation2 + $0xc10] sm:$0xf] }
  0xa0   :  { %6497 = vmatpush.bf16.msrb.mxu3 %v14280_v38  ;;  %6472 = vmatpush.bf16.msrb.mxu1 %v12104_v45  ;;  %v16090_v11 = vld [vmem:[#allocation2 + $0x80c] sm:$0xf]  ;;  %v10696_v22 = vor.u32 %v15834_v5, %v10693_v6  ;;  %v14668_v38 = vor.u32 %v16843_v30, %v14667_v29  ;;  %v12492_v45 = vor.u32 %v16299_v39, %v12491_v37  ;;  %v16235_v63 = vld [vmem:[#allocation2 + $0xc8c] sm:$0xf0] }
  0xa1   :  { %v11717_v12 = vld [vmem:[#allocation2 + $0x888] sm:$0xf0]  ;;  %v13259_v0 = vld [vmem:[#allocation2 + $0x1410] sm:$0xf]  ;;  %v12236_v5 = vor.u32 %v16235_v63, %v12235_v61  ;;  %v16571_v61 = vld [vmem:[#allocation2 + $0x1714] sm:$0xf] }
  0xa2   :  { %6485 = vmatpush.bf16.msrb.mxu2 %v13128_v46  ;;  %6460 = vmatpush.bf16.msrb.mxu0 %v10952_v56  ;;  %v16346_v13 = vld [vmem:[#allocation2 + $0x100c] sm:$0xf]  ;;  %v11720_v27 = vor.u32 %v16090_v11, %v11717_v12  ;;  %v13516_v46 = vor.u32 %v16555_v41, %v13515_v40  ;;  %v11340_v56 = vor.u32 %v16011_v48, %v11339_v47  ;;  %v16491_v1 = vld [vmem:[#allocation2 + $0x148c] sm:$0xf0] }
  0xa3   :  { %v12741_v16 = vld [vmem:[#allocation2 + $0x1088] sm:$0xf0]  ;;  %v14283_v2 = vld [vmem:[#allocation2 + $0x1c10] sm:$0xf]  ;;  %v13260_v6 = vor.u32 %v16491_v1, %v13259_v0  ;;  %v16827_v1 = vld [vmem:[#allocation2 + $0x1f14] sm:$0xf] }
  0xa4   :  { %6498 = vmatpush.bf16.msrb.mxu3 %v14152_v50  ;;  %6473 = vmatpush.bf16.msrb.mxu1 %v11976_v57  ;;  %v16602_v17 = vld [vmem:[#allocation2 + $0x180c] sm:$0xf]  ;;  %v12744_v28 = vor.u32 %v16346_v13, %v12741_v16  ;;  %v14540_v50 = vor.u32 %v16811_v43, %v14539_v42  ;;  %v12364_v57 = vor.u32 %v16267_v51, %v12363_v49  ;;  %v16747_v3 = vld [vmem:[#allocation2 + $0x1c8c] sm:$0xf0] }
  0xa5   :  { %v13765_v18 = vld [vmem:[#allocation2 + $0x1888] sm:$0xf0]  ;;  %v12107_v11 = vld [vmem:[#allocation2 + $0xb10] sm:$0xf]  ;;  %v14284_v12 = vor.u32 %v16747_v3, %v14283_v2  ;;  %v14669_v2 = vld [vmem:[#allocation2 + $0x1f90] sm:$0xf0] }
  0xa6   :  { %6486 = vmatpush.bf16.msrb.mxu2 %v13000_v58  ;;  %6461 = vmatpush.bf16.msrb.mxu0 %v10824_v4  ;;  %v13768_v31 = vor.u32 %v16602_v17, %v13765_v18  ;;  %v13388_v58 = vor.u32 %v16523_v53, %v13387_v52  ;;  %v11212_v4 = vor.u32 %v15979_v60, %v11211_v59  ;;  %v16203_v13 = vld [vmem:[#allocation2 + $0xb8c] sm:$0xf0]  ;;  %v12621_v60 = vld [vmem:[#allocation2 + $0xf90] sm:$0xf0] }
  0xa7   :  { %v16459_v16 = vld [vmem:[#allocation2 + $0x138c] sm:$0xf0]  ;;  %v12108_v20 = vor.u32 %v16203_v13, %v12107_v11  ;;  %v16283_v11 = vld [vmem:[#allocation2 + $0xe14] sm:$0xf] }
  0xa8   :  { %6499 = vmatpush.bf16.msrb.mxu3 %v14024_v62  ;;  %6474 = vmatpush.bf16.msrb.mxu1 %v11848_v7  ;;  %v14412_v62 = vor.u32 %v16779_v55, %v14411_v54  ;;  %v11083_v7 = vld [vmem:[#allocation2 + $0x310] sm:$0xf]  ;;  %v12493_v13 = vld [vmem:[#allocation2 + $0xe90] sm:$0xf0] }
  0xa9   :  { %v14155_v17 = vld [vmem:[#allocation2 + $0x1b10] sm:$0xf] }
  0xaa   :  { %6487 = vmatpush.bf16.msrb.mxu2 %v12872_v10  ;;  %6462 = vmatpush.bf16.msrb.mxu0 %v10696_v22  ;;  %v15947_v10 = vld [vmem:[#allocation2 + $0x38c] sm:$0xf0] }
  0xab   :  { %v16715_v18 = vld [vmem:[#allocation2 + $0x1b8c] sm:$0xf0]  ;;  %v11084_v19 = vor.u32 %v15947_v10, %v11083_v7  ;;  %v16027_v7 = vld [vmem:[#allocation2 + $0x614] sm:$0xf] }
  0xac   :  { %6500 = vmatpush.bf16.msrb.mxu3 %v13896_v14  ;;  %6475 = vmatpush.bf16.msrb.mxu1 %v11720_v27  ;;  %v13131_v14 = vld [vmem:[#allocation2 + $0x1310] sm:$0xf]  ;;  %v14156_v26 = vor.u32 %v16715_v18, %v14155_v17  ;;  %v11469_v10 = vld [vmem:[#allocation2 + $0x690] sm:$0xf0] }
  0xad   :  { %6463 = vmatmul.bf16.vlgmr.msrb.gmra.mxu0 %v17285_v9  ;;  %v13132_v21 = vor.u32 %v16459_v16, %v13131_v14  ;;  %v10955_v22 = vld [vmem:[#allocation2 + $0x210] sm:$0xf]  ;;  %v16539_v14 = vld [vmem:[#allocation2 + $0x1614] sm:$0xf] }
  0xae   :  { %6488 = vmatpush.bf16.msrb.mxu2 %v12744_v28  ;;  %6507 = vmatpush.bf16.msra.mxu0 %v11596_v32  ;;  %v15915_v23 = vld [vmem:[#allocation2 + $0x28c] sm:$0xf0]  ;;  %v13517_v16 = vld [vmem:[#allocation2 + $0x1690] sm:$0xf0] }
  0xaf   :  { %6476 = vmatmul.bf16.vlgmr.msrb.gmra.mxu1 %v17298_v25  ;;  %v11979_v24 = vld [vmem:[#allocation2 + $0xa10] sm:$0xf]  ;;  %v10956_v32 = vor.u32 %v15915_v23, %v10955_v22  ;;  %v16795_v17 = vld [vmem:[#allocation2 + $0x1e14] sm:$0xf] }
  0xb0   :  { %6501 = vmatpush.bf16.msrb.mxu3 %v13768_v31  ;;  %6520 = vmatpush.bf16.msra.mxu1 %v12620_v33  ;;  %v16171_v27 = vld [vmem:[#allocation2 + $0xa8c] sm:$0xf0]  ;;  %v14541_v18 = vld [vmem:[#allocation2 + $0x1e90] sm:$0xf0] }
  0xb1   :  { %6489 = vmatmul.bf16.vlgmr.msrb.gmra.mxu2 %v17283_v8  ;;  %v13003_v28 = vld [vmem:[#allocation2 + $0x1210] sm:$0xf]  ;;  %v11980_v33 = vor.u32 %v16171_v27, %v11979_v24  ;;  %v15995_v22 = vld [vmem:[#allocation2 + $0x514] sm:$0xf] }
  0xb2   :  { %6533 = vmatpush.bf16.msra.mxu2 %v13644_v34  ;;  %6508 = vmatpush.bf16.msra.mxu0 %v11468_v44  ;;  %v16427_v29 = vld [vmem:[#allocation2 + $0x128c] sm:$0xf0]  ;;  %v11341_v23 = vld [vmem:[#allocation2 + $0x590] sm:$0xf0] }
  0xb3   :  { %6502 = vmatmul.bf16.vlgmr.msrb.gmra.mxu3 %v17290_v15  ;;  %v14027_v30 = vld [vmem:[#allocation2 + $0x1a10] sm:$0xf]  ;;  %v13004_v34 = vor.u32 %v16427_v29, %v13003_v28  ;;  %v16251_v24 = vld [vmem:[#allocation2 + $0xd14] sm:$0xf] }
  0xb4   :  { %6546 = vmatpush.bf16.msra.mxu3 %v14668_v38  ;;  %6521 = vmatpush.bf16.msra.mxu1 %v12492_v45  ;;  %v16683_v31 = vld [vmem:[#allocation2 + $0x1a8c] sm:$0xf0]  ;;  %v12365_v27 = vld [vmem:[#allocation2 + $0xd90] sm:$0xf0] }
  0xb5   :  { %v10827_v35 = vld [vmem:[#allocation2 + $0x110] sm:$0xf]  ;;  %v14028_v38 = vor.u32 %v16683_v31, %v14027_v30  ;;  %v16507_v28 = vld [vmem:[#allocation2 + $0x1514] sm:$0xf] }
  0xb6   :  { %6534 = vmatpush.bf16.msra.mxu2 %v13516_v46  ;;  %6509 = vmatpush.bf16.msra.mxu0 %v11340_v56  ;;  %v15883_v36 = vld [vmem:[#allocation2 + $0x18c] sm:$0xf0]  ;;  %v16059_v56 = vld [vmem:[#allocation2 + $0x714] sm:$0xf] }
  0xb7   :  { %v11851_v37 = vld [vmem:[#allocation2 + $0x910] sm:$0xf]  ;;  %v10828_v44 = vor.u32 %v15883_v36, %v10827_v35  ;;  %v13389_v29 = vld [vmem:[#allocation2 + $0x1590] sm:$0xf0] }
  0xb8   :  { %6547 = vmatpush.bf16.msra.mxu3 %v14540_v50  ;;  %6522 = vmatpush.bf16.msra.mxu1 %v12364_v57  ;;  %v16139_v39 = vld [vmem:[#allocation2 + $0x98c] sm:$0xf0]  ;;  %v11597_v57 = vld [vmem:[#allocation2 + $0x790] sm:$0xf0]  ;;  %v13392_v35 = vor.u32 %v16507_v28, %v13389_v29 }
  0xb9   :  { %v12875_v40 = vld [vmem:[#allocation2 + $0x1110] sm:$0xf]  ;;  %v11852_v47 = vor.u32 %v16139_v39, %v11851_v37  ;;  %v16763_v30 = vld [vmem:[#allocation2 + $0x1d14] sm:$0xf] }
  0xba   :  { %6535 = vmatpush.bf16.msra.mxu2 %v13388_v58  ;;  %6510 = vmatpush.bf16.msra.mxu0 %v11212_v4  ;;  %v16395_v41 = vld [vmem:[#allocation2 + $0x118c] sm:$0xf0]  ;;  %v16315_v58 = vld [vmem:[#allocation2 + $0xf14] sm:$0xf]  ;;  %v11600_v4 = vor.u32 %v16059_v56, %v11597_v57 }
  0xbb   :  { %v13899_v42 = vld [vmem:[#allocation2 + $0x1910] sm:$0xf]  ;;  %v12876_v48 = vor.u32 %v16395_v41, %v12875_v40  ;;  %v14413_v31 = vld [vmem:[#allocation2 + $0x1d90] sm:$0xf0] }
  0xbc   :  { %6548 = vmatpush.bf16.msra.mxu3 %v14412_v62  ;;  %6523 = vmatpush.bf16.msra.mxu1 %v12236_v5  ;;  %v16651_v43 = vld [vmem:[#allocation2 + $0x198c] sm:$0xf0]  ;;  %v13645_v62 = vld [vmem:[#allocation2 + $0x1790] sm:$0xf0]  ;;  %v12624_v5 = vor.u32 %v16315_v58, %v12621_v60  ;;  %v14416_v39 = vor.u32 %v16763_v30, %v14413_v31 }
  0xbd   :  { %v10699_v45 = vld [vmem:[#allocation2 + $0x10] sm:$0xf]  ;;  %v13900_v52 = vor.u32 %v16651_v43, %v13899_v42  ;;  %v11213_v36 = vld [vmem:[#allocation2 + $0x490] sm:$0xf0]  ;;  %v17320_v42 = vld [vmem:[%s17691_s2] sm:$0xff] }
  0xbe   :  { %6536 = vmatpush.bf16.msra.mxu2 %v13260_v6  ;;  %6511 = vmatpush.bf16.msra.mxu0 %v11084_v19  ;;  %v15851_v46 = vld [vmem:[#allocation2 + $0x8c] sm:$0xf0]  ;;  %v13648_v6 = vor.u32 %v16571_v61, %v13645_v62  ;;  %v11472_v19 = vor.u32 %v16027_v7, %v11469_v10  ;;  %v16219_v37 = vld [vmem:[#allocation2 + $0xc14] sm:$0xf] }
  0xbf   :  { %v11723_v49 = vld [vmem:[#allocation2 + $0x810] sm:$0xf]  ;;  %v10700_v59 = vor.u32 %v15851_v46, %v10699_v45  ;;  %v16475_v40 = vld [vmem:[#allocation2 + $0x1414] sm:$0xf] }
  0xc0   :  { %6549 = vmatpush.bf16.msra.mxu3 %v14284_v12  ;;  %6524 = vmatpush.bf16.msra.mxu1 %v12108_v20  ;;  %v16107_v50 = vld [vmem:[#allocation2 + $0x88c] sm:$0xf0]  ;;  %v14672_v12 = vor.u32 %v16827_v1, %v14669_v2  ;;  %v12496_v20 = vor.u32 %v16283_v11, %v12493_v13  ;;  %v13261_v41 = vld [vmem:[#allocation2 + $0x1490] sm:$0xf0] }
  0xc1   :  { %v12747_v51 = vld [vmem:[#allocation2 + $0x1010] sm:$0xf]  ;;  %v11724_v63 = vor.u32 %v16107_v50, %v11723_v49  ;;  %v16731_v43 = vld [vmem:[#allocation2 + $0x1c14] sm:$0xf] }
  0xc2   :  { %6537 = vmatpush.bf16.msra.mxu2 %v13132_v21  ;;  %6512 = vmatpush.bf16.msra.mxu0 %v10956_v32  ;;  %v16363_v53 = vld [vmem:[#allocation2 + $0x108c] sm:$0xf0]  ;;  %v13520_v21 = vor.u32 %v16539_v14, %v13517_v16  ;;  %v11344_v32 = vor.u32 %v15995_v22, %v11341_v23  ;;  %v15931_v46 = vld [vmem:[#allocation2 + $0x314] sm:$0xf] }
  0xc3   :  { %v13771_v54 = vld [vmem:[#allocation2 + $0x1810] sm:$0xf]  ;;  %v12748_v0 = vor.u32 %v16363_v53, %v12747_v51  ;;  %v11085_v49 = vld [vmem:[#allocation2 + $0x390] sm:$0xf0]  ;;  %v1115_v51 = vperm.slane %v17320_v42, 0 }
  0xc4   :  { %6550 = vmatpush.bf16.msra.mxu3 %v14156_v26  ;;  %6525 = vmatpush.bf16.msra.mxu1 %v11980_v33  ;;  %v16619_v55 = vld [vmem:[#allocation2 + $0x188c] sm:$0xf0]  ;;  %v14544_v26 = vor.u32 %v16795_v17, %v14541_v18  ;;  %v15963_v33 = vld [vmem:[#allocation2 + $0x414] sm:$0xf]  ;;  %v11088_v58 = vor.u32 %v15931_v46, %v11085_v49  ;;  %v12627_v46 = vld [vmem:[#allocation2 + $0xf18] sm:$0xf] }
  0xc5   :  { %v13772_v3 = vor.u32 %v16619_v55, %v13771_v54  ;;  %v11216_v45 = vor.u32 %v15963_v33, %v11213_v36  ;;  %v16187_v50 = vld [vmem:[#allocation2 + $0xb14] sm:$0xf]  ;;  %v13651_v49 = vld [vmem:[#allocation2 + $0x1718] sm:$0xf] }
  0xc6   :  { %6538 = vmatpush.bf16.msra.mxu2 %v13004_v34  ;;  %6513 = vmatpush.bf16.msra.mxu0 %v10828_v44  ;;  %v12368_v34 = vor.u32 %v16251_v24, %v12365_v27  ;;  %v14285_v44 = vld [vmem:[#allocation2 + $0x1c90] sm:$0xf0] }
  0xc7   :  { %v12109_v53 = vld [vmem:[#allocation2 + $0xb90] sm:$0xf0] }
  0xc8   :  { %6551 = vmatpush.bf16.msra.mxu3 %v14028_v38  ;;  %6526 = vmatpush.bf16.msra.mxu1 %v11852_v47  ;;  %v12237_v38 = vld [vmem:[#allocation2 + $0xc90] sm:$0xf0]  ;;  %v12112_v60 = vor.u32 %v16187_v50, %v12109_v53  ;;  %v16588_v50 = vld [vmem:[#allocation2 + $0x1794] sm:$0xf0] }
  0xc9   :  { %v12240_v47 = vor.u32 %v16219_v37, %v12237_v38  ;;  %v16443_v54 = vld [vmem:[#allocation2 + $0x1314] sm:$0xf] }
  0xca   :  { %6539 = vmatpush.bf16.msra.mxu2 %v12876_v48  ;;  %6514 = vmatpush.bf16.msra.mxu0 %v10700_v59  ;;  %v13264_v48 = vor.u32 %v16475_v40, %v13261_v41  ;;  %v13133_v55 = vld [vmem:[#allocation2 + $0x1390] sm:$0xf0] }
  0xcb   :  { %v16699_v56 = vld [vmem:[#allocation2 + $0x1b14] sm:$0xf]  ;;  %v13136_v61 = vor.u32 %v16443_v54, %v13133_v55  ;;  %v14675_v54 = vld [vmem:[#allocation2 + $0x1f18] sm:$0xf] }
  0xcc   :  { %6552 = vmatpush.bf16.msra.mxu3 %v13900_v52  ;;  %6527 = vmatpush.bf16.msra.mxu1 %v11724_v63  ;;  %v14288_v52 = vor.u32 %v16731_v43, %v14285_v44  ;;  %v14157_v57 = vld [vmem:[#allocation2 + $0x1b90] sm:$0xf0]  ;;  %v6321_v11 = vpop.f32.mrf.mxu1  ;;  %v11603_v44 = vld [vmem:[#allocation2 + $0x718] sm:$0xf] }
  0xcd   :  { %6515 = vmatmul.bf16.vlgmr.msra.gmra.mxu0 %v17285_v9  ;;  %v15899_v62 = vld [vmem:[#allocation2 + $0x214] sm:$0xf]  ;;  %v14160_v2 = vor.u32 %v16699_v56, %v14157_v57  ;;  %v16844_v55 = vld [vmem:[#allocation2 + $0x1f94] sm:$0xf0] }
  0xce   :  { %6540 = vmatpush.bf16.msra.mxu2 %v12748_v0  ;;  %6559 = vmatpush.bf16.msrb.mxu0 %v11600_v4  ;;  %v6308_v59 = vpop.f32.mrf.mxu0  ;;  %v10957_v63 = vld [vmem:[#allocation2 + $0x290] sm:$0xf0] }
  0xcf   :  { %6528 = vmatmul.bf16.vlgmr.msra.gmra.mxu1 %v17298_v25  ;;  %v16155_v0 = vld [vmem:[#allocation2 + $0xa14] sm:$0xf]  ;;  %v6309_v1 = vadd.f32 %v6308_v59, %v1115_v51  ;;  %v10960_v10 = vor.u32 %v15899_v62, %v10957_v63  ;;  %v16044_v62 = vld [vmem:[#allocation2 + $0x694] sm:$0xf0] }
  0xd0   :  { %6553 = vmatpush.bf16.msra.mxu3 %v13772_v3  ;;  %6572 = vmatpush.bf16.msrb.mxu1 %v12624_v5  ;;  %v11981_v3 = vld [vmem:[#allocation2 + $0xa90] sm:$0xf0]  ;;  %v12499_v63 = vld [vmem:[#allocation2 + $0xe18] sm:$0xf] }
  0xd1   :  { %6541 = vmatmul.bf16.vlgmr.msra.gmra.mxu2 %v17283_v8  ;;  %v16411_v4 = vld [vmem:[#allocation2 + $0x1214] sm:$0xf]  ;;  %v6322_v18 = vadd.f32 %v6321_v11, %v6309_v1  ;;  %v14676_v1 = vor.u32 %v16844_v55, %v14675_v54 }
  0xd2   :  { %6585 = vmatpush.bf16.msrb.mxu2 %v13648_v6  ;;  %6560 = vmatpush.bf16.msrb.mxu0 %v11472_v19  ;;  %v13005_v5 = vld [vmem:[#allocation2 + $0x1290] sm:$0xf0] }
  0xd3   :  { %6554 = vmatmul.bf16.vlgmr.msra.gmra.mxu3 %v17290_v15  ;;  %v16667_v6 = vld [vmem:[#allocation2 + $0x1a14] sm:$0xf]  ;;  %v13008_v13 = vor.u32 %v16411_v4, %v13005_v5  ;;  %v16556_v4 = vld [vmem:[#allocation2 + $0x1694] sm:$0xf0] }
  0xd4   :  { %6598 = vmatpush.bf16.msrb.mxu3 %v14672_v12  ;;  %6573 = vmatpush.bf16.msrb.mxu1 %v12496_v20  ;;  %v14029_v7 = vld [vmem:[#allocation2 + $0x1a90] sm:$0xf0]  ;;  %v11984_v12 = vor.u32 %v16155_v0, %v11981_v3  ;;  %v6334_v23 = vpop.f32.mrf.mxu2  ;;  %v6323_v51 = vpop.f32.mrf.mxu1  ;;  %v13523_v3 = vld [vmem:[#allocation2 + $0x1618] sm:$0xf] }
  0xd5   :  { %v15867_v14 = vld [vmem:[#allocation2 + $0x114] sm:$0xf]  ;;  %v14032_v19 = vor.u32 %v16667_v6, %v14029_v7  ;;  %v6335_v27 = vadd.f32 %v6334_v23, %v6322_v18  ;;  %v14547_v5 = vld [vmem:[#allocation2 + $0x1e18] sm:$0xf]  ;;  %v13524_v11 = vor.u32 %v16556_v4, %v13523_v3 }
  0xd6   :  { %6586 = vmatpush.bf16.msrb.mxu2 %v13520_v21  ;;  %6561 = vmatpush.bf16.msrb.mxu0 %v11344_v32  ;;  %v10829_v16 = vld [vmem:[#allocation2 + $0x190] sm:$0xf0]  ;;  %v6347_v28 = vpop.f32.mrf.mxu3  ;;  %v6310_v32 = vpop.f32.mrf.mxu0  ;;  %v16812_v6 = vld [vmem:[#allocation2 + $0x1e94] sm:$0xf0] }
  0xd7   :  { %v16123_v17 = vld [vmem:[#allocation2 + $0x914] sm:$0xf]  ;;  %v10832_v29 = vor.u32 %v15867_v14, %v10829_v16  ;;  %v17323_v38 = vadd.f32 %v6347_v28, %v6335_v27  ;;  %v12371_v14 = vld [vmem:[#allocation2 + $0xd18] sm:$0xf]  ;;  %v14548_v16 = vor.u32 %v16812_v6, %v14547_v5 }
  0xd8   :  { %6599 = vmatpush.bf16.msrb.mxu3 %v14544_v26  ;;  %6574 = vmatpush.bf16.msrb.mxu1 %v12368_v34  ;;  %v11853_v20 = vld [vmem:[#allocation2 + $0x990] sm:$0xf0]  ;;  %v13395_v18 = vld [vmem:[#allocation2 + $0x1518] sm:$0xf] }
  0xd9   :  { %v16379_v21 = vld [vmem:[#allocation2 + $0x1114] sm:$0xf]  ;;  %v11856_v33 = vor.u32 %v16123_v17, %v11853_v20  ;;  %v16268_v17 = vld [vmem:[#allocation2 + $0xd94] sm:$0xf0]  ;;  %vm7963_vm0 = vcmp.ge.f32.partialorder %v17323_v38, 0.0 }
  0xda   :  { %6587 = vmatpush.bf16.msrb.mxu2 %v13392_v35  ;;  %6562 = vmatpush.bf16.msrb.mxu0 %v11216_v45  ;;  %v12877_v22 = vld [vmem:[#allocation2 + $0x1190] sm:$0xf0]  ;;  %v16076_v45 = vld [vmem:[#allocation2 + $0x794] sm:$0xf0] }
  0xdb   :  { %v16635_v24 = vld [vmem:[#allocation2 + $0x1914] sm:$0xf]  ;;  %v12880_v34 = vor.u32 %v16379_v21, %v12877_v22  ;;  %v11604_v57 = vor.u32 %v16076_v45, %v11603_v44  ;;  %v14419_v20 = vld [vmem:[#allocation2 + $0x1d18] sm:$0xf] }
  0xdc   :  { %6600 = vmatpush.bf16.msrb.mxu3 %v14416_v39  ;;  %6575 = vmatpush.bf16.msrb.mxu1 %v12240_v47  ;;  %v13901_v26 = vld [vmem:[#allocation2 + $0x1990] sm:$0xf0]  ;;  %v16780_v21 = vld [vmem:[#allocation2 + $0x1d94] sm:$0xf0] }
  0xdd   :  { %v15835_v30 = vld [vmem:[#allocation2 + $0x14] sm:$0xf]  ;;  %v13904_v39 = vor.u32 %v16635_v24, %v13901_v26  ;;  %v11219_v23 = vld [vmem:[#allocation2 + $0x418] sm:$0xf]  ;;  %v12372_v24 = vor.u32 %v16268_v17, %v12371_v14 }
  0xde   :  { %6588 = vmatpush.bf16.msrb.mxu2 %v13264_v48  ;;  %6563 = vmatpush.bf16.msrb.mxu0 %v11088_v58  ;;  %v10701_v31 = vld [vmem:[#allocation2 + $0x90] sm:$0xf0]  ;;  %v16332_v48 = vld [vmem:[#allocation2 + $0xf94] sm:$0xf0]  ;;  %v6336_v58 = vpop.f32.mrf.mxu2  ;;  %v6349_v0 = vpop.f32.mrf.mxu3 }
  0xdf   :  { %v16091_v35 = vld [vmem:[#allocation2 + $0x814] sm:$0xf]  ;;  %v10704_v47 = vor.u32 %v15835_v30, %v10701_v31  ;;  %v12628_v59 = vor.u32 %v16332_v48, %v12627_v46  ;;  %v15980_v27 = vld [vmem:[#allocation2 + $0x494] sm:$0xf0]  ;;  %v14420_v30 = vor.u32 %v16780_v21, %v14419_v20 }
  0xe0   :  { %6601 = vmatpush.bf16.msrb.mxu3 %v14288_v52  ;;  %6576 = vmatpush.bf16.msrb.mxu1 %v12112_v60  ;;  %v11725_v36 = vld [vmem:[#allocation2 + $0x890] sm:$0xf0]  ;;  %v13652_v60 = vor.u32 %v16588_v50, %v13651_v49  ;;  %v12243_v28 = vld [vmem:[#allocation2 + $0xc18] sm:$0xf] }
  0xe1   :  { %v16347_v37 = vld [vmem:[#allocation2 + $0x1014] sm:$0xf]  ;;  %v11728_v52 = vor.u32 %v16091_v35, %v11725_v36  ;;  %v16236_v31 = vld [vmem:[#allocation2 + $0xc94] sm:$0xf0]  ;;  %v11220_v36 = vor.u32 %v15980_v27, %v11219_v23 }
  0xe2   :  { %6589 = vmatpush.bf16.msrb.mxu2 %v13136_v61  ;;  %6564 = vmatpush.bf16.msrb.mxu0 %v10960_v10  ;;  %v12749_v40 = vld [vmem:[#allocation2 + $0x1090] sm:$0xf0]  ;;  %v11475_v61 = vld [vmem:[#allocation2 + $0x618] sm:$0xf] }
  0xe3   :  { %v16603_v41 = vld [vmem:[#allocation2 + $0x1814] sm:$0xf]  ;;  %v12752_v53 = vor.u32 %v16347_v37, %v12749_v40  ;;  %v11476_v7 = vor.u32 %v16044_v62, %v11475_v61  ;;  %v13267_v32 = vld [vmem:[#allocation2 + $0x1418] sm:$0xf] }
  0xe4   :  { %6602 = vmatpush.bf16.msrb.mxu3 %v14160_v2  ;;  %6577 = vmatpush.bf16.msrb.mxu1 %v11984_v12  ;;  %v13773_v43 = vld [vmem:[#allocation2 + $0x1890] sm:$0xf0]  ;;  %v16300_v2 = vld [vmem:[#allocation2 + $0xe94] sm:$0xf0] }
  0xe5   :  { %v13776_v56 = vor.u32 %v16603_v41, %v13773_v43  ;;  %v12500_v10 = vor.u32 %v16300_v2, %v12499_v63  ;;  %v11347_v12 = vld [vmem:[#allocation2 + $0x518] sm:$0xf] }
  0xe6   :  { %6590 = vmatpush.bf16.msrb.mxu2 %v13008_v13  ;;  %6565 = vmatpush.bf16.msrb.mxu0 %v10832_v29  ;;  %v16012_v13 = vld [vmem:[#allocation2 + $0x594] sm:$0xf0]  ;;  %v1116_v29 = vperm.slane %v17320_v42, 1 }
  0xe7   :  { %v11348_v22 = vor.u32 %v16012_v13, %v11347_v12  ;;  %v16748_v35 = vld [vmem:[#allocation2 + $0x1c94] sm:$0xf0] }
  0xe8   :  { %6603 = vmatpush.bf16.msrb.mxu3 %v14032_v19  ;;  %6578 = vmatpush.bf16.msrb.mxu1 %v11856_v33  ;;  %v16524_v19 = vld [vmem:[#allocation2 + $0x1594] sm:$0xf0] }
  0xe9   :  { %v13396_v26 = vor.u32 %v16524_v19, %v13395_v18  ;;  %v16492_v33 = vld [vmem:[#allocation2 + $0x1494] sm:$0xf0] }
  0xea   :  { %6591 = vmatpush.bf16.msrb.mxu2 %v12880_v34  ;;  %6566 = vmatpush.bf16.msrb.mxu0 %v10704_v47  ;;  %v14291_v34 = vld [vmem:[#allocation2 + $0x1c18] sm:$0xf]  ;;  %v6360_v37 = vpop.f32.mrf.mxu0  ;;  %v13268_v40 = vor.u32 %v16492_v33, %v13267_v32 }
  0xeb   :  { %v11091_v41 = vld [vmem:[#allocation2 + $0x318] sm:$0xf]  ;;  %v6361_v45 = vadd.f32 %v6360_v37, %v1116_v29  ;;  %v14292_v47 = vor.u32 %v16748_v35, %v14291_v34 }
  0xec   :  { %6604 = vmatpush.bf16.msrb.mxu3 %v13904_v39  ;;  %6579 = vmatpush.bf16.msrb.mxu1 %v11728_v52  ;;  %v12244_v39 = vor.u32 %v16236_v31, %v12243_v28  ;;  %v15948_v43 = vld [vmem:[#allocation2 + $0x394] sm:$0xf0]  ;;  %v6373_v46 = vpop.f32.mrf.mxu1 }
  0xed   :  { %6567 = vmatmul.bf16.vlgmr.msrb.gmra.mxu0 %v17285_v9  ;;  %v12115_v44 = vld [vmem:[#allocation2 + $0xb18] sm:$0xf]  ;;  %v11092_v54 = vor.u32 %v15948_v43, %v11091_v41  ;;  %v16316_v41 = vld [vmem:[#allocation2 + $0xf1c] sm:$0xf] }
  0xee   :  { %6592 = vmatpush.bf16.msrb.mxu2 %v12752_v53  ;;  %6611 = vmatpush.bf16.msra.mxu0 %v11604_v57  ;;  %v16204_v48 = vld [vmem:[#allocation2 + $0xb94] sm:$0xf0]  ;;  %v6374_v53 = vadd.f32 %v6373_v46, %v6361_v45  ;;  %v16572_v45 = vld [vmem:[#allocation2 + $0x171c] sm:$0xf] }
  0xef   :  { %6580 = vmatmul.bf16.vlgmr.msrb.gmra.mxu1 %v17298_v25  ;;  %v13139_v49 = vld [vmem:[#allocation2 + $0x1318] sm:$0xf]  ;;  %v12116_v55 = vor.u32 %v16204_v48, %v12115_v44  ;;  %v12629_v44 = vld [vmem:[#allocation2 + $0xf98] sm:$0xf0] }
  0xf0   :  { %6605 = vmatpush.bf16.msrb.mxu3 %v13776_v56  ;;  %6624 = vmatpush.bf16.msra.mxu1 %v12628_v59  ;;  %v16460_v50 = vld [vmem:[#allocation2 + $0x1394] sm:$0xf0]  ;;  %v13653_v46 = vld [vmem:[#allocation2 + $0x1798] sm:$0xf0] }
  0xf1   :  { %6593 = vmatmul.bf16.vlgmr.msrb.gmra.mxu2 %v17283_v8  ;;  %v14163_v51 = vld [vmem:[#allocation2 + $0x1b18] sm:$0xf]  ;;  %v13140_v56 = vor.u32 %v16460_v50, %v13139_v49  ;;  %v16828_v49 = vld [vmem:[#allocation2 + $0x1f1c] sm:$0xf] }
  0xf2   :  { %6637 = vmatpush.bf16.msra.mxu2 %v13652_v60  ;;  %6612 = vmatpush.bf16.msra.mxu0 %v11476_v7  ;;  %v16716_v52 = vld [vmem:[#allocation2 + $0x1b94] sm:$0xf0]  ;;  %v6362_v7 = vpop.f32.mrf.mxu0  ;;  %v14677_v50 = vld [vmem:[#allocation2 + $0x1f98] sm:$0xf0] }
  0xf3   :  { %6606 = vmatmul.bf16.vlgmr.msrb.gmra.mxu3 %v17290_v15  ;;  %v10963_v57 = vld [vmem:[#allocation2 + $0x218] sm:$0xf]  ;;  %v14164_v61 = vor.u32 %v16716_v52, %v14163_v51 }
  0xf4   :  { %6650 = vmatpush.bf16.msra.mxu3 %v14676_v1  ;;  %6625 = vmatpush.bf16.msra.mxu1 %v12500_v10  ;;  %v15916_v58 = vld [vmem:[#allocation2 + $0x294] sm:$0xf0]  ;;  %v6386_v60 = vpop.f32.mrf.mxu2 }
  0xf5   :  { %v11987_v59 = vld [vmem:[#allocation2 + $0xa18] sm:$0xf]  ;;  %v6387_v1 = vadd.f32 %v6386_v60, %v6374_v53  ;;  %v10964_v5 = vor.u32 %v15916_v58, %v10963_v57  ;;  %v12632_v53 = vor.u32 %v16316_v41, %v12629_v44  ;;  %v16284_v57 = vld [vmem:[#allocation2 + $0xe1c] sm:$0xf]  ;;  %v14680_v58 = vor.u32 %v16828_v49, %v14677_v50 }
  0xf6   :  { %6638 = vmatpush.bf16.msra.mxu2 %v13524_v11  ;;  %6613 = vmatpush.bf16.msra.mxu0 %v11348_v22  ;;  %v16172_v62 = vld [vmem:[#allocation2 + $0xa94] sm:$0xf0]  ;;  %v6399_v2 = vpop.f32.mrf.mxu3  ;;  %v16540_v60 = vld [vmem:[#allocation2 + $0x161c] sm:$0xf] }
  0xf7   :  { %v13011_v63 = vld [vmem:[#allocation2 + $0x1218] sm:$0xf]  ;;  %v17330_v6 = vadd.f32 %v6399_v2, %v6387_v1  ;;  %v11988_v10 = vor.u32 %v16172_v62, %v11987_v59  ;;  %v12501_v59 = vld [vmem:[#allocation2 + $0xe98] sm:$0xf0] }
  0xf8   :  { %6651 = vmatpush.bf16.msra.mxu3 %v14548_v16  ;;  %6626 = vmatpush.bf16.msra.mxu1 %v12372_v24  ;;  %v16428_v0 = vld [vmem:[#allocation2 + $0x1294] sm:$0xf0]  ;;  %v6375_v16 = vpop.f32.mrf.mxu1  ;;  %v16796_v62 = vld [vmem:[#allocation2 + $0x1e1c] sm:$0xf]  ;;  %v12504_v1 = vor.u32 %v16284_v57, %v12501_v59 }
  0xf9   :  { %v14035_v3 = vld [vmem:[#allocation2 + $0x1a18] sm:$0xf]  ;;  %v13012_v11 = vor.u32 %v16428_v0, %v13011_v63  ;;  %v14549_v63 = vld [vmem:[#allocation2 + $0x1e98] sm:$0xf0]  ;;  %vm7964_vm1 = vcmp.ge.f32.partialorder %v17330_v6, 0.0 }
  0xfa   :  { %6639 = vmatpush.bf16.msra.mxu2 %v13396_v26  ;;  %6614 = vmatpush.bf16.msra.mxu0 %v11220_v36  ;;  %v16684_v4 = vld [vmem:[#allocation2 + $0x1a94] sm:$0xf0]  ;;  %v14552_v7 = vor.u32 %v16796_v62, %v14549_v63  ;;  %v12117_v41 = vld [vmem:[#allocation2 + $0xb98] sm:$0xf0] }
  0xfb   :  { %v10835_v12 = vld [vmem:[#allocation2 + $0x118] sm:$0xf]  ;;  %v14036_v17 = vor.u32 %v16684_v4, %v14035_v3  ;;  %v15996_v3 = vld [vmem:[#allocation2 + $0x51c] sm:$0xf] }
  0xfc   :  { %6652 = vmatpush.bf16.msra.mxu3 %v14420_v30  ;;  %6627 = vmatpush.bf16.msra.mxu1 %v12244_v39  ;;  %v15884_v13 = vld [vmem:[#allocation2 + $0x194] sm:$0xf0]  ;;  %v6388_v32 = vpop.f32.mrf.mxu2  ;;  %v16060_v39 = vld [vmem:[#allocation2 + $0x71c] sm:$0xf] }
  0xfd   :  { %v11859_v14 = vld [vmem:[#allocation2 + $0x918] sm:$0xf]  ;;  %v10836_v23 = vor.u32 %v15884_v13, %v10835_v12  ;;  %v11349_v4 = vld [vmem:[#allocation2 + $0x598] sm:$0xf0] }
  0xfe   :  { %6640 = vmatpush.bf16.msra.mxu2 %v13268_v40  ;;  %6615 = vmatpush.bf16.msra.mxu0 %v11092_v54  ;;  %v16140_v18 = vld [vmem:[#allocation2 + $0x994] sm:$0xf0]  ;;  %v6401_v37 = vpop.f32.mrf.mxu3  ;;  %v11605_v40 = vld [vmem:[#allocation2 + $0x798] sm:$0xf0]  ;;  %v13656_v54 = vor.u32 %v16572_v45, %v13653_v46  ;;  %v11352_v16 = vor.u32 %v15996_v3, %v11349_v4 }
  0xff   :  { %v12883_v19 = vld [vmem:[#allocation2 + $0x1118] sm:$0xf]  ;;  %v11860_v27 = vor.u32 %v16140_v18, %v11859_v14  ;;  %v11608_v52 = vor.u32 %v16060_v39, %v11605_v40  ;;  %v13397_v12 = vld [vmem:[#allocation2 + $0x1598] sm:$0xf0] }
 0x100   :  { %6653 = vmatpush.bf16.msra.mxu3 %v14292_v47  ;;  %6628 = vmatpush.bf16.msra.mxu1 %v12116_v55  ;;  %v16396_v20 = vld [vmem:[#allocation2 + $0x1194] sm:$0xf0]  ;;  %v16028_v55 = vld [vmem:[#allocation2 + $0x61c] sm:$0xf] }
 0x101   :  { %v13907_v21 = vld [vmem:[#allocation2 + $0x1918] sm:$0xf]  ;;  %v12884_v28 = vor.u32 %v16396_v20, %v12883_v19  ;;  %v16764_v13 = vld [vmem:[#allocation2 + $0x1d1c] sm:$0xf] }
 0x102   :  { %6641 = vmatpush.bf16.msra.mxu2 %v13140_v56  ;;  %v16652_v22 = vld [vmem:[#allocation2 + $0x1994] sm:$0xf0]  ;;  %6616 = vmatpush.bf16.msra.mxu0 %v10964_v5  ;;  %v11477_v56 = vld [vmem:[#allocation2 + $0x698] sm:$0xf0] }
 0x103   :  { %v10707_v24 = vld [vmem:[#allocation2 + $0x18] sm:$0xf]  ;;  %v13908_v33 = vor.u32 %v16652_v22, %v13907_v21  ;;  %v11480_v0 = vor.u32 %v16028_v55, %v11477_v56  ;;  %v16252_v5 = vld [vmem:[#allocation2 + $0xd1c] sm:$0xf]  ;;  %v1117_v22 = vperm.slane %v17320_v42, 2 }
 0x104   :  { %6654 = vmatpush.bf16.msra.mxu3 %v14164_v61  ;;  %v15852_v26 = vld [vmem:[#allocation2 + $0x94] sm:$0xf0]  ;;  %6629 = vmatpush.bf16.msra.mxu1 %v11988_v10  ;;  %v13525_v61 = vld [vmem:[#allocation2 + $0x1698] sm:$0xf0] }
 0x105   :  { %v11731_v29 = vld [vmem:[#allocation2 + $0x818] sm:$0xf]  ;;  %v10708_v43 = vor.u32 %v15852_v26, %v10707_v24  ;;  %v13528_v2 = vor.u32 %v16540_v60, %v13525_v61  ;;  %v12373_v10 = vld [vmem:[#allocation2 + $0xd98] sm:$0xf0] }
 0x106   :  { %6642 = vmatpush.bf16.msra.mxu2 %v13012_v11  ;;  %v16108_v30 = vld [vmem:[#allocation2 + $0x894] sm:$0xf0]  ;;  %6617 = vmatpush.bf16.msra.mxu0 %v10836_v23  ;;  %v16508_v11 = vld [vmem:[#allocation2 + $0x151c] sm:$0xf]  ;;  %v12376_v18 = vor.u32 %v16252_v5, %v12373_v10 }
 0x107   :  { %v12755_v31 = vld [vmem:[#allocation2 + $0x1018] sm:$0xf]  ;;  %v11732_v47 = vor.u32 %v16108_v30, %v11731_v29  ;;  %v14421_v14 = vld [vmem:[#allocation2 + $0x1d98] sm:$0xf0]  ;;  %v13400_v19 = vor.u32 %v16508_v11, %v13397_v12 }
 0x108   :  { %6655 = vmatpush.bf16.msra.mxu3 %v14036_v17  ;;  %v16364_v34 = vld [vmem:[#allocation2 + $0x1094] sm:$0xf0]  ;;  %6630 = vmatpush.bf16.msra.mxu1 %v11860_v27  ;;  %v15964_v17 = vld [vmem:[#allocation2 + $0x41c] sm:$0xf]  ;;  %v14424_v23 = vor.u32 %v16764_v13, %v14421_v14 }
 0x109   :  { %v13779_v35 = vld [vmem:[#allocation2 + $0x1818] sm:$0xf]  ;;  %v12756_v48 = vor.u32 %v16364_v34, %v12755_v31  ;;  %v11221_v20 = vld [vmem:[#allocation2 + $0x498] sm:$0xf0] }
 0x10a   :  { %v16620_v36 = vld [vmem:[#allocation2 + $0x1894] sm:$0xf0]  ;;  %6643 = vmatpush.bf16.msra.mxu2 %v12884_v28  ;;  %6618 = vmatpush.bf16.msra.mxu0 %v10708_v43  ;;  %v16220_v21 = vld [vmem:[#allocation2 + $0xc1c] sm:$0xf]  ;;  %v11224_v30 = vor.u32 %v15964_v17, %v11221_v20  ;;  %v6412_v31 = vpop.f32.mrf.mxu0 }
 0x10b   :  { %v13780_v51 = vor.u32 %v16620_v36, %v13779_v35  ;;  %v12245_v24 = vld [vmem:[#allocation2 + $0xc98] sm:$0xf0]  ;;  %v6413_v37 = vadd.f32 %v6412_v31, %v1117_v22 }
 0x10c   :  { %6656 = vmatpush.bf16.msra.mxu3 %v13908_v33  ;;  %6631 = vmatpush.bf16.msra.mxu1 %v11732_v47  ;;  %v16476_v26 = vld [vmem:[#allocation2 + $0x141c] sm:$0xf]  ;;  %v12248_v32 = vor.u32 %v16220_v21, %v12245_v24  ;;  %v6425_v39 = vpop.f32.mrf.mxu1 }
 0x10d   :  { %6619 = vmatmul.bf16.vlgmr.msra.gmra.mxu0 %v17285_v9  ;;  %v13269_v27 = vld [vmem:[#allocation2 + $0x1498] sm:$0xf0]  ;;  %v6426_v47 = vadd.f32 %v6425_v39, %v6413_v37  ;;  %v16333_v37 = vld [vmem:[#allocation2 + $0xf9c] sm:$0xf0] }
 0x10e   :  { %6644 = vmatpush.bf16.msra.mxu2 %v12756_v48  ;;  %6663 = vmatpush.bf16.msrb.mxu0 %v11608_v52  ;;  %v16732_v28 = vld [vmem:[#allocation2 + $0x1c1c] sm:$0xf]  ;;  %v13272_v33 = vor.u32 %v16476_v26, %v13269_v27  ;;  %v13659_v39 = vld [vmem:[#allocation2 + $0x1720] sm:$0xf] }
 0x10f   :  { %6632 = vmatmul.bf16.vlgmr.msra.gmra.mxu1 %v17298_v25  ;;  %v14293_v29 = vld [vmem:[#allocation2 + $0x1c98] sm:$0xf0] }
 0x110   :  { %6657 = vmatpush.bf16.msra.mxu3 %v13780_v51  ;;  %6676 = vmatpush.bf16.msrb.mxu1 %v12632_v53  ;;  %v15932_v34 = vld [vmem:[#allocation2 + $0x31c] sm:$0xf]  ;;  %v14296_v40 = vor.u32 %v16732_v28, %v14293_v29 }
 0x111   :  { %6645 = vmatmul.bf16.vlgmr.msra.gmra.mxu2 %v17283_v8  ;;  %v11093_v35 = vld [vmem:[#allocation2 + $0x398] sm:$0xf0] }
 0x112   :  { %6689 = vmatpush.bf16.msrb.mxu2 %v13656_v54  ;;  %6664 = vmatpush.bf16.msrb.mxu0 %v11480_v0  ;;  %v16188_v36 = vld [vmem:[#allocation2 + $0xb1c] sm:$0xf]  ;;  %v11096_v48 = vor.u32 %v15932_v34, %v11093_v35  ;;  %v16077_v34 = vld [vmem:[#allocation2 + $0x79c] sm:$0xf0] }
 0x113   :  { %6658 = vmatmul.bf16.vlgmr.msra.gmra.mxu3 %v17290_v15  ;;  %v16444_v43 = vld [vmem:[#allocation2 + $0x131c] sm:$0xf]  ;;  %v12120_v49 = vor.u32 %v16188_v36, %v12117_v41  ;;  %v12635_v35 = vld [vmem:[#allocation2 + $0xf20] sm:$0xf] }
 0x114   :  { %6702 = vmatpush.bf16.msrb.mxu3 %v14680_v58  ;;  %6677 = vmatpush.bf16.msrb.mxu1 %v12504_v1  ;;  %v13141_v44 = vld [vmem:[#allocation2 + $0x1398] sm:$0xf0]  ;;  %v6438_v54 = vpop.f32.mrf.mxu2  ;;  %v6414_v1 = vpop.f32.mrf.mxu0 }
 0x115   :  { %v16700_v45 = vld [vmem:[#allocation2 + $0x1b1c] sm:$0xf]  ;;  %v13144_v50 = vor.u32 %v16444_v43, %v13141_v44  ;;  %v6439_v59 = vadd.f32 %v6438_v54, %v6426_v47  ;;  %v6427_v10 = vpop.f32.mrf.mxu1  ;;  %v14683_v44 = vld [vmem:[#allocation2 + $0x1f20] sm:$0xf] }
 0x116   :  { %6690 = vmatpush.bf16.msrb.mxu2 %v13528_v2  ;;  %6665 = vmatpush.bf16.msrb.mxu0 %v11352_v16  ;;  %v14165_v46 = vld [vmem:[#allocation2 + $0x1b98] sm:$0xf0]  ;;  %v6451_v60 = vpop.f32.mrf.mxu3  ;;  %v16301_v54 = vld [vmem:[#allocation2 + $0xe9c] sm:$0xf0] }
 0x117   :  { %v15900_v51 = vld [vmem:[#allocation2 + $0x21c] sm:$0xf]  ;;  %v14168_v55 = vor.u32 %v16700_v45, %v14165_v46  ;;  %v17337_v0 = vadd.f32 %v6451_v60, %v6439_v59  ;;  %v16845_v45 = vld [vmem:[#allocation2 + $0x1f9c] sm:$0xf0] }
 0x118   :  { %6703 = vmatpush.bf16.msrb.mxu3 %v14552_v7  ;;  %6678 = vmatpush.bf16.msrb.mxu1 %v12376_v18  ;;  %v10965_v52 = vld [vmem:[#allocation2 + $0x298] sm:$0xf0]  ;;  %v12379_v1 = vld [vmem:[#allocation2 + $0xd20] sm:$0xf] }
 0x119   :  { %v16156_v53 = vld [vmem:[#allocation2 + $0xa1c] sm:$0xf]  ;;  %v10968_v63 = vor.u32 %v15900_v51, %v10965_v52  ;;  %v16045_v51 = vld [vmem:[#allocation2 + $0x69c] sm:$0xf0]  ;;  %vm7965_vm2 = vcmp.ge.f32.partialorder %v17337_v0, 0.0 }
 0x11a   :  { %6691 = vmatpush.bf16.msrb.mxu2 %v13400_v19  ;;  %6666 = vmatpush.bf16.msrb.mxu0 %v11224_v30  ;;  %v11989_v56 = vld [vmem:[#allocation2 + $0xa98] sm:$0xf0]  ;;  %v12507_v52 = vld [vmem:[#allocation2 + $0xe20] sm:$0xf] }
 0x11b   :  { %v16412_v57 = vld [vmem:[#allocation2 + $0x121c] sm:$0xf]  ;;  %v11992_v2 = vor.u32 %v16156_v53, %v11989_v56  ;;  %v14684_v53 = vor.u32 %v16845_v45, %v14683_v44  ;;  %v16557_v56 = vld [vmem:[#allocation2 + $0x169c] sm:$0xf0]  ;;  %v12508_v60 = vor.u32 %v16301_v54, %v12507_v52 }
 0x11c   :  { %6704 = vmatpush.bf16.msrb.mxu3 %v14424_v23  ;;  %6679 = vmatpush.bf16.msrb.mxu1 %v12248_v32  ;;  %v13013_v58 = vld [vmem:[#allocation2 + $0x1298] sm:$0xf0]  ;;  %v6440_v27 = vpop.f32.mrf.mxu2  ;;  %v16781_v10 = vld [vmem:[#allocation2 + $0x1d9c] sm:$0xf0] }
 0x11d   :  { %v16668_v61 = vld [vmem:[#allocation2 + $0x1a1c] sm:$0xf]  ;;  %v13016_v3 = vor.u32 %v16412_v57, %v13013_v58  ;;  %v14555_v57 = vld [vmem:[#allocation2 + $0x1e20] sm:$0xf] }
 0x11e   :  { %6692 = vmatpush.bf16.msrb.mxu2 %v13272_v33  ;;  %v14037_v62 = vld [vmem:[#allocation2 + $0x1a98] sm:$0xf0]  ;;  %6667 = vmatpush.bf16.msrb.mxu0 %v11096_v48  ;;  %v6453_v32 = vpop.f32.mrf.mxu3  ;;  %v11611_v33 = vld [vmem:[#allocation2 + $0x720] sm:$0xf]  ;;  %v12636_v48 = vor.u32 %v16333_v37, %v12635_v35 }
 0x11f   :  { %v15868_v4 = vld [vmem:[#allocation2 + $0x11c] sm:$0xf]  ;;  %v14040_v11 = vor.u32 %v16668_v61, %v14037_v62  ;;  %v11612_v47 = vor.u32 %v16077_v34, %v11611_v33  ;;  %v16813_v58 = vld [vmem:[#allocation2 + $0x1e9c] sm:$0xf0] }
 0x120   :  { %6705 = vmatpush.bf16.msrb.mxu3 %v14296_v40  ;;  %6680 = vmatpush.bf16.msrb.mxu1 %v12120_v49  ;;  %v10837_v5 = vld [vmem:[#allocation2 + $0x198] sm:$0xf0]  ;;  %v16589_v40 = vld [vmem:[#allocation2 + $0x179c] sm:$0xf0] }
 0x121   :  { %v16124_v7 = vld [vmem:[#allocation2 + $0x91c] sm:$0xf]  ;;  %v10840_v18 = vor.u32 %v15868_v4, %v10837_v5  ;;  %v13660_v49 = vor.u32 %v16589_v40, %v13659_v39  ;;  %v11355_v62 = vld [vmem:[#allocation2 + $0x520] sm:$0xf] }
 0x122   :  { %6693 = vmatpush.bf16.msrb.mxu2 %v13144_v50  ;;  %v11861_v12 = vld [vmem:[#allocation2 + $0x998] sm:$0xf0]  ;;  %6668 = vmatpush.bf16.msrb.mxu0 %v10968_v63  ;;  %v11483_v50 = vld [vmem:[#allocation2 + $0x620] sm:$0xf] }
 0x123   :  { %v16380_v13 = vld [vmem:[#allocation2 + $0x111c] sm:$0xf]  ;;  %v11864_v21 = vor.u32 %v16124_v7, %v11861_v12  ;;  %v11484_v59 = vor.u32 %v16045_v51, %v11483_v50  ;;  %v16013_v63 = vld [vmem:[#allocation2 + $0x59c] sm:$0xf0] }
 0x124   :  { %6706 = vmatpush.bf16.msrb.mxu3 %v14168_v55  ;;  %v12885_v14 = vld [vmem:[#allocation2 + $0x1198] sm:$0xf0]  ;;  %6681 = vmatpush.bf16.msrb.mxu1 %v11992_v2  ;;  %v13531_v55 = vld [vmem:[#allocation2 + $0x1620] sm:$0xf]  ;;  %v14556_v2 = vor.u32 %v16813_v58, %v14555_v57 }
 0x125   :  { %v16636_v16 = vld [vmem:[#allocation2 + $0x191c] sm:$0xf]  ;;  %v12888_v22 = vor.u32 %v16380_v13, %v12885_v14  ;;  %v13532_v61 = vor.u32 %v16557_v56, %v13531_v55  ;;  %v13403_v4 = vld [vmem:[#allocation2 + $0x1520] sm:$0xf] }
 0x126   :  { %v13909_v17 = vld [vmem:[#allocation2 + $0x1998] sm:$0xf0]  ;;  %6694 = vmatpush.bf16.msrb.mxu2 %v13016_v3  ;;  %6669 = vmatpush.bf16.msrb.mxu0 %v10840_v18  ;;  %v16269_v3 = vld [vmem:[#allocation2 + $0xd9c] sm:$0xf0]  ;;  %v1118_v18 = vperm.slane %v17320_v42, 3 }
 0x127   :  { %v15836_v19 = vld [vmem:[#allocation2 + $0x1c] sm:$0xf]  ;;  %v13912_v28 = vor.u32 %v16636_v16, %v13909_v17  ;;  %v16525_v5 = vld [vmem:[#allocation2 + $0x159c] sm:$0xf0]  ;;  %v12380_v13 = vor.u32 %v16269_v3, %v12379_v1 }
 0x128   :  { %v10709_v20 = vld [vmem:[#allocation2 + $0x98] sm:$0xf0]  ;;  %6707 = vmatpush.bf16.msrb.mxu3 %v14040_v11  ;;  %6682 = vmatpush.bf16.msrb.mxu1 %v11864_v21  ;;  %v14427_v7 = vld [vmem:[#allocation2 + $0x1d20] sm:$0xf]  ;;  %v11356_v11 = vor.u32 %v16013_v63, %v11355_v62  ;;  %v13404_v14 = vor.u32 %v16525_v5, %v13403_v4 }
 0x129   :  { %v16092_v23 = vld [vmem:[#allocation2 + $0x81c] sm:$0xf]  ;;  %v10712_v36 = vor.u32 %v15836_v19, %v10709_v20  ;;  %v11227_v12 = vld [vmem:[#allocation2 + $0x420] sm:$0xf]  ;;  %v14428_v19 = vor.u32 %v16781_v10, %v14427_v7 }
 0x12a   :  { %v11733_v24 = vld [vmem:[#allocation2 + $0x898] sm:$0xf0]  ;;  %6695 = vmatpush.bf16.msrb.mxu2 %v12888_v22  ;;  %v15981_v16 = vld [vmem:[#allocation2 + $0x49c] sm:$0xf0]  ;;  %v6464_v27 = vpop.f32.mrf.mxu0 }
 0x12b   :  { %v16348_v26 = vld [vmem:[#allocation2 + $0x101c] sm:$0xf]  ;;  %v11736_v41 = vor.u32 %v16092_v23, %v11733_v24  ;;  %6670 = vmatpush.bf16.msrb.mxu0 %v10712_v36  ;;  %v12251_v17 = vld [vmem:[#allocation2 + $0xc20] sm:$0xf]  ;;  %v6465_v33 = vadd.f32 %v6464_v27, %v1118_v18 }
 0x12c   :  { %v12757_v29 = vld [vmem:[#allocation2 + $0x1098] sm:$0xf0]  ;;  %6708 = vmatpush.bf16.msrb.mxu3 %v13912_v28  ;;  %v16237_v20 = vld [vmem:[#allocation2 + $0xc9c] sm:$0xf0]  ;;  %v6477_v34 = vpop.f32.mrf.mxu1 }
 0x12d   :  { %v16604_v30 = vld [vmem:[#allocation2 + $0x181c] sm:$0xf]  ;;  %v12760_v43 = vor.u32 %v16348_v26, %v12757_v29  ;;  %6683 = vmatpush.bf16.msrb.mxu1 %v11736_v41  ;;  %v13275_v21 = vld [vmem:[#allocation2 + $0x1420] sm:$0xf]  ;;  %v11228_v26 = vor.u32 %v15981_v16, %v11227_v12  ;;  %v12252_v28 = vor.u32 %v16237_v20, %v12251_v17  ;;  %v6478_v41 = vadd.f32 %v6477_v34, %v6465_v33  ;;  %v12637_v33 = vld [vmem:[#allocation2 + $0xfa0] sm:$0xf0] }
 0x12e   :  { %v13781_v31 = vld [vmem:[#allocation2 + $0x1898] sm:$0xf0]  ;;  %6671 = vmatmul.bf16.vlgmr.msrb.gmra.mxu0 %v17285_v9  ;;  %v16493_v22 = vld [vmem:[#allocation2 + $0x149c] sm:$0xf0]  ;;  %v16573_v34 = vld [vmem:[#allocation2 + $0x1724] sm:$0xf] }
 0x12f   :  { %v13784_v46 = vor.u32 %v16604_v30, %v13781_v31  ;;  %6696 = vmatpush.bf16.msrb.mxu2 %v12760_v43  ;;  %6715 = vmatpush.bf16.msra.mxu0 %v11612_v47  ;;  %v14299_v23 = vld [vmem:[#allocation2 + $0x1c20] sm:$0xf]  ;;  %v13276_v29 = vor.u32 %v16493_v22, %v13275_v21 }
 0x130   :  { %6684 = vmatmul.bf16.vlgmr.msrb.gmra.mxu1 %v17298_v25  ;;  %v16749_v24 = vld [vmem:[#allocation2 + $0x1c9c] sm:$0xf0] }
 0x131   :  { %6709 = vmatpush.bf16.msrb.mxu3 %v13784_v46  ;;  %6728 = vmatpush.bf16.msra.mxu1 %v12636_v48  ;;  %v11099_v30 = vld [vmem:[#allocation2 + $0x320] sm:$0xf]  ;;  %v14300_v42 = vor.u32 %v16749_v24, %v14299_v23 }
 0x132   :  { %6697 = vmatmul.bf16.vlgmr.msrb.gmra.mxu2 %v17283_v8  ;;  %v15949_v31 = vld [vmem:[#allocation2 + $0x39c] sm:$0xf0] }
 0x133   :  { %6741 = vmatpush.bf16.msra.mxu2 %v13660_v49  ;;  %6716 = vmatpush.bf16.msra.mxu0 %v11484_v59  ;;  %v12123_v32 = vld [vmem:[#allocation2 + $0xb20] sm:$0xf]  ;;  %v11100_v43 = vor.u32 %v15949_v31, %v11099_v30  ;;  %v11613_v30 = vld [vmem:[#allocation2 + $0x7a0] sm:$0xf0] }
 0x134   :  { %6710 = vmatmul.bf16.vlgmr.msrb.gmra.mxu3 %v17290_v15  ;;  %v16205_v35 = vld [vmem:[#allocation2 + $0xb9c] sm:$0xf0]  ;;  %v6490_v49 = vpop.f32.mrf.mxu2  ;;  %v6479_v3 = vpop.f32.mrf.mxu1  ;;  %v16317_v31 = vld [vmem:[#allocation2 + $0xf24] sm:$0xf] }
 0x135   :  { %6754 = vmatpush.bf16.msra.mxu3 %v14684_v53  ;;  %6729 = vmatpush.bf16.msra.mxu1 %v12508_v60  ;;  %v13147_v36 = vld [vmem:[#allocation2 + $0x1320] sm:$0xf]  ;;  %v12124_v44 = vor.u32 %v16205_v35, %v12123_v32  ;;  %v6491_v54 = vadd.f32 %v6490_v49, %v6478_v41  ;;  %v6466_v60 = vpop.f32.mrf.mxu0  ;;  %v12509_v49 = vld [vmem:[#allocation2 + $0xea0] sm:$0xf0] }
 0x136   :  { %v16461_v37 = vld [vmem:[#allocation2 + $0x139c] sm:$0xf0]  ;;  %v6503_v55 = vpop.f32.mrf.mxu3  ;;  %v16253_v60 = vld [vmem:[#allocation2 + $0xd24] sm:$0xf] }
 0x137   :  { %6742 = vmatpush.bf16.msra.mxu2 %v13532_v61  ;;  %6717 = vmatpush.bf16.msra.mxu0 %v11356_v11  ;;  %v14171_v39 = vld [vmem:[#allocation2 + $0x1b20] sm:$0xf]  ;;  %v13148_v45 = vor.u32 %v16461_v37, %v13147_v36  ;;  %v17344_v59 = vadd.f32 %v6503_v55, %v6491_v54  ;;  %v16829_v37 = vld [vmem:[#allocation2 + $0x1f24] sm:$0xf] }
 0x138   :  { %v16717_v40 = vld [vmem:[#allocation2 + $0x1b9c] sm:$0xf0]  ;;  %v14429_v3 = vld [vmem:[#allocation2 + $0x1da0] sm:$0xf0] }
 0x139   :  { %6755 = vmatpush.bf16.msra.mxu3 %v14556_v2  ;;  %6730 = vmatpush.bf16.msra.mxu1 %v12380_v13  ;;  %v10971_v46 = vld [vmem:[#allocation2 + $0x220] sm:$0xf]  ;;  %v14172_v50 = vor.u32 %v16717_v40, %v14171_v39  ;;  %v14685_v39 = vld [vmem:[#allocation2 + $0x1fa0] sm:$0xf0]  ;;  %vm7966_vm3 = vcmp.ge.f32.partialorder %v17344_v59, 0.0 }
 0x13a   :  { %v15917_v47 = vld [vmem:[#allocation2 + $0x29c] sm:$0xf0] }
 0x13b   :  { %6743 = vmatpush.bf16.msra.mxu2 %v13404_v14  ;;  %6718 = vmatpush.bf16.msra.mxu0 %v11228_v26  ;;  %v11995_v48 = vld [vmem:[#allocation2 + $0xa20] sm:$0xf]  ;;  %v10972_v58 = vor.u32 %v15917_v47, %v10971_v46  ;;  %v11485_v46 = vld [vmem:[#allocation2 + $0x6a0] sm:$0xf0] }
 0x13c   :  { %v16173_v51 = vld [vmem:[#allocation2 + $0xa9c] sm:$0xf0]  ;;  %v6492_v22 = vpop.f32.mrf.mxu2  ;;  %v16285_v47 = vld [vmem:[#allocation2 + $0xe24] sm:$0xf] }
 0x13d   :  { %6756 = vmatpush.bf16.msra.mxu3 %v14428_v19  ;;  %6731 = vmatpush.bf16.msra.mxu1 %v12252_v28  ;;  %v13019_v52 = vld [vmem:[#allocation2 + $0x1220] sm:$0xf]  ;;  %v11996_v61 = vor.u32 %v16173_v51, %v11995_v48  ;;  %v14688_v48 = vor.u32 %v16829_v37, %v14685_v39  ;;  %v13533_v51 = vld [vmem:[#allocation2 + $0x16a0] sm:$0xf0]  ;;  %v12512_v55 = vor.u32 %v16285_v47, %v12509_v49 }
 0x13e   :  { %v16429_v53 = vld [vmem:[#allocation2 + $0x129c] sm:$0xf0]  ;;  %v6505_v28 = vpop.f32.mrf.mxu3  ;;  %v16413_v49 = vld [vmem:[#allocation2 + $0x1224] sm:$0xf] }
 0x13f   :  { %6744 = vmatpush.bf16.msra.mxu2 %v13276_v29  ;;  %v14043_v56 = vld [vmem:[#allocation2 + $0x1a20] sm:$0xf]  ;;  %6719 = vmatpush.bf16.msra.mxu0 %v11100_v43  ;;  %v13020_v62 = vor.u32 %v16429_v53, %v13019_v52  ;;  %v16061_v29 = vld [vmem:[#allocation2 + $0x724] sm:$0xf]  ;;  %v12640_v43 = vor.u32 %v16317_v31, %v12637_v33 }
 0x140   :  { %v16685_v57 = vld [vmem:[#allocation2 + $0x1a9c] sm:$0xf0]  ;;  %v11616_v41 = vor.u32 %v16061_v29, %v11613_v30  ;;  %v16797_v52 = vld [vmem:[#allocation2 + $0x1e24] sm:$0xf] }
 0x141   :  { %6757 = vmatpush.bf16.msra.mxu3 %v14300_v42  ;;  %6732 = vmatpush.bf16.msra.mxu1 %v12124_v44  ;;  %v10843_v63 = vld [vmem:[#allocation2 + $0x120] sm:$0xf]  ;;  %v14044_v4 = vor.u32 %v16685_v57, %v14043_v56  ;;  %v13661_v42 = vld [vmem:[#allocation2 + $0x17a0] sm:$0xf0] }
 0x142   :  { %v15885_v1 = vld [vmem:[#allocation2 + $0x19c] sm:$0xf0]  ;;  %v13664_v44 = vor.u32 %v16573_v34, %v13661_v42  ;;  %v14557_v53 = vld [vmem:[#allocation2 + $0x1ea0] sm:$0xf0] }
 0x143   :  { %6745 = vmatpush.bf16.msra.mxu2 %v13148_v45  ;;  %v11867_v2 = vld [vmem:[#allocation2 + $0x920] sm:$0xf]  ;;  %6720 = vmatpush.bf16.msra.mxu0 %v10972_v58  ;;  %v10844_v13 = vor.u32 %v15885_v1, %v10843_v63  ;;  %v16029_v45 = vld [vmem:[#allocation2 + $0x624] sm:$0xf] }
 0x144   :  { %v16141_v5 = vld [vmem:[#allocation2 + $0x99c] sm:$0xf0]  ;;  %v11488_v54 = vor.u32 %v16029_v45, %v11485_v46  ;;  %v15997_v57 = vld [vmem:[#allocation2 + $0x524] sm:$0xf] }
 0x145   :  { %6758 = vmatpush.bf16.msra.mxu3 %v14172_v50  ;;  %v12891_v7 = vld [vmem:[#allocation2 + $0x1120] sm:$0xf]  ;;  %6733 = vmatpush.bf16.msra.mxu1 %v11996_v61  ;;  %v11868_v17 = vor.u32 %v16141_v5, %v11867_v2  ;;  %v16541_v50 = vld [vmem:[#allocation2 + $0x1624] sm:$0xf]  ;;  %v14560_v61 = vor.u32 %v16797_v52, %v14557_v53 }
 0x146   :  { %v16397_v10 = vld [vmem:[#allocation2 + $0x119c] sm:$0xf0]  ;;  %v13536_v56 = vor.u32 %v16541_v50, %v13533_v51  ;;  %v11357_v58 = vld [vmem:[#allocation2 + $0x5a0] sm:$0xf0] }
 0x147   :  { %v13915_v11 = vld [vmem:[#allocation2 + $0x1920] sm:$0xf]  ;;  %6746 = vmatpush.bf16.msra.mxu2 %v13020_v62  ;;  %v12892_v18 = vor.u32 %v16397_v10, %v12891_v7  ;;  %6721 = vmatpush.bf16.msra.mxu0 %v10844_v13  ;;  %v12381_v62 = vld [vmem:[#allocation2 + $0xda0] sm:$0xf0] }
 0x148   :  { %v16653_v12 = vld [vmem:[#allocation2 + $0x199c] sm:$0xf0]  ;;  %v16509_v63 = vld [vmem:[#allocation2 + $0x1524] sm:$0xf]  ;;  %v12384_v7 = vor.u32 %v16253_v60, %v12381_v62 }
 0x149   :  { %v10715_v14 = vld [vmem:[#allocation2 + $0x20] sm:$0xf]  ;;  %6759 = vmatpush.bf16.msra.mxu3 %v14044_v4  ;;  %v13916_v23 = vor.u32 %v16653_v12, %v13915_v11  ;;  %6734 = vmatpush.bf16.msra.mxu1 %v11868_v17  ;;  %v13405_v1 = vld [vmem:[#allocation2 + $0x15a0] sm:$0xf0]  ;;  %v11360_v4 = vor.u32 %v15997_v57, %v11357_v58 }
 0x14a   :  { %v15853_v16 = vld [vmem:[#allocation2 + $0x9c] sm:$0xf0]  ;;  %v16765_v2 = vld [vmem:[#allocation2 + $0x1d24] sm:$0xf]  ;;  %v13408_v10 = vor.u32 %v16509_v63, %v13405_v1 }
 0x14b   :  { %v11739_v19 = vld [vmem:[#allocation2 + $0x820] sm:$0xf]  ;;  %v10716_v32 = vor.u32 %v15853_v16, %v10715_v14  ;;  %6747 = vmatpush.bf16.msra.mxu2 %v12892_v18  ;;  %v15965_v5 = vld [vmem:[#allocation2 + $0x424] sm:$0xf]  ;;  %v14432_v16 = vor.u32 %v16765_v2, %v14429_v3 }
 0x14c   :  { %v16109_v20 = vld [vmem:[#allocation2 + $0x89c] sm:$0xf0]  ;;  %v11229_v11 = vld [vmem:[#allocation2 + $0x4a0] sm:$0xf0]  ;;  %v6529_v31 = vpop.f32.mrf.mxu1 }
 0x14d   :  { %v12763_v21 = vld [vmem:[#allocation2 + $0x1020] sm:$0xf]  ;;  %v11740_v35 = vor.u32 %v16109_v20, %v11739_v19  ;;  %6760 = vmatpush.bf16.msra.mxu3 %v13916_v23  ;;  %6722 = vmatpush.bf16.msra.mxu0 %v10716_v32  ;;  %v16221_v12 = vld [vmem:[#allocation2 + $0xc24] sm:$0xf]  ;;  %v11232_v22 = vor.u32 %v15965_v5, %v11229_v11  ;;  %v6516_v23 = vpop.f32.mrf.mxu0 }
 0x14e   :  { %v16365_v24 = vld [vmem:[#allocation2 + $0x109c] sm:$0xf0]  ;;  %v12253_v17 = vld [vmem:[#allocation2 + $0xca0] sm:$0xf0] }
 0x14f   :  { %v13787_v26 = vld [vmem:[#allocation2 + $0x1820] sm:$0xf]  ;;  %v12764_v36 = vor.u32 %v16365_v24, %v12763_v21  ;;  %6735 = vmatpush.bf16.msra.mxu1 %v11740_v35  ;;  %v16477_v18 = vld [vmem:[#allocation2 + $0x1424] sm:$0xf]  ;;  %v12256_v24 = vor.u32 %v16221_v12, %v12253_v17 }
 0x150   :  { %v16621_v27 = vld [vmem:[#allocation2 + $0x189c] sm:$0xf0]  ;;  %6723 = vmatmul.bf16.vlgmr.msra.gmra.mxu0 %v17285_v9  ;;  %v13277_v19 = vld [vmem:[#allocation2 + $0x14a0] sm:$0xf0] }
 0x151   :  { %v13788_v40 = vor.u32 %v16621_v27, %v13787_v26  ;;  %6748 = vmatpush.bf16.msra.mxu2 %v12764_v36  ;;  %6767 = vmatpush.bf16.msrb.mxu0 %v11616_v41  ;;  %v17353_v13 = vld [vmem:[%s17691_s2] sm:$0xff]  ;;  %v13280_v26 = vor.u32 %v16477_v18, %v13277_v19 }
 0x152   :  { %6736 = vmatmul.bf16.vlgmr.msra.gmra.mxu1 %v17298_v25  ;;  %v1119_v14 = vperm.slane %v17353_v13, 4  ;;  %v16733_v20 = vld [vmem:[#allocation2 + $0x1c24] sm:$0xf] }
 0x153   :  { %6761 = vmatpush.bf16.msra.mxu3 %v13788_v40  ;;  %6780 = vmatpush.bf16.msrb.mxu1 %v12640_v43  ;;  %v14301_v21 = vld [vmem:[#allocation2 + $0x1ca0] sm:$0xf0] }
 0x154   :  { %6749 = vmatmul.bf16.vlgmr.msra.gmra.mxu2 %v17283_v8  ;;  %v15933_v27 = vld [vmem:[#allocation2 + $0x324] sm:$0xf]  ;;  %v6517_v30 = vadd.f32 %v6516_v23, %v1119_v14  ;;  %v14304_v32 = vor.u32 %v16733_v20, %v14301_v21  ;;  %v6542_v46 = vpop.f32.mrf.mxu2  ;;  %v6531_v1 = vpop.f32.mrf.mxu1 }
 0x155   :  { %6793 = vmatpush.bf16.msrb.mxu2 %v13664_v44  ;;  %6768 = vmatpush.bf16.msrb.mxu0 %v11488_v54  ;;  %v11101_v28 = vld [vmem:[#allocation2 + $0x3a0] sm:$0xf0]  ;;  %v6518_v57 = vpop.f32.mrf.mxu0  ;;  %v16526_v1 = vld [vmem:[#allocation2 + $0x15a4] sm:$0xf0] }
 0x156   :  { %6762 = vmatmul.bf16.vlgmr.msra.gmra.mxu3 %v17290_v15  ;;  %v16189_v29 = vld [vmem:[#allocation2 + $0xb24] sm:$0xf]  ;;  %v6530_v37 = vadd.f32 %v6529_v31, %v6517_v30  ;;  %v11104_v39 = vor.u32 %v15933_v27, %v11101_v28  ;;  %v6555_v52 = vpop.f32.mrf.mxu3  ;;  %v11619_v28 = vld [vmem:[#allocation2 + $0x728] sm:$0xf] }
 0x157   :  { %6806 = vmatpush.bf16.msrb.mxu3 %v14688_v48  ;;  %6781 = vmatpush.bf16.msrb.mxu1 %v12512_v55  ;;  %v12125_v33 = vld [vmem:[#allocation2 + $0xba0] sm:$0xf0]  ;;  %v12643_v30 = vld [vmem:[#allocation2 + $0xf28] sm:$0xf] }
 0x158   :  { %v16445_v34 = vld [vmem:[#allocation2 + $0x1324] sm:$0xf]  ;;  %v12128_v40 = vor.u32 %v16189_v29, %v12125_v33  ;;  %v6543_v51 = vadd.f32 %v6542_v46, %v6530_v37  ;;  %v16078_v29 = vld [vmem:[#allocation2 + $0x7a4] sm:$0xf0] }
 0x159   :  { %6794 = vmatpush.bf16.msrb.mxu2 %v13536_v56  ;;  %6769 = vmatpush.bf16.msrb.mxu0 %v11360_v4  ;;  %v13149_v42 = vld [vmem:[#allocation2 + $0x13a0] sm:$0xf0]  ;;  %v13667_v33 = vld [vmem:[#allocation2 + $0x1728] sm:$0xf] }
 0x15a   :  { %v16701_v35 = vld [vmem:[#allocation2 + $0x1b24] sm:$0xf]  ;;  %v13152_v41 = vor.u32 %v16445_v34, %v13149_v42  ;;  %v17356_v56 = vadd.f32 %v6555_v52, %v6543_v51  ;;  %v16590_v34 = vld [vmem:[#allocation2 + $0x17a4] sm:$0xf0] }
 0x15b   :  { %6807 = vmatpush.bf16.msrb.mxu3 %v14560_v61  ;;  %6782 = vmatpush.bf16.msrb.mxu1 %v12384_v7  ;;  %v14173_v36 = vld [vmem:[#allocation2 + $0x1ba0] sm:$0xf0]  ;;  %v16846_v37 = vld [vmem:[#allocation2 + $0x1fa4] sm:$0xf0] }
 0x15c   :  { %v15901_v43 = vld [vmem:[#allocation2 + $0x224] sm:$0xf]  ;;  %v14176_v47 = vor.u32 %v16701_v35, %v14173_v36  ;;  %v6544_v21 = vpop.f32.mrf.mxu2  ;;  %v14691_v36 = vld [vmem:[#allocation2 + $0x1f28] sm:$0xf]  ;;  %vm7967_vm4 = vcmp.ge.f32.partialorder %v17356_v56, 0.0 }
 0x15d   :  { %6795 = vmatpush.bf16.msrb.mxu2 %v13408_v10  ;;  %6770 = vmatpush.bf16.msrb.mxu0 %v11232_v22  ;;  %v10973_v44 = vld [vmem:[#allocation2 + $0x2a0] sm:$0xf0]  ;;  %v12515_v46 = vld [vmem:[#allocation2 + $0xe28] sm:$0xf] }
 0x15e   :  { %v16157_v45 = vld [vmem:[#allocation2 + $0xa24] sm:$0xf]  ;;  %v10976_v55 = vor.u32 %v15901_v43, %v10973_v44  ;;  %v6557_v27 = vpop.f32.mrf.mxu3  ;;  %v13668_v43 = vor.u32 %v16590_v34, %v13667_v33  ;;  %v11491_v44 = vld [vmem:[#allocation2 + $0x628] sm:$0xf] }
 0x15f   :  { %6808 = vmatpush.bf16.msrb.mxu3 %v14432_v16  ;;  %6783 = vmatpush.bf16.msrb.mxu1 %v12256_v24  ;;  %v11997_v48 = vld [vmem:[#allocation2 + $0xaa0] sm:$0xf0]  ;;  %v14563_v51 = vld [vmem:[#allocation2 + $0x1e28] sm:$0xf] }
 0x160   :  { %v13021_v50 = vld [vmem:[#allocation2 + $0x12a0] sm:$0xf0]  ;;  %v12000_v58 = vor.u32 %v16157_v45, %v11997_v48  ;;  %v16046_v45 = vld [vmem:[#allocation2 + $0x6a4] sm:$0xf0] }
 0x161   :  { %6796 = vmatpush.bf16.msrb.mxu2 %v13280_v26  ;;  %v16669_v53 = vld [vmem:[#allocation2 + $0x1a24] sm:$0xf]  ;;  %6771 = vmatpush.bf16.msrb.mxu0 %v11104_v39  ;;  %v13024_v60 = vor.u32 %v16413_v49, %v13021_v50  ;;  %v16302_v48 = vld [vmem:[#allocation2 + $0xea4] sm:$0xf0] }
 0x162   :  { %v14045_v54 = vld [vmem:[#allocation2 + $0x1aa0] sm:$0xf0]  ;;  %v13539_v49 = vld [vmem:[#allocation2 + $0x1628] sm:$0xf] }
 0x163   :  { %6809 = vmatpush.bf16.msrb.mxu3 %v14304_v32  ;;  %6784 = vmatpush.bf16.msrb.mxu1 %v12128_v40  ;;  %v15869_v61 = vld [vmem:[#allocation2 + $0x124] sm:$0xf]  ;;  %v14048_v2 = vor.u32 %v16669_v53, %v14045_v54  ;;  %v16334_v32 = vld [vmem:[#allocation2 + $0xfa4] sm:$0xf0]  ;;  %v11620_v40 = vor.u32 %v16078_v29, %v11619_v28  ;;  %v11492_v53 = vor.u32 %v16046_v45, %v11491_v44 }
 0x164   :  { %v10845_v62 = vld [vmem:[#allocation2 + $0x1a0] sm:$0xf0]  ;;  %v16558_v50 = vld [vmem:[#allocation2 + $0x16a4] sm:$0xf0]  ;;  %v12516_v54 = vor.u32 %v16302_v48, %v12515_v46 }
 0x165   :  { %6797 = vmatpush.bf16.msrb.mxu2 %v13152_v41  ;;  %v16125_v63 = vld [vmem:[#allocation2 + $0x924] sm:$0xf]  ;;  %6772 = vmatpush.bf16.msrb.mxu0 %v10976_v55  ;;  %v10848_v11 = vor.u32 %v15869_v61, %v10845_v62  ;;  %v12644_v41 = vor.u32 %v16334_v32, %v12643_v30  ;;  %v16814_v52 = vld [vmem:[#allocation2 + $0x1ea4] sm:$0xf0]  ;;  %v13540_v55 = vor.u32 %v16558_v50, %v13539_v49 }
 0x166   :  { %v11869_v3 = vld [vmem:[#allocation2 + $0x9a0] sm:$0xf0]  ;;  %v11363_v57 = vld [vmem:[#allocation2 + $0x528] sm:$0xf]  ;;  %v14564_v61 = vor.u32 %v16814_v52, %v14563_v51 }
 0x167   :  { %6810 = vmatpush.bf16.msrb.mxu3 %v14176_v47  ;;  %v16381_v4 = vld [vmem:[#allocation2 + $0x1124] sm:$0xf]  ;;  %6785 = vmatpush.bf16.msrb.mxu1 %v12000_v58  ;;  %v11872_v16 = vor.u32 %v16125_v63, %v11869_v3  ;;  %v14692_v47 = vor.u32 %v16846_v37, %v14691_v36  ;;  %v16014_v58 = vld [vmem:[#allocation2 + $0x5a4] sm:$0xf0] }
 0x168   :  { %v12893_v5 = vld [vmem:[#allocation2 + $0x11a0] sm:$0xf0]  ;;  %v16270_v62 = vld [vmem:[#allocation2 + $0xda4] sm:$0xf0] }
 0x169   :  { %v16637_v7 = vld [vmem:[#allocation2 + $0x1924] sm:$0xf]  ;;  %6798 = vmatpush.bf16.msrb.mxu2 %v13024_v60  ;;  %v12896_v17 = vor.u32 %v16381_v4, %v12893_v5  ;;  %6773 = vmatpush.bf16.msrb.mxu0 %v10848_v11  ;;  %v12387_v60 = vld [vmem:[#allocation2 + $0xd28] sm:$0xf]  ;;  %v11364_v4 = vor.u32 %v16014_v58, %v11363_v57 }
 0x16a   :  { %v13917_v10 = vld [vmem:[#allocation2 + $0x19a0] sm:$0xf0]  ;;  %v13411_v63 = vld [vmem:[#allocation2 + $0x1528] sm:$0xf] }
 0x16b   :  { %v15837_v12 = vld [vmem:[#allocation2 + $0x24] sm:$0xf]  ;;  %6811 = vmatpush.bf16.msrb.mxu3 %v14048_v2  ;;  %v13920_v22 = vor.u32 %v16637_v7, %v13917_v10  ;;  %6786 = vmatpush.bf16.msrb.mxu1 %v11872_v16  ;;  %v14435_v2 = vld [vmem:[#allocation2 + $0x1d28] sm:$0xf]  ;;  %v12388_v7 = vor.u32 %v16270_v62, %v12387_v60  ;;  %v13412_v10 = vor.u32 %v16526_v1, %v13411_v63 }
 0x16c   :  { %v10717_v14 = vld [vmem:[#allocation2 + $0xa0] sm:$0xf0]  ;;  %v16782_v3 = vld [vmem:[#allocation2 + $0x1da4] sm:$0xf0] }
 0x16d   :  { %v16093_v18 = vld [vmem:[#allocation2 + $0x824] sm:$0xf]  ;;  %v10720_v31 = vor.u32 %v15837_v12, %v10717_v14  ;;  %6799 = vmatpush.bf16.msrb.mxu2 %v12896_v17  ;;  %v11235_v5 = vld [vmem:[#allocation2 + $0x428] sm:$0xf]  ;;  %v1120_v14 = vperm.slane %v17353_v13, 5  ;;  %v14436_v16 = vor.u32 %v16782_v3, %v14435_v2 }
 0x16e   :  { %v11741_v19 = vld [vmem:[#allocation2 + $0x8a0] sm:$0xf0]  ;;  %v15982_v11 = vld [vmem:[#allocation2 + $0x4a4] sm:$0xf0] }
 0x16f   :  { %v16349_v20 = vld [vmem:[#allocation2 + $0x1024] sm:$0xf]  ;;  %v11744_v42 = vor.u32 %v16093_v18, %v11741_v19  ;;  %6812 = vmatpush.bf16.msrb.mxu3 %v13920_v22  ;;  %6774 = vmatpush.bf16.msrb.mxu0 %v10720_v31  ;;  %v12259_v12 = vld [vmem:[#allocation2 + $0xc28] sm:$0xf]  ;;  %v11236_v22 = vor.u32 %v15982_v11, %v11235_v5  ;;  %v6581_v31 = vpop.f32.mrf.mxu1 }
 0x170   :  { %v12765_v23 = vld [vmem:[#allocation2 + $0x10a0] sm:$0xf0]  ;;  %v16238_v17 = vld [vmem:[#allocation2 + $0xca4] sm:$0xf0] }
 0x171   :  { %v16605_v24 = vld [vmem:[#allocation2 + $0x1824] sm:$0xf]  ;;  %v12768_v35 = vor.u32 %v16349_v20, %v12765_v23  ;;  %6787 = vmatpush.bf16.msrb.mxu1 %v11744_v42  ;;  %v13283_v18 = vld [vmem:[#allocation2 + $0x1428] sm:$0xf]  ;;  %v6568_v23 = vpop.f32.mrf.mxu0 }
 0x172   :  { %v13789_v26 = vld [vmem:[#allocation2 + $0x18a0] sm:$0xf0]  ;;  %6775 = vmatmul.bf16.vlgmr.msrb.gmra.mxu0 %v17285_v9  ;;  %v16494_v19 = vld [vmem:[#allocation2 + $0x14a4] sm:$0xf0]  ;;  %v6569_v30 = vadd.f32 %v6568_v23, %v1120_v14 }
 0x173   :  { %v13792_v39 = vor.u32 %v16605_v24, %v13789_v26  ;;  %6800 = vmatpush.bf16.msrb.mxu2 %v12768_v35  ;;  %6819 = vmatpush.bf16.msra.mxu0 %v11620_v40  ;;  %v14307_v20 = vld [vmem:[#allocation2 + $0x1c28] sm:$0xf]  ;;  %v12260_v24 = vor.u32 %v16238_v17, %v12259_v12  ;;  %v13284_v26 = vor.u32 %v16494_v19, %v13283_v18 }
 0x174   :  { %6788 = vmatmul.bf16.vlgmr.msrb.gmra.mxu1 %v17298_v25  ;;  %v16750_v21 = vld [vmem:[#allocation2 + $0x1ca4] sm:$0xf0]  ;;  %v6582_v37 = vadd.f32 %v6581_v31, %v6569_v30  ;;  %v6594_v46 = vpop.f32.mrf.mxu2  ;;  %v11621_v30 = vld [vmem:[#allocation2 + $0x7a8] sm:$0xf0] }
 0x175   :  { %6813 = vmatpush.bf16.msrb.mxu3 %v13792_v39  ;;  %6832 = vmatpush.bf16.msra.mxu1 %v12644_v41  ;;  %v11107_v27 = vld [vmem:[#allocation2 + $0x328] sm:$0xf]  ;;  %v14308_v32 = vor.u32 %v16750_v21, %v14307_v20  ;;  %v16318_v31 = vld [vmem:[#allocation2 + $0xf2c] sm:$0xf] }
 0x176   :  { %6801 = vmatmul.bf16.vlgmr.msrb.gmra.mxu2 %v17283_v8  ;;  %v15950_v28 = vld [vmem:[#allocation2 + $0x3a4] sm:$0xf0]  ;;  %v6595_v51 = vadd.f32 %v6594_v46, %v6582_v37  ;;  %v6607_v52 = vpop.f32.mrf.mxu3  ;;  %v16830_v37 = vld [vmem:[#allocation2 + $0x1f2c] sm:$0xf] }
 0x177   :  { %6845 = vmatpush.bf16.msra.mxu2 %v13668_v43  ;;  %6820 = vmatpush.bf16.msra.mxu0 %v11492_v53  ;;  %v12131_v29 = vld [vmem:[#allocation2 + $0xb28] sm:$0xf]  ;;  %v11108_v39 = vor.u32 %v15950_v28, %v11107_v27  ;;  %v6583_v2 = vpop.f32.mrf.mxu1  ;;  %v11493_v46 = vld [vmem:[#allocation2 + $0x6a8] sm:$0xf0] }
 0x178   :  { %6814 = vmatmul.bf16.vlgmr.msrb.gmra.mxu3 %v17290_v15  ;;  %v16206_v33 = vld [vmem:[#allocation2 + $0xba4] sm:$0xf0]  ;;  %v17363_v57 = vadd.f32 %v6607_v52, %v6595_v51  ;;  %v13541_v51 = vld [vmem:[#allocation2 + $0x16a8] sm:$0xf0] }
 0x179   :  { %6858 = vmatpush.bf16.msra.mxu3 %v14692_v47  ;;  %6833 = vmatpush.bf16.msra.mxu1 %v12516_v54  ;;  %v13155_v34 = vld [vmem:[#allocation2 + $0x1328] sm:$0xf]  ;;  %v12132_v40 = vor.u32 %v16206_v33, %v12131_v29  ;;  %v6570_v58 = vpop.f32.mrf.mxu0  ;;  %v16062_v29 = vld [vmem:[#allocation2 + $0x72c] sm:$0xf] }
 0x17a   :  { %v16462_v42 = vld [vmem:[#allocation2 + $0x13a4] sm:$0xf0]  ;;  %v12645_v33 = vld [vmem:[#allocation2 + $0xfa8] sm:$0xf0]  ;;  %vm7968_vm5 = vcmp.ge.f32.partialorder %v17363_v57, 0.0 }
 0x17b   :  { %6846 = vmatpush.bf16.msra.mxu2 %v13540_v55  ;;  %6821 = vmatpush.bf16.msra.mxu0 %v11364_v4  ;;  %v14179_v35 = vld [vmem:[#allocation2 + $0x1b28] sm:$0xf]  ;;  %v13156_v41 = vor.u32 %v16462_v42, %v13155_v34  ;;  %v16574_v34 = vld [vmem:[#allocation2 + $0x172c] sm:$0xf] }
 0x17c   :  { %v16718_v36 = vld [vmem:[#allocation2 + $0x1ba4] sm:$0xf0]  ;;  %v13669_v42 = vld [vmem:[#allocation2 + $0x17a8] sm:$0xf0] }
 0x17d   :  { %6859 = vmatpush.bf16.msra.mxu3 %v14564_v61  ;;  %6834 = vmatpush.bf16.msra.mxu1 %v12388_v7  ;;  %v10979_v43 = vld [vmem:[#allocation2 + $0x228] sm:$0xf]  ;;  %v14180_v47 = vor.u32 %v16718_v36, %v14179_v35  ;;  %v16798_v52 = vld [vmem:[#allocation2 + $0x1e2c] sm:$0xf] }
 0x17e   :  { %v15918_v44 = vld [vmem:[#allocation2 + $0x2a4] sm:$0xf0]  ;;  %v6609_v28 = vpop.f32.mrf.mxu3  ;;  %v16510_v2 = vld [vmem:[#allocation2 + $0x152c] sm:$0xf] }
 0x17f   :  { %6847 = vmatpush.bf16.msra.mxu2 %v13412_v10  ;;  %6822 = vmatpush.bf16.msra.mxu0 %v11236_v22  ;;  %v12003_v45 = vld [vmem:[#allocation2 + $0xa28] sm:$0xf]  ;;  %v10980_v55 = vor.u32 %v15918_v44, %v10979_v43  ;;  %v6596_v22 = vpop.f32.mrf.mxu2  ;;  %v12648_v43 = vor.u32 %v16318_v31, %v12645_v33  ;;  %v13672_v44 = vor.u32 %v16574_v34, %v13669_v42  ;;  %v16190_v31 = vld [vmem:[#allocation2 + $0xb2c] sm:$0xf] }
 0x180   :  { %v16174_v48 = vld [vmem:[#allocation2 + $0xaa4] sm:$0xf0]  ;;  %v16734_v22 = vld [vmem:[#allocation2 + $0x1c2c] sm:$0xf] }
 0x181   :  { %6860 = vmatpush.bf16.msra.mxu3 %v14436_v16  ;;  %6835 = vmatpush.bf16.msra.mxu1 %v12260_v24  ;;  %v13027_v49 = vld [vmem:[#allocation2 + $0x1228] sm:$0xf]  ;;  %v12004_v60 = vor.u32 %v16174_v48, %v12003_v45  ;;  %v16030_v45 = vld [vmem:[#allocation2 + $0x62c] sm:$0xf] }
 0x182   :  { %v16430_v50 = vld [vmem:[#allocation2 + $0x12a4] sm:$0xf0]  ;;  %v12133_v42 = vld [vmem:[#allocation2 + $0xba8] sm:$0xf0] }
 0x183   :  { %6848 = vmatpush.bf16.msra.mxu2 %v13284_v26  ;;  %v14051_v53 = vld [vmem:[#allocation2 + $0x1a28] sm:$0xf]  ;;  %6823 = vmatpush.bf16.msra.mxu0 %v11108_v39  ;;  %v13028_v61 = vor.u32 %v16430_v50, %v13027_v49  ;;  %v14693_v39 = vld [vmem:[#allocation2 + $0x1fa8] sm:$0xf0] }
 0x184   :  { %v16686_v54 = vld [vmem:[#allocation2 + $0x1aa4] sm:$0xf0]  ;;  %v14696_v48 = vor.u32 %v16830_v37, %v14693_v39  ;;  %v12517_v49 = vld [vmem:[#allocation2 + $0xea8] sm:$0xf0] }
 0x185   :  { %6861 = vmatpush.bf16.msra.mxu3 %v14308_v32  ;;  %6836 = vmatpush.bf16.msra.mxu1 %v12132_v40  ;;  %v10851_v62 = vld [vmem:[#allocation2 + $0x128] sm:$0xf]  ;;  %v14052_v3 = vor.u32 %v16686_v54, %v14051_v53  ;;  %v16542_v50 = vld [vmem:[#allocation2 + $0x162c] sm:$0xf]  ;;  %v11496_v54 = vor.u32 %v16030_v45, %v11493_v46 }
 0x186   :  { %v15886_v63 = vld [vmem:[#allocation2 + $0x1a4] sm:$0xf0]  ;;  %v14565_v53 = vld [vmem:[#allocation2 + $0x1ea8] sm:$0xf0]  ;;  %v13544_v58 = vor.u32 %v16542_v50, %v13541_v51 }
 0x187   :  { %6849 = vmatpush.bf16.msra.mxu2 %v13156_v41  ;;  %v11875_v1 = vld [vmem:[#allocation2 + $0x928] sm:$0xf]  ;;  %6824 = vmatpush.bf16.msra.mxu0 %v10980_v55  ;;  %v10852_v12 = vor.u32 %v15886_v63, %v10851_v62  ;;  %v11624_v41 = vor.u32 %v16062_v29, %v11621_v30  ;;  %v16254_v62 = vld [vmem:[#allocation2 + $0xd2c] sm:$0xf]  ;;  %v14568_v63 = vor.u32 %v16798_v52, %v14565_v53 }
 0x188   :  { %v16142_v4 = vld [vmem:[#allocation2 + $0x9a4] sm:$0xf0]  ;;  %v15934_v29 = vld [vmem:[#allocation2 + $0x32c] sm:$0xf] }
 0x189   :  { %6862 = vmatpush.bf16.msra.mxu3 %v14180_v47  ;;  %v12899_v5 = vld [vmem:[#allocation2 + $0x1128] sm:$0xf]  ;;  %6837 = vmatpush.bf16.msra.mxu1 %v12004_v60  ;;  %v11876_v17 = vor.u32 %v16142_v4, %v11875_v1  ;;  %v16286_v47 = vld [vmem:[#allocation2 + $0xe2c] sm:$0xf] }
 0x18a   :  { %v16398_v7 = vld [vmem:[#allocation2 + $0x11a4] sm:$0xf0]  ;;  %v12520_v55 = vor.u32 %v16286_v47, %v12517_v49  ;;  %v15998_v60 = vld [vmem:[#allocation2 + $0x52c] sm:$0xf] }
 0x18b   :  { %v13923_v10 = vld [vmem:[#allocation2 + $0x1928] sm:$0xf]  ;;  %6850 = vmatpush.bf16.msra.mxu2 %v13028_v61  ;;  %v12900_v18 = vor.u32 %v16398_v7, %v12899_v5  ;;  %6825 = vmatpush.bf16.msra.mxu0 %v10852_v12  ;;  %v11365_v61 = vld [vmem:[#allocation2 + $0x5a8] sm:$0xf0] }
 0x18c   :  { %v16654_v11 = vld [vmem:[#allocation2 + $0x19a4] sm:$0xf0]  ;;  %v12389_v1 = vld [vmem:[#allocation2 + $0xda8] sm:$0xf0]  ;;  %v11368_v7 = vor.u32 %v15998_v60, %v11365_v61  ;;  %v6633_v33 = vpop.f32.mrf.mxu1 }
 0x18d   :  { %v10723_v14 = vld [vmem:[#allocation2 + $0x28] sm:$0xf]  ;;  %6863 = vmatpush.bf16.msra.mxu3 %v14052_v3  ;;  %v13924_v23 = vor.u32 %v16654_v11, %v13923_v10  ;;  %6838 = vmatpush.bf16.msra.mxu1 %v11876_v17  ;;  %v13413_v3 = vld [vmem:[#allocation2 + $0x15a8] sm:$0xf0]  ;;  %v12392_v11 = vor.u32 %v16254_v62, %v12389_v1  ;;  %v1121_v17 = vperm.slane %v17353_v13, 6 }
 0x18e   :  { %v15854_v16 = vld [vmem:[#allocation2 + $0xa4] sm:$0xf0]  ;;  %v16766_v4 = vld [vmem:[#allocation2 + $0x1d2c] sm:$0xf]  ;;  %v13416_v12 = vor.u32 %v16510_v2, %v13413_v3 }
 0x18f   :  { %v11747_v19 = vld [vmem:[#allocation2 + $0x828] sm:$0xf]  ;;  %v10724_v32 = vor.u32 %v15854_v16, %v10723_v14  ;;  %6851 = vmatpush.bf16.msra.mxu2 %v12900_v18  ;;  %v14437_v5 = vld [vmem:[#allocation2 + $0x1da8] sm:$0xf0] }
 0x190   :  { %v16110_v20 = vld [vmem:[#allocation2 + $0x8a4] sm:$0xf0]  ;;  %v15966_v10 = vld [vmem:[#allocation2 + $0x42c] sm:$0xf]  ;;  %v14440_v18 = vor.u32 %v16766_v4, %v14437_v5 }
 0x191   :  { %v12771_v21 = vld [vmem:[#allocation2 + $0x1028] sm:$0xf]  ;;  %v11748_v35 = vor.u32 %v16110_v20, %v11747_v19  ;;  %6864 = vmatpush.bf16.msra.mxu3 %v13924_v23  ;;  %6826 = vmatpush.bf16.msra.mxu0 %v10724_v32  ;;  %v11237_v14 = vld [vmem:[#allocation2 + $0x4a8] sm:$0xf0] }
 0x192   :  { %v16366_v24 = vld [vmem:[#allocation2 + $0x10a4] sm:$0xf0]  ;;  %v16222_v16 = vld [vmem:[#allocation2 + $0xc2c] sm:$0xf] }
 0x193   :  { %v13795_v26 = vld [vmem:[#allocation2 + $0x1828] sm:$0xf]  ;;  %v12772_v36 = vor.u32 %v16366_v24, %v12771_v21  ;;  %6839 = vmatpush.bf16.msra.mxu1 %v11748_v35  ;;  %v12261_v19 = vld [vmem:[#allocation2 + $0xca8] sm:$0xf0]  ;;  %v11240_v24 = vor.u32 %v15966_v10, %v11237_v14 }
 0x194   :  { %v16622_v27 = vld [vmem:[#allocation2 + $0x18a4] sm:$0xf0]  ;;  %6827 = vmatmul.bf16.vlgmr.msra.gmra.mxu0 %v17285_v9  ;;  %v16478_v20 = vld [vmem:[#allocation2 + $0x142c] sm:$0xf]  ;;  %v6635_v5 = vpop.f32.mrf.mxu1 }
 0x195   :  { %v13796_v40 = vor.u32 %v16622_v27, %v13795_v26  ;;  %6852 = vmatpush.bf16.msra.mxu2 %v12772_v36  ;;  %6871 = vmatpush.bf16.msrb.mxu0 %v11624_v41  ;;  %v13285_v21 = vld [vmem:[#allocation2 + $0x14a8] sm:$0xf0]  ;;  %v6620_v26 = vpop.f32.mrf.mxu0  ;;  %v12264_v27 = vor.u32 %v16222_v16, %v12261_v19  ;;  %v16271_v5 = vld [vmem:[#allocation2 + $0xdac] sm:$0xf0] }
 0x196   :  { %6840 = vmatmul.bf16.vlgmr.msra.gmra.mxu1 %v17298_v25  ;;  %v14309_v23 = vld [vmem:[#allocation2 + $0x1ca8] sm:$0xf0]  ;;  %v13288_v28 = vor.u32 %v16478_v20, %v13285_v21  ;;  %v6621_v32 = vadd.f32 %v6620_v26, %v1121_v17 }
 0x197   :  { %6865 = vmatpush.bf16.msra.mxu3 %v13796_v40  ;;  %6884 = vmatpush.bf16.msrb.mxu1 %v12648_v43  ;;  %v11109_v30 = vld [vmem:[#allocation2 + $0x3a8] sm:$0xf0]  ;;  %v14312_v34 = vor.u32 %v16734_v22, %v14309_v23  ;;  %v12136_v43 = vor.u32 %v16190_v31, %v12133_v42 }
 0x198   :  { %6853 = vmatmul.bf16.vlgmr.msra.gmra.mxu2 %v17283_v8  ;;  %v16446_v35 = vld [vmem:[#allocation2 + $0x132c] sm:$0xf]  ;;  %v6634_v40 = vadd.f32 %v6633_v33, %v6621_v32  ;;  %v11112_v41 = vor.u32 %v15934_v29, %v11109_v30  ;;  %v11627_v32 = vld [vmem:[#allocation2 + $0x730] sm:$0xf] }
 0x199   :  { %6897 = vmatpush.bf16.msrb.mxu2 %v13672_v44  ;;  %6872 = vmatpush.bf16.msrb.mxu0 %v11496_v54  ;;  %v13157_v36 = vld [vmem:[#allocation2 + $0x13a8] sm:$0xf0]  ;;  %v6659_v54 = vpop.f32.mrf.mxu3  ;;  %v16079_v33 = vld [vmem:[#allocation2 + $0x7ac] sm:$0xf0] }
 0x19a   :  { %6866 = vmatmul.bf16.vlgmr.msra.gmra.mxu3 %v17290_v15  ;;  %v16702_v37 = vld [vmem:[#allocation2 + $0x1b2c] sm:$0xf]  ;;  %v13160_v44 = vor.u32 %v16446_v35, %v13157_v36  ;;  %v16335_v35 = vld [vmem:[#allocation2 + $0xfac] sm:$0xf0] }
 0x19b   :  { %6910 = vmatpush.bf16.msrb.mxu3 %v14696_v48  ;;  %6885 = vmatpush.bf16.msrb.mxu1 %v12520_v55  ;;  %v14181_v39 = vld [vmem:[#allocation2 + $0x1ba8] sm:$0xf0]  ;;  %v6646_v48 = vpop.f32.mrf.mxu2  ;;  %v13675_v36 = vld [vmem:[#allocation2 + $0x1730] sm:$0xf] }
 0x19c   :  { %v15902_v45 = vld [vmem:[#allocation2 + $0x22c] sm:$0xf]  ;;  %v14184_v49 = vor.u32 %v16702_v37, %v14181_v39  ;;  %v6647_v53 = vadd.f32 %v6646_v48, %v6634_v40  ;;  %v16591_v37 = vld [vmem:[#allocation2 + $0x17ac] sm:$0xf0] }
 0x19d   :  { %6898 = vmatpush.bf16.msrb.mxu2 %v13544_v58  ;;  %6873 = vmatpush.bf16.msrb.mxu0 %v11368_v7  ;;  %v10981_v46 = vld [vmem:[#allocation2 + $0x2a8] sm:$0xf0]  ;;  %v6622_v62 = vpop.f32.mrf.mxu0  ;;  %v11499_v48 = vld [vmem:[#allocation2 + $0x630] sm:$0xf] }
 0x19e   :  { %v16158_v47 = vld [vmem:[#allocation2 + $0xa2c] sm:$0xf]  ;;  %v10984_v60 = vor.u32 %v15902_v45, %v10981_v46  ;;  %v17370_v61 = vadd.f32 %v6659_v54, %v6647_v53  ;;  %v11628_v45 = vor.u32 %v16079_v33, %v11627_v32  ;;  %v13547_v53 = vld [vmem:[#allocation2 + $0x1630] sm:$0xf] }
 0x19f   :  { %6911 = vmatpush.bf16.msrb.mxu3 %v14568_v63  ;;  %6886 = vmatpush.bf16.msrb.mxu1 %v12392_v11  ;;  %v12005_v50 = vld [vmem:[#allocation2 + $0xaa8] sm:$0xf0]  ;;  %v16559_v54 = vld [vmem:[#allocation2 + $0x16ac] sm:$0xf0] }
 0x1a0   :  { %v16414_v51 = vld [vmem:[#allocation2 + $0x122c] sm:$0xf]  ;;  %v12008_v63 = vor.u32 %v16158_v47, %v12005_v50  ;;  %v13676_v47 = vor.u32 %v16591_v37, %v13675_v36  ;;  %v12523_v50 = vld [vmem:[#allocation2 + $0xe30] sm:$0xf]  ;;  %vm7969_vm6 = vcmp.ge.f32.partialorder %v17370_v61, 0.0 }
 0x1a1   :  { %6899 = vmatpush.bf16.msrb.mxu2 %v13416_v12  ;;  %6874 = vmatpush.bf16.msrb.mxu0 %v11240_v24  ;;  %v13029_v52 = vld [vmem:[#allocation2 + $0x12a8] sm:$0xf0]  ;;  %v6661_v31 = vpop.f32.mrf.mxu3  ;;  %v11115_v33 = vld [vmem:[#allocation2 + $0x330] sm:$0xf] }
 0x1a2   :  { %v16670_v55 = vld [vmem:[#allocation2 + $0x1a2c] sm:$0xf]  ;;  %v13032_v1 = vor.u32 %v16414_v51, %v13029_v52  ;;  %v16303_v52 = vld [vmem:[#allocation2 + $0xeac] sm:$0xf0] }
 0x1a3   :  { %6912 = vmatpush.bf16.msrb.mxu3 %v14440_v18  ;;  %6887 = vmatpush.bf16.msrb.mxu1 %v12264_v27  ;;  %v14053_v58 = vld [vmem:[#allocation2 + $0x1aa8] sm:$0xf0]  ;;  %v6648_v26 = vpop.f32.mrf.mxu2  ;;  %v12524_v62 = vor.u32 %v16303_v52, %v12523_v50  ;;  %v16207_v37 = vld [vmem:[#allocation2 + $0xbac] sm:$0xf0] }
 0x1a4   :  { %v15870_v2 = vld [vmem:[#allocation2 + $0x12c] sm:$0xf]  ;;  %v14056_v7 = vor.u32 %v16670_v55, %v14053_v58  ;;  %v14571_v55 = vld [vmem:[#allocation2 + $0x1e30] sm:$0xf] }
 0x1a5   :  { %6900 = vmatpush.bf16.msrb.mxu2 %v13288_v28  ;;  %6875 = vmatpush.bf16.msrb.mxu0 %v11112_v41  ;;  %v10853_v3 = vld [vmem:[#allocation2 + $0x1a8] sm:$0xf0]  ;;  %v14699_v41 = vld [vmem:[#allocation2 + $0x1f30] sm:$0xf] }
 0x1a6   :  { %v16126_v4 = vld [vmem:[#allocation2 + $0x92c] sm:$0xf]  ;;  %v10856_v17 = vor.u32 %v15870_v2, %v10853_v3  ;;  %v16815_v58 = vld [vmem:[#allocation2 + $0x1eac] sm:$0xf0] }
 0x1a7   :  { %6913 = vmatpush.bf16.msrb.mxu3 %v14312_v34  ;;  %6888 = vmatpush.bf16.msrb.mxu1 %v12136_v43  ;;  %v11877_v10 = vld [vmem:[#allocation2 + $0x9a8] sm:$0xf0]  ;;  %v12651_v34 = vld [vmem:[#allocation2 + $0xf30] sm:$0xf] }
 0x1a8   :  { %v16382_v11 = vld [vmem:[#allocation2 + $0x112c] sm:$0xf]  ;;  %v11880_v20 = vor.u32 %v16126_v4, %v11877_v10  ;;  %v16847_v43 = vld [vmem:[#allocation2 + $0x1fac] sm:$0xf0]  ;;  %v12652_v46 = vor.u32 %v16335_v35, %v12651_v34  ;;  %v14572_v4 = vor.u32 %v16815_v58, %v14571_v55 }
 0x1a9   :  { %6901 = vmatpush.bf16.msrb.mxu2 %v13160_v44  ;;  %v12901_v12 = vld [vmem:[#allocation2 + $0x11a8] sm:$0xf0]  ;;  %6876 = vmatpush.bf16.msrb.mxu0 %v10984_v60  ;;  %v14700_v51 = vor.u32 %v16847_v43, %v14699_v41  ;;  %v16015_v2 = vld [vmem:[#allocation2 + $0x5ac] sm:$0xf0] }
 0x1aa   :  { %v16638_v14 = vld [vmem:[#allocation2 + $0x192c] sm:$0xf]  ;;  %v12904_v21 = vor.u32 %v16382_v11, %v12901_v12  ;;  %v12395_v3 = vld [vmem:[#allocation2 + $0xd30] sm:$0xf] }
 0x1ab   :  { %6914 = vmatpush.bf16.msrb.mxu3 %v14184_v49  ;;  %v13925_v16 = vld [vmem:[#allocation2 + $0x19a8] sm:$0xf0]  ;;  %6889 = vmatpush.bf16.msrb.mxu1 %v12008_v63  ;;  %v16047_v49 = vld [vmem:[#allocation2 + $0x6ac] sm:$0xf0]  ;;  %v13548_v63 = vor.u32 %v16559_v54, %v13547_v53 }
 0x1ac   :  { %v15838_v18 = vld [vmem:[#allocation2 + $0x2c] sm:$0xf]  ;;  %v13928_v27 = vor.u32 %v16638_v14, %v13925_v16  ;;  %v11500_v60 = vor.u32 %v16047_v49, %v11499_v48  ;;  %v16527_v10 = vld [vmem:[#allocation2 + $0x15ac] sm:$0xf0] }
 0x1ad   :  { %v10725_v19 = vld [vmem:[#allocation2 + $0xa8] sm:$0xf0]  ;;  %6902 = vmatpush.bf16.msrb.mxu2 %v13032_v1  ;;  %6877 = vmatpush.bf16.msrb.mxu0 %v10856_v17  ;;  %v11371_v1 = vld [vmem:[#allocation2 + $0x530] sm:$0xf]  ;;  %v12396_v17 = vor.u32 %v16271_v5, %v12395_v3  ;;  %v6685_v36 = vpop.f32.mrf.mxu1 }
 0x1ae   :  { %v16094_v22 = vld [vmem:[#allocation2 + $0x82c] sm:$0xf]  ;;  %v10728_v42 = vor.u32 %v15838_v18, %v10725_v19  ;;  %v14443_v11 = vld [vmem:[#allocation2 + $0x1d30] sm:$0xf]  ;;  %v11372_v14 = vor.u32 %v16015_v2, %v11371_v1 }
 0x1af   :  { %v11749_v23 = vld [vmem:[#allocation2 + $0x8a8] sm:$0xf0]  ;;  %6915 = vmatpush.bf16.msrb.mxu3 %v14056_v7  ;;  %6890 = vmatpush.bf16.msrb.mxu1 %v11880_v20  ;;  %v13419_v7 = vld [vmem:[#allocation2 + $0x1530] sm:$0xf] }
 0x1b0   :  { %v16350_v24 = vld [vmem:[#allocation2 + $0x102c] sm:$0xf]  ;;  %v11752_v39 = vor.u32 %v16094_v22, %v11749_v23  ;;  %v16783_v12 = vld [vmem:[#allocation2 + $0x1dac] sm:$0xf0]  ;;  %v13420_v18 = vor.u32 %v16527_v10, %v13419_v7 }
 0x1b1   :  { %v12773_v28 = vld [vmem:[#allocation2 + $0x10a8] sm:$0xf0]  ;;  %6903 = vmatpush.bf16.msrb.mxu2 %v12904_v21  ;;  %6878 = vmatpush.bf16.msrb.mxu0 %v10728_v42  ;;  %v11243_v16 = vld [vmem:[#allocation2 + $0x430] sm:$0xf]  ;;  %v1122_v21 = vperm.slane %v17353_v13, 7  ;;  %v14444_v22 = vor.u32 %v16783_v12, %v14443_v11 }
 0x1b2   :  { %v16606_v29 = vld [vmem:[#allocation2 + $0x182c] sm:$0xf]  ;;  %v12776_v40 = vor.u32 %v16350_v24, %v12773_v28  ;;  %v15983_v19 = vld [vmem:[#allocation2 + $0x4ac] sm:$0xf0] }
 0x1b3   :  { %v13797_v30 = vld [vmem:[#allocation2 + $0x18a8] sm:$0xf0]  ;;  %6916 = vmatpush.bf16.msrb.mxu3 %v13928_v27  ;;  %6891 = vmatpush.bf16.msrb.mxu1 %v11752_v39  ;;  %v12267_v20 = vld [vmem:[#allocation2 + $0xc30] sm:$0xf] }
 0x1b4   :  { %v13800_v44 = vor.u32 %v16606_v29, %v13797_v30  ;;  %6879 = vmatmul.bf16.vlgmr.msrb.gmra.mxu0 %v17285_v9  ;;  %v16239_v23 = vld [vmem:[#allocation2 + $0xcac] sm:$0xf0]  ;;  %v11244_v29 = vor.u32 %v15983_v19, %v11243_v16  ;;  %v6672_v30 = vpop.f32.mrf.mxu0 }
 0x1b5   :  { %6904 = vmatpush.bf16.msrb.mxu2 %v12776_v40  ;;  %6923 = vmatpush.bf16.msra.mxu0 %v11628_v45  ;;  %v13291_v24 = vld [vmem:[#allocation2 + $0x1430] sm:$0xf]  ;;  %v12268_v31 = vor.u32 %v16239_v23, %v12267_v20  ;;  %v6673_v35 = vadd.f32 %v6672_v30, %v1122_v21  ;;  %v6687_v12 = vpop.f32.mrf.mxu1 }
 0x1b6   :  { %6892 = vmatmul.bf16.vlgmr.msrb.gmra.mxu1 %v17298_v25  ;;  %v16495_v26 = vld [vmem:[#allocation2 + $0x14ac] sm:$0xf0] }
 0x1b7   :  { %6917 = vmatpush.bf16.msrb.mxu3 %v13800_v44  ;;  %6936 = vmatpush.bf16.msra.mxu1 %v12652_v46  ;;  %v14315_v27 = vld [vmem:[#allocation2 + $0x1c30] sm:$0xf]  ;;  %v13292_v32 = vor.u32 %v16495_v26, %v13291_v24  ;;  %v6686_v44 = vadd.f32 %v6685_v36, %v6673_v35  ;;  %v16063_v35 = vld [vmem:[#allocation2 + $0x734] sm:$0xf] }
 0x1b8   :  { %6905 = vmatmul.bf16.vlgmr.msrb.gmra.mxu2 %v17283_v8  ;;  %v16751_v28 = vld [vmem:[#allocation2 + $0x1cac] sm:$0xf0]  ;;  %v11629_v36 = vld [vmem:[#allocation2 + $0x7b0] sm:$0xf0] }
 0x1b9   :  { %6949 = vmatpush.bf16.msra.mxu2 %v13676_v47  ;;  %6924 = vmatpush.bf16.msra.mxu0 %v11500_v60  ;;  %v15951_v34 = vld [vmem:[#allocation2 + $0x3ac] sm:$0xf0]  ;;  %v14316_v13 = vor.u32 %v16751_v28, %v14315_v27  ;;  %v6711_v60 = vpop.f32.mrf.mxu3 }
 0x1ba   :  { %6918 = vmatmul.bf16.vlgmr.msrb.gmra.mxu3 %v17290_v15  ;;  %v12139_v42 = vld [vmem:[#allocation2 + $0xb30] sm:$0xf]  ;;  %v11116_v45 = vor.u32 %v15951_v34, %v11115_v33 }
 0x1bb   :  { %6962 = vmatpush.bf16.msra.mxu3 %v14700_v51  ;;  %6937 = vmatpush.bf16.msra.mxu1 %v12524_v62  ;;  %v13163_v39 = vld [vmem:[#allocation2 + $0x1330] sm:$0xf]  ;;  %v12140_v46 = vor.u32 %v16207_v37, %v12139_v42  ;;  %v6698_v51 = vpop.f32.mrf.mxu2 }
 0x1bc   :  { %v16463_v40 = vld [vmem:[#allocation2 + $0x13ac] sm:$0xf0]  ;;  %v6699_v58 = vadd.f32 %v6698_v51, %v6686_v44  ;;  %v6674_v3 = vpop.f32.mrf.mxu0  ;;  %v16031_v51 = vld [vmem:[#allocation2 + $0x634] sm:$0xf] }
 0x1bd   :  { %6950 = vmatpush.bf16.msra.mxu2 %v13548_v63  ;;  %6925 = vmatpush.bf16.msra.mxu0 %v11372_v14  ;;  %v14187_v41 = vld [vmem:[#allocation2 + $0x1b30] sm:$0xf]  ;;  %v13164_v47 = vor.u32 %v16463_v40, %v13163_v39  ;;  %v12653_v39 = vld [vmem:[#allocation2 + $0xfb0] sm:$0xf0] }
 0x1be   :  { %v16719_v43 = vld [vmem:[#allocation2 + $0x1bac] sm:$0xf0]  ;;  %v17377_v2 = vadd.f32 %v6711_v60, %v6699_v58  ;;  %v16575_v40 = vld [vmem:[#allocation2 + $0x1734] sm:$0xf] }
 0x1bf   :  { %6963 = vmatpush.bf16.msra.mxu3 %v14572_v4  ;;  %6938 = vmatpush.bf16.msra.mxu1 %v12396_v17  ;;  %v10987_v48 = vld [vmem:[#allocation2 + $0x230] sm:$0xf]  ;;  %v14188_v52 = vor.u32 %v16719_v43, %v14187_v41  ;;  %v13677_v41 = vld [vmem:[#allocation2 + $0x17b0] sm:$0xf0] }
 0x1c0   :  { %v15919_v49 = vld [vmem:[#allocation2 + $0x2ac] sm:$0xf0]  ;;  %v16543_v58 = vld [vmem:[#allocation2 + $0x1634] sm:$0xf]  ;;  %vm7970_vm7 = vcmp.ge.f32.partialorder %v17377_v2, 0.0 }
 0x1c1   :  { %6951 = vmatpush.bf16.msra.mxu2 %v13420_v18  ;;  %6926 = vmatpush.bf16.msra.mxu0 %v11244_v29  ;;  %v12011_v50 = vld [vmem:[#allocation2 + $0xa30] sm:$0xf]  ;;  %v10988_v1 = vor.u32 %v15919_v49, %v10987_v48  ;;  %v6713_v42 = vpop.f32.mrf.mxu3  ;;  %v11632_v48 = vor.u32 %v16063_v35, %v11629_v36  ;;  %v13549_v60 = vld [vmem:[#allocation2 + $0x16b0] sm:$0xf0] }
 0x1c2   :  { %v16175_v53 = vld [vmem:[#allocation2 + $0xaac] sm:$0xf0]  ;;  %v15999_v3 = vld [vmem:[#allocation2 + $0x534] sm:$0xf] }
 0x1c3   :  { %6964 = vmatpush.bf16.msra.mxu3 %v14444_v22  ;;  %6939 = vmatpush.bf16.msra.mxu1 %v12268_v31  ;;  %v13035_v54 = vld [vmem:[#allocation2 + $0x1230] sm:$0xf]  ;;  %v12012_v4 = vor.u32 %v16175_v53, %v12011_v50  ;;  %v6700_v30 = vpop.f32.mrf.mxu2  ;;  %v13680_v50 = vor.u32 %v16575_v40, %v13677_v41  ;;  %v16287_v53 = vld [vmem:[#allocation2 + $0xe34] sm:$0xf] }
 0x1c4   :  { %v16431_v55 = vld [vmem:[#allocation2 + $0x12ac] sm:$0xf0]  ;;  %v16479_v30 = vld [vmem:[#allocation2 + $0x1434] sm:$0xf] }
 0x1c5   :  { %6952 = vmatpush.bf16.msra.mxu2 %v13292_v32  ;;  %v14059_v62 = vld [vmem:[#allocation2 + $0x1a30] sm:$0xf]  ;;  %6927 = vmatpush.bf16.msra.mxu0 %v11116_v45  ;;  %v13036_v5 = vor.u32 %v16431_v55, %v13035_v54  ;;  %v16831_v45 = vld [vmem:[#allocation2 + $0x1f34] sm:$0xf] }
 0x1c6   :  { %v16687_v63 = vld [vmem:[#allocation2 + $0x1aac] sm:$0xf0]  ;;  %v12525_v55 = vld [vmem:[#allocation2 + $0xeb0] sm:$0xf0] }
 0x1c7   :  { %6965 = vmatpush.bf16.msra.mxu3 %v14316_v13  ;;  %6940 = vmatpush.bf16.msra.mxu1 %v12140_v46  ;;  %v10859_v7 = vld [vmem:[#allocation2 + $0x130] sm:$0xf]  ;;  %v14060_v14 = vor.u32 %v16687_v63, %v14059_v62  ;;  %v16319_v13 = vld [vmem:[#allocation2 + $0xf34] sm:$0xf] }
 0x1c8   :  { %v15887_v10 = vld [vmem:[#allocation2 + $0x1ac] sm:$0xf0]  ;;  %v14701_v46 = vld [vmem:[#allocation2 + $0x1fb0] sm:$0xf0]  ;;  %v12656_v49 = vor.u32 %v16319_v13, %v12653_v39 }
 0x1c9   :  { %6953 = vmatpush.bf16.msra.mxu2 %v13164_v47  ;;  %v11883_v11 = vld [vmem:[#allocation2 + $0x930] sm:$0xf]  ;;  %6928 = vmatpush.bf16.msra.mxu0 %v10988_v1  ;;  %v10860_v21 = vor.u32 %v15887_v10, %v10859_v7  ;;  %v14704_v54 = vor.u32 %v16831_v45, %v14701_v46  ;;  %v16799_v62 = vld [vmem:[#allocation2 + $0x1e34] sm:$0xf] }
 0x1ca   :  { %v16143_v16 = vld [vmem:[#allocation2 + $0x9ac] sm:$0xf0]  ;;  %v14573_v63 = vld [vmem:[#allocation2 + $0x1eb0] sm:$0xf0] }
 0x1cb   :  { %6966 = vmatpush.bf16.msra.mxu3 %v14188_v52  ;;  %v12907_v17 = vld [vmem:[#allocation2 + $0x1130] sm:$0xf]  ;;  %6941 = vmatpush.bf16.msra.mxu1 %v12012_v4  ;;  %v11884_v24 = vor.u32 %v16143_v16, %v11883_v11  ;;  %v11501_v52 = vld [vmem:[#allocation2 + $0x6b0] sm:$0xf0]  ;;  %v12528_v4 = vor.u32 %v16287_v53, %v12525_v55  ;;  %v14576_v12 = vor.u32 %v16799_v62, %v14573_v63 }
 0x1cc   :  { %v16399_v18 = vld [vmem:[#allocation2 + $0x11ac] sm:$0xf0]  ;;  %v11504_v1 = vor.u32 %v16031_v51, %v11501_v52  ;;  %v11373_v7 = vld [vmem:[#allocation2 + $0x5b0] sm:$0xf0] }
 0x1cd   :  { %v13931_v19 = vld [vmem:[#allocation2 + $0x1930] sm:$0xf]  ;;  %6954 = vmatpush.bf16.msra.mxu2 %v13036_v5  ;;  %v12908_v26 = vor.u32 %v16399_v18, %v12907_v17  ;;  %6929 = vmatpush.bf16.msra.mxu0 %v10860_v21  ;;  %v13552_v5 = vor.u32 %v16543_v58, %v13549_v60  ;;  %v16255_v10 = vld [vmem:[#allocation2 + $0xd34] sm:$0xf]  ;;  %v17383_v17 = vld [vmem:[%s17691_s2 + $0x8] sm:$0xff]  ;;  %v6724_v42 = vpop.f32.mrf.mxu0 }
 0x1ce   :  { %v16655_v20 = vld [vmem:[#allocation2 + $0x19ac] sm:$0xf0]  ;;  %v12397_v11 = vld [vmem:[#allocation2 + $0xdb0] sm:$0xf0] }
 0x1cf   :  { %v10731_v22 = vld [vmem:[#allocation2 + $0x30] sm:$0xf]  ;;  %6967 = vmatpush.bf16.msra.mxu3 %v14060_v14  ;;  %v13932_v31 = vor.u32 %v16655_v20, %v13931_v19  ;;  %6942 = vmatpush.bf16.msra.mxu1 %v11884_v24  ;;  %v16511_v14 = vld [vmem:[#allocation2 + $0x1534] sm:$0xf]  ;;  %v11376_v20 = vor.u32 %v15999_v3, %v11373_v7  ;;  %v6737_v41 = vpop.f32.mrf.mxu1 }
 0x1d0   :  { %v15855_v23 = vld [vmem:[#allocation2 + $0xac] sm:$0xf0]  ;;  %v13421_v16 = vld [vmem:[#allocation2 + $0x15b0] sm:$0xf0] }
 0x1d1   :  { %v11755_v27 = vld [vmem:[#allocation2 + $0x830] sm:$0xf]  ;;  %v10732_v37 = vor.u32 %v15855_v23, %v10731_v22  ;;  %6955 = vmatpush.bf16.msra.mxu2 %v12908_v26  ;;  %v16767_v18 = vld [vmem:[#allocation2 + $0x1d34] sm:$0xf]  ;;  %v12400_v22 = vor.u32 %v16255_v10, %v12397_v11  ;;  %v13424_v23 = vor.u32 %v16511_v14, %v13421_v16 }
 0x1d2   :  { %v16111_v28 = vld [vmem:[#allocation2 + $0x8ac] sm:$0xf0]  ;;  %v14445_v19 = vld [vmem:[#allocation2 + $0x1db0] sm:$0xf0] }
 0x1d3   :  { %v12779_v29 = vld [vmem:[#allocation2 + $0x1030] sm:$0xf]  ;;  %v11756_v43 = vor.u32 %v16111_v28, %v11755_v27  ;;  %6968 = vmatpush.bf16.msra.mxu3 %v13932_v31  ;;  %6930 = vmatpush.bf16.msra.mxu0 %v10732_v37  ;;  %v15967_v21 = vld [vmem:[#allocation2 + $0x434] sm:$0xf]  ;;  %v1123_v27 = vperm.slane %v17383_v17, 0  ;;  %v14448_v28 = vor.u32 %v16767_v18, %v14445_v19 }
 0x1d4   :  { %v16367_v32 = vld [vmem:[#allocation2 + $0x10ac] sm:$0xf0]  ;;  %v11245_v24 = vld [vmem:[#allocation2 + $0x4b0] sm:$0xf0] }
 0x1d5   :  { %v13803_v33 = vld [vmem:[#allocation2 + $0x1830] sm:$0xf]  ;;  %v12780_v44 = vor.u32 %v16367_v32, %v12779_v29  ;;  %6943 = vmatpush.bf16.msra.mxu1 %v11756_v43  ;;  %v16223_v26 = vld [vmem:[#allocation2 + $0xc34] sm:$0xf]  ;;  %v6725_v40 = vadd.f32 %v6724_v42, %v1123_v27 }
 0x1d6   :  { %v16623_v34 = vld [vmem:[#allocation2 + $0x18ac] sm:$0xf0]  ;;  %6931 = vmatmul.bf16.vlgmr.msra.gmra.mxu0 %v17285_v9  ;;  %v12269_v29 = vld [vmem:[#allocation2 + $0xcb0] sm:$0xf0] }
 0x1d7   :  { %v13804_v47 = vor.u32 %v16623_v34, %v13803_v33  ;;  %6956 = vmatpush.bf16.msra.mxu2 %v12780_v44  ;;  %6975 = vmatpush.bf16.msrb.mxu0 %v11632_v48  ;;  %v13293_v31 = vld [vmem:[#allocation2 + $0x14b0] sm:$0xf0]  ;;  %v11248_v34 = vor.u32 %v15967_v21, %v11245_v24  ;;  %v12272_v35 = vor.u32 %v16223_v26, %v12269_v29  ;;  %v6750_v58 = vpop.f32.mrf.mxu2  ;;  %v6739_v21 = vpop.f32.mrf.mxu1 }
 0x1d8   :  { %6944 = vmatmul.bf16.vlgmr.msra.gmra.mxu1 %v17298_v25  ;;  %v16735_v32 = vld [vmem:[#allocation2 + $0x1c34] sm:$0xf]  ;;  %v13296_v36 = vor.u32 %v16479_v30, %v13293_v31  ;;  %v12403_v21 = vld [vmem:[#allocation2 + $0xd38] sm:$0xf] }
 0x1d9   :  { %6969 = vmatpush.bf16.msra.mxu3 %v13804_v47  ;;  %6988 = vmatpush.bf16.msrb.mxu1 %v12656_v49  ;;  %v14317_v33 = vld [vmem:[#allocation2 + $0x1cb0] sm:$0xf0]  ;;  %v6738_v49 = vadd.f32 %v6737_v41, %v6725_v40 }
 0x1da   :  { %6957 = vmatmul.bf16.vlgmr.msra.gmra.mxu2 %v17283_v8  ;;  %v15935_v13 = vld [vmem:[#allocation2 + $0x334] sm:$0xf]  ;;  %v14320_v43 = vor.u32 %v16735_v32, %v14317_v33 }
 0x1db   :  { %7001 = vmatpush.bf16.msrb.mxu2 %v13680_v50  ;;  %6976 = vmatpush.bf16.msrb.mxu0 %v11504_v1  ;;  %v11117_v37 = vld [vmem:[#allocation2 + $0x3b0] sm:$0xf0]  ;;  %v6751_v3 = vadd.f32 %v6750_v58, %v6738_v49  ;;  %v16592_v49 = vld [vmem:[#allocation2 + $0x17b4] sm:$0xf0] }
 0x1dc   :  { %6970 = vmatmul.bf16.vlgmr.msra.gmra.mxu3 %v17290_v15  ;;  %v16191_v39 = vld [vmem:[#allocation2 + $0xb34] sm:$0xf]  ;;  %v11120_v50 = vor.u32 %v15935_v13, %v11117_v37 }
 0x1dd   :  { %7014 = vmatpush.bf16.msrb.mxu3 %v14704_v54  ;;  %6989 = vmatpush.bf16.msrb.mxu1 %v12528_v4  ;;  %v12141_v44 = vld [vmem:[#allocation2 + $0xbb0] sm:$0xf0]  ;;  %v6763_v4 = vpop.f32.mrf.mxu3 }
 0x1de   :  { %v16447_v45 = vld [vmem:[#allocation2 + $0x1334] sm:$0xf]  ;;  %v12144_v51 = vor.u32 %v16191_v39, %v12141_v44  ;;  %v17389_v11 = vadd.f32 %v6763_v4, %v6751_v3  ;;  %v16080_v44 = vld [vmem:[#allocation2 + $0x7b4] sm:$0xf0] }
 0x1df   :  { %7002 = vmatpush.bf16.msrb.mxu2 %v13552_v5  ;;  %6977 = vmatpush.bf16.msrb.mxu0 %v11376_v20  ;;  %v13165_v46 = vld [vmem:[#allocation2 + $0x13b0] sm:$0xf0]  ;;  %v16304_v4 = vld [vmem:[#allocation2 + $0xeb4] sm:$0xf0] }
 0x1e0   :  { %v16703_v47 = vld [vmem:[#allocation2 + $0x1b34] sm:$0xf]  ;;  %v13168_v52 = vor.u32 %v16447_v45, %v13165_v46  ;;  %v12659_v45 = vld [vmem:[#allocation2 + $0xf38] sm:$0xf]  ;;  %vm7971_vm8 = vcmp.ge.f32.partialorder %v17389_v11, 0.0 }
 0x1e1   :  { %7015 = vmatpush.bf16.msrb.mxu3 %v14576_v12  ;;  %6990 = vmatpush.bf16.msrb.mxu1 %v12400_v22  ;;  %v14189_v48 = vld [vmem:[#allocation2 + $0x1bb0] sm:$0xf0]  ;;  %v6726_v12 = vpop.f32.mrf.mxu0 }
 0x1e2   :  { %v15903_v53 = vld [vmem:[#allocation2 + $0x234] sm:$0xf]  ;;  %v14192_v60 = vor.u32 %v16703_v47, %v14189_v48  ;;  %v16336_v47 = vld [vmem:[#allocation2 + $0xfb4] sm:$0xf0] }
 0x1e3   :  { %7003 = vmatpush.bf16.msrb.mxu2 %v13424_v23  ;;  %6978 = vmatpush.bf16.msrb.mxu0 %v11248_v34  ;;  %v10989_v54 = vld [vmem:[#allocation2 + $0x2b0] sm:$0xf0]  ;;  %v13683_v48 = vld [vmem:[#allocation2 + $0x1738] sm:$0xf]  ;;  %v12660_v58 = vor.u32 %v16336_v47, %v12659_v45 }
 0x1e4   :  { %v16159_v55 = vld [vmem:[#allocation2 + $0xa34] sm:$0xf]  ;;  %v10992_v10 = vor.u32 %v15903_v53, %v10989_v54  ;;  %v16848_v53 = vld [vmem:[#allocation2 + $0x1fb4] sm:$0xf0] }
 0x1e5   :  { %7016 = vmatpush.bf16.msrb.mxu3 %v14448_v28  ;;  %6991 = vmatpush.bf16.msrb.mxu1 %v12272_v35  ;;  %v12013_v62 = vld [vmem:[#allocation2 + $0xab0] sm:$0xf0]  ;;  %v6765_v41 = vpop.f32.mrf.mxu3  ;;  %v16816_v12 = vld [vmem:[#allocation2 + $0x1eb4] sm:$0xf0] }
 0x1e6   :  { %v16415_v63 = vld [vmem:[#allocation2 + $0x1234] sm:$0xf]  ;;  %v12016_v14 = vor.u32 %v16159_v55, %v12013_v62  ;;  %v11507_v62 = vld [vmem:[#allocation2 + $0x638] sm:$0xf] }
 0x1e7   :  { %7004 = vmatpush.bf16.msrb.mxu2 %v13296_v36  ;;  %v13037_v1 = vld [vmem:[#allocation2 + $0x12b0] sm:$0xf0]  ;;  %6979 = vmatpush.bf16.msrb.mxu0 %v11120_v50  ;;  %v6752_v36 = vpop.f32.mrf.mxu2  ;;  %v15952_v47 = vld [vmem:[#allocation2 + $0x3b4] sm:$0xf0] }
 0x1e8   :  { %v16671_v5 = vld [vmem:[#allocation2 + $0x1a34] sm:$0xf]  ;;  %v13040_v16 = vor.u32 %v16415_v63, %v13037_v1  ;;  %v16048_v63 = vld [vmem:[#allocation2 + $0x6b4] sm:$0xf0] }
 0x1e9   :  { %7017 = vmatpush.bf16.msrb.mxu3 %v14320_v43  ;;  %v14061_v7 = vld [vmem:[#allocation2 + $0x1ab0] sm:$0xf0]  ;;  %6992 = vmatpush.bf16.msrb.mxu1 %v12144_v51  ;;  %v11635_v43 = vld [vmem:[#allocation2 + $0x738] sm:$0xf] }
 0x1ea   :  { %v15871_v18 = vld [vmem:[#allocation2 + $0x134] sm:$0xf]  ;;  %v14064_v22 = vor.u32 %v16671_v5, %v14061_v7  ;;  %v11636_v55 = vor.u32 %v16080_v44, %v11635_v43  ;;  %v12531_v1 = vld [vmem:[#allocation2 + $0xe38] sm:$0xf] }
 0x1eb   :  { %7005 = vmatpush.bf16.msrb.mxu2 %v13168_v52  ;;  %v10861_v19 = vld [vmem:[#allocation2 + $0x1b0] sm:$0xf0]  ;;  %6980 = vmatpush.bf16.msrb.mxu0 %v10992_v10  ;;  %v14707_v52 = vld [vmem:[#allocation2 + $0x1f38] sm:$0xf] }
 0x1ec   :  { %v16127_v20 = vld [vmem:[#allocation2 + $0x934] sm:$0xf]  ;;  %v10864_v29 = vor.u32 %v15871_v18, %v10861_v19  ;;  %v14708_v3 = vor.u32 %v16848_v53, %v14707_v52  ;;  %v13555_v5 = vld [vmem:[#allocation2 + $0x1638] sm:$0xf] }
 0x1ed   :  { %7018 = vmatpush.bf16.msrb.mxu3 %v14192_v60  ;;  %v11885_v23 = vld [vmem:[#allocation2 + $0x9b0] sm:$0xf0]  ;;  %6993 = vmatpush.bf16.msrb.mxu1 %v12016_v14  ;;  %v13684_v60 = vor.u32 %v16592_v49, %v13683_v48  ;;  %v16560_v7 = vld [vmem:[#allocation2 + $0x16b4] sm:$0xf0]  ;;  %v11508_v14 = vor.u32 %v16048_v63, %v11507_v62 }
 0x1ee   :  { %v16383_v24 = vld [vmem:[#allocation2 + $0x1134] sm:$0xf]  ;;  %v11888_v32 = vor.u32 %v16127_v20, %v11885_v23  ;;  %v14579_v10 = vld [vmem:[#allocation2 + $0x1e38] sm:$0xf]  ;;  %v13556_v18 = vor.u32 %v16560_v7, %v13555_v5 }
 0x1ef   :  { %v12909_v26 = vld [vmem:[#allocation2 + $0x11b0] sm:$0xf0]  ;;  %7006 = vmatpush.bf16.msrb.mxu2 %v13040_v16  ;;  %6981 = vmatpush.bf16.msrb.mxu0 %v10864_v29  ;;  %v12532_v16 = vor.u32 %v16304_v4, %v12531_v1  ;;  %v11379_v19 = vld [vmem:[#allocation2 + $0x538] sm:$0xf]  ;;  %v6776_v43 = vpop.f32.mrf.mxu0 }
 0x1f0   :  { %v16639_v27 = vld [vmem:[#allocation2 + $0x1934] sm:$0xf]  ;;  %v12912_v33 = vor.u32 %v16383_v24, %v12909_v26  ;;  %v16016_v20 = vld [vmem:[#allocation2 + $0x5b4] sm:$0xf0] }
 0x1f1   :  { %v13933_v28 = vld [vmem:[#allocation2 + $0x19b0] sm:$0xf0]  ;;  %7019 = vmatpush.bf16.msrb.mxu3 %v14064_v22  ;;  %6994 = vmatpush.bf16.msrb.mxu1 %v11888_v32  ;;  %v14580_v22 = vor.u32 %v16816_v12, %v14579_v10  ;;  %v16272_v23 = vld [vmem:[#allocation2 + $0xdb4] sm:$0xf0]  ;;  %v11380_v29 = vor.u32 %v16016_v20, %v11379_v19 }
 0x1f2   :  { %v15839_v30 = vld [vmem:[#allocation2 + $0x34] sm:$0xf]  ;;  %v13936_v13 = vor.u32 %v16639_v27, %v13933_v28  ;;  %v13427_v24 = vld [vmem:[#allocation2 + $0x1538] sm:$0xf] }
 0x1f3   :  { %v10733_v31 = vld [vmem:[#allocation2 + $0xb0] sm:$0xf0]  ;;  %7007 = vmatpush.bf16.msrb.mxu2 %v12912_v33  ;;  %v16528_v26 = vld [vmem:[#allocation2 + $0x15b4] sm:$0xf0] }
 0x1f4   :  { %v16095_v34 = vld [vmem:[#allocation2 + $0x834] sm:$0xf]  ;;  %v10736_v46 = vor.u32 %v15839_v30, %v10733_v31  ;;  %v14451_v27 = vld [vmem:[#allocation2 + $0x1d38] sm:$0xf]  ;;  %v12404_v31 = vor.u32 %v16272_v23, %v12403_v21  ;;  %v13428_v32 = vor.u32 %v16528_v26, %v13427_v24 }
 0x1f5   :  { %v11757_v42 = vld [vmem:[#allocation2 + $0x8b0] sm:$0xf0]  ;;  %7020 = vmatpush.bf16.msrb.mxu3 %v13936_v13  ;;  %v16784_v28 = vld [vmem:[#allocation2 + $0x1db4] sm:$0xf0] }
 0x1f6   :  { %v16351_v35 = vld [vmem:[#allocation2 + $0x1034] sm:$0xf]  ;;  %v11760_v50 = vor.u32 %v16095_v34, %v11757_v42  ;;  %6982 = vmatpush.bf16.msrb.mxu0 %v10736_v46  ;;  %v11251_v30 = vld [vmem:[#allocation2 + $0x438] sm:$0xf]  ;;  %v1124_v42 = vperm.slane %v17383_v17, 1 }
 0x1f7   :  { %v12781_v37 = vld [vmem:[#allocation2 + $0x10b0] sm:$0xf0]  ;;  %v15984_v33 = vld [vmem:[#allocation2 + $0x4b4] sm:$0xf0]  ;;  %v6778_v24 = vpop.f32.mrf.mxu0 }
 0x1f8   :  { %v16607_v39 = vld [vmem:[#allocation2 + $0x1834] sm:$0xf]  ;;  %v12784_v51 = vor.u32 %v16351_v35, %v12781_v37  ;;  %6995 = vmatpush.bf16.msrb.mxu1 %v11760_v50  ;;  %v12275_v34 = vld [vmem:[#allocation2 + $0xc38] sm:$0xf]  ;;  %v14452_v35 = vor.u32 %v16784_v28, %v14451_v27  ;;  %v11252_v41 = vor.u32 %v15984_v33, %v11251_v30  ;;  %v6777_v49 = vadd.f32 %v6776_v43, %v1124_v42  ;;  %v6789_v50 = vpop.f32.mrf.mxu1  ;;  %v16800_v24 = vld [vmem:[#allocation2 + $0x1e3c] sm:$0xf] }
 0x1f9   :  { %v13805_v40 = vld [vmem:[#allocation2 + $0x18b0] sm:$0xf0]  ;;  %6983 = vmatmul.bf16.vlgmr.msrb.gmra.mxu0 %v17285_v9  ;;  %v16240_v36 = vld [vmem:[#allocation2 + $0xcb4] sm:$0xf0]  ;;  %v6802_v7 = vpop.f32.mrf.mxu2 }
 0x1fa   :  { %v13808_v54 = vor.u32 %v16607_v39, %v13805_v40  ;;  %7008 = vmatpush.bf16.msrb.mxu2 %v12784_v51  ;;  %7027 = vmatpush.bf16.msra.mxu0 %v11636_v55  ;;  %v13299_v13 = vld [vmem:[#allocation2 + $0x1438] sm:$0xf]  ;;  %v12276_v44 = vor.u32 %v16240_v36, %v12275_v34 }
 0x1fb   :  { %6996 = vmatmul.bf16.vlgmr.msrb.gmra.mxu1 %v17298_v25  ;;  %v16496_v37 = vld [vmem:[#allocation2 + $0x14b4] sm:$0xf0]  ;;  %v6815_v19 = vpop.f32.mrf.mxu3 }
 0x1fc   :  { %7021 = vmatpush.bf16.msrb.mxu3 %v13808_v54  ;;  %7040 = vmatpush.bf16.msra.mxu1 %v12660_v58  ;;  %v14323_v39 = vld [vmem:[#allocation2 + $0x1c38] sm:$0xf]  ;;  %v13300_v45 = vor.u32 %v16496_v37, %v13299_v13 }
 0x1fd   :  { %7009 = vmatmul.bf16.vlgmr.msrb.gmra.mxu2 %v17283_v8  ;;  %v16752_v40 = vld [vmem:[#allocation2 + $0x1cb4] sm:$0xf0] }
 0x1fe   :  { %7053 = vmatpush.bf16.msra.mxu2 %v13684_v60  ;;  %7028 = vmatpush.bf16.msra.mxu0 %v11508_v14  ;;  %v11123_v46 = vld [vmem:[#allocation2 + $0x338] sm:$0xf]  ;;  %v14324_v51 = vor.u32 %v16752_v40, %v14323_v39  ;;  %v6790_v60 = vadd.f32 %v6789_v50, %v6777_v49 }
 0x1ff   :  { %7022 = vmatmul.bf16.vlgmr.msrb.gmra.mxu3 %v17290_v15  ;;  %v12147_v48 = vld [vmem:[#allocation2 + $0xb38] sm:$0xf]  ;;  %v11124_v62 = vor.u32 %v15952_v47, %v11123_v46 }
 0x200   :  { %7066 = vmatpush.bf16.msra.mxu3 %v14708_v3  ;;  %7041 = vmatpush.bf16.msra.mxu1 %v12532_v16  ;;  %v16208_v52 = vld [vmem:[#allocation2 + $0xbb4] sm:$0xf0] }
 0x201   :  { %v13171_v53 = vld [vmem:[#allocation2 + $0x1338] sm:$0xf]  ;;  %v12148_v63 = vor.u32 %v16208_v52, %v12147_v48  ;;  %v6804_v46 = vpop.f32.mrf.mxu2  ;;  %v16064_v52 = vld [vmem:[#allocation2 + $0x73c] sm:$0xf] }
 0x202   :  { %7054 = vmatpush.bf16.msra.mxu2 %v13556_v18  ;;  %7029 = vmatpush.bf16.msra.mxu0 %v11380_v29  ;;  %v16464_v54 = vld [vmem:[#allocation2 + $0x13b4] sm:$0xf0]  ;;  %v6803_v18 = vadd.f32 %v6802_v7, %v6790_v60  ;;  %v16576_v60 = vld [vmem:[#allocation2 + $0x173c] sm:$0xf] }
 0x203   :  { %v14195_v55 = vld [vmem:[#allocation2 + $0x1b38] sm:$0xf]  ;;  %v13172_v1 = vor.u32 %v16464_v54, %v13171_v53  ;;  %v11637_v53 = vld [vmem:[#allocation2 + $0x7b8] sm:$0xf0] }
 0x204   :  { %7067 = vmatpush.bf16.msra.mxu3 %v14580_v22  ;;  %7042 = vmatpush.bf16.msra.mxu1 %v12404_v31  ;;  %v16720_v58 = vld [vmem:[#allocation2 + $0x1bb4] sm:$0xf0]  ;;  %v17396_v23 = vadd.f32 %v6815_v19, %v6803_v18  ;;  %v6791_v31 = vpop.f32.mrf.mxu1  ;;  %v16320_v54 = vld [vmem:[#allocation2 + $0xf3c] sm:$0xf]  ;;  %v11640_v7 = vor.u32 %v16064_v52, %v11637_v53 }
 0x205   :  { %v10995_v3 = vld [vmem:[#allocation2 + $0x238] sm:$0xf]  ;;  %v14196_v10 = vor.u32 %v16720_v58, %v14195_v55  ;;  %v12661_v58 = vld [vmem:[#allocation2 + $0xfb8] sm:$0xf0] }
 0x206   :  { %7055 = vmatpush.bf16.msra.mxu2 %v13428_v32  ;;  %7030 = vmatpush.bf16.msra.mxu0 %v11252_v41  ;;  %v15920_v4 = vld [vmem:[#allocation2 + $0x2b4] sm:$0xf0]  ;;  %v16288_v18 = vld [vmem:[#allocation2 + $0xe3c] sm:$0xf]  ;;  %vm7972_vm9 = vcmp.ge.f32.partialorder %v17396_v23, 0.0 }
 0x207   :  { %v12019_v5 = vld [vmem:[#allocation2 + $0xa38] sm:$0xf]  ;;  %v10996_v22 = vor.u32 %v15920_v4, %v10995_v3  ;;  %v16832_v3 = vld [vmem:[#allocation2 + $0x1f3c] sm:$0xf] }
 0x208   :  { %7068 = vmatpush.bf16.msra.mxu3 %v14452_v35  ;;  %7043 = vmatpush.bf16.msra.mxu1 %v12276_v44  ;;  %v16176_v12 = vld [vmem:[#allocation2 + $0xab4] sm:$0xf0]  ;;  %v14709_v4 = vld [vmem:[#allocation2 + $0x1fb8] sm:$0xf0] }
 0x209   :  { %v13043_v14 = vld [vmem:[#allocation2 + $0x1238] sm:$0xf]  ;;  %v12020_v26 = vor.u32 %v16176_v12, %v12019_v5  ;;  %v14712_v19 = vor.u32 %v16832_v3, %v14709_v4  ;;  %v11381_v31 = vld [vmem:[#allocation2 + $0x5b8] sm:$0xf0] }
 0x20a   :  { %7056 = vmatpush.bf16.msra.mxu2 %v13300_v45  ;;  %v16432_v16 = vld [vmem:[#allocation2 + $0x12b4] sm:$0xf0]  ;;  %7031 = vmatpush.bf16.msra.mxu0 %v11124_v62  ;;  %v13685_v62 = vld [vmem:[#allocation2 + $0x17b8] sm:$0xf0] }
 0x20b   :  { %v14067_v20 = vld [vmem:[#allocation2 + $0x1a38] sm:$0xf]  ;;  %v13044_v27 = vor.u32 %v16432_v16, %v13043_v14  ;;  %v13688_v12 = vor.u32 %v16576_v60, %v13685_v62  ;;  %v16032_v14 = vld [vmem:[#allocation2 + $0x63c] sm:$0xf] }
 0x20c   :  { %7069 = vmatpush.bf16.msra.mxu3 %v14324_v51  ;;  %v16688_v21 = vld [vmem:[#allocation2 + $0x1ab4] sm:$0xf0]  ;;  %7044 = vmatpush.bf16.msra.mxu1 %v12148_v63  ;;  %v6817_v51 = vpop.f32.mrf.mxu3  ;;  %v11509_v16 = vld [vmem:[#allocation2 + $0x6b8] sm:$0xf0] }
 0x20d   :  { %v10867_v28 = vld [vmem:[#allocation2 + $0x138] sm:$0xf]  ;;  %v14068_v32 = vor.u32 %v16688_v21, %v14067_v20  ;;  %v12533_v20 = vld [vmem:[#allocation2 + $0xeb8] sm:$0xf0] }
 0x20e   :  { %7057 = vmatpush.bf16.msra.mxu2 %v13172_v1  ;;  %v15888_v29 = vld [vmem:[#allocation2 + $0x1b4] sm:$0xf0]  ;;  %7032 = vmatpush.bf16.msra.mxu0 %v10996_v22  ;;  %v16544_v21 = vld [vmem:[#allocation2 + $0x163c] sm:$0xf] }
 0x20f   :  { %v11891_v30 = vld [vmem:[#allocation2 + $0x938] sm:$0xf]  ;;  %v10868_v13 = vor.u32 %v15888_v29, %v10867_v28  ;;  %v13557_v22 = vld [vmem:[#allocation2 + $0x16b8] sm:$0xf0]  ;;  %v12536_v28 = vor.u32 %v16288_v18, %v12533_v20 }
 0x210   :  { %7070 = vmatpush.bf16.msra.mxu3 %v14196_v10  ;;  %v16144_v33 = vld [vmem:[#allocation2 + $0x9b4] sm:$0xf0]  ;;  %7045 = vmatpush.bf16.msra.mxu1 %v12020_v26  ;;  %v12664_v10 = vor.u32 %v16320_v54, %v12661_v58  ;;  %v14581_v26 = vld [vmem:[#allocation2 + $0x1eb8] sm:$0xf0]  ;;  %v13560_v29 = vor.u32 %v16544_v21, %v13557_v22 }
 0x211   :  { %v12915_v34 = vld [vmem:[#allocation2 + $0x1138] sm:$0xf]  ;;  %v11892_v40 = vor.u32 %v16144_v33, %v11891_v30  ;;  %v16000_v30 = vld [vmem:[#allocation2 + $0x53c] sm:$0xf]  ;;  %v14584_v33 = vor.u32 %v16800_v24, %v14581_v26  ;;  %v6828_v53 = vpop.f32.mrf.mxu0 }
 0x212   :  { %v16400_v42 = vld [vmem:[#allocation2 + $0x11b4] sm:$0xf0]  ;;  %7058 = vmatpush.bf16.msra.mxu2 %v13044_v27  ;;  %7033 = vmatpush.bf16.msra.mxu0 %v10868_v13  ;;  %v11512_v27 = vor.u32 %v16032_v14, %v11509_v16  ;;  %v14453_v13 = vld [vmem:[#allocation2 + $0x1db8] sm:$0xf0] }
 0x213   :  { %v13939_v35 = vld [vmem:[#allocation2 + $0x1938] sm:$0xf]  ;;  %v12916_v41 = vor.u32 %v16400_v42, %v12915_v34  ;;  %v12405_v34 = vld [vmem:[#allocation2 + $0xdb8] sm:$0xf0] }
 0x214   :  { %v16656_v36 = vld [vmem:[#allocation2 + $0x19b4] sm:$0xf0]  ;;  %7071 = vmatpush.bf16.msra.mxu3 %v14068_v32  ;;  %7046 = vmatpush.bf16.msra.mxu1 %v11892_v40  ;;  %v16256_v32 = vld [vmem:[#allocation2 + $0xd3c] sm:$0xf] }
 0x215   :  { %v10739_v37 = vld [vmem:[#allocation2 + $0x38] sm:$0xf]  ;;  %v13940_v47 = vor.u32 %v16656_v36, %v13939_v35  ;;  %v16512_v42 = vld [vmem:[#allocation2 + $0x153c] sm:$0xf]  ;;  %v12408_v40 = vor.u32 %v16256_v32, %v12405_v34 }
 0x216   :  { %v15856_v39 = vld [vmem:[#allocation2 + $0xb4] sm:$0xf0]  ;;  %7059 = vmatpush.bf16.msra.mxu2 %v12916_v41  ;;  %v13429_v35 = vld [vmem:[#allocation2 + $0x15b8] sm:$0xf0] }
 0x217   :  { %v11763_v43 = vld [vmem:[#allocation2 + $0x838] sm:$0xf]  ;;  %v10740_v55 = vor.u32 %v15856_v39, %v10739_v37  ;;  %v16768_v36 = vld [vmem:[#allocation2 + $0x1d3c] sm:$0xf]  ;;  %v11384_v37 = vor.u32 %v16000_v30, %v11381_v31  ;;  %v13432_v41 = vor.u32 %v16512_v42, %v13429_v35 }
 0x218   :  { %v16112_v44 = vld [vmem:[#allocation2 + $0x8b4] sm:$0xf0]  ;;  %7072 = vmatpush.bf16.msra.mxu3 %v13940_v47  ;;  %v15968_v39 = vld [vmem:[#allocation2 + $0x43c] sm:$0xf]  ;;  %v14456_v46 = vor.u32 %v16768_v36, %v14453_v13 }
 0x219   :  { %v12787_v45 = vld [vmem:[#allocation2 + $0x1038] sm:$0xf]  ;;  %v11764_v63 = vor.u32 %v16112_v44, %v11763_v43  ;;  %7034 = vmatpush.bf16.msra.mxu0 %v10740_v55  ;;  %v11253_v43 = vld [vmem:[#allocation2 + $0x4b8] sm:$0xf0]  ;;  %v6830_v35 = vpop.f32.mrf.mxu0 }
 0x21a   :  { %v16368_v48 = vld [vmem:[#allocation2 + $0x10b4] sm:$0xf0]  ;;  %v16224_v44 = vld [vmem:[#allocation2 + $0xc3c] sm:$0xf]  ;;  %v11256_v52 = vor.u32 %v15968_v39, %v11253_v43  ;;  %v16561_v35 = vld [vmem:[#allocation2 + $0x16bc] sm:$0xf0] }
 0x21b   :  { %v13811_v49 = vld [vmem:[#allocation2 + $0x1838] sm:$0xf]  ;;  %v12788_v1 = vor.u32 %v16368_v48, %v12787_v45  ;;  %7047 = vmatpush.bf16.msra.mxu1 %v11764_v63  ;;  %v1125_v45 = vperm.slane %v17383_v17, 2  ;;  %v12277_v47 = vld [vmem:[#allocation2 + $0xcb8] sm:$0xf0]  ;;  %v6854_v24 = vpop.f32.mrf.mxu2 }
 0x21c   :  { %v16624_v50 = vld [vmem:[#allocation2 + $0x18b4] sm:$0xf0]  ;;  %7035 = vmatmul.bf16.vlgmr.msra.gmra.mxu0 %v17285_v9  ;;  %v16480_v48 = vld [vmem:[#allocation2 + $0x143c] sm:$0xf]  ;;  %v12280_v54 = vor.u32 %v16224_v44, %v12277_v47 }
 0x21d   :  { %v13812_v5 = vor.u32 %v16624_v50, %v13811_v49  ;;  %7060 = vmatpush.bf16.msra.mxu2 %v12788_v1  ;;  %7079 = vmatpush.bf16.msrb.mxu0 %v11640_v7  ;;  %v13301_v49 = vld [vmem:[#allocation2 + $0x14b8] sm:$0xf0]  ;;  %v6829_v63 = vadd.f32 %v6828_v53, %v1125_v45  ;;  %v6841_v1 = vpop.f32.mrf.mxu1  ;;  %v6867_v31 = vpop.f32.mrf.mxu3 }
 0x21e   :  { %7048 = vmatmul.bf16.vlgmr.msra.gmra.mxu1 %v17298_v25  ;;  %v16736_v50 = vld [vmem:[#allocation2 + $0x1c3c] sm:$0xf]  ;;  %v13304_v55 = vor.u32 %v16480_v48, %v13301_v49 }
 0x21f   :  { %7073 = vmatpush.bf16.msra.mxu3 %v13812_v5  ;;  %7092 = vmatpush.bf16.msrb.mxu1 %v12664_v10  ;;  %v14325_v51 = vld [vmem:[#allocation2 + $0x1cb8] sm:$0xf0]  ;;  %v6842_v14 = vadd.f32 %v6841_v1, %v6829_v63 }
 0x220   :  { %7061 = vmatmul.bf16.vlgmr.msra.gmra.mxu2 %v17283_v8  ;;  %v15936_v58 = vld [vmem:[#allocation2 + $0x33c] sm:$0xf]  ;;  %v14328_v3 = vor.u32 %v16736_v50, %v14325_v51 }
 0x221   :  { %7105 = vmatpush.bf16.msrb.mxu2 %v13688_v12  ;;  %7080 = vmatpush.bf16.msrb.mxu0 %v11512_v27  ;;  %v11125_v60 = vld [vmem:[#allocation2 + $0x3b8] sm:$0xf0]  ;;  %v6855_v30 = vadd.f32 %v6854_v24, %v6842_v14  ;;  %v16337_v14 = vld [vmem:[#allocation2 + $0xfbc] sm:$0xf0] }
 0x222   :  { %7074 = vmatmul.bf16.vlgmr.msra.gmra.mxu3 %v17290_v15  ;;  %v16192_v62 = vld [vmem:[#allocation2 + $0xb3c] sm:$0xf]  ;;  %v11128_v16 = vor.u32 %v15936_v58, %v11125_v60 }
 0x223   :  { %7118 = vmatpush.bf16.msrb.mxu3 %v14712_v19  ;;  %7093 = vmatpush.bf16.msrb.mxu1 %v12536_v28  ;;  %v12149_v4 = vld [vmem:[#allocation2 + $0xbb8] sm:$0xf0]  ;;  %v17403_v42 = vadd.f32 %v6867_v31, %v6855_v30  ;;  %v6856_v60 = vpop.f32.mrf.mxu2  ;;  %v16049_v30 = vld [vmem:[#allocation2 + $0x6bc] sm:$0xf0] }
 0x224   :  { %v16448_v5 = vld [vmem:[#allocation2 + $0x133c] sm:$0xf]  ;;  %v12152_v18 = vor.u32 %v16192_v62, %v12149_v4  ;;  %v12539_v31 = vld [vmem:[#allocation2 + $0xe40] sm:$0xf]  ;;  %v1126_v60 = vperm.slane %v17383_v17, 3 }
 0x225   :  { %7106 = vmatpush.bf16.msrb.mxu2 %v13560_v29  ;;  %7081 = vmatpush.bf16.msrb.mxu0 %v11384_v37  ;;  %v13173_v7 = vld [vmem:[#allocation2 + $0x13b8] sm:$0xf0]  ;;  %v6869_v4 = vpop.f32.mrf.mxu3  ;;  %vm7973_vm10 = vcmp.ge.f32.partialorder %v17403_v42, 0.0 }
 0x226   :  { %v16704_v10 = vld [vmem:[#allocation2 + $0x1b3c] sm:$0xf]  ;;  %v13176_v19 = vor.u32 %v16448_v5, %v13173_v7  ;;  %v11643_v5 = vld [vmem:[#allocation2 + $0x740] sm:$0xf] }
 0x227   :  { %7119 = vmatpush.bf16.msrb.mxu3 %v14584_v33  ;;  %7094 = vmatpush.bf16.msrb.mxu1 %v12408_v40  ;;  %v14197_v12 = vld [vmem:[#allocation2 + $0x1bb8] sm:$0xf0]  ;;  %v16081_v7 = vld [vmem:[#allocation2 + $0x7bc] sm:$0xf0] }
 0x228   :  { %v15904_v20 = vld [vmem:[#allocation2 + $0x23c] sm:$0xf]  ;;  %v14200_v26 = vor.u32 %v16704_v10, %v14197_v12  ;;  %v12667_v10 = vld [vmem:[#allocation2 + $0xf40] sm:$0xf] }
 0x229   :  { %7107 = vmatpush.bf16.msrb.mxu2 %v13432_v41  ;;  %7082 = vmatpush.bf16.msrb.mxu0 %v11256_v52  ;;  %v10997_v21 = vld [vmem:[#allocation2 + $0x2b8] sm:$0xf0]  ;;  %v6843_v41 = vpop.f32.mrf.mxu1  ;;  %v14331_v4 = vld [vmem:[#allocation2 + $0x1c40] sm:$0xf] }
 0x22a   :  { %v16160_v22 = vld [vmem:[#allocation2 + $0xa3c] sm:$0xf]  ;;  %v11000_v34 = vor.u32 %v15904_v20, %v10997_v21  ;;  %v14715_v21 = vld [vmem:[#allocation2 + $0x1f40] sm:$0xf] }
 0x22b   :  { %7120 = vmatpush.bf16.msrb.mxu3 %v14456_v46  ;;  %7095 = vmatpush.bf16.msrb.mxu1 %v12280_v54  ;;  %v12021_v27 = vld [vmem:[#allocation2 + $0xab8] sm:$0xf0]  ;;  %v11387_v41 = vld [vmem:[#allocation2 + $0x540] sm:$0xf] }
 0x22c   :  { %v16416_v28 = vld [vmem:[#allocation2 + $0x123c] sm:$0xf]  ;;  %v12024_v36 = vor.u32 %v16160_v22, %v12021_v27  ;;  %v16849_v22 = vld [vmem:[#allocation2 + $0x1fbc] sm:$0xf0]  ;;  %v12668_v27 = vor.u32 %v16337_v14, %v12667_v10 }
 0x22d   :  { %7108 = vmatpush.bf16.msrb.mxu2 %v13304_v55  ;;  %v13045_v29 = vld [vmem:[#allocation2 + $0x12b8] sm:$0xf0]  ;;  %7083 = vmatpush.bf16.msrb.mxu0 %v11128_v16  ;;  %v13691_v16 = vld [vmem:[#allocation2 + $0x1740] sm:$0xf] }
 0x22e   :  { %v16672_v32 = vld [vmem:[#allocation2 + $0x1a3c] sm:$0xf]  ;;  %v13048_v13 = vor.u32 %v16416_v28, %v13045_v29  ;;  %v11515_v29 = vld [vmem:[#allocation2 + $0x640] sm:$0xf] }
 0x22f   :  { %7121 = vmatpush.bf16.msrb.mxu3 %v14328_v3  ;;  %v14069_v33 = vld [vmem:[#allocation2 + $0x1ab8] sm:$0xf0]  ;;  %7096 = vmatpush.bf16.msrb.mxu1 %v12152_v18  ;;  %v16593_v18 = vld [vmem:[#allocation2 + $0x17bc] sm:$0xf0] }
 0x230   :  { %v15872_v37 = vld [vmem:[#allocation2 + $0x13c] sm:$0xf]  ;;  %v14072_v43 = vor.u32 %v16672_v32, %v14069_v33  ;;  %v13692_v28 = vor.u32 %v16593_v18, %v13691_v16  ;;  %v14716_v32 = vor.u32 %v16849_v22, %v14715_v21  ;;  %v16305_v33 = vld [vmem:[#allocation2 + $0xebc] sm:$0xf0] }
 0x231   :  { %7109 = vmatpush.bf16.msrb.mxu2 %v13176_v19  ;;  %v10869_v39 = vld [vmem:[#allocation2 + $0x1b8] sm:$0xf0]  ;;  %7084 = vmatpush.bf16.msrb.mxu0 %v11000_v34  ;;  %v13563_v34 = vld [vmem:[#allocation2 + $0x1640] sm:$0xf]  ;;  %v6880_v10 = vpop.f32.mrf.mxu0 }
 0x232   :  { %v16128_v40 = vld [vmem:[#allocation2 + $0x93c] sm:$0xf]  ;;  %v10872_v49 = vor.u32 %v15872_v37, %v10869_v39  ;;  %v11516_v37 = vor.u32 %v16049_v30, %v11515_v29  ;;  %v12540_v39 = vor.u32 %v16305_v33, %v12539_v31  ;;  %v11131_v16 = vld [vmem:[#allocation2 + $0x340] sm:$0xf] }
 0x233   :  { %7122 = vmatpush.bf16.msrb.mxu3 %v14200_v26  ;;  %v11893_v44 = vld [vmem:[#allocation2 + $0x9b8] sm:$0xf0]  ;;  %7097 = vmatpush.bf16.msrb.mxu1 %v12024_v36  ;;  %v11644_v26 = vor.u32 %v16081_v7, %v11643_v5  ;;  %v14587_v36 = vld [vmem:[#allocation2 + $0x1e40] sm:$0xf]  ;;  %v6893_v21 = vpop.f32.mrf.mxu1 }
 0x234   :  { %v16384_v45 = vld [vmem:[#allocation2 + $0x113c] sm:$0xf]  ;;  %v11896_v52 = vor.u32 %v16128_v40, %v11893_v44  ;;  %v13564_v40 = vor.u32 %v16561_v35, %v13563_v34  ;;  %v12411_v44 = vld [vmem:[#allocation2 + $0xd40] sm:$0xf] }
 0x235   :  { %v12917_v46 = vld [vmem:[#allocation2 + $0x11b8] sm:$0xf0]  ;;  %7110 = vmatpush.bf16.msrb.mxu2 %v13048_v13  ;;  %7085 = vmatpush.bf16.msrb.mxu0 %v10872_v49  ;;  %v16817_v13 = vld [vmem:[#allocation2 + $0x1ebc] sm:$0xf0] }
 0x236   :  { %v16640_v47 = vld [vmem:[#allocation2 + $0x193c] sm:$0xf]  ;;  %v12920_v53 = vor.u32 %v16384_v45, %v12917_v46  ;;  %v14588_v45 = vor.u32 %v16817_v13, %v14587_v36  ;;  %v16273_v46 = vld [vmem:[#allocation2 + $0xdbc] sm:$0xf0] }
 0x237   :  { %v13941_v48 = vld [vmem:[#allocation2 + $0x19b8] sm:$0xf0]  ;;  %7123 = vmatpush.bf16.msrb.mxu3 %v14072_v43  ;;  %7098 = vmatpush.bf16.msrb.mxu1 %v11896_v52  ;;  %v16017_v43 = vld [vmem:[#allocation2 + $0x5bc] sm:$0xf0] }
 0x238   :  { %v15840_v50 = vld [vmem:[#allocation2 + $0x3c] sm:$0xf]  ;;  %v13944_v62 = vor.u32 %v16640_v47, %v13941_v48  ;;  %v13435_v47 = vld [vmem:[#allocation2 + $0x1540] sm:$0xf] }
 0x239   :  { %v10741_v51 = vld [vmem:[#allocation2 + $0xb8] sm:$0xf0]  ;;  %7111 = vmatpush.bf16.msrb.mxu2 %v12920_v53  ;;  %v16529_v48 = vld [vmem:[#allocation2 + $0x15bc] sm:$0xf0]  ;;  %v12412_v53 = vor.u32 %v16273_v46, %v12411_v44 }
 0x23a   :  { %v16096_v54 = vld [vmem:[#allocation2 + $0x83c] sm:$0xf]  ;;  %v10744_v12 = vor.u32 %v15840_v50, %v10741_v51  ;;  %v14459_v49 = vld [vmem:[#allocation2 + $0x1d40] sm:$0xf]  ;;  %v11388_v51 = vor.u32 %v16017_v43, %v11387_v41 }
 0x23b   :  { %v11765_v55 = vld [vmem:[#allocation2 + $0x8b8] sm:$0xf0]  ;;  %7124 = vmatpush.bf16.msrb.mxu3 %v13944_v62  ;;  %v16785_v50 = vld [vmem:[#allocation2 + $0x1dbc] sm:$0xf0]  ;;  %v6906_v36 = vpop.f32.mrf.mxu2 }
 0x23c   :  { %v16352_v58 = vld [vmem:[#allocation2 + $0x103c] sm:$0xf]  ;;  %v11768_v19 = vor.u32 %v16096_v54, %v11765_v55  ;;  %7086 = vmatpush.bf16.msrb.mxu0 %v10744_v12  ;;  %v11259_v52 = vld [vmem:[#allocation2 + $0x440] sm:$0xf]  ;;  %v13436_v54 = vor.u32 %v16529_v48, %v13435_v47  ;;  %v14460_v62 = vor.u32 %v16785_v50, %v14459_v49  ;;  %v6882_v48 = vpop.f32.mrf.mxu0 }
 0x23d   :  { %v12789_v63 = vld [vmem:[#allocation2 + $0x10b8] sm:$0xf0]  ;;  %v15985_v55 = vld [vmem:[#allocation2 + $0x4bc] sm:$0xf0]  ;;  %v6919_v43 = vpop.f32.mrf.mxu3  ;;  %v13565_v48 = vld [vmem:[#allocation2 + $0x16c0] sm:$0xf0] }
 0x23e   :  { %v16608_v1 = vld [vmem:[#allocation2 + $0x183c] sm:$0xf]  ;;  %v12792_v20 = vor.u32 %v16352_v58, %v12789_v63  ;;  %7099 = vmatpush.bf16.msrb.mxu1 %v11768_v19  ;;  %v12283_v58 = vld [vmem:[#allocation2 + $0xc40] sm:$0xf]  ;;  %v11260_v7 = vor.u32 %v15985_v55, %v11259_v52 }
 0x23f   :  { %v13813_v3 = vld [vmem:[#allocation2 + $0x18b8] sm:$0xf0]  ;;  %7087 = vmatmul.bf16.vlgmr.msrb.gmra.mxu0 %v17285_v9  ;;  %v16241_v63 = vld [vmem:[#allocation2 + $0xcbc] sm:$0xf0] }
 0x240   :  { %v13816_v24 = vor.u32 %v16608_v1, %v13813_v3  ;;  %7112 = vmatpush.bf16.msrb.mxu2 %v12792_v20  ;;  %7131 = vmatpush.bf16.msra.mxu0 %v11644_v26  ;;  %v13307_v1 = vld [vmem:[#allocation2 + $0x1440] sm:$0xf]  ;;  %v12284_v12 = vor.u32 %v16241_v63, %v12283_v58  ;;  %v6881_v20 = vadd.f32 %v6880_v10, %v1126_v60 }
 0x241   :  { %7100 = vmatmul.bf16.vlgmr.msrb.gmra.mxu1 %v17298_v25  ;;  %v16497_v3 = vld [vmem:[#allocation2 + $0x14bc] sm:$0xf0] }
 0x242   :  { %7125 = vmatpush.bf16.msrb.mxu3 %v13816_v24  ;;  %7144 = vmatpush.bf16.msra.mxu1 %v12668_v27  ;;  %v16753_v5 = vld [vmem:[#allocation2 + $0x1cbc] sm:$0xf0]  ;;  %v13308_v14 = vor.u32 %v16497_v3, %v13307_v1  ;;  %v6894_v29 = vadd.f32 %v6893_v21, %v6881_v20 }
 0x243   :  { %7113 = vmatmul.bf16.vlgmr.msrb.gmra.mxu2 %v17283_v8  ;;  %v15953_v18 = vld [vmem:[#allocation2 + $0x3bc] sm:$0xf0]  ;;  %v14332_v17 = vor.u32 %v16753_v5, %v14331_v4 }
 0x244   :  { %7157 = vmatpush.bf16.msra.mxu2 %v13692_v28  ;;  %7132 = vmatpush.bf16.msra.mxu0 %v11516_v37  ;;  %v12155_v19 = vld [vmem:[#allocation2 + $0xb40] sm:$0xf]  ;;  %v11132_v30 = vor.u32 %v15953_v18, %v11131_v16  ;;  %v6907_v41 = vadd.f32 %v6906_v36, %v6894_v29  ;;  %v6908_v18 = vpop.f32.mrf.mxu2  ;;  %v12669_v29 = vld [vmem:[#allocation2 + $0xfc0] sm:$0xf0] }
 0x245   :  { %7126 = vmatmul.bf16.vlgmr.msrb.gmra.mxu3 %v17290_v15  ;;  %v16209_v22 = vld [vmem:[#allocation2 + $0xbbc] sm:$0xf0]  ;;  %v17419_v18 = vld [vmem:[%s17691_s2 + $0x8] sm:$0xff] }
 0x246   :  { %7170 = vmatpush.bf16.msra.mxu3 %v14716_v32  ;;  %7145 = vmatpush.bf16.msra.mxu1 %v12540_v39  ;;  %v13179_v24 = vld [vmem:[#allocation2 + $0x1340] sm:$0xf]  ;;  %v12156_v31 = vor.u32 %v16209_v22, %v12155_v19  ;;  %v17410_v47 = vadd.f32 %v6919_v43, %v6907_v41  ;;  %v6921_v22 = vpop.f32.mrf.mxu3  ;;  %v11517_v41 = vld [vmem:[#allocation2 + $0x6c0] sm:$0xf0] }
 0x247   :  { %v16465_v26 = vld [vmem:[#allocation2 + $0x13bc] sm:$0xf0]  ;;  %v16289_v43 = vld [vmem:[#allocation2 + $0xe44] sm:$0xf] }
 0x248   :  { %7158 = vmatpush.bf16.msra.mxu2 %v13564_v40  ;;  %7133 = vmatpush.bf16.msra.mxu0 %v11388_v51  ;;  %v14203_v27 = vld [vmem:[#allocation2 + $0x1b40] sm:$0xf]  ;;  %v13180_v32 = vor.u32 %v16465_v26, %v13179_v24  ;;  %v16065_v24 = vld [vmem:[#allocation2 + $0x744] sm:$0xf]  ;;  %vm7974_vm11 = vcmp.ge.f32.partialorder %v17410_v47, 0.0 }
 0x249   :  { %v16721_v28 = vld [vmem:[#allocation2 + $0x1bbc] sm:$0xf0]  ;;  %v11645_v26 = vld [vmem:[#allocation2 + $0x7c0] sm:$0xf0] }
 0x24a   :  { %7171 = vmatpush.bf16.msra.mxu3 %v14588_v45  ;;  %7146 = vmatpush.bf16.msra.mxu1 %v12412_v53  ;;  %v11003_v33 = vld [vmem:[#allocation2 + $0x240] sm:$0xf]  ;;  %v14204_v13 = vor.u32 %v16721_v28, %v14203_v27  ;;  %v16321_v27 = vld [vmem:[#allocation2 + $0xf44] sm:$0xf] }
 0x24b   :  { %v15921_v34 = vld [vmem:[#allocation2 + $0x2bc] sm:$0xf0]  ;;  %v13309_v22 = vld [vmem:[#allocation2 + $0x14c0] sm:$0xf0] }
 0x24c   :  { %7159 = vmatpush.bf16.msra.mxu2 %v13436_v54  ;;  %7134 = vmatpush.bf16.msra.mxu0 %v11260_v7  ;;  %v12027_v35 = vld [vmem:[#allocation2 + $0xa40] sm:$0xf]  ;;  %v11004_v46 = vor.u32 %v15921_v34, %v11003_v33  ;;  %v6895_v54 = vpop.f32.mrf.mxu1  ;;  %v16833_v34 = vld [vmem:[#allocation2 + $0x1f44] sm:$0xf] }
 0x24d   :  { %v16177_v37 = vld [vmem:[#allocation2 + $0xabc] sm:$0xf0]  ;;  %v16001_v54 = vld [vmem:[#allocation2 + $0x544] sm:$0xf] }
 0x24e   :  { %7172 = vmatpush.bf16.msra.mxu3 %v14460_v62  ;;  %7147 = vmatpush.bf16.msra.mxu1 %v12284_v12  ;;  %v13051_v39 = vld [vmem:[#allocation2 + $0x1240] sm:$0xf]  ;;  %v12028_v49 = vor.u32 %v16177_v37, %v12027_v35  ;;  %v14717_v35 = vld [vmem:[#allocation2 + $0x1fc0] sm:$0xf0]  ;;  %v12672_v37 = vor.u32 %v16321_v27, %v12669_v29 }
 0x24f   :  { %v16433_v40 = vld [vmem:[#allocation2 + $0x12bc] sm:$0xf0] }
 0x250   :  { %7160 = vmatpush.bf16.msra.mxu2 %v13308_v14  ;;  %v14075_v44 = vld [vmem:[#allocation2 + $0x1a40] sm:$0xf]  ;;  %7135 = vmatpush.bf16.msra.mxu0 %v11132_v30  ;;  %v13052_v50 = vor.u32 %v16433_v40, %v13051_v39  ;;  %v16577_v30 = vld [vmem:[#allocation2 + $0x1744] sm:$0xf] }
 0x251   :  { %v16689_v45 = vld [vmem:[#allocation2 + $0x1abc] sm:$0xf0]  ;;  %v16033_v40 = vld [vmem:[#allocation2 + $0x644] sm:$0xf] }
 0x252   :  { %7173 = vmatpush.bf16.msra.mxu3 %v14332_v17  ;;  %7148 = vmatpush.bf16.msra.mxu1 %v12156_v31  ;;  %v10875_v51 = vld [vmem:[#allocation2 + $0x140] sm:$0xf]  ;;  %v14076_v55 = vor.u32 %v16689_v45, %v14075_v44  ;;  %v13693_v31 = vld [vmem:[#allocation2 + $0x17c0] sm:$0xf0]  ;;  %v14720_v44 = vor.u32 %v16833_v34, %v14717_v35 }
 0x253   :  { %v15889_v52 = vld [vmem:[#allocation2 + $0x1bc] sm:$0xf0]  ;;  %v13696_v39 = vor.u32 %v16577_v30, %v13693_v31  ;;  %v12541_v45 = vld [vmem:[#allocation2 + $0xec0] sm:$0xf0] }
 0x254   :  { %7161 = vmatpush.bf16.msra.mxu2 %v13180_v32  ;;  %v11899_v53 = vld [vmem:[#allocation2 + $0x940] sm:$0xf]  ;;  %7136 = vmatpush.bf16.msra.mxu0 %v11004_v46  ;;  %v10876_v3 = vor.u32 %v15889_v52, %v10875_v51  ;;  %v16545_v46 = vld [vmem:[#allocation2 + $0x1644] sm:$0xf]  ;;  %v11520_v51 = vor.u32 %v16033_v40, %v11517_v41  ;;  %v12544_v52 = vor.u32 %v16289_v43, %v12541_v45 }
 0x255   :  { %v16145_v58 = vld [vmem:[#allocation2 + $0x9bc] sm:$0xf0]  ;;  %v15937_v31 = vld [vmem:[#allocation2 + $0x344] sm:$0xf]  ;;  %v6945_v35 = vpop.f32.mrf.mxu1 }
 0x256   :  { %7174 = vmatpush.bf16.msra.mxu3 %v14204_v13  ;;  %v12923_v60 = vld [vmem:[#allocation2 + $0x1140] sm:$0xf]  ;;  %7149 = vmatpush.bf16.msra.mxu1 %v12028_v49  ;;  %v11900_v7 = vor.u32 %v16145_v58, %v11899_v53  ;;  %v11648_v13 = vor.u32 %v16065_v24, %v11645_v26  ;;  %v16801_v49 = vld [vmem:[#allocation2 + $0x1e44] sm:$0xf]  ;;  %v13568_v53 = vor.u32 %v16545_v46, %v13565_v48 }
 0x257   :  { %v16401_v62 = vld [vmem:[#allocation2 + $0x11bc] sm:$0xf0]  ;;  %v16257_v58 = vld [vmem:[#allocation2 + $0xd44] sm:$0xf] }
 0x258   :  { %v13947_v63 = vld [vmem:[#allocation2 + $0x1940] sm:$0xf]  ;;  %7162 = vmatpush.bf16.msra.mxu2 %v13052_v50  ;;  %v12924_v10 = vor.u32 %v16401_v62, %v12923_v60  ;;  %7137 = vmatpush.bf16.msra.mxu0 %v10876_v3  ;;  %v14589_v50 = vld [vmem:[#allocation2 + $0x1ec0] sm:$0xf0] }
 0x259   :  { %v16657_v1 = vld [vmem:[#allocation2 + $0x19bc] sm:$0xf0]  ;;  %v14592_v60 = vor.u32 %v16801_v49, %v14589_v50  ;;  %v12413_v62 = vld [vmem:[#allocation2 + $0xdc0] sm:$0xf0] }
 0x25a   :  { %v10747_v4 = vld [vmem:[#allocation2 + $0x40] sm:$0xf]  ;;  %7175 = vmatpush.bf16.msra.mxu3 %v14076_v55  ;;  %v13948_v19 = vor.u32 %v16657_v1, %v13947_v63  ;;  %7150 = vmatpush.bf16.msra.mxu1 %v11900_v7  ;;  %v11389_v55 = vld [vmem:[#allocation2 + $0x5c0] sm:$0xf0] }
 0x25b   :  { %v15857_v5 = vld [vmem:[#allocation2 + $0xbc] sm:$0xf0]  ;;  %v16513_v63 = vld [vmem:[#allocation2 + $0x1544] sm:$0xf] }
 0x25c   :  { %v11771_v12 = vld [vmem:[#allocation2 + $0x840] sm:$0xf]  ;;  %v10748_v28 = vor.u32 %v15857_v5, %v10747_v4  ;;  %7163 = vmatpush.bf16.msra.mxu2 %v12924_v10  ;;  %v13437_v1 = vld [vmem:[#allocation2 + $0x15c0] sm:$0xf0]  ;;  %v11392_v5 = vor.u32 %v16001_v54, %v11389_v55  ;;  %v12416_v10 = vor.u32 %v16257_v58, %v12413_v62 }
 0x25d   :  { %v16113_v14 = vld [vmem:[#allocation2 + $0x8bc] sm:$0xf0]  ;;  %v16769_v3 = vld [vmem:[#allocation2 + $0x1d44] sm:$0xf] }
 0x25e   :  { %v12795_v16 = vld [vmem:[#allocation2 + $0x1040] sm:$0xf]  ;;  %v11772_v32 = vor.u32 %v16113_v14, %v11771_v12  ;;  %7176 = vmatpush.bf16.msra.mxu3 %v13948_v19  ;;  %7138 = vmatpush.bf16.msra.mxu0 %v10748_v28  ;;  %v14461_v4 = vld [vmem:[#allocation2 + $0x1dc0] sm:$0xf0]  ;;  %v13440_v12 = vor.u32 %v16513_v63, %v13437_v1  ;;  %v1127_v19 = vperm.slane %v17419_v18, 4  ;;  %v6932_v28 = vpop.f32.mrf.mxu0 }
 0x25f   :  { %v16369_v20 = vld [vmem:[#allocation2 + $0x10bc] sm:$0xf0]  ;;  %v15969_v7 = vld [vmem:[#allocation2 + $0x444] sm:$0xf] }
 0x260   :  { %v13819_v21 = vld [vmem:[#allocation2 + $0x1840] sm:$0xf]  ;;  %v12796_v33 = vor.u32 %v16369_v20, %v12795_v16  ;;  %7151 = vmatpush.bf16.msra.mxu1 %v11772_v32  ;;  %v11261_v14 = vld [vmem:[#allocation2 + $0x4c0] sm:$0xf0]  ;;  %v14464_v20 = vor.u32 %v16769_v3, %v14461_v4  ;;  %v6933_v34 = vadd.f32 %v6932_v28, %v1127_v19 }
 0x261   :  { %v16625_v17 = vld [vmem:[#allocation2 + $0x18bc] sm:$0xf0]  ;;  %7139 = vmatmul.bf16.vlgmr.msra.gmra.mxu0 %v17285_v9  ;;  %v16225_v16 = vld [vmem:[#allocation2 + $0xc44] sm:$0xf]  ;;  %v11264_v27 = vor.u32 %v15969_v7, %v11261_v14 }
 0x262   :  { %v13820_v36 = vor.u32 %v16625_v17, %v13819_v21  ;;  %7164 = vmatpush.bf16.msra.mxu2 %v12796_v33  ;;  %7183 = vmatpush.bf16.msrb.mxu0 %v11648_v13  ;;  %v12285_v21 = vld [vmem:[#allocation2 + $0xcc0] sm:$0xf0]  ;;  %v6946_v43 = vadd.f32 %v6945_v35, %v6933_v34 }
 0x263   :  { %7152 = vmatmul.bf16.vlgmr.msra.gmra.mxu1 %v17298_v25  ;;  %v16481_v17 = vld [vmem:[#allocation2 + $0x1444] sm:$0xf]  ;;  %v12288_v29 = vor.u32 %v16225_v16, %v12285_v21  ;;  %v6947_v16 = vpop.f32.mrf.mxu1 }
 0x264   :  { %7177 = vmatpush.bf16.msra.mxu3 %v13820_v36  ;;  %7196 = vmatpush.bf16.msrb.mxu1 %v12672_v37  ;;  %v16737_v24 = vld [vmem:[#allocation2 + $0x1c44] sm:$0xf]  ;;  %v13312_v30 = vor.u32 %v16481_v17, %v13309_v22 }
 0x265   :  { %7165 = vmatmul.bf16.vlgmr.msra.gmra.mxu2 %v17283_v8  ;;  %v14333_v26 = vld [vmem:[#allocation2 + $0x1cc0] sm:$0xf0] }
 0x266   :  { %7209 = vmatpush.bf16.msrb.mxu2 %v13696_v39  ;;  %7184 = vmatpush.bf16.msrb.mxu0 %v11520_v51  ;;  %v11133_v32 = vld [vmem:[#allocation2 + $0x3c0] sm:$0xf0]  ;;  %v14336_v36 = vor.u32 %v16737_v24, %v14333_v26  ;;  %v6958_v51 = vpop.f32.mrf.mxu2  ;;  %v6934_v4 = vpop.f32.mrf.mxu0 }
 0x267   :  { %7178 = vmatmul.bf16.vlgmr.msra.gmra.mxu3 %v17290_v15  ;;  %v16193_v33 = vld [vmem:[#allocation2 + $0xb44] sm:$0xf]  ;;  %v6959_v58 = vadd.f32 %v6958_v51, %v6946_v43  ;;  %v12675_v43 = vld [vmem:[#allocation2 + $0xf48] sm:$0xf] }
 0x268   :  { %7222 = vmatpush.bf16.msrb.mxu3 %v14720_v44  ;;  %7197 = vmatpush.bf16.msrb.mxu1 %v12544_v52  ;;  %v12157_v13 = vld [vmem:[#allocation2 + $0xbc0] sm:$0xf0]  ;;  %v11136_v44 = vor.u32 %v15937_v31, %v11133_v32  ;;  %v14723_v51 = vld [vmem:[#allocation2 + $0x1f48] sm:$0xf] }
 0x269   :  { %v16449_v37 = vld [vmem:[#allocation2 + $0x1344] sm:$0xf]  ;;  %v12160_v45 = vor.u32 %v16193_v33, %v12157_v13  ;;  %v16306_v4 = vld [vmem:[#allocation2 + $0xec4] sm:$0xf0] }
 0x26a   :  { %7210 = vmatpush.bf16.msrb.mxu2 %v13568_v53  ;;  %7185 = vmatpush.bf16.msrb.mxu0 %v11392_v5  ;;  %v13181_v39 = vld [vmem:[#allocation2 + $0x13c0] sm:$0xf0] }
 0x26b   :  { %v16705_v40 = vld [vmem:[#allocation2 + $0x1b44] sm:$0xf]  ;;  %v13184_v46 = vor.u32 %v16449_v37, %v13181_v39 }
 0x26c   :  { %7223 = vmatpush.bf16.msrb.mxu3 %v14592_v60  ;;  %7198 = vmatpush.bf16.msrb.mxu1 %v12416_v10  ;;  %v14205_v41 = vld [vmem:[#allocation2 + $0x1bc0] sm:$0xf0]  ;;  %v6971_v60 = vpop.f32.mrf.mxu3 }
 0x26d   :  { %v15905_v48 = vld [vmem:[#allocation2 + $0x244] sm:$0xf]  ;;  %v14208_v52 = vor.u32 %v16705_v40, %v14205_v41  ;;  %v17422_v3 = vadd.f32 %v6971_v60, %v6959_v58  ;;  %v11651_v40 = vld [vmem:[#allocation2 + $0x748] sm:$0xf] }
 0x26e   :  { %7211 = vmatpush.bf16.msrb.mxu2 %v13440_v12  ;;  %7186 = vmatpush.bf16.msrb.mxu0 %v11264_v27  ;;  %v11005_v49 = vld [vmem:[#allocation2 + $0x2c0] sm:$0xf0]  ;;  %v6960_v34 = vpop.f32.mrf.mxu2  ;;  %v16082_v41 = vld [vmem:[#allocation2 + $0x7c4] sm:$0xf0] }
 0x26f   :  { %v16161_v50 = vld [vmem:[#allocation2 + $0xa44] sm:$0xf]  ;;  %v11008_v1 = vor.u32 %v15905_v48, %v11005_v49  ;;  %v16594_v48 = vld [vmem:[#allocation2 + $0x17c4] sm:$0xf0]  ;;  %vm7975_vm12 = vcmp.ge.f32.partialorder %v17422_v3, 0.0 }
 0x270   :  { %7224 = vmatpush.bf16.msrb.mxu3 %v14464_v20  ;;  %7199 = vmatpush.bf16.msrb.mxu1 %v12288_v29  ;;  %v12029_v53 = vld [vmem:[#allocation2 + $0xac0] sm:$0xf0]  ;;  %v11523_v60 = vld [vmem:[#allocation2 + $0x648] sm:$0xf] }
 0x271   :  { %v16417_v54 = vld [vmem:[#allocation2 + $0x1244] sm:$0xf]  ;;  %v12032_v5 = vor.u32 %v16161_v50, %v12029_v53  ;;  %v15986_v34 = vld [vmem:[#allocation2 + $0x4c4] sm:$0xf0] }
 0x272   :  { %7212 = vmatpush.bf16.msrb.mxu2 %v13312_v30  ;;  %v13053_v55 = vld [vmem:[#allocation2 + $0x12c0] sm:$0xf0]  ;;  %7187 = vmatpush.bf16.msrb.mxu0 %v11136_v44 }
 0x273   :  { %v16673_v62 = vld [vmem:[#allocation2 + $0x1a44] sm:$0xf]  ;;  %v13056_v7 = vor.u32 %v16417_v54, %v13053_v55  ;;  %v11652_v54 = vor.u32 %v16082_v41, %v11651_v40  ;;  %v16498_v40 = vld [vmem:[#allocation2 + $0x14c4] sm:$0xf0] }
 0x274   :  { %7225 = vmatpush.bf16.msrb.mxu3 %v14336_v36  ;;  %v14077_v63 = vld [vmem:[#allocation2 + $0x1ac0] sm:$0xf0]  ;;  %7200 = vmatpush.bf16.msrb.mxu1 %v12160_v45  ;;  %v6973_v39 = vpop.f32.mrf.mxu3  ;;  %v16338_v45 = vld [vmem:[#allocation2 + $0xfc4] sm:$0xf0] }
 0x275   :  { %v15873_v10 = vld [vmem:[#allocation2 + $0x144] sm:$0xf]  ;;  %v14080_v19 = vor.u32 %v16673_v62, %v14077_v63  ;;  %v12676_v55 = vor.u32 %v16338_v45, %v12675_v43  ;;  %v16050_v62 = vld [vmem:[#allocation2 + $0x6c4] sm:$0xf0] }
 0x276   :  { %7213 = vmatpush.bf16.msrb.mxu2 %v13184_v46  ;;  %v10877_v12 = vld [vmem:[#allocation2 + $0x1c0] sm:$0xf0]  ;;  %7188 = vmatpush.bf16.msrb.mxu0 %v11008_v1  ;;  %v13699_v46 = vld [vmem:[#allocation2 + $0x1748] sm:$0xf]  ;;  %v6984_v45 = vpop.f32.mrf.mxu0 }
 0x277   :  { %v16129_v14 = vld [vmem:[#allocation2 + $0x944] sm:$0xf]  ;;  %v10880_v26 = vor.u32 %v15873_v10, %v10877_v12  ;;  %v13700_v58 = vor.u32 %v16594_v48, %v13699_v46  ;;  %v12547_v63 = vld [vmem:[#allocation2 + $0xe48] sm:$0xf] }
 0x278   :  { %7226 = vmatpush.bf16.msrb.mxu3 %v14208_v52  ;;  %v11901_v20 = vld [vmem:[#allocation2 + $0x9c0] sm:$0xf0]  ;;  %7201 = vmatpush.bf16.msrb.mxu1 %v12032_v5  ;;  %v16850_v52 = vld [vmem:[#allocation2 + $0x1fc4] sm:$0xf0]  ;;  %v12548_v16 = vor.u32 %v16306_v4, %v12547_v63 }
 0x279   :  { %v16385_v21 = vld [vmem:[#allocation2 + $0x1144] sm:$0xf]  ;;  %v11904_v29 = vor.u32 %v16129_v14, %v11901_v20  ;;  %v14724_v1 = vor.u32 %v16850_v52, %v14723_v51  ;;  %v13571_v5 = vld [vmem:[#allocation2 + $0x1648] sm:$0xf]  ;;  %v11524_v14 = vor.u32 %v16050_v62, %v11523_v60 }
 0x27a   :  { %v12925_v17 = vld [vmem:[#allocation2 + $0x11c0] sm:$0xf0]  ;;  %7214 = vmatpush.bf16.msrb.mxu2 %v13056_v7  ;;  %7189 = vmatpush.bf16.msrb.mxu0 %v10880_v26  ;;  %v16562_v7 = vld [vmem:[#allocation2 + $0x16c4] sm:$0xf0] }
 0x27b   :  { %v16641_v22 = vld [vmem:[#allocation2 + $0x1944] sm:$0xf]  ;;  %v12928_v30 = vor.u32 %v16385_v21, %v12925_v17  ;;  %v14595_v10 = vld [vmem:[#allocation2 + $0x1e48] sm:$0xf] }
 0x27c   :  { %v13949_v24 = vld [vmem:[#allocation2 + $0x19c0] sm:$0xf0]  ;;  %7227 = vmatpush.bf16.msrb.mxu3 %v14080_v19  ;;  %7202 = vmatpush.bf16.msrb.mxu1 %v11904_v29  ;;  %v16818_v12 = vld [vmem:[#allocation2 + $0x1ec4] sm:$0xf0]  ;;  %v13572_v19 = vor.u32 %v16562_v7, %v13571_v5 }
 0x27d   :  { %v15841_v27 = vld [vmem:[#allocation2 + $0x44] sm:$0xf]  ;;  %v13952_v35 = vor.u32 %v16641_v22, %v13949_v24  ;;  %v11395_v20 = vld [vmem:[#allocation2 + $0x548] sm:$0xf]  ;;  %v14596_v22 = vor.u32 %v16818_v12, %v14595_v10 }
 0x27e   :  { %v10749_v28 = vld [vmem:[#allocation2 + $0xc0] sm:$0xf0]  ;;  %7215 = vmatpush.bf16.msrb.mxu2 %v12928_v30  ;;  %v16018_v21 = vld [vmem:[#allocation2 + $0x5c4] sm:$0xf0] }
 0x27f   :  { %v16097_v31 = vld [vmem:[#allocation2 + $0x844] sm:$0xf]  ;;  %v10752_v44 = vor.u32 %v15841_v27, %v10749_v28  ;;  %v12419_v17 = vld [vmem:[#allocation2 + $0xd48] sm:$0xf]  ;;  %v11396_v30 = vor.u32 %v16018_v21, %v11395_v20 }
 0x280   :  { %v11773_v32 = vld [vmem:[#allocation2 + $0x8c0] sm:$0xf0]  ;;  %7228 = vmatpush.bf16.msrb.mxu3 %v13952_v35  ;;  %v16274_v24 = vld [vmem:[#allocation2 + $0xdc4] sm:$0xf0] }
 0x281   :  { %v16353_v33 = vld [vmem:[#allocation2 + $0x1044] sm:$0xf]  ;;  %v11776_v49 = vor.u32 %v16097_v31, %v11773_v32  ;;  %7190 = vmatpush.bf16.msrb.mxu0 %v10752_v44  ;;  %v13443_v26 = vld [vmem:[#allocation2 + $0x1548] sm:$0xf]  ;;  %v12420_v32 = vor.u32 %v16274_v24, %v12419_v17 }
 0x282   :  { %v12797_v36 = vld [vmem:[#allocation2 + $0x10c0] sm:$0xf0]  ;;  %v16530_v27 = vld [vmem:[#allocation2 + $0x15c4] sm:$0xf0]  ;;  %v7023_v24 = vpop.f32.mrf.mxu3 }
 0x283   :  { %v16609_v13 = vld [vmem:[#allocation2 + $0x1844] sm:$0xf]  ;;  %v12800_v50 = vor.u32 %v16353_v33, %v12797_v36  ;;  %7203 = vmatpush.bf16.msrb.mxu1 %v11776_v49  ;;  %v14467_v28 = vld [vmem:[#allocation2 + $0x1d48] sm:$0xf]  ;;  %v13444_v33 = vor.u32 %v16530_v27, %v13443_v26  ;;  %v1128_v36 = vperm.slane %v17419_v18, 5 }
 0x284   :  { %v13821_v37 = vld [vmem:[#allocation2 + $0x18c0] sm:$0xf0]  ;;  %v16786_v29 = vld [vmem:[#allocation2 + $0x1dc4] sm:$0xf0]  ;;  %7191 = vmatmul.bf16.vlgmr.msrb.gmra.mxu0 %v17285_v9 }
 0x285   :  { %v13824_v53 = vor.u32 %v16609_v13, %v13821_v37  ;;  %7216 = vmatpush.bf16.msrb.mxu2 %v12800_v50  ;;  %7235 = vmatpush.bf16.msra.mxu0 %v11652_v54  ;;  %v11267_v31 = vld [vmem:[#allocation2 + $0x448] sm:$0xf]  ;;  %v14468_v13 = vor.u32 %v16786_v29, %v14467_v28  ;;  %v6985_v52 = vadd.f32 %v6984_v45, %v1128_v36 }
 0x286   :  { %7204 = vmatmul.bf16.vlgmr.msrb.gmra.mxu1 %v17298_v25  ;;  %v12291_v35 = vld [vmem:[#allocation2 + $0xc48] sm:$0xf]  ;;  %v11268_v44 = vor.u32 %v15986_v34, %v11267_v31 }
 0x287   :  { %7229 = vmatpush.bf16.msrb.mxu3 %v13824_v53  ;;  %7248 = vmatpush.bf16.msra.mxu1 %v12676_v55  ;;  %v16242_v37 = vld [vmem:[#allocation2 + $0xcc4] sm:$0xf0]  ;;  %v6997_v53 = vpop.f32.mrf.mxu1 }
 0x288   :  { %7217 = vmatmul.bf16.vlgmr.msrb.gmra.mxu2 %v17283_v8  ;;  %v13315_v39 = vld [vmem:[#allocation2 + $0x1448] sm:$0xf]  ;;  %v12292_v46 = vor.u32 %v16242_v37, %v12291_v35 }
 0x289   :  { %7261 = vmatpush.bf16.msra.mxu2 %v13700_v58  ;;  %7236 = vmatpush.bf16.msra.mxu0 %v11524_v14  ;;  %v14339_v41 = vld [vmem:[#allocation2 + $0x1c48] sm:$0xf]  ;;  %v13316_v48 = vor.u32 %v16498_v40, %v13315_v39 }
 0x28a   :  { %7230 = vmatmul.bf16.vlgmr.msrb.gmra.mxu3 %v17290_v15  ;;  %v16754_v43 = vld [vmem:[#allocation2 + $0x1cc4] sm:$0xf0] }
 0x28b   :  { %7274 = vmatpush.bf16.msra.mxu3 %v14724_v1  ;;  %7249 = vmatpush.bf16.msra.mxu1 %v12548_v16  ;;  %v11139_v49 = vld [vmem:[#allocation2 + $0x348] sm:$0xf]  ;;  %v14340_v54 = vor.u32 %v16754_v43, %v14339_v41  ;;  %v6998_v1 = vadd.f32 %v6997_v53, %v6985_v52  ;;  %v7010_v16 = vpop.f32.mrf.mxu2 }
 0x28c   :  { %v15954_v50 = vld [vmem:[#allocation2 + $0x3c4] sm:$0xf0] }
 0x28d   :  { %7262 = vmatpush.bf16.msra.mxu2 %v13572_v19  ;;  %7237 = vmatpush.bf16.msra.mxu0 %v11396_v30  ;;  %v12163_v51 = vld [vmem:[#allocation2 + $0xb48] sm:$0xf]  ;;  %v11140_v4 = vor.u32 %v15954_v50, %v11139_v49  ;;  %v6986_v30 = vpop.f32.mrf.mxu0 }
 0x28e   :  { %v16210_v55 = vld [vmem:[#allocation2 + $0xbc4] sm:$0xf0] }
 0x28f   :  { %7275 = vmatpush.bf16.msra.mxu3 %v14596_v22  ;;  %7250 = vmatpush.bf16.msra.mxu1 %v12420_v32  ;;  %v13187_v58 = vld [vmem:[#allocation2 + $0x1348] sm:$0xf]  ;;  %v12164_v5 = vor.u32 %v16210_v55, %v12163_v51  ;;  %v7011_v22 = vadd.f32 %v7010_v16, %v6998_v1  ;;  %v6999_v36 = vpop.f32.mrf.mxu1  ;;  %v11653_v1 = vld [vmem:[#allocation2 + $0x7c8] sm:$0xf0] }
 0x290   :  { %v16466_v60 = vld [vmem:[#allocation2 + $0x13c4] sm:$0xf0] }
 0x291   :  { %7263 = vmatpush.bf16.msra.mxu2 %v13444_v33  ;;  %v14211_v62 = vld [vmem:[#allocation2 + $0x1b48] sm:$0xf]  ;;  %7238 = vmatpush.bf16.msra.mxu0 %v11268_v44  ;;  %v13188_v7 = vor.u32 %v16466_v60, %v13187_v58  ;;  %v17429_v29 = vadd.f32 %v7023_v24, %v7011_v22 }
 0x292   :  { %v16722_v63 = vld [vmem:[#allocation2 + $0x1bc4] sm:$0xf0] }
 0x293   :  { %7276 = vmatpush.bf16.msra.mxu3 %v14468_v13  ;;  %7251 = vmatpush.bf16.msra.mxu1 %v12292_v46  ;;  %v11011_v10 = vld [vmem:[#allocation2 + $0x248] sm:$0xf]  ;;  %v14212_v19 = vor.u32 %v16722_v63, %v14211_v62  ;;  %v7012_v53 = vpop.f32.mrf.mxu2  ;;  %v7025_v62 = vpop.f32.mrf.mxu3  ;;  %v16066_v63 = vld [vmem:[#allocation2 + $0x74c] sm:$0xf]  ;;  %vm7976_vm13 = vcmp.ge.f32.partialorder %v17429_v29, 0.0 }
 0x294   :  { %v15922_v12 = vld [vmem:[#allocation2 + $0x2c4] sm:$0xf0]  ;;  %v12293_v62 = vld [vmem:[#allocation2 + $0xcc8] sm:$0xf0] }
 0x295   :  { %7264 = vmatpush.bf16.msra.mxu2 %v13316_v48  ;;  %v12035_v14 = vld [vmem:[#allocation2 + $0xa48] sm:$0xf]  ;;  %7239 = vmatpush.bf16.msra.mxu0 %v11140_v4  ;;  %v11012_v28 = vor.u32 %v15922_v12, %v11011_v10  ;;  %v16322_v4 = vld [vmem:[#allocation2 + $0xf4c] sm:$0xf] }
 0x296   :  { %v16178_v20 = vld [vmem:[#allocation2 + $0xac4] sm:$0xf0]  ;;  %v16578_v10 = vld [vmem:[#allocation2 + $0x174c] sm:$0xf] }
 0x297   :  { %7277 = vmatpush.bf16.msra.mxu3 %v14340_v54  ;;  %v13059_v21 = vld [vmem:[#allocation2 + $0x1248] sm:$0xf]  ;;  %7252 = vmatpush.bf16.msra.mxu1 %v12164_v5  ;;  %v12036_v31 = vor.u32 %v16178_v20, %v12035_v14  ;;  %v13701_v12 = vld [vmem:[#allocation2 + $0x17c8] sm:$0xf0] }
 0x298   :  { %v16434_v17 = vld [vmem:[#allocation2 + $0x12c4] sm:$0xf0]  ;;  %v14725_v20 = vld [vmem:[#allocation2 + $0x1fc8] sm:$0xf0]  ;;  %v13704_v24 = vor.u32 %v16578_v10, %v13701_v12 }
 0x299   :  { %v14083_v26 = vld [vmem:[#allocation2 + $0x1a48] sm:$0xf]  ;;  %7265 = vmatpush.bf16.msra.mxu2 %v13188_v7  ;;  %v13060_v32 = vor.u32 %v16434_v17, %v13059_v21  ;;  %7240 = vmatpush.bf16.msra.mxu0 %v11012_v28  ;;  %v12677_v7 = vld [vmem:[#allocation2 + $0xfc8] sm:$0xf0]  ;;  %v11656_v17 = vor.u32 %v16066_v63, %v11653_v1  ;;  %v7036_v10 = vpop.f32.mrf.mxu0 }
 0x29a   :  { %v16690_v27 = vld [vmem:[#allocation2 + $0x1ac4] sm:$0xf0]  ;;  %v12680_v22 = vor.u32 %v16322_v4, %v12677_v7  ;;  %v16290_v28 = vld [vmem:[#allocation2 + $0xe4c] sm:$0xf] }
 0x29b   :  { %v10883_v33 = vld [vmem:[#allocation2 + $0x148] sm:$0xf]  ;;  %7278 = vmatpush.bf16.msra.mxu3 %v14212_v19  ;;  %v14084_v13 = vor.u32 %v16690_v27, %v14083_v26  ;;  %7253 = vmatpush.bf16.msra.mxu1 %v12036_v31  ;;  %v16834_v19 = vld [vmem:[#allocation2 + $0x1f4c] sm:$0xf] }
 0x29c   :  { %v15890_v34 = vld [vmem:[#allocation2 + $0x1c4] sm:$0xf0]  ;;  %v16034_v26 = vld [vmem:[#allocation2 + $0x64c] sm:$0xf]  ;;  %v14728_v30 = vor.u32 %v16834_v19, %v14725_v20 }
 0x29d   :  { %v11907_v35 = vld [vmem:[#allocation2 + $0x948] sm:$0xf]  ;;  %v10884_v44 = vor.u32 %v15890_v34, %v10883_v33  ;;  %7266 = vmatpush.bf16.msra.mxu2 %v13060_v32  ;;  %v11525_v27 = vld [vmem:[#allocation2 + $0x6c8] sm:$0xf0] }
 0x29e   :  { %v16146_v37 = vld [vmem:[#allocation2 + $0x9c4] sm:$0xf0]  ;;  %v12549_v31 = vld [vmem:[#allocation2 + $0xec8] sm:$0xf0]  ;;  %v11528_v36 = vor.u32 %v16034_v26, %v11525_v27 }
 0x29f   :  { %v12931_v39 = vld [vmem:[#allocation2 + $0x1148] sm:$0xf]  ;;  %v11908_v48 = vor.u32 %v16146_v37, %v11907_v35  ;;  %7279 = vmatpush.bf16.msra.mxu3 %v14084_v13  ;;  %7241 = vmatpush.bf16.msra.mxu0 %v10884_v44  ;;  %v16546_v32 = vld [vmem:[#allocation2 + $0x164c] sm:$0xf]  ;;  %v12552_v13 = vor.u32 %v16290_v28, %v12549_v31 }
 0x2a0   :  { %v16402_v40 = vld [vmem:[#allocation2 + $0x11c4] sm:$0xf0]  ;;  %v13573_v33 = vld [vmem:[#allocation2 + $0x16c8] sm:$0xf0] }
 0x2a1   :  { %v13955_v41 = vld [vmem:[#allocation2 + $0x1948] sm:$0xf]  ;;  %v12932_v49 = vor.u32 %v16402_v40, %v12931_v39  ;;  %7254 = vmatpush.bf16.msra.mxu1 %v11908_v48  ;;  %v16802_v34 = vld [vmem:[#allocation2 + $0x1e4c] sm:$0xf]  ;;  %v13576_v37 = vor.u32 %v16546_v32, %v13573_v33 }
 0x2a2   :  { %v16658_v43 = vld [vmem:[#allocation2 + $0x19c4] sm:$0xf0]  ;;  %v14597_v35 = vld [vmem:[#allocation2 + $0x1ec8] sm:$0xf0] }
 0x2a3   :  { %v10755_v45 = vld [vmem:[#allocation2 + $0x48] sm:$0xf]  ;;  %v13956_v54 = vor.u32 %v16658_v43, %v13955_v41  ;;  %7267 = vmatpush.bf16.msra.mxu2 %v12932_v49  ;;  %v16002_v39 = vld [vmem:[#allocation2 + $0x54c] sm:$0xf]  ;;  %v14600_v43 = vor.u32 %v16802_v34, %v14597_v35 }
 0x2a4   :  { %v15858_v46 = vld [vmem:[#allocation2 + $0xc4] sm:$0xf0]  ;;  %v11397_v40 = vld [vmem:[#allocation2 + $0x5c8] sm:$0xf0] }
 0x2a5   :  { %v11779_v50 = vld [vmem:[#allocation2 + $0x848] sm:$0xf]  ;;  %v10756_v5 = vor.u32 %v15858_v46, %v10755_v45  ;;  %7280 = vmatpush.bf16.msra.mxu3 %v13956_v54  ;;  %v16258_v41 = vld [vmem:[#allocation2 + $0xd4c] sm:$0xf] }
 0x2a6   :  { %v16114_v51 = vld [vmem:[#allocation2 + $0x8c4] sm:$0xf0]  ;;  %v12421_v44 = vld [vmem:[#allocation2 + $0xdc8] sm:$0xf0] }
 0x2a7   :  { %v12803_v52 = vld [vmem:[#allocation2 + $0x1048] sm:$0xf]  ;;  %v11780_v14 = vor.u32 %v16114_v51, %v11779_v50  ;;  %7242 = vmatpush.bf16.msra.mxu0 %v10756_v5  ;;  %v16514_v45 = vld [vmem:[#allocation2 + $0x154c] sm:$0xf]  ;;  %v11400_v50 = vor.u32 %v16002_v39, %v11397_v40 }
 0x2a8   :  { %v16370_v55 = vld [vmem:[#allocation2 + $0x10c4] sm:$0xf0]  ;;  %v13445_v46 = vld [vmem:[#allocation2 + $0x15c8] sm:$0xf0] }
 0x2a9   :  { %v13827_v58 = vld [vmem:[#allocation2 + $0x1848] sm:$0xf]  ;;  %v12804_v16 = vor.u32 %v16370_v55, %v12803_v52  ;;  %7255 = vmatpush.bf16.msra.mxu1 %v11780_v14  ;;  %v16770_v48 = vld [vmem:[#allocation2 + $0x1d4c] sm:$0xf]  ;;  %v12424_v52 = vor.u32 %v16258_v41, %v12421_v44  ;;  %v13448_v53 = vor.u32 %v16514_v45, %v13445_v46  ;;  %v7075_v45 = vpop.f32.mrf.mxu3 }
 0x2aa   :  { %v16626_v60 = vld [vmem:[#allocation2 + $0x18c4] sm:$0xf0]  ;;  %v14469_v49 = vld [vmem:[#allocation2 + $0x1dc8] sm:$0xf0]  ;;  %7243 = vmatmul.bf16.vlgmr.msra.gmra.mxu0 %v17285_v9 }
 0x2ab   :  { %v13828_v21 = vor.u32 %v16626_v60, %v13827_v58  ;;  %7268 = vmatpush.bf16.msra.mxu2 %v12804_v16  ;;  %7287 = vmatpush.bf16.msrb.mxu0 %v11656_v17  ;;  %v15970_v51 = vld [vmem:[#allocation2 + $0x44c] sm:$0xf]  ;;  %v1129_v58 = vperm.slane %v17419_v18, 6  ;;  %v14472_v60 = vor.u32 %v16770_v48, %v14469_v49  ;;  %v7049_v17 = vpop.f32.mrf.mxu1 }
 0x2ac   :  { %7256 = vmatmul.bf16.vlgmr.msra.gmra.mxu1 %v17298_v25  ;;  %v11269_v54 = vld [vmem:[#allocation2 + $0x4c8] sm:$0xf0] }
 0x2ad   :  { %7281 = vmatpush.bf16.msra.mxu3 %v13828_v21  ;;  %7300 = vmatpush.bf16.msrb.mxu1 %v12680_v22  ;;  %v16226_v55 = vld [vmem:[#allocation2 + $0xc4c] sm:$0xf]  ;;  %v11272_v7 = vor.u32 %v15970_v51, %v11269_v54  ;;  %v7037_v21 = vadd.f32 %v7036_v10, %v1129_v58  ;;  %v7038_v51 = vpop.f32.mrf.mxu0 }
 0x2ae   :  { %7269 = vmatmul.bf16.vlgmr.msra.gmra.mxu2 %v17283_v8  ;;  %v16482_v63 = vld [vmem:[#allocation2 + $0x144c] sm:$0xf]  ;;  %v12296_v12 = vor.u32 %v16226_v55, %v12293_v62  ;;  %v12555_v51 = vld [vmem:[#allocation2 + $0xe50] sm:$0xf] }
 0x2af   :  { %7313 = vmatpush.bf16.msrb.mxu2 %v13704_v24  ;;  %7288 = vmatpush.bf16.msrb.mxu0 %v11528_v36  ;;  %v13317_v1 = vld [vmem:[#allocation2 + $0x14c8] sm:$0xf0]  ;;  %v7050_v31 = vadd.f32 %v7049_v17, %v7037_v21 }
 0x2b0   :  { %7282 = vmatmul.bf16.vlgmr.msra.gmra.mxu3 %v17290_v15  ;;  %v16738_v4 = vld [vmem:[#allocation2 + $0x1c4c] sm:$0xf]  ;;  %v13320_v14 = vor.u32 %v16482_v63, %v13317_v1 }
 0x2b1   :  { %7326 = vmatpush.bf16.msrb.mxu3 %v14728_v30  ;;  %7301 = vmatpush.bf16.msrb.mxu1 %v12552_v13  ;;  %v14341_v5 = vld [vmem:[#allocation2 + $0x1cc8] sm:$0xf0] }
 0x2b2   :  { %v15938_v16 = vld [vmem:[#allocation2 + $0x34c] sm:$0xf]  ;;  %v14344_v22 = vor.u32 %v16738_v4, %v14341_v5 }
 0x2b3   :  { %7314 = vmatpush.bf16.msrb.mxu2 %v13576_v37  ;;  %7289 = vmatpush.bf16.msrb.mxu0 %v11400_v50  ;;  %v11141_v19 = vld [vmem:[#allocation2 + $0x3c8] sm:$0xf0]  ;;  %v7062_v37 = vpop.f32.mrf.mxu2 }
 0x2b4   :  { %v16194_v20 = vld [vmem:[#allocation2 + $0xb4c] sm:$0xf]  ;;  %v11144_v32 = vor.u32 %v15938_v16, %v11141_v19  ;;  %v7063_v44 = vadd.f32 %v7062_v37, %v7050_v31  ;;  %v11659_v31 = vld [vmem:[#allocation2 + $0x750] sm:$0xf] }
 0x2b5   :  { %7327 = vmatpush.bf16.msrb.mxu3 %v14600_v43  ;;  %7302 = vmatpush.bf16.msrb.mxu1 %v12424_v52  ;;  %v12165_v24 = vld [vmem:[#allocation2 + $0xbc8] sm:$0xf0] }
 0x2b6   :  { %v16450_v26 = vld [vmem:[#allocation2 + $0x134c] sm:$0xf]  ;;  %v12168_v33 = vor.u32 %v16194_v20, %v12165_v24  ;;  %v17436_v50 = vadd.f32 %v7075_v45, %v7063_v44 }
 0x2b7   :  { %7315 = vmatpush.bf16.msrb.mxu2 %v13448_v53  ;;  %v13189_v27 = vld [vmem:[#allocation2 + $0x13c8] sm:$0xf0]  ;;  %7290 = vmatpush.bf16.msrb.mxu0 %v11272_v7 }
 0x2b8   :  { %v16706_v28 = vld [vmem:[#allocation2 + $0x1b4c] sm:$0xf]  ;;  %v13192_v34 = vor.u32 %v16450_v26, %v13189_v27  ;;  %vm7977_vm14 = vcmp.ge.f32.partialorder %v17436_v50, 0.0 }
 0x2b9   :  { %7328 = vmatpush.bf16.msrb.mxu3 %v14472_v60  ;;  %v14213_v30 = vld [vmem:[#allocation2 + $0x1bc8] sm:$0xf0]  ;;  %7303 = vmatpush.bf16.msrb.mxu1 %v12296_v12  ;;  %v7051_v60 = vpop.f32.mrf.mxu1 }
 0x2ba   :  { %v15906_v35 = vld [vmem:[#allocation2 + $0x24c] sm:$0xf]  ;;  %v14216_v39 = vor.u32 %v16706_v28, %v14213_v30  ;;  %v7077_v30 = vpop.f32.mrf.mxu3  ;;  %v16819_v60 = vld [vmem:[#allocation2 + $0x1ecc] sm:$0xf0] }
 0x2bb   :  { %7316 = vmatpush.bf16.msrb.mxu2 %v13320_v14  ;;  %v11013_v36 = vld [vmem:[#allocation2 + $0x2c8] sm:$0xf0]  ;;  %7291 = vmatpush.bf16.msrb.mxu0 %v11144_v32  ;;  %v16083_v32 = vld [vmem:[#allocation2 + $0x7cc] sm:$0xf0] }
 0x2bc   :  { %v16162_v13 = vld [vmem:[#allocation2 + $0xa4c] sm:$0xf]  ;;  %v11016_v49 = vor.u32 %v15906_v35, %v11013_v36  ;;  %v16339_v35 = vld [vmem:[#allocation2 + $0xfcc] sm:$0xf0]  ;;  %v11660_v44 = vor.u32 %v16083_v32, %v11659_v31 }
 0x2bd   :  { %7329 = vmatpush.bf16.msrb.mxu3 %v14344_v22  ;;  %v12037_v40 = vld [vmem:[#allocation2 + $0xac8] sm:$0xf0]  ;;  %7304 = vmatpush.bf16.msrb.mxu1 %v12168_v33  ;;  %v7064_v22 = vpop.f32.mrf.mxu2  ;;  %v12683_v33 = vld [vmem:[#allocation2 + $0xf50] sm:$0xf] }
 0x2be   :  { %v16418_v41 = vld [vmem:[#allocation2 + $0x124c] sm:$0xf]  ;;  %v12040_v52 = vor.u32 %v16162_v13, %v12037_v40  ;;  %v13707_v36 = vld [vmem:[#allocation2 + $0x1750] sm:$0xf]  ;;  %v12684_v45 = vor.u32 %v16339_v35, %v12683_v33 }
 0x2bf   :  { %v13061_v43 = vld [vmem:[#allocation2 + $0x12c8] sm:$0xf0]  ;;  %7317 = vmatpush.bf16.msrb.mxu2 %v13192_v34  ;;  %7292 = vmatpush.bf16.msrb.mxu0 %v11016_v49  ;;  %v16595_v13 = vld [vmem:[#allocation2 + $0x17cc] sm:$0xf0] }
 0x2c0   :  { %v16674_v46 = vld [vmem:[#allocation2 + $0x1a4c] sm:$0xf]  ;;  %v13064_v53 = vor.u32 %v16418_v41, %v13061_v43  ;;  %v14731_v40 = vld [vmem:[#allocation2 + $0x1f50] sm:$0xf] }
 0x2c1   :  { %v14085_v48 = vld [vmem:[#allocation2 + $0x1ac8] sm:$0xf0]  ;;  %7330 = vmatpush.bf16.msrb.mxu3 %v14216_v39  ;;  %7305 = vmatpush.bf16.msrb.mxu1 %v12040_v52  ;;  %v16851_v41 = vld [vmem:[#allocation2 + $0x1fcc] sm:$0xf0] }
 0x2c2   :  { %v15874_v54 = vld [vmem:[#allocation2 + $0x14c] sm:$0xf]  ;;  %v14088_v62 = vor.u32 %v16674_v46, %v14085_v48  ;;  %v13708_v46 = vor.u32 %v16595_v13, %v13707_v36  ;;  %v11531_v48 = vld [vmem:[#allocation2 + $0x650] sm:$0xf]  ;;  %v14732_v52 = vor.u32 %v16851_v41, %v14731_v40  ;;  %v7088_v13 = vpop.f32.mrf.mxu0 }
 0x2c3   :  { %v10885_v55 = vld [vmem:[#allocation2 + $0x1c8] sm:$0xf0]  ;;  %7318 = vmatpush.bf16.msrb.mxu2 %v13064_v53  ;;  %v16051_v49 = vld [vmem:[#allocation2 + $0x6cc] sm:$0xf0] }
 0x2c4   :  { %v16130_v58 = vld [vmem:[#allocation2 + $0x94c] sm:$0xf]  ;;  %v10888_v10 = vor.u32 %v15874_v54, %v10885_v55  ;;  %v16307_v53 = vld [vmem:[#allocation2 + $0xecc] sm:$0xf0] }
 0x2c5   :  { %v11909_v63 = vld [vmem:[#allocation2 + $0x9c8] sm:$0xf0]  ;;  %7331 = vmatpush.bf16.msrb.mxu3 %v14088_v62  ;;  %v13579_v54 = vld [vmem:[#allocation2 + $0x1650] sm:$0xf]  ;;  %v11532_v62 = vor.u32 %v16051_v49, %v11531_v48 }
 0x2c6   :  { %v16386_v1 = vld [vmem:[#allocation2 + $0x114c] sm:$0xf]  ;;  %v11912_v16 = vor.u32 %v16130_v58, %v11909_v63  ;;  %7293 = vmatpush.bf16.msrb.mxu0 %v10888_v10  ;;  %v16563_v55 = vld [vmem:[#allocation2 + $0x16cc] sm:$0xf0]  ;;  %v12556_v63 = vor.u32 %v16307_v53, %v12555_v51 }
 0x2c7   :  { %v12933_v4 = vld [vmem:[#allocation2 + $0x11c8] sm:$0xf0]  ;;  %v14603_v58 = vld [vmem:[#allocation2 + $0x1e50] sm:$0xf] }
 0x2c8   :  { %v16642_v5 = vld [vmem:[#allocation2 + $0x194c] sm:$0xf]  ;;  %v12936_v19 = vor.u32 %v16386_v1, %v12933_v4  ;;  %7306 = vmatpush.bf16.msrb.mxu1 %v11912_v16  ;;  %v13580_v1 = vor.u32 %v16563_v55, %v13579_v54  ;;  %v11403_v4 = vld [vmem:[#allocation2 + $0x550] sm:$0xf]  ;;  %v14604_v10 = vor.u32 %v16819_v60, %v14603_v58 }
 0x2c9   :  { %v13957_v7 = vld [vmem:[#allocation2 + $0x19c8] sm:$0xf0]  ;;  %v16531_v16 = vld [vmem:[#allocation2 + $0x15cc] sm:$0xf0] }
 0x2ca   :  { %v15842_v12 = vld [vmem:[#allocation2 + $0x4c] sm:$0xf]  ;;  %v13960_v24 = vor.u32 %v16642_v5, %v13957_v7  ;;  %7319 = vmatpush.bf16.msrb.mxu2 %v12936_v19  ;;  %v16019_v5 = vld [vmem:[#allocation2 + $0x5cc] sm:$0xf0] }
 0x2cb   :  { %v10757_v14 = vld [vmem:[#allocation2 + $0xc8] sm:$0xf0]  ;;  %v12427_v7 = vld [vmem:[#allocation2 + $0xd50] sm:$0xf] }
 0x2cc   :  { %v16098_v20 = vld [vmem:[#allocation2 + $0x84c] sm:$0xf]  ;;  %v10760_v34 = vor.u32 %v15842_v12, %v10757_v14  ;;  %7332 = vmatpush.bf16.msrb.mxu3 %v13960_v24  ;;  %v16275_v12 = vld [vmem:[#allocation2 + $0xdcc] sm:$0xf0] }
 0x2cd   :  { %v11781_v21 = vld [vmem:[#allocation2 + $0x8c8] sm:$0xf0]  ;;  %v13451_v14 = vld [vmem:[#allocation2 + $0x1550] sm:$0xf]  ;;  %v12428_v22 = vor.u32 %v16275_v12, %v12427_v7 }
 0x2ce   :  { %v16354_v17 = vld [vmem:[#allocation2 + $0x104c] sm:$0xf]  ;;  %v11784_v37 = vor.u32 %v16098_v20, %v11781_v21  ;;  %7294 = vmatpush.bf16.msrb.mxu0 %v10760_v34  ;;  %v14475_v19 = vld [vmem:[#allocation2 + $0x1d50] sm:$0xf]  ;;  %v11404_v21 = vor.u32 %v16019_v5, %v11403_v4  ;;  %v13452_v24 = vor.u32 %v16531_v16, %v13451_v14  ;;  %v7127_v14 = vpop.f32.mrf.mxu3 }
 0x2cf   :  { %v12805_v26 = vld [vmem:[#allocation2 + $0x10c8] sm:$0xf0]  ;;  %v16787_v20 = vld [vmem:[#allocation2 + $0x1dcc] sm:$0xf0] }
 0x2d0   :  { %v16610_v27 = vld [vmem:[#allocation2 + $0x184c] sm:$0xf]  ;;  %v12808_v39 = vor.u32 %v16354_v17, %v12805_v26  ;;  %7307 = vmatpush.bf16.msrb.mxu1 %v11784_v37  ;;  %v11275_v17 = vld [vmem:[#allocation2 + $0x450] sm:$0xf]  ;;  %v14476_v30 = vor.u32 %v16787_v20, %v14475_v19 }
 0x2d1   :  { %v13829_v28 = vld [vmem:[#allocation2 + $0x18c8] sm:$0xf0]  ;;  %7295 = vmatmul.bf16.vlgmr.msrb.gmra.mxu0 %v17285_v9  ;;  %v15987_v26 = vld [vmem:[#allocation2 + $0x4cc] sm:$0xf0] }
 0x2d2   :  { %v13832_v43 = vor.u32 %v16610_v27, %v13829_v28  ;;  %7320 = vmatpush.bf16.msrb.mxu2 %v12808_v39  ;;  %7339 = vmatpush.bf16.msra.mxu0 %v11660_v44  ;;  %v12299_v27 = vld [vmem:[#allocation2 + $0xc50] sm:$0xf]  ;;  %v1130_v28 = vperm.slane %v17419_v18, 7  ;;  %v11276_v36 = vor.u32 %v15987_v26, %v11275_v17  ;;  %v7090_v17 = vpop.f32.mrf.mxu0 }
 0x2d3   :  { %7308 = vmatmul.bf16.vlgmr.msrb.gmra.mxu1 %v17298_v25  ;;  %v16243_v31 = vld [vmem:[#allocation2 + $0xccc] sm:$0xf0]  ;;  %v16291_v17 = vld [vmem:[#allocation2 + $0xe54] sm:$0xf] }
 0x2d4   :  { %7333 = vmatpush.bf16.msrb.mxu3 %v13832_v43  ;;  %7352 = vmatpush.bf16.msra.mxu1 %v12684_v45  ;;  %v13323_v32 = vld [vmem:[#allocation2 + $0x1450] sm:$0xf]  ;;  %v12300_v37 = vor.u32 %v16243_v31, %v12299_v27  ;;  %v7089_v44 = vadd.f32 %v7088_v13, %v1130_v28  ;;  %v7101_v45 = vpop.f32.mrf.mxu1 }
 0x2d5   :  { %7321 = vmatmul.bf16.vlgmr.msrb.gmra.mxu2 %v17283_v8  ;;  %v16499_v33 = vld [vmem:[#allocation2 + $0x14cc] sm:$0xf0] }
 0x2d6   :  { %7365 = vmatpush.bf16.msra.mxu2 %v13708_v46  ;;  %7340 = vmatpush.bf16.msra.mxu0 %v11532_v62  ;;  %v14347_v34 = vld [vmem:[#allocation2 + $0x1c50] sm:$0xf]  ;;  %v13324_v39 = vor.u32 %v16499_v33, %v13323_v32  ;;  %v7102_v53 = vadd.f32 %v7101_v45, %v7089_v44 }
 0x2d7   :  { %7334 = vmatmul.bf16.vlgmr.msrb.gmra.mxu3 %v17290_v15  ;;  %v16755_v35 = vld [vmem:[#allocation2 + $0x1ccc] sm:$0xf0] }
 0x2d8   :  { %7378 = vmatpush.bf16.msra.mxu3 %v14732_v52  ;;  %7353 = vmatpush.bf16.msra.mxu1 %v12556_v63  ;;  %v11147_v40 = vld [vmem:[#allocation2 + $0x350] sm:$0xf]  ;;  %v14348_v18 = vor.u32 %v16755_v35, %v14347_v34 }
 0x2d9   :  { %v15955_v41 = vld [vmem:[#allocation2 + $0x3cc] sm:$0xf0] }
 0x2da   :  { %7366 = vmatpush.bf16.msra.mxu2 %v13580_v1  ;;  %7341 = vmatpush.bf16.msra.mxu0 %v11404_v21  ;;  %v12171_v43 = vld [vmem:[#allocation2 + $0xb50] sm:$0xf]  ;;  %v11148_v54 = vor.u32 %v15955_v41, %v11147_v40  ;;  %v7114_v1 = vpop.f32.mrf.mxu2 }
 0x2db   :  { %v16211_v46 = vld [vmem:[#allocation2 + $0xbcc] sm:$0xf0]  ;;  %v7115_v12 = vadd.f32 %v7114_v1, %v7102_v53  ;;  %v16067_v53 = vld [vmem:[#allocation2 + $0x754] sm:$0xf] }
 0x2dc   :  { %7379 = vmatpush.bf16.msra.mxu3 %v14604_v10  ;;  %7354 = vmatpush.bf16.msra.mxu1 %v12428_v22  ;;  %v13195_v48 = vld [vmem:[#allocation2 + $0x1350] sm:$0xf]  ;;  %v12172_v55 = vor.u32 %v16211_v46, %v12171_v43 }
 0x2dd   :  { %v16467_v49 = vld [vmem:[#allocation2 + $0x13cc] sm:$0xf0]  ;;  %v17443_v21 = vadd.f32 %v7127_v14, %v7115_v12 }
 0x2de   :  { %7367 = vmatpush.bf16.msra.mxu2 %v13452_v24  ;;  %v14219_v51 = vld [vmem:[#allocation2 + $0x1b50] sm:$0xf]  ;;  %7342 = vmatpush.bf16.msra.mxu0 %v11276_v36  ;;  %v13196_v58 = vor.u32 %v16467_v49, %v13195_v48 }
 0x2df   :  { %v16723_v52 = vld [vmem:[#allocation2 + $0x1bcc] sm:$0xf0]  ;;  %vm7978_vm15 = vcmp.ge.f32.partialorder %v17443_v21, 0.0 }
 0x2e0   :  { %7380 = vmatpush.bf16.msra.mxu3 %v14476_v30  ;;  %7355 = vmatpush.bf16.msra.mxu1 %v12300_v37  ;;  %v11019_v60 = vld [vmem:[#allocation2 + $0x250] sm:$0xf]  ;;  %v14220_v4 = vor.u32 %v16723_v52, %v14219_v51  ;;  %v7103_v30 = vpop.f32.mrf.mxu1  ;;  %v7129_v52 = vpop.f32.mrf.mxu3 }
 0x2e1   :  { %v15923_v62 = vld [vmem:[#allocation2 + $0x2cc] sm:$0xf0]  ;;  %v14605_v30 = vld [vmem:[#allocation2 + $0x1ed0] sm:$0xf0] }
 0x2e2   :  { %7368 = vmatpush.bf16.msra.mxu2 %v13324_v39  ;;  %v12043_v63 = vld [vmem:[#allocation2 + $0xa50] sm:$0xf]  ;;  %7343 = vmatpush.bf16.msra.mxu0 %v11148_v54  ;;  %v11020_v20 = vor.u32 %v15923_v62, %v11019_v60  ;;  %v11661_v54 = vld [vmem:[#allocation2 + $0x7d0] sm:$0xf0] }
 0x2e3   :  { %v16179_v5 = vld [vmem:[#allocation2 + $0xacc] sm:$0xf0]  ;;  %v12685_v60 = vld [vmem:[#allocation2 + $0xfd0] sm:$0xf0]  ;;  %v11664_v12 = vor.u32 %v16067_v53, %v11661_v54 }
 0x2e4   :  { %7381 = vmatpush.bf16.msra.mxu3 %v14348_v18  ;;  %v13067_v7 = vld [vmem:[#allocation2 + $0x1250] sm:$0xf]  ;;  %7356 = vmatpush.bf16.msra.mxu1 %v12172_v55  ;;  %v12044_v22 = vor.u32 %v16179_v5, %v12043_v63  ;;  %v7116_v18 = vpop.f32.mrf.mxu2  ;;  %v16323_v55 = vld [vmem:[#allocation2 + $0xf54] sm:$0xf] }
 0x2e5   :  { %v16435_v10 = vld [vmem:[#allocation2 + $0x12cc] sm:$0xf0]  ;;  %v16579_v62 = vld [vmem:[#allocation2 + $0x1754] sm:$0xf]  ;;  %v12688_v14 = vor.u32 %v16323_v55, %v12685_v60 }
 0x2e6   :  { %v14091_v16 = vld [vmem:[#allocation2 + $0x1a50] sm:$0xf]  ;;  %7369 = vmatpush.bf16.msra.mxu2 %v13196_v58  ;;  %v13068_v24 = vor.u32 %v16435_v10, %v13067_v7  ;;  %7344 = vmatpush.bf16.msra.mxu0 %v11020_v20  ;;  %v13709_v63 = vld [vmem:[#allocation2 + $0x17d0] sm:$0xf0] }
 0x2e7   :  { %v16691_v19 = vld [vmem:[#allocation2 + $0x1acc] sm:$0xf0]  ;;  %v16835_v5 = vld [vmem:[#allocation2 + $0x1f54] sm:$0xf] }
 0x2e8   :  { %v10891_v26 = vld [vmem:[#allocation2 + $0x150] sm:$0xf]  ;;  %7382 = vmatpush.bf16.msra.mxu3 %v14220_v4  ;;  %v14092_v31 = vor.u32 %v16691_v19, %v14091_v16  ;;  %7357 = vmatpush.bf16.msra.mxu1 %v12044_v22  ;;  %v14733_v7 = vld [vmem:[#allocation2 + $0x1fd0] sm:$0xf0]  ;;  %v13712_v16 = vor.u32 %v16579_v62, %v13709_v63 }
 0x2e9   :  { %v15891_v27 = vld [vmem:[#allocation2 + $0x1cc] sm:$0xf0]  ;;  %v16035_v19 = vld [vmem:[#allocation2 + $0x654] sm:$0xf]  ;;  %v14736_v22 = vor.u32 %v16835_v5, %v14733_v7 }
 0x2ea   :  { %v11915_v28 = vld [vmem:[#allocation2 + $0x950] sm:$0xf]  ;;  %v10892_v13 = vor.u32 %v15891_v27, %v10891_v26  ;;  %7370 = vmatpush.bf16.msra.mxu2 %v13068_v24  ;;  %v11533_v20 = vld [vmem:[#allocation2 + $0x6d0] sm:$0xf0] }
 0x2eb   :  { %v16147_v32 = vld [vmem:[#allocation2 + $0x9cc] sm:$0xf0]  ;;  %v12557_v24 = vld [vmem:[#allocation2 + $0xed0] sm:$0xf0] }
 0x2ec   :  { %v12939_v33 = vld [vmem:[#allocation2 + $0x1150] sm:$0xf]  ;;  %v11916_v40 = vor.u32 %v16147_v32, %v11915_v28  ;;  %7383 = vmatpush.bf16.msra.mxu3 %v14092_v31  ;;  %7345 = vmatpush.bf16.msra.mxu0 %v10892_v13  ;;  %v16547_v26 = vld [vmem:[#allocation2 + $0x1654] sm:$0xf]  ;;  %v11536_v31 = vor.u32 %v16035_v19, %v11533_v20 }
 0x2ed   :  { %v16403_v34 = vld [vmem:[#allocation2 + $0x11cc] sm:$0xf0]  ;;  %v13581_v27 = vld [vmem:[#allocation2 + $0x16d0] sm:$0xf0] }
 0x2ee   :  { %v13963_v35 = vld [vmem:[#allocation2 + $0x1950] sm:$0xf]  ;;  %v12940_v41 = vor.u32 %v16403_v34, %v12939_v33  ;;  %7358 = vmatpush.bf16.msra.mxu1 %v11916_v40  ;;  %v16803_v28 = vld [vmem:[#allocation2 + $0x1e54] sm:$0xf]  ;;  %v12560_v33 = vor.u32 %v16291_v17, %v12557_v24  ;;  %v13584_v34 = vor.u32 %v16547_v26, %v13581_v27 }
 0x2ef   :  { %v16659_v36 = vld [vmem:[#allocation2 + $0x19cc] sm:$0xf0]  ;;  %v16003_v32 = vld [vmem:[#allocation2 + $0x554] sm:$0xf] }
 0x2f0   :  { %v10763_v37 = vld [vmem:[#allocation2 + $0x50] sm:$0xf]  ;;  %v13964_v46 = vor.u32 %v16659_v36, %v13963_v35  ;;  %7371 = vmatpush.bf16.msra.mxu2 %v12940_v41  ;;  %v11405_v35 = vld [vmem:[#allocation2 + $0x5d0] sm:$0xf0] }
 0x2f1   :  { %v15859_v39 = vld [vmem:[#allocation2 + $0xcc] sm:$0xf0]  ;;  %v16259_v36 = vld [vmem:[#allocation2 + $0xd54] sm:$0xf] }
 0x2f2   :  { %v11787_v43 = vld [vmem:[#allocation2 + $0x850] sm:$0xf]  ;;  %v10764_v58 = vor.u32 %v15859_v39, %v10763_v37  ;;  %7384 = vmatpush.bf16.msra.mxu3 %v13964_v46  ;;  %v12429_v13 = vld [vmem:[#allocation2 + $0xdd0] sm:$0xf0]  ;;  %v14608_v37 = vor.u32 %v16803_v28, %v14605_v30 }
 0x2f3   :  { %v16115_v44 = vld [vmem:[#allocation2 + $0x8cc] sm:$0xf0]  ;;  %v16515_v39 = vld [vmem:[#allocation2 + $0x1554] sm:$0xf]  ;;  %v12432_v46 = vor.u32 %v16259_v36, %v12429_v13 }
 0x2f4   :  { %v12811_v45 = vld [vmem:[#allocation2 + $0x1050] sm:$0xf]  ;;  %v11788_v1 = vor.u32 %v16115_v44, %v11787_v43  ;;  %7346 = vmatpush.bf16.msra.mxu0 %v10764_v58  ;;  %v13453_v40 = vld [vmem:[#allocation2 + $0x15d0] sm:$0xf0] }
 0x2f5   :  { %v16371_v48 = vld [vmem:[#allocation2 + $0x10cc] sm:$0xf0]  ;;  %v16771_v43 = vld [vmem:[#allocation2 + $0x1d54] sm:$0xf] }
 0x2f6   :  { %v13835_v49 = vld [vmem:[#allocation2 + $0x1850] sm:$0xf]  ;;  %v12812_v4 = vor.u32 %v16371_v48, %v12811_v45  ;;  %7359 = vmatpush.bf16.msra.mxu1 %v11788_v1  ;;  %v14477_v44 = vld [vmem:[#allocation2 + $0x1dd0] sm:$0xf0]  ;;  %v11408_v45 = vor.u32 %v16003_v32, %v11405_v35  ;;  %v13456_v48 = vor.u32 %v16515_v39, %v13453_v40  ;;  %v7140_v1 = vpop.f32.mrf.mxu0  ;;  %v7166_v35 = vpop.f32.mrf.mxu2 }
 0x2f7   :  { %v16627_v51 = vld [vmem:[#allocation2 + $0x18cc] sm:$0xf0]  ;;  %7347 = vmatmul.bf16.vlgmr.msra.gmra.mxu0 %v17285_v9  ;;  %v15971_v18 = vld [vmem:[#allocation2 + $0x454] sm:$0xf]  ;;  %v14480_v53 = vor.u32 %v16771_v43, %v14477_v44  ;;  %v7179_v43 = vpop.f32.mrf.mxu3 }
 0x2f8   :  { %v13836_v10 = vor.u32 %v16627_v51, %v13835_v49  ;;  %7372 = vmatpush.bf16.msra.mxu2 %v12812_v4  ;;  %7391 = vmatpush.bf16.msrb.mxu0 %v11664_v12  ;;  %v17449_v41 = vld [vmem:[%s17691_s2 + $0x10] sm:$0xff] }
 0x2f9   :  { %7360 = vmatmul.bf16.vlgmr.msra.gmra.mxu1 %v17298_v25  ;;  %v11277_v49 = vld [vmem:[#allocation2 + $0x4d0] sm:$0xf0]  ;;  %v1131_v52 = vperm.slane %v17449_v41, 0 }
 0x2fa   :  { %7385 = vmatpush.bf16.msra.mxu3 %v13836_v10  ;;  %7404 = vmatpush.bf16.msrb.mxu1 %v12688_v14  ;;  %v16227_v51 = vld [vmem:[#allocation2 + $0xc54] sm:$0xf]  ;;  %v11280_v63 = vor.u32 %v15971_v18, %v11277_v49 }
 0x2fb   :  { %7373 = vmatmul.bf16.vlgmr.msra.gmra.mxu2 %v17283_v8  ;;  %v12301_v54 = vld [vmem:[#allocation2 + $0xcd0] sm:$0xf0]  ;;  %v7141_v14 = vadd.f32 %v7140_v1, %v1131_v52 }
 0x2fc   :  { %7417 = vmatpush.bf16.msrb.mxu2 %v13712_v16  ;;  %7392 = vmatpush.bf16.msrb.mxu0 %v11536_v31  ;;  %v16483_v55 = vld [vmem:[#allocation2 + $0x1454] sm:$0xf]  ;;  %v12304_v4 = vor.u32 %v16227_v51, %v12301_v54  ;;  %v7153_v16 = vpop.f32.mrf.mxu1 }
 0x2fd   :  { %7386 = vmatmul.bf16.vlgmr.msra.gmra.mxu3 %v17290_v15  ;;  %v13325_v58 = vld [vmem:[#allocation2 + $0x14d0] sm:$0xf0]  ;;  %v7154_v27 = vadd.f32 %v7153_v16, %v7141_v14 }
 0x2fe   :  { %7430 = vmatpush.bf16.msrb.mxu3 %v14736_v22  ;;  %7405 = vmatpush.bf16.msrb.mxu1 %v12560_v33  ;;  %v16739_v60 = vld [vmem:[#allocation2 + $0x1c54] sm:$0xf]  ;;  %v13328_v5 = vor.u32 %v16483_v55, %v13325_v58 }
 0x2ff   :  { %v14349_v62 = vld [vmem:[#allocation2 + $0x1cd0] sm:$0xf0]  ;;  %v7167_v40 = vadd.f32 %v7166_v35, %v7154_v27  ;;  %v13715_v35 = vld [vmem:[#allocation2 + $0x1758] sm:$0xf] }
 0x300   :  { %7418 = vmatpush.bf16.msrb.mxu2 %v13584_v34  ;;  %7393 = vmatpush.bf16.msrb.mxu0 %v11408_v45  ;;  %v15939_v7 = vld [vmem:[#allocation2 + $0x354] sm:$0xf]  ;;  %v14352_v19 = vor.u32 %v16739_v60, %v14349_v62 }
 0x301   :  { %v11149_v10 = vld [vmem:[#allocation2 + $0x3d0] sm:$0xf0] }
 0x302   :  { %7431 = vmatpush.bf16.msrb.mxu3 %v14608_v37  ;;  %7406 = vmatpush.bf16.msrb.mxu1 %v12432_v46  ;;  %v16195_v12 = vld [vmem:[#allocation2 + $0xb54] sm:$0xf]  ;;  %v11152_v28 = vor.u32 %v15939_v7, %v11149_v10  ;;  %v17455_v46 = vadd.f32 %v7179_v43, %v7167_v40  ;;  %v16852_v40 = vld [vmem:[#allocation2 + $0x1fd4] sm:$0xf0] }
 0x303   :  { %v12173_v20 = vld [vmem:[#allocation2 + $0xbd0] sm:$0xf0] }
 0x304   :  { %7419 = vmatpush.bf16.msrb.mxu2 %v13456_v48  ;;  %v16451_v17 = vld [vmem:[#allocation2 + $0x1354] sm:$0xf]  ;;  %7394 = vmatpush.bf16.msrb.mxu0 %v11280_v63  ;;  %v12176_v30 = vor.u32 %v16195_v12, %v12173_v20  ;;  %v7142_v48 = vpop.f32.mrf.mxu0  ;;  %v7155_v55 = vpop.f32.mrf.mxu1 }
 0x305   :  { %v13197_v22 = vld [vmem:[#allocation2 + $0x13d0] sm:$0xf0]  ;;  %v11539_v48 = vld [vmem:[#allocation2 + $0x658] sm:$0xf] }
 0x306   :  { %7432 = vmatpush.bf16.msrb.mxu3 %v14480_v53  ;;  %v16707_v24 = vld [vmem:[#allocation2 + $0x1b54] sm:$0xf]  ;;  %7407 = vmatpush.bf16.msrb.mxu1 %v12304_v4  ;;  %v13200_v31 = vor.u32 %v16451_v17, %v13197_v22  ;;  %v7168_v17 = vpop.f32.mrf.mxu2  ;;  %v16564_v55 = vld [vmem:[#allocation2 + $0x16d4] sm:$0xf0] }
 0x307   :  { %v14221_v26 = vld [vmem:[#allocation2 + $0x1bd0] sm:$0xf0] }
 0x308   :  { %7420 = vmatpush.bf16.msrb.mxu2 %v13328_v5  ;;  %v15907_v32 = vld [vmem:[#allocation2 + $0x254] sm:$0xf]  ;;  %v14224_v36 = vor.u32 %v16707_v24, %v14221_v26  ;;  %7395 = vmatpush.bf16.msrb.mxu0 %v11152_v28  ;;  %v7181_v28 = vpop.f32.mrf.mxu3 }
 0x309   :  { %v11021_v33 = vld [vmem:[#allocation2 + $0x2d0] sm:$0xf0]  ;;  %v12307_v28 = vld [vmem:[#allocation2 + $0xc58] sm:$0xf] }
 0x30a   :  { %v16163_v34 = vld [vmem:[#allocation2 + $0xa54] sm:$0xf]  ;;  %7433 = vmatpush.bf16.msrb.mxu3 %v14352_v19  ;;  %v11024_v18 = vor.u32 %v15907_v32, %v11021_v33  ;;  %7408 = vmatpush.bf16.msrb.mxu1 %v12176_v30  ;;  %v11667_v30 = vld [vmem:[#allocation2 + $0x758] sm:$0xf] }
 0x30b   :  { %v12045_v13 = vld [vmem:[#allocation2 + $0xad0] sm:$0xf0]  ;;  %v12691_v32 = vld [vmem:[#allocation2 + $0xf58] sm:$0xf] }
 0x30c   :  { %v16419_v37 = vld [vmem:[#allocation2 + $0x1254] sm:$0xf]  ;;  %7421 = vmatpush.bf16.msrb.mxu2 %v13200_v31  ;;  %v12048_v49 = vor.u32 %v16163_v34, %v12045_v13  ;;  %7396 = vmatpush.bf16.msrb.mxu0 %v11024_v18  ;;  %v16084_v31 = vld [vmem:[#allocation2 + $0x7d4] sm:$0xf0] }
 0x30d   :  { %v13069_v39 = vld [vmem:[#allocation2 + $0x12d0] sm:$0xf0]  ;;  %v16340_v34 = vld [vmem:[#allocation2 + $0xfd4] sm:$0xf0] }
 0x30e   :  { %v16675_v44 = vld [vmem:[#allocation2 + $0x1a54] sm:$0xf]  ;;  %v13072_v51 = vor.u32 %v16419_v37, %v13069_v39  ;;  %7434 = vmatpush.bf16.msrb.mxu3 %v14224_v36  ;;  %7409 = vmatpush.bf16.msrb.mxu1 %v12048_v49  ;;  %v16596_v36 = vld [vmem:[#allocation2 + $0x17d4] sm:$0xf0] }
 0x30f   :  { %v14093_v45 = vld [vmem:[#allocation2 + $0x1ad0] sm:$0xf0]  ;;  %v14739_v39 = vld [vmem:[#allocation2 + $0x1f58] sm:$0xf]  ;;  %v13716_v18 = vor.u32 %v16596_v36, %v13715_v35 }
 0x310   :  { %v15875_v52 = vld [vmem:[#allocation2 + $0x154] sm:$0xf]  ;;  %v14096_v58 = vor.u32 %v16675_v44, %v14093_v45  ;;  %7422 = vmatpush.bf16.msrb.mxu2 %v13072_v51  ;;  %v11668_v44 = vor.u32 %v16084_v31, %v11667_v30  ;;  %v12692_v45 = vor.u32 %v16340_v34, %v12691_v32  ;;  %v16052_v49 = vld [vmem:[#allocation2 + $0x6d4] sm:$0xf0]  ;;  %v1132_v30 = vperm.slane %v17449_v41, 1 }
 0x311   :  { %v10893_v53 = vld [vmem:[#allocation2 + $0x1d0] sm:$0xf0]  ;;  %v12563_v51 = vld [vmem:[#allocation2 + $0xe58] sm:$0xf] }
 0x312   :  { %v16131_v54 = vld [vmem:[#allocation2 + $0x954] sm:$0xf]  ;;  %v10896_v5 = vor.u32 %v15875_v52, %v10893_v53  ;;  %7435 = vmatpush.bf16.msrb.mxu3 %v14096_v58  ;;  %v14740_v52 = vor.u32 %v16852_v40, %v14739_v39  ;;  %v16308_v53 = vld [vmem:[#allocation2 + $0xed4] sm:$0xf0] }
 0x313   :  { %v11917_v60 = vld [vmem:[#allocation2 + $0x9d0] sm:$0xf0]  ;;  %v14611_v58 = vld [vmem:[#allocation2 + $0x1e58] sm:$0xf] }
 0x314   :  { %v16387_v62 = vld [vmem:[#allocation2 + $0x1154] sm:$0xf]  ;;  %v11920_v12 = vor.u32 %v16131_v54, %v11917_v60  ;;  %7397 = vmatpush.bf16.msrb.mxu0 %v10896_v5  ;;  %v13587_v54 = vld [vmem:[#allocation2 + $0x1658] sm:$0xf] }
 0x315   :  { %v12941_v63 = vld [vmem:[#allocation2 + $0x11d0] sm:$0xf0]  ;;  %v16820_v60 = vld [vmem:[#allocation2 + $0x1ed4] sm:$0xf0] }
 0x316   :  { %v16643_v1 = vld [vmem:[#allocation2 + $0x1954] sm:$0xf]  ;;  %v12944_v14 = vor.u32 %v16387_v62, %v12941_v63  ;;  %7410 = vmatpush.bf16.msrb.mxu1 %v11920_v12  ;;  %v11540_v62 = vor.u32 %v16052_v49, %v11539_v48  ;;  %v12564_v63 = vor.u32 %v16308_v53, %v12563_v51  ;;  %v16020_v5 = vld [vmem:[#allocation2 + $0x5d4] sm:$0xf0]  ;;  %v7205_v48 = vpop.f32.mrf.mxu1 }
 0x317   :  { %v13965_v4 = vld [vmem:[#allocation2 + $0x19d0] sm:$0xf0]  ;;  %v16276_v12 = vld [vmem:[#allocation2 + $0xdd4] sm:$0xf0] }
 0x318   :  { %v15843_v7 = vld [vmem:[#allocation2 + $0x54] sm:$0xf]  ;;  %v13968_v22 = vor.u32 %v16643_v1, %v13965_v4  ;;  %7423 = vmatpush.bf16.msrb.mxu2 %v12944_v14  ;;  %v13588_v1 = vor.u32 %v16564_v55, %v13587_v54  ;;  %v11411_v4 = vld [vmem:[#allocation2 + $0x558] sm:$0xf] }
 0x319   :  { %v10765_v10 = vld [vmem:[#allocation2 + $0xd0] sm:$0xf0]  ;;  %v13459_v14 = vld [vmem:[#allocation2 + $0x1558] sm:$0xf]  ;;  %v11412_v17 = vor.u32 %v16020_v5, %v11411_v4 }
 0x31a   :  { %v16099_v16 = vld [vmem:[#allocation2 + $0x854] sm:$0xf]  ;;  %v10768_v33 = vor.u32 %v15843_v7, %v10765_v10  ;;  %7436 = vmatpush.bf16.msrb.mxu3 %v13968_v22  ;;  %v12435_v7 = vld [vmem:[#allocation2 + $0xd58] sm:$0xf]  ;;  %v14612_v10 = vor.u32 %v16820_v60, %v14611_v58 }
 0x31b   :  { %v11789_v19 = vld [vmem:[#allocation2 + $0x8d0] sm:$0xf0]  ;;  %v11283_v22 = vld [vmem:[#allocation2 + $0x458] sm:$0xf] }
 0x31c   :  { %v16355_v20 = vld [vmem:[#allocation2 + $0x1054] sm:$0xf]  ;;  %v11792_v13 = vor.u32 %v16099_v16, %v11789_v19  ;;  %7398 = vmatpush.bf16.msrb.mxu0 %v10768_v33  ;;  %v16532_v16 = vld [vmem:[#allocation2 + $0x15d4] sm:$0xf0] }
 0x31d   :  { %v12813_v24 = vld [vmem:[#allocation2 + $0x10d0] sm:$0xf0]  ;;  %v14483_v19 = vld [vmem:[#allocation2 + $0x1d58] sm:$0xf] }
 0x31e   :  { %v16611_v26 = vld [vmem:[#allocation2 + $0x1854] sm:$0xf]  ;;  %v12816_v37 = vor.u32 %v16355_v20, %v12813_v24  ;;  %7411 = vmatpush.bf16.msrb.mxu1 %v11792_v13  ;;  %v16788_v20 = vld [vmem:[#allocation2 + $0x1dd4] sm:$0xf0]  ;;  %v12436_v24 = vor.u32 %v16276_v12, %v12435_v7  ;;  %v7218_v7 = vpop.f32.mrf.mxu2 }
 0x31f   :  { %v13837_v27 = vld [vmem:[#allocation2 + $0x18d0] sm:$0xf0]  ;;  %7399 = vmatmul.bf16.vlgmr.msrb.gmra.mxu0 %v17285_v9  ;;  %v14484_v31 = vor.u32 %v16788_v20, %v14483_v19  ;;  %v16244_v32 = vld [vmem:[#allocation2 + $0xcd4] sm:$0xf0]  ;;  %v7231_v20 = vpop.f32.mrf.mxu3 }
 0x320   :  { %v13840_v43 = vor.u32 %v16611_v26, %v13837_v27  ;;  %7424 = vmatpush.bf16.msrb.mxu2 %v12816_v37  ;;  %7443 = vmatpush.bf16.msra.mxu0 %v11668_v44  ;;  %v13460_v26 = vor.u32 %v16532_v16, %v13459_v14  ;;  %v15988_v27 = vld [vmem:[#allocation2 + $0x4d4] sm:$0xf0]  ;;  %v7192_v37 = vpop.f32.mrf.mxu0  ;;  %v12308_v39 = vor.u32 %v16244_v32, %v12307_v28 }
 0x321   :  { %7412 = vmatmul.bf16.vlgmr.msrb.gmra.mxu1 %v17298_v25  ;;  %v13331_v33 = vld [vmem:[#allocation2 + $0x1458] sm:$0xf]  ;;  %v11284_v13 = vor.u32 %v15988_v27, %v11283_v22 }
 0x322   :  { %7437 = vmatpush.bf16.msrb.mxu3 %v13840_v43  ;;  %7456 = vmatpush.bf16.msra.mxu1 %v12692_v45  ;;  %v16500_v34 = vld [vmem:[#allocation2 + $0x14d4] sm:$0xf0] }
 0x323   :  { %7425 = vmatmul.bf16.vlgmr.msrb.gmra.mxu2 %v17283_v8  ;;  %v14355_v35 = vld [vmem:[#allocation2 + $0x1c58] sm:$0xf]  ;;  %v13332_v40 = vor.u32 %v16500_v34, %v13331_v33  ;;  %v7207_v34 = vpop.f32.mrf.mxu1 }
 0x324   :  { %7469 = vmatpush.bf16.msra.mxu2 %v13716_v18  ;;  %7444 = vmatpush.bf16.msra.mxu0 %v11540_v62  ;;  %v16756_v36 = vld [vmem:[#allocation2 + $0x1cd4] sm:$0xf0]  ;;  %v7193_v18 = vadd.f32 %v7192_v37, %v1132_v30  ;;  %v16548_v34 = vld [vmem:[#allocation2 + $0x165c] sm:$0xf] }
 0x325   :  { %7438 = vmatmul.bf16.vlgmr.msrb.gmra.mxu3 %v17290_v15  ;;  %v11155_v43 = vld [vmem:[#allocation2 + $0x358] sm:$0xf]  ;;  %v14356_v49 = vor.u32 %v16756_v36, %v14355_v35 }
 0x326   :  { %7482 = vmatpush.bf16.msra.mxu3 %v14740_v52  ;;  %7457 = vmatpush.bf16.msra.mxu1 %v12564_v63  ;;  %v15956_v44 = vld [vmem:[#allocation2 + $0x3d4] sm:$0xf0]  ;;  %v7206_v58 = vadd.f32 %v7205_v48, %v7193_v18 }
 0x327   :  { %v12179_v45 = vld [vmem:[#allocation2 + $0xb58] sm:$0xf]  ;;  %v11156_v60 = vor.u32 %v15956_v44, %v11155_v43 }
 0x328   :  { %7470 = vmatpush.bf16.msra.mxu2 %v13588_v1  ;;  %7445 = vmatpush.bf16.msra.mxu0 %v11412_v17  ;;  %v16212_v51 = vld [vmem:[#allocation2 + $0xbd4] sm:$0xf0]  ;;  %v7219_v19 = vadd.f32 %v7218_v7, %v7206_v58  ;;  %v7194_v27 = vpop.f32.mrf.mxu0  ;;  %v12693_v7 = vld [vmem:[#allocation2 + $0xfd8] sm:$0xf0] }
 0x329   :  { %v13203_v52 = vld [vmem:[#allocation2 + $0x1358] sm:$0xf]  ;;  %v12180_v62 = vor.u32 %v16212_v51, %v12179_v45 }
 0x32a   :  { %7483 = vmatpush.bf16.msra.mxu3 %v14612_v10  ;;  %7458 = vmatpush.bf16.msra.mxu1 %v12436_v24  ;;  %v16468_v53 = vld [vmem:[#allocation2 + $0x13d4] sm:$0xf0] }
 0x32b   :  { %v14227_v54 = vld [vmem:[#allocation2 + $0x1b58] sm:$0xf]  ;;  %v13204_v63 = vor.u32 %v16468_v53, %v13203_v52  ;;  %v7220_v53 = vpop.f32.mrf.mxu2 }
 0x32c   :  { %7471 = vmatpush.bf16.msra.mxu2 %v13460_v26  ;;  %v16724_v55 = vld [vmem:[#allocation2 + $0x1bd4] sm:$0xf0]  ;;  %7446 = vmatpush.bf16.msra.mxu0 %v11284_v13  ;;  %v17462_v26 = vadd.f32 %v7231_v20, %v7219_v19  ;;  %v16836_v19 = vld [vmem:[#allocation2 + $0x1f5c] sm:$0xf] }
 0x32d   :  { %v11027_v1 = vld [vmem:[#allocation2 + $0x258] sm:$0xf]  ;;  %v14228_v10 = vor.u32 %v16724_v55, %v14227_v54  ;;  %v14741_v20 = vld [vmem:[#allocation2 + $0x1fd8] sm:$0xf0] }
 0x32e   :  { %7484 = vmatpush.bf16.msra.mxu3 %v14484_v31  ;;  %7459 = vmatpush.bf16.msra.mxu1 %v12308_v39  ;;  %v15924_v4 = vld [vmem:[#allocation2 + $0x2d4] sm:$0xf0]  ;;  %v14485_v53 = vld [vmem:[#allocation2 + $0x1dd8] sm:$0xf0] }
 0x32f   :  { %v12051_v5 = vld [vmem:[#allocation2 + $0xa58] sm:$0xf]  ;;  %v11028_v24 = vor.u32 %v15924_v4, %v11027_v1  ;;  %v11669_v1 = vld [vmem:[#allocation2 + $0x7d8] sm:$0xf0] }
 0x330   :  { %7472 = vmatpush.bf16.msra.mxu2 %v13332_v40  ;;  %v16180_v12 = vld [vmem:[#allocation2 + $0xad4] sm:$0xf0]  ;;  %7447 = vmatpush.bf16.msra.mxu0 %v11156_v60  ;;  %v16324_v4 = vld [vmem:[#allocation2 + $0xf5c] sm:$0xf] }
 0x331   :  { %v13075_v14 = vld [vmem:[#allocation2 + $0x1258] sm:$0xf]  ;;  %v12052_v28 = vor.u32 %v16180_v12, %v12051_v5  ;;  %v13717_v12 = vld [vmem:[#allocation2 + $0x17d8] sm:$0xf0] }
 0x332   :  { %7485 = vmatpush.bf16.msra.mxu3 %v14356_v49  ;;  %v16436_v16 = vld [vmem:[#allocation2 + $0x12d4] sm:$0xf0]  ;;  %7460 = vmatpush.bf16.msra.mxu1 %v12180_v62  ;;  %v7233_v62 = vpop.f32.mrf.mxu3 }
 0x333   :  { %v14099_v17 = vld [vmem:[#allocation2 + $0x1a58] sm:$0xf]  ;;  %v13076_v30 = vor.u32 %v16436_v16, %v13075_v14  ;;  %v11285_v62 = vld [vmem:[#allocation2 + $0x4d8] sm:$0xf0] }
 0x334   :  { %v16692_v22 = vld [vmem:[#allocation2 + $0x1ad4] sm:$0xf0]  ;;  %7473 = vmatpush.bf16.msra.mxu2 %v13204_v63  ;;  %7448 = vmatpush.bf16.msra.mxu0 %v11028_v24  ;;  %v16068_v63 = vld [vmem:[#allocation2 + $0x75c] sm:$0xf]  ;;  %v12696_v24 = vor.u32 %v16324_v4, %v12693_v7 }
 0x335   :  { %v10899_v31 = vld [vmem:[#allocation2 + $0x158] sm:$0xf]  ;;  %v14100_v35 = vor.u32 %v16692_v22, %v14099_v17  ;;  %v11672_v22 = vor.u32 %v16068_v63, %v11669_v1  ;;  %v16228_v63 = vld [vmem:[#allocation2 + $0xc5c] sm:$0xf]  ;;  %v1133_v1 = vperm.slane %v17449_v41, 2 }
 0x336   :  { %v15892_v32 = vld [vmem:[#allocation2 + $0x1d4] sm:$0xf0]  ;;  %7486 = vmatpush.bf16.msra.mxu3 %v14228_v10  ;;  %7461 = vmatpush.bf16.msra.mxu1 %v12052_v28  ;;  %v16580_v10 = vld [vmem:[#allocation2 + $0x175c] sm:$0xf] }
 0x337   :  { %v11923_v33 = vld [vmem:[#allocation2 + $0x958] sm:$0xf]  ;;  %v10900_v43 = vor.u32 %v15892_v32, %v10899_v31  ;;  %v13720_v27 = vor.u32 %v16580_v10, %v13717_v12  ;;  %v16036_v28 = vld [vmem:[#allocation2 + $0x65c] sm:$0xf]  ;;  %v14744_v32 = vor.u32 %v16836_v19, %v14741_v20  ;;  %v7244_v19 = vpop.f32.mrf.mxu0 }
 0x338   :  { %v16148_v36 = vld [vmem:[#allocation2 + $0x9d4] sm:$0xf0]  ;;  %7474 = vmatpush.bf16.msra.mxu2 %v13076_v30  ;;  %v11541_v30 = vld [vmem:[#allocation2 + $0x6d8] sm:$0xf0] }
 0x339   :  { %v12947_v13 = vld [vmem:[#allocation2 + $0x1158] sm:$0xf]  ;;  %v11924_v18 = vor.u32 %v16148_v36, %v11923_v33  ;;  %7449 = vmatpush.bf16.msra.mxu0 %v10900_v43  ;;  %v16292_v31 = vld [vmem:[#allocation2 + $0xe5c] sm:$0xf] }
 0x33a   :  { %v16404_v37 = vld [vmem:[#allocation2 + $0x11d4] sm:$0xf0]  ;;  %7487 = vmatpush.bf16.msra.mxu3 %v14100_v35  ;;  %v12565_v33 = vld [vmem:[#allocation2 + $0xed8] sm:$0xf0] }
 0x33b   :  { %v13971_v39 = vld [vmem:[#allocation2 + $0x1958] sm:$0xf]  ;;  %v12948_v48 = vor.u32 %v16404_v37, %v12947_v13  ;;  %7462 = vmatpush.bf16.msra.mxu1 %v11924_v18  ;;  %v13589_v35 = vld [vmem:[#allocation2 + $0x16d8] sm:$0xf0]  ;;  %v11544_v37 = vor.u32 %v16036_v28, %v11541_v30  ;;  %v7245_v28 = vadd.f32 %v7244_v19, %v1133_v1  ;;  %v7257_v30 = vpop.f32.mrf.mxu1 }
 0x33c   :  { %v16660_v40 = vld [vmem:[#allocation2 + $0x19d4] sm:$0xf0]  ;;  %v16804_v36 = vld [vmem:[#allocation2 + $0x1e5c] sm:$0xf] }
 0x33d   :  { %v10771_v44 = vld [vmem:[#allocation2 + $0x58] sm:$0xf]  ;;  %v13972_v54 = vor.u32 %v16660_v40, %v13971_v39  ;;  %7475 = vmatpush.bf16.msra.mxu2 %v12948_v48  ;;  %v14613_v13 = vld [vmem:[#allocation2 + $0x1ed8] sm:$0xf0]  ;;  %v12568_v39 = vor.u32 %v16292_v31, %v12565_v33  ;;  %v13592_v40 = vor.u32 %v16548_v34, %v13589_v35 }
 0x33e   :  { %v15860_v45 = vld [vmem:[#allocation2 + $0xd4] sm:$0xf0]  ;;  %v16004_v43 = vld [vmem:[#allocation2 + $0x55c] sm:$0xf]  ;;  %v14616_v18 = vor.u32 %v16804_v36, %v14613_v13  ;;  %v7258_v13 = vadd.f32 %v7257_v30, %v7245_v28 }
 0x33f   :  { %v11795_v49 = vld [vmem:[#allocation2 + $0x858] sm:$0xf]  ;;  %v10772_v5 = vor.u32 %v15860_v45, %v10771_v44  ;;  %7488 = vmatpush.bf16.msra.mxu3 %v13972_v54  ;;  %v11413_v44 = vld [vmem:[#allocation2 + $0x5d8] sm:$0xf0] }
 0x340   :  { %v16116_v51 = vld [vmem:[#allocation2 + $0x8d4] sm:$0xf0]  ;;  %v16260_v45 = vld [vmem:[#allocation2 + $0xd5c] sm:$0xf]  ;;  %v11416_v54 = vor.u32 %v16004_v43, %v11413_v44 }
 0x341   :  { %v12819_v52 = vld [vmem:[#allocation2 + $0x1058] sm:$0xf]  ;;  %v11796_v14 = vor.u32 %v16116_v51, %v11795_v49  ;;  %7450 = vmatpush.bf16.msra.mxu0 %v10772_v5  ;;  %v12437_v48 = vld [vmem:[#allocation2 + $0xdd8] sm:$0xf0] }
 0x342   :  { %v16372_v55 = vld [vmem:[#allocation2 + $0x10d4] sm:$0xf0]  ;;  %v16516_v49 = vld [vmem:[#allocation2 + $0x155c] sm:$0xf] }
 0x343   :  { %v13843_v58 = vld [vmem:[#allocation2 + $0x1858] sm:$0xf]  ;;  %v12820_v16 = vor.u32 %v16372_v55, %v12819_v52  ;;  %7463 = vmatpush.bf16.msra.mxu1 %v11796_v14  ;;  %v13461_v51 = vld [vmem:[#allocation2 + $0x15d8] sm:$0xf0] }
 0x344   :  { %v16628_v60 = vld [vmem:[#allocation2 + $0x18d4] sm:$0xf0]  ;;  %v16772_v52 = vld [vmem:[#allocation2 + $0x1d5c] sm:$0xf]  ;;  %7451 = vmatmul.bf16.vlgmr.msra.gmra.mxu0 %v17285_v9 }
 0x345   :  { %v13844_v17 = vor.u32 %v16628_v60, %v13843_v58  ;;  %7476 = vmatpush.bf16.msra.mxu2 %v12820_v16  ;;  %7495 = vmatpush.bf16.msrb.mxu0 %v11672_v22  ;;  %v15972_v55 = vld [vmem:[#allocation2 + $0x45c] sm:$0xf]  ;;  %v12440_v58 = vor.u32 %v16260_v45, %v12437_v48  ;;  %v13464_v60 = vor.u32 %v16516_v49, %v13461_v51 }
 0x346   :  { %7464 = vmatmul.bf16.vlgmr.msra.gmra.mxu1 %v17298_v25  ;;  %v14488_v4 = vor.u32 %v16772_v52, %v14485_v53  ;;  %v12309_v5 = vld [vmem:[#allocation2 + $0xcd8] sm:$0xf0]  ;;  %v11288_v16 = vor.u32 %v15972_v55, %v11285_v62 }
 0x347   :  { %7489 = vmatpush.bf16.msra.mxu3 %v13844_v17  ;;  %7508 = vmatpush.bf16.msrb.mxu1 %v12696_v24  ;;  %v16484_v7 = vld [vmem:[#allocation2 + $0x145c] sm:$0xf]  ;;  %v12312_v20 = vor.u32 %v16228_v63, %v12309_v5  ;;  %v7246_v63 = vpop.f32.mrf.mxu0 }
 0x348   :  { %7477 = vmatmul.bf16.vlgmr.msra.gmra.mxu2 %v17283_v8  ;;  %v13333_v10 = vld [vmem:[#allocation2 + $0x14d8] sm:$0xf0] }
 0x349   :  { %7521 = vmatpush.bf16.msrb.mxu2 %v13720_v27  ;;  %7496 = vmatpush.bf16.msrb.mxu0 %v11544_v37  ;;  %v16740_v12 = vld [vmem:[#allocation2 + $0x1c5c] sm:$0xf]  ;;  %v13336_v17 = vor.u32 %v16484_v7, %v13333_v10 }
 0x34a   :  { %7490 = vmatmul.bf16.vlgmr.msra.gmra.mxu3 %v17290_v15  ;;  %v14357_v14 = vld [vmem:[#allocation2 + $0x1cd8] sm:$0xf0] }
 0x34b   :  { %7534 = vmatpush.bf16.msrb.mxu3 %v14744_v32  ;;  %7509 = vmatpush.bf16.msrb.mxu1 %v12568_v39  ;;  %v15940_v22 = vld [vmem:[#allocation2 + $0x35c] sm:$0xf]  ;;  %v14360_v31 = vor.u32 %v16740_v12, %v14357_v14  ;;  %v7259_v12 = vpop.f32.mrf.mxu1 }
 0x34c   :  { %v11157_v24 = vld [vmem:[#allocation2 + $0x3d8] sm:$0xf0]  ;;  %v16309_v12 = vld [vmem:[#allocation2 + $0xedc] sm:$0xf0] }
 0x34d   :  { %7522 = vmatpush.bf16.msrb.mxu2 %v13592_v40  ;;  %7497 = vmatpush.bf16.msrb.mxu0 %v11416_v54  ;;  %v16196_v27 = vld [vmem:[#allocation2 + $0xb5c] sm:$0xf]  ;;  %v11160_v37 = vor.u32 %v15940_v22, %v11157_v24  ;;  %v7283_v54 = vpop.f32.mrf.mxu3 }
 0x34e   :  { %v12181_v32 = vld [vmem:[#allocation2 + $0xbd8] sm:$0xf0] }
 0x34f   :  { %7535 = vmatpush.bf16.msrb.mxu3 %v14616_v18  ;;  %7510 = vmatpush.bf16.msrb.mxu1 %v12440_v58  ;;  %v16452_v33 = vld [vmem:[#allocation2 + $0x135c] sm:$0xf]  ;;  %v12184_v39 = vor.u32 %v16196_v27, %v12181_v32  ;;  %v7270_v18 = vpop.f32.mrf.mxu2 }
 0x350   :  { %v13205_v34 = vld [vmem:[#allocation2 + $0x13d8] sm:$0xf0]  ;;  %v7271_v53 = vadd.f32 %v7270_v18, %v7258_v13 }
 0x351   :  { %7523 = vmatpush.bf16.msrb.mxu2 %v13464_v60  ;;  %v16708_v35 = vld [vmem:[#allocation2 + $0x1b5c] sm:$0xf]  ;;  %7498 = vmatpush.bf16.msrb.mxu0 %v11288_v16  ;;  %v13208_v40 = vor.u32 %v16452_v33, %v13205_v34 }
 0x352   :  { %v14229_v36 = vld [vmem:[#allocation2 + $0x1bd8] sm:$0xf0]  ;;  %v17469_v62 = vadd.f32 %v7283_v54, %v7271_v53  ;;  %v14747_v54 = vld [vmem:[#allocation2 + $0x1f60] sm:$0xf] }
 0x353   :  { %7536 = vmatpush.bf16.msrb.mxu3 %v14488_v4  ;;  %7511 = vmatpush.bf16.msrb.mxu1 %v12312_v20  ;;  %v15908_v43 = vld [vmem:[#allocation2 + $0x25c] sm:$0xf]  ;;  %v14232_v48 = vor.u32 %v16708_v35, %v14229_v36 }
 0x354   :  { %v11029_v44 = vld [vmem:[#allocation2 + $0x2d8] sm:$0xf0] }
 0x355   :  { %7524 = vmatpush.bf16.msrb.mxu2 %v13336_v17  ;;  %v16164_v45 = vld [vmem:[#allocation2 + $0xa5c] sm:$0xf]  ;;  %7499 = vmatpush.bf16.msrb.mxu0 %v11160_v37  ;;  %v11032_v60 = vor.u32 %v15908_v43, %v11029_v44  ;;  %v11675_v43 = vld [vmem:[#allocation2 + $0x760] sm:$0xf] }
 0x356   :  { %v12053_v49 = vld [vmem:[#allocation2 + $0xad8] sm:$0xf0]  ;;  %v16085_v44 = vld [vmem:[#allocation2 + $0x7dc] sm:$0xf0] }
 0x357   :  { %7537 = vmatpush.bf16.msrb.mxu3 %v14360_v31  ;;  %v16420_v51 = vld [vmem:[#allocation2 + $0x125c] sm:$0xf]  ;;  %7512 = vmatpush.bf16.msrb.mxu1 %v12184_v39  ;;  %v12056_v1 = vor.u32 %v16164_v45, %v12053_v49  ;;  %v7272_v35 = vpop.f32.mrf.mxu2  ;;  %v12699_v45 = vld [vmem:[#allocation2 + $0xf60] sm:$0xf] }
 0x358   :  { %v13077_v52 = vld [vmem:[#allocation2 + $0x12d8] sm:$0xf0]  ;;  %v13723_v49 = vld [vmem:[#allocation2 + $0x1760] sm:$0xf] }
 0x359   :  { %v16676_v55 = vld [vmem:[#allocation2 + $0x1a5c] sm:$0xf]  ;;  %7525 = vmatpush.bf16.msrb.mxu2 %v13208_v40  ;;  %v13080_v4 = vor.u32 %v16420_v51, %v13077_v52  ;;  %7500 = vmatpush.bf16.msrb.mxu0 %v11032_v60  ;;  %v7285_v40 = vpop.f32.mrf.mxu3  ;;  %v16597_v51 = vld [vmem:[#allocation2 + $0x17dc] sm:$0xf0]  ;;  %v11676_v60 = vor.u32 %v16085_v44, %v11675_v43 }
 0x35a   :  { %v14101_v58 = vld [vmem:[#allocation2 + $0x1ad8] sm:$0xf0]  ;;  %v14491_v35 = vld [vmem:[#allocation2 + $0x1d60] sm:$0xf] }
 0x35b   :  { %v15876_v5 = vld [vmem:[#allocation2 + $0x15c] sm:$0xf]  ;;  %7538 = vmatpush.bf16.msrb.mxu3 %v14232_v48  ;;  %v14104_v14 = vor.u32 %v16676_v55, %v14101_v58  ;;  %7513 = vmatpush.bf16.msrb.mxu1 %v12056_v1  ;;  %v16341_v48 = vld [vmem:[#allocation2 + $0xfdc] sm:$0xf0]  ;;  %v13724_v1 = vor.u32 %v16597_v51, %v13723_v49 }
 0x35c   :  { %v10901_v7 = vld [vmem:[#allocation2 + $0x1d8] sm:$0xf0]  ;;  %v16853_v55 = vld [vmem:[#allocation2 + $0x1fdc] sm:$0xf0]  ;;  %v12700_v63 = vor.u32 %v16341_v48, %v12699_v45  ;;  %v1134_v45 = vperm.slane %v17449_v41, 3 }
 0x35d   :  { %v16132_v10 = vld [vmem:[#allocation2 + $0x95c] sm:$0xf]  ;;  %v10904_v24 = vor.u32 %v15876_v5, %v10901_v7  ;;  %7526 = vmatpush.bf16.msrb.mxu2 %v13080_v4  ;;  %v11547_v4 = vld [vmem:[#allocation2 + $0x660] sm:$0xf] }
 0x35e   :  { %v11925_v16 = vld [vmem:[#allocation2 + $0x9d8] sm:$0xf0]  ;;  %v16053_v5 = vld [vmem:[#allocation2 + $0x6dc] sm:$0xf0] }
 0x35f   :  { %v16388_v19 = vld [vmem:[#allocation2 + $0x115c] sm:$0xf]  ;;  %v11928_v30 = vor.u32 %v16132_v10, %v11925_v16  ;;  %7539 = vmatpush.bf16.msrb.mxu3 %v14104_v14  ;;  %7501 = vmatpush.bf16.msrb.mxu0 %v10904_v24  ;;  %v12571_v7 = vld [vmem:[#allocation2 + $0xe60] sm:$0xf]  ;;  %v14748_v10 = vor.u32 %v16853_v55, %v14747_v54  ;;  %v7296_v55 = vpop.f32.mrf.mxu0 }
 0x360   :  { %v12949_v20 = vld [vmem:[#allocation2 + $0x11d8] sm:$0xf0]  ;;  %v13595_v14 = vld [vmem:[#allocation2 + $0x1660] sm:$0xf] }
 0x361   :  { %v16644_v17 = vld [vmem:[#allocation2 + $0x195c] sm:$0xf]  ;;  %v12952_v31 = vor.u32 %v16388_v19, %v12949_v20  ;;  %7514 = vmatpush.bf16.msrb.mxu1 %v11928_v30  ;;  %v16565_v16 = vld [vmem:[#allocation2 + $0x16dc] sm:$0xf0] }
 0x362   :  { %v13973_v22 = vld [vmem:[#allocation2 + $0x19d8] sm:$0xf0]  ;;  %v14619_v19 = vld [vmem:[#allocation2 + $0x1e60] sm:$0xf]  ;;  %v13596_v24 = vor.u32 %v16565_v16, %v13595_v14 }
 0x363   :  { %v15844_v27 = vld [vmem:[#allocation2 + $0x5c] sm:$0xf]  ;;  %v13976_v36 = vor.u32 %v16644_v17, %v13973_v22  ;;  %7527 = vmatpush.bf16.msrb.mxu2 %v12952_v31  ;;  %v16821_v20 = vld [vmem:[#allocation2 + $0x1edc] sm:$0xf0]  ;;  %v11548_v17 = vor.u32 %v16053_v5, %v11547_v4  ;;  %v12572_v22 = vor.u32 %v16309_v12, %v12571_v7  ;;  %v7297_v5 = vadd.f32 %v7296_v55, %v1134_v45  ;;  %v7309_v7 = vpop.f32.mrf.mxu1 }
 0x364   :  { %v10773_v28 = vld [vmem:[#allocation2 + $0xd8] sm:$0xf0]  ;;  %v12443_v30 = vld [vmem:[#allocation2 + $0xd60] sm:$0xf]  ;;  %v14620_v31 = vor.u32 %v16821_v20, %v14619_v19 }
 0x365   :  { %v16100_v32 = vld [vmem:[#allocation2 + $0x85c] sm:$0xf]  ;;  %v10776_v18 = vor.u32 %v15844_v27, %v10773_v28  ;;  %7540 = vmatpush.bf16.msrb.mxu3 %v13976_v36  ;;  %v11419_v27 = vld [vmem:[#allocation2 + $0x560] sm:$0xf]  ;;  %v7310_v20 = vadd.f32 %v7309_v7, %v7297_v5 }
 0x366   :  { %v11797_v33 = vld [vmem:[#allocation2 + $0x8d8] sm:$0xf0]  ;;  %v16021_v28 = vld [vmem:[#allocation2 + $0x5dc] sm:$0xf0] }
 0x367   :  { %v16356_v34 = vld [vmem:[#allocation2 + $0x105c] sm:$0xf]  ;;  %v11800_v52 = vor.u32 %v16100_v32, %v11797_v33  ;;  %7502 = vmatpush.bf16.msrb.mxu0 %v10776_v18  ;;  %v16277_v32 = vld [vmem:[#allocation2 + $0xddc] sm:$0xf0] }
 0x368   :  { %v12821_v13 = vld [vmem:[#allocation2 + $0x10d8] sm:$0xf0]  ;;  %v13467_v33 = vld [vmem:[#allocation2 + $0x1560] sm:$0xf] }
 0x369   :  { %v16612_v37 = vld [vmem:[#allocation2 + $0x185c] sm:$0xf]  ;;  %v12824_v53 = vor.u32 %v16356_v34, %v12821_v13  ;;  %7515 = vmatpush.bf16.msrb.mxu1 %v11800_v52  ;;  %v16533_v34 = vld [vmem:[#allocation2 + $0x15dc] sm:$0xf0]  ;;  %v11420_v13 = vor.u32 %v16021_v28, %v11419_v27 }
 0x36a   :  { %v13845_v39 = vld [vmem:[#allocation2 + $0x18d8] sm:$0xf0]  ;;  %v16789_v36 = vld [vmem:[#allocation2 + $0x1ddc] sm:$0xf0]  ;;  %7503 = vmatmul.bf16.vlgmr.msrb.gmra.mxu0 %v17285_v9  ;;  %v13468_v40 = vor.u32 %v16533_v34, %v13467_v33 }
 0x36b   :  { %v13848_v58 = vor.u32 %v16612_v37, %v13845_v39  ;;  %7528 = vmatpush.bf16.msrb.mxu2 %v12824_v53  ;;  %7547 = vmatpush.bf16.msra.mxu0 %v11676_v60  ;;  %v11291_v37 = vld [vmem:[#allocation2 + $0x460] sm:$0xf]  ;;  %v12444_v39 = vor.u32 %v16277_v32, %v12443_v30  ;;  %v14492_v18 = vor.u32 %v16789_v36, %v14491_v35 }
 0x36c   :  { %7516 = vmatmul.bf16.vlgmr.msrb.gmra.mxu1 %v17298_v25  ;;  %v15989_v43 = vld [vmem:[#allocation2 + $0x4dc] sm:$0xf0] }
 0x36d   :  { %7541 = vmatpush.bf16.msrb.mxu3 %v13848_v58  ;;  %7560 = vmatpush.bf16.msra.mxu1 %v12700_v63  ;;  %v12315_v44 = vld [vmem:[#allocation2 + $0xc60] sm:$0xf]  ;;  %v11292_v54 = vor.u32 %v15989_v43, %v11291_v37 }
 0x36e   :  { %7529 = vmatmul.bf16.vlgmr.msrb.gmra.mxu2 %v17283_v8  ;;  %v16245_v48 = vld [vmem:[#allocation2 + $0xcdc] sm:$0xf0] }
 0x36f   :  { %7573 = vmatpush.bf16.msra.mxu2 %v13724_v1  ;;  %7548 = vmatpush.bf16.msra.mxu0 %v11548_v17  ;;  %v13339_v49 = vld [vmem:[#allocation2 + $0x1460] sm:$0xf]  ;;  %v12316_v58 = vor.u32 %v16245_v48, %v12315_v44  ;;  %v7298_v44 = vpop.f32.mrf.mxu0 }
 0x370   :  { %7542 = vmatmul.bf16.vlgmr.msrb.gmra.mxu3 %v17290_v15  ;;  %v16501_v51 = vld [vmem:[#allocation2 + $0x14dc] sm:$0xf0] }
 0x371   :  { %7586 = vmatpush.bf16.msra.mxu3 %v14748_v10  ;;  %7561 = vmatpush.bf16.msra.mxu1 %v12572_v22  ;;  %v14363_v52 = vld [vmem:[#allocation2 + $0x1c60] sm:$0xf]  ;;  %v13340_v60 = vor.u32 %v16501_v51, %v13339_v49 }
 0x372   :  { %v16757_v53 = vld [vmem:[#allocation2 + $0x1cdc] sm:$0xf0] }
 0x373   :  { %7574 = vmatpush.bf16.msra.mxu2 %v13596_v24  ;;  %7549 = vmatpush.bf16.msra.mxu0 %v11420_v13  ;;  %v11163_v63 = vld [vmem:[#allocation2 + $0x360] sm:$0xf]  ;;  %v14364_v41 = vor.u32 %v16757_v53, %v14363_v52  ;;  %v7335_v13 = vpop.f32.mrf.mxu3  ;;  %v7311_v52 = vpop.f32.mrf.mxu1 }
 0x374   :  { %v15957_v1 = vld [vmem:[#allocation2 + $0x3dc] sm:$0xf0]  ;;  %v12573_v52 = vld [vmem:[#allocation2 + $0xee0] sm:$0xf0] }
 0x375   :  { %7587 = vmatpush.bf16.msra.mxu3 %v14620_v31  ;;  %7562 = vmatpush.bf16.msra.mxu1 %v12444_v39  ;;  %v12187_v4 = vld [vmem:[#allocation2 + $0xb60] sm:$0xf]  ;;  %v11164_v17 = vor.u32 %v15957_v1, %v11163_v63  ;;  %v7322_v31 = vpop.f32.mrf.mxu2 }
 0x376   :  { %v16213_v10 = vld [vmem:[#allocation2 + $0xbdc] sm:$0xf0]  ;;  %v7323_v36 = vadd.f32 %v7322_v31, %v7310_v20 }
 0x377   :  { %7575 = vmatpush.bf16.msra.mxu2 %v13468_v40  ;;  %v13211_v12 = vld [vmem:[#allocation2 + $0x1360] sm:$0xf]  ;;  %7550 = vmatpush.bf16.msra.mxu0 %v11292_v54  ;;  %v12188_v22 = vor.u32 %v16213_v10, %v12187_v4 }
 0x378   :  { %v16469_v14 = vld [vmem:[#allocation2 + $0x13dc] sm:$0xf0]  ;;  %v17476_v43 = vadd.f32 %v7335_v13, %v7323_v36  ;;  %v16837_v13 = vld [vmem:[#allocation2 + $0x1f64] sm:$0xf] }
 0x379   :  { %7588 = vmatpush.bf16.msra.mxu3 %v14492_v18  ;;  %v14235_v16 = vld [vmem:[#allocation2 + $0x1b60] sm:$0xf]  ;;  %7563 = vmatpush.bf16.msra.mxu1 %v12316_v58  ;;  %v13212_v24 = vor.u32 %v16469_v14, %v13211_v12 }
 0x37a   :  { %v16725_v19 = vld [vmem:[#allocation2 + $0x1bdc] sm:$0xf0] }
 0x37b   :  { %7576 = vmatpush.bf16.msra.mxu2 %v13340_v60  ;;  %v11035_v27 = vld [vmem:[#allocation2 + $0x260] sm:$0xf]  ;;  %v14236_v32 = vor.u32 %v16725_v19, %v14235_v16  ;;  %7551 = vmatpush.bf16.msra.mxu0 %v11164_v17 }
 0x37c   :  { %v15925_v28 = vld [vmem:[#allocation2 + $0x2dc] sm:$0xf0] }
 0x37d   :  { %v12059_v30 = vld [vmem:[#allocation2 + $0xa60] sm:$0xf]  ;;  %7589 = vmatpush.bf16.msra.mxu3 %v14364_v41  ;;  %v11036_v40 = vor.u32 %v15925_v28, %v11035_v27  ;;  %7564 = vmatpush.bf16.msra.mxu1 %v12188_v22  ;;  %v7324_v16 = vpop.f32.mrf.mxu2  ;;  %v16069_v27 = vld [vmem:[#allocation2 + $0x764] sm:$0xf] }
 0x37e   :  { %v16181_v33 = vld [vmem:[#allocation2 + $0xadc] sm:$0xf0]  ;;  %v11677_v28 = vld [vmem:[#allocation2 + $0x7e0] sm:$0xf0] }
 0x37f   :  { %v13083_v34 = vld [vmem:[#allocation2 + $0x1260] sm:$0xf]  ;;  %7577 = vmatpush.bf16.msra.mxu2 %v13212_v24  ;;  %v12060_v45 = vor.u32 %v16181_v33, %v12059_v30  ;;  %7552 = vmatpush.bf16.msra.mxu0 %v11036_v40  ;;  %v7337_v24 = vpop.f32.mrf.mxu3  ;;  %v16325_v30 = vld [vmem:[#allocation2 + $0xf64] sm:$0xf]  ;;  %v11680_v40 = vor.u32 %v16069_v27, %v11677_v28 }
 0x380   :  { %v16437_v35 = vld [vmem:[#allocation2 + $0x12dc] sm:$0xf0]  ;;  %v16581_v33 = vld [vmem:[#allocation2 + $0x1764] sm:$0xf] }
 0x381   :  { %v14107_v37 = vld [vmem:[#allocation2 + $0x1a60] sm:$0xf]  ;;  %v13084_v18 = vor.u32 %v16437_v35, %v13083_v34  ;;  %7590 = vmatpush.bf16.msra.mxu3 %v14236_v32  ;;  %7565 = vmatpush.bf16.msra.mxu1 %v12060_v45  ;;  %v12701_v32 = vld [vmem:[#allocation2 + $0xfe0] sm:$0xf0] }
 0x382   :  { %v16693_v39 = vld [vmem:[#allocation2 + $0x1adc] sm:$0xf0]  ;;  %v13725_v34 = vld [vmem:[#allocation2 + $0x17e0] sm:$0xf0]  ;;  %v12704_v44 = vor.u32 %v16325_v30, %v12701_v32  ;;  %v17485_v30 = vld [vmem:[%s17691_s2 + $0x10] sm:$0xff] }
 0x383   :  { %v10907_v48 = vld [vmem:[#allocation2 + $0x160] sm:$0xf]  ;;  %v14108_v53 = vor.u32 %v16693_v39, %v14107_v37  ;;  %7578 = vmatpush.bf16.msra.mxu2 %v13084_v18  ;;  %v14749_v37 = vld [vmem:[#allocation2 + $0x1fe0] sm:$0xf0]  ;;  %v13728_v45 = vor.u32 %v16581_v33, %v13725_v34 }
 0x384   :  { %v15893_v49 = vld [vmem:[#allocation2 + $0x1dc] sm:$0xf0]  ;;  %v16037_v18 = vld [vmem:[#allocation2 + $0x664] sm:$0xf] }
 0x385   :  { %v11931_v51 = vld [vmem:[#allocation2 + $0x960] sm:$0xf]  ;;  %v10908_v1 = vor.u32 %v15893_v49, %v10907_v48  ;;  %7591 = vmatpush.bf16.msra.mxu3 %v14108_v53  ;;  %v11549_v48 = vld [vmem:[#allocation2 + $0x6e0] sm:$0xf0] }
 0x386   :  { %v16149_v54 = vld [vmem:[#allocation2 + $0x9dc] sm:$0xf0]  ;;  %v16293_v49 = vld [vmem:[#allocation2 + $0xe64] sm:$0xf] }
 0x387   :  { %v12955_v55 = vld [vmem:[#allocation2 + $0x1160] sm:$0xf]  ;;  %v11932_v7 = vor.u32 %v16149_v54, %v11931_v51  ;;  %7553 = vmatpush.bf16.msra.mxu0 %v10908_v1  ;;  %v14752_v51 = vor.u32 %v16837_v13, %v14749_v37  ;;  %v16549_v53 = vld [vmem:[#allocation2 + $0x1664] sm:$0xf] }
 0x388   :  { %v16405_v58 = vld [vmem:[#allocation2 + $0x11dc] sm:$0xf0]  ;;  %v13597_v54 = vld [vmem:[#allocation2 + $0x16e0] sm:$0xf0] }
 0x389   :  { %v13979_v60 = vld [vmem:[#allocation2 + $0x1960] sm:$0xf]  ;;  %v12956_v41 = vor.u32 %v16405_v58, %v12955_v55  ;;  %7566 = vmatpush.bf16.msra.mxu1 %v11932_v7  ;;  %v16805_v55 = vld [vmem:[#allocation2 + $0x1e64] sm:$0xf]  ;;  %v13600_v1 = vor.u32 %v16549_v53, %v13597_v54 }
 0x38a   :  { %v16661_v63 = vld [vmem:[#allocation2 + $0x19dc] sm:$0xf0]  ;;  %v14621_v58 = vld [vmem:[#allocation2 + $0x1ee0] sm:$0xf0] }
 0x38b   :  { %v10779_v4 = vld [vmem:[#allocation2 + $0x60] sm:$0xf]  ;;  %v13980_v19 = vor.u32 %v16661_v63, %v13979_v60  ;;  %7579 = vmatpush.bf16.msra.mxu2 %v12956_v41  ;;  %v11552_v60 = vor.u32 %v16037_v18, %v11549_v48  ;;  %v12576_v63 = vor.u32 %v16293_v49, %v12573_v52  ;;  %v16261_v7 = vld [vmem:[#allocation2 + $0xd64] sm:$0xf]  ;;  %v14624_v41 = vor.u32 %v16805_v55, %v14621_v58 }
 0x38c   :  { %v15861_v5 = vld [vmem:[#allocation2 + $0xdc] sm:$0xf0]  ;;  %v16773_v16 = vld [vmem:[#allocation2 + $0x1d64] sm:$0xf] }
 0x38d   :  { %v11803_v10 = vld [vmem:[#allocation2 + $0x860] sm:$0xf]  ;;  %v10780_v31 = vor.u32 %v15861_v5, %v10779_v4  ;;  %7592 = vmatpush.bf16.msra.mxu3 %v13980_v19  ;;  %v16005_v4 = vld [vmem:[#allocation2 + $0x564] sm:$0xf] }
 0x38e   :  { %v16117_v12 = vld [vmem:[#allocation2 + $0x8dc] sm:$0xf0]  ;;  %v11421_v5 = vld [vmem:[#allocation2 + $0x5e0] sm:$0xf0] }
 0x38f   :  { %v12827_v14 = vld [vmem:[#allocation2 + $0x1060] sm:$0xf]  ;;  %v11804_v35 = vor.u32 %v16117_v12, %v11803_v10  ;;  %7554 = vmatpush.bf16.msra.mxu0 %v10780_v31  ;;  %v12445_v10 = vld [vmem:[#allocation2 + $0xde0] sm:$0xf0]  ;;  %v1135_v31 = vperm.slane %v17485_v30, 4 }
 0x390   :  { %v16373_v20 = vld [vmem:[#allocation2 + $0x10dc] sm:$0xf0]  ;;  %v16517_v12 = vld [vmem:[#allocation2 + $0x1564] sm:$0xf] }
 0x391   :  { %v13851_v17 = vld [vmem:[#allocation2 + $0x1860] sm:$0xf]  ;;  %v12828_v36 = vor.u32 %v16373_v20, %v12827_v14  ;;  %7567 = vmatpush.bf16.msra.mxu1 %v11804_v35  ;;  %v13469_v14 = vld [vmem:[#allocation2 + $0x15e0] sm:$0xf0]  ;;  %v11424_v20 = vor.u32 %v16005_v4, %v11421_v5 }
 0x392   :  { %v16629_v22 = vld [vmem:[#allocation2 + $0x18dc] sm:$0xf0]  ;;  %v14493_v19 = vld [vmem:[#allocation2 + $0x1de0] sm:$0xf0]  ;;  %7555 = vmatmul.bf16.vlgmr.msra.gmra.mxu0 %v17285_v9  ;;  %v13472_v24 = vor.u32 %v16517_v12, %v13469_v14  ;;  %v7374_v12 = vpop.f32.mrf.mxu2 }
 0x393   :  { %v13852_v39 = vor.u32 %v16629_v22, %v13851_v17  ;;  %7580 = vmatpush.bf16.msra.mxu2 %v12828_v36  ;;  %7599 = vmatpush.bf16.msrb.mxu0 %v11680_v40  ;;  %v15973_v17 = vld [vmem:[#allocation2 + $0x464] sm:$0xf]  ;;  %v12448_v22 = vor.u32 %v16261_v7, %v12445_v10  ;;  %v14496_v32 = vor.u32 %v16773_v16, %v14493_v19 }
 0x394   :  { %7568 = vmatmul.bf16.vlgmr.msra.gmra.mxu1 %v17298_v25  ;;  %v11293_v27 = vld [vmem:[#allocation2 + $0x4e0] sm:$0xf0] }
 0x395   :  { %7593 = vmatpush.bf16.msra.mxu3 %v13852_v39  ;;  %7612 = vmatpush.bf16.msrb.mxu1 %v12704_v44  ;;  %v16229_v28 = vld [vmem:[#allocation2 + $0xc64] sm:$0xf]  ;;  %v11296_v37 = vor.u32 %v15973_v17, %v11293_v27  ;;  %v7348_v39 = vpop.f32.mrf.mxu0 }
 0x396   :  { %7581 = vmatmul.bf16.vlgmr.msra.gmra.mxu2 %v17283_v8  ;;  %v12317_v33 = vld [vmem:[#allocation2 + $0xce0] sm:$0xf0]  ;;  %v7349_v49 = vadd.f32 %v7348_v39, %v1135_v31 }
 0x397   :  { %7625 = vmatpush.bf16.msrb.mxu2 %v13728_v45  ;;  %7600 = vmatpush.bf16.msrb.mxu0 %v11552_v60  ;;  %v16485_v34 = vld [vmem:[#allocation2 + $0x1464] sm:$0xf]  ;;  %v12320_v40 = vor.u32 %v16229_v28, %v12317_v33 }
 0x398   :  { %7594 = vmatmul.bf16.vlgmr.msra.gmra.mxu3 %v17290_v15  ;;  %v13341_v35 = vld [vmem:[#allocation2 + $0x14e0] sm:$0xf0] }
 0x399   :  { %7638 = vmatpush.bf16.msrb.mxu3 %v14752_v51  ;;  %7613 = vmatpush.bf16.msrb.mxu1 %v12576_v63  ;;  %v16741_v36 = vld [vmem:[#allocation2 + $0x1c64] sm:$0xf]  ;;  %v13344_v44 = vor.u32 %v16485_v34, %v13341_v35  ;;  %v7361_v51 = vpop.f32.mrf.mxu1 }
 0x39a   :  { %v14365_v13 = vld [vmem:[#allocation2 + $0x1ce0] sm:$0xf0]  ;;  %v7362_v63 = vadd.f32 %v7361_v51, %v7349_v49 }
 0x39b   :  { %7626 = vmatpush.bf16.msrb.mxu2 %v13600_v1  ;;  %7601 = vmatpush.bf16.msrb.mxu0 %v11424_v20  ;;  %v15941_v45 = vld [vmem:[#allocation2 + $0x364] sm:$0xf]  ;;  %v14368_v52 = vor.u32 %v16741_v36, %v14365_v13 }
 0x39c   :  { %v11165_v18 = vld [vmem:[#allocation2 + $0x3e0] sm:$0xf0]  ;;  %v7375_v17 = vadd.f32 %v7374_v12, %v7362_v63  ;;  %v7376_v63 = vpop.f32.mrf.mxu2  ;;  %v16086_v12 = vld [vmem:[#allocation2 + $0x7e4] sm:$0xf0] }
 0x39d   :  { %7639 = vmatpush.bf16.msrb.mxu3 %v14624_v41  ;;  %7614 = vmatpush.bf16.msrb.mxu1 %v12448_v22  ;;  %v16197_v48 = vld [vmem:[#allocation2 + $0xb64] sm:$0xf]  ;;  %v11168_v1 = vor.u32 %v15941_v45, %v11165_v18  ;;  %v7387_v22 = vpop.f32.mrf.mxu3  ;;  %v13475_v63 = vld [vmem:[#allocation2 + $0x1568] sm:$0xf] }
 0x39e   :  { %v12189_v53 = vld [vmem:[#allocation2 + $0xbe0] sm:$0xf0]  ;;  %v17488_v31 = vadd.f32 %v7387_v22, %v7375_v17  ;;  %v16598_v17 = vld [vmem:[#allocation2 + $0x17e4] sm:$0xf0] }
 0x39f   :  { %7627 = vmatpush.bf16.msrb.mxu2 %v13472_v24  ;;  %v16453_v54 = vld [vmem:[#allocation2 + $0x1364] sm:$0xf]  ;;  %7602 = vmatpush.bf16.msrb.mxu0 %v11296_v37  ;;  %v12192_v4 = vor.u32 %v16197_v48, %v12189_v53 }
 0x3a0   :  { %v13213_v55 = vld [vmem:[#allocation2 + $0x13e0] sm:$0xf0] }
 0x3a1   :  { %7640 = vmatpush.bf16.msrb.mxu3 %v14496_v32  ;;  %v16709_v58 = vld [vmem:[#allocation2 + $0x1b64] sm:$0xf]  ;;  %7615 = vmatpush.bf16.msrb.mxu1 %v12320_v40  ;;  %v13216_v5 = vor.u32 %v16453_v54, %v13213_v55  ;;  %v7350_v32 = vpop.f32.mrf.mxu0  ;;  %v7363_v37 = vpop.f32.mrf.mxu1 }
 0x3a2   :  { %v14237_v60 = vld [vmem:[#allocation2 + $0x1be0] sm:$0xf0]  ;;  %v12579_v37 = vld [vmem:[#allocation2 + $0xe68] sm:$0xf] }
 0x3a3   :  { %7628 = vmatpush.bf16.msrb.mxu2 %v13344_v44  ;;  %v15909_v7 = vld [vmem:[#allocation2 + $0x264] sm:$0xf]  ;;  %v14240_v14 = vor.u32 %v16709_v58, %v14237_v60  ;;  %7603 = vmatpush.bf16.msrb.mxu0 %v11168_v1 }
 0x3a4   :  { %v11037_v41 = vld [vmem:[#allocation2 + $0x2e0] sm:$0xf0] }
 0x3a5   :  { %v16165_v10 = vld [vmem:[#allocation2 + $0xa64] sm:$0xf]  ;;  %7641 = vmatpush.bf16.msrb.mxu3 %v14368_v52  ;;  %v11040_v28 = vor.u32 %v15909_v7, %v11037_v41  ;;  %7616 = vmatpush.bf16.msrb.mxu1 %v12192_v4  ;;  %v7389_v41 = vpop.f32.mrf.mxu3 }
 0x3a6   :  { %v12061_v16 = vld [vmem:[#allocation2 + $0xae0] sm:$0xf0]  ;;  %v11299_v41 = vld [vmem:[#allocation2 + $0x468] sm:$0xf] }
 0x3a7   :  { %v16421_v19 = vld [vmem:[#allocation2 + $0x1264] sm:$0xf]  ;;  %7629 = vmatpush.bf16.msrb.mxu2 %v13216_v5  ;;  %v12064_v33 = vor.u32 %v16165_v10, %v12061_v16  ;;  %7604 = vmatpush.bf16.msrb.mxu0 %v11040_v28  ;;  %v11683_v10 = vld [vmem:[#allocation2 + $0x768] sm:$0xf] }
 0x3a8   :  { %v13085_v20 = vld [vmem:[#allocation2 + $0x12e0] sm:$0xf0]  ;;  %v16854_v28 = vld [vmem:[#allocation2 + $0x1fe4] sm:$0xf0] }
 0x3a9   :  { %v16677_v24 = vld [vmem:[#allocation2 + $0x1a64] sm:$0xf]  ;;  %v13088_v34 = vor.u32 %v16421_v19, %v13085_v20  ;;  %7642 = vmatpush.bf16.msrb.mxu3 %v14240_v14  ;;  %7617 = vmatpush.bf16.msrb.mxu1 %v12064_v33  ;;  %v12707_v14 = vld [vmem:[#allocation2 + $0xf68] sm:$0xf]  ;;  %v11684_v33 = vor.u32 %v16086_v12, %v11683_v10 }
 0x3aa   :  { %v14109_v27 = vld [vmem:[#allocation2 + $0x1ae0] sm:$0xf0]  ;;  %v16342_v19 = vld [vmem:[#allocation2 + $0xfe4] sm:$0xf0] }
 0x3ab   :  { %v15877_v35 = vld [vmem:[#allocation2 + $0x164] sm:$0xf]  ;;  %v14112_v39 = vor.u32 %v16677_v24, %v14109_v27  ;;  %7630 = vmatpush.bf16.msrb.mxu2 %v13088_v34  ;;  %v13731_v20 = vld [vmem:[#allocation2 + $0x1768] sm:$0xf]  ;;  %v12708_v34 = vor.u32 %v16342_v19, %v12707_v14  ;;  %v1136_v19 = vperm.slane %v17485_v30, 5 }
 0x3ac   :  { %v10909_v36 = vld [vmem:[#allocation2 + $0x1e0] sm:$0xf0]  ;;  %v14755_v27 = vld [vmem:[#allocation2 + $0x1f68] sm:$0xf] }
 0x3ad   :  { %v16133_v13 = vld [vmem:[#allocation2 + $0x964] sm:$0xf]  ;;  %v10912_v49 = vor.u32 %v15877_v35, %v10909_v36  ;;  %7643 = vmatpush.bf16.msrb.mxu3 %v14112_v39  ;;  %v13732_v35 = vor.u32 %v16598_v17, %v13731_v20  ;;  %v11555_v36 = vld [vmem:[#allocation2 + $0x668] sm:$0xf]  ;;  %v14756_v39 = vor.u32 %v16854_v28, %v14755_v27 }
 0x3ae   :  { %v11933_v40 = vld [vmem:[#allocation2 + $0x9e0] sm:$0xf0]  ;;  %v15990_v14 = vld [vmem:[#allocation2 + $0x4e4] sm:$0xf0] }
 0x3af   :  { %v16389_v44 = vld [vmem:[#allocation2 + $0x1164] sm:$0xf]  ;;  %v11936_v53 = vor.u32 %v16133_v13, %v11933_v40  ;;  %7605 = vmatpush.bf16.msrb.mxu0 %v10912_v49  ;;  %v16054_v13 = vld [vmem:[#allocation2 + $0x6e4] sm:$0xf0] }
 0x3b0   :  { %v12957_v45 = vld [vmem:[#allocation2 + $0x11e0] sm:$0xf0]  ;;  %v16310_v40 = vld [vmem:[#allocation2 + $0xee4] sm:$0xf0]  ;;  %v11556_v49 = vor.u32 %v16054_v13, %v11555_v36 }
 0x3b1   :  { %v16645_v18 = vld [vmem:[#allocation2 + $0x1964] sm:$0xf]  ;;  %v12960_v54 = vor.u32 %v16389_v44, %v12957_v45  ;;  %7618 = vmatpush.bf16.msrb.mxu1 %v11936_v53  ;;  %v13603_v44 = vld [vmem:[#allocation2 + $0x1668] sm:$0xf] }
 0x3b2   :  { %v13981_v48 = vld [vmem:[#allocation2 + $0x19e0] sm:$0xf0]  ;;  %v16566_v45 = vld [vmem:[#allocation2 + $0x16e4] sm:$0xf0] }
 0x3b3   :  { %v15845_v51 = vld [vmem:[#allocation2 + $0x64] sm:$0xf]  ;;  %v13984_v1 = vor.u32 %v16645_v18, %v13981_v48  ;;  %7631 = vmatpush.bf16.msrb.mxu2 %v12960_v54  ;;  %v14627_v18 = vld [vmem:[#allocation2 + $0x1e68] sm:$0xf] }
 0x3b4   :  { %v10781_v52 = vld [vmem:[#allocation2 + $0xe0] sm:$0xf0]  ;;  %v16822_v48 = vld [vmem:[#allocation2 + $0x1ee4] sm:$0xf0] }
 0x3b5   :  { %v16101_v55 = vld [vmem:[#allocation2 + $0x864] sm:$0xf]  ;;  %v10784_v16 = vor.u32 %v15845_v51, %v10781_v52  ;;  %7644 = vmatpush.bf16.msrb.mxu3 %v13984_v1  ;;  %v12580_v51 = vor.u32 %v16310_v40, %v12579_v37  ;;  %v13604_v52 = vor.u32 %v16566_v45, %v13603_v44  ;;  %v11427_v53 = vld [vmem:[#allocation2 + $0x568] sm:$0xf]  ;;  %v7413_v40 = vpop.f32.mrf.mxu1 }
 0x3b6   :  { %v11805_v58 = vld [vmem:[#allocation2 + $0x8e0] sm:$0xf0]  ;;  %v16022_v54 = vld [vmem:[#allocation2 + $0x5e4] sm:$0xf0] }
 0x3b7   :  { %v16357_v60 = vld [vmem:[#allocation2 + $0x1064] sm:$0xf]  ;;  %v11808_v22 = vor.u32 %v16101_v55, %v11805_v58  ;;  %7606 = vmatpush.bf16.msrb.mxu0 %v10784_v16  ;;  %v12451_v55 = vld [vmem:[#allocation2 + $0xd68] sm:$0xf]  ;;  %v14628_v58 = vor.u32 %v16822_v48, %v14627_v18 }
 0x3b8   :  { %v12829_v4 = vld [vmem:[#allocation2 + $0x10e0] sm:$0xf0]  ;;  %v16534_v1 = vld [vmem:[#allocation2 + $0x15e4] sm:$0xf0] }
 0x3b9   :  { %v16613_v5 = vld [vmem:[#allocation2 + $0x1864] sm:$0xf]  ;;  %v12832_v24 = vor.u32 %v16357_v60, %v12829_v4  ;;  %7619 = vmatpush.bf16.msrb.mxu1 %v11808_v22  ;;  %v16278_v60 = vld [vmem:[#allocation2 + $0xde4] sm:$0xf0]  ;;  %v13476_v12 = vor.u32 %v16534_v1, %v13475_v63  ;;  %v7426_v1 = vpop.f32.mrf.mxu2 }
 0x3ba   :  { %v13853_v7 = vld [vmem:[#allocation2 + $0x18e0] sm:$0xf0]  ;;  %v14499_v4 = vld [vmem:[#allocation2 + $0x1d68] sm:$0xf]  ;;  %7607 = vmatmul.bf16.vlgmr.msrb.gmra.mxu0 %v17285_v9  ;;  %v12452_v10 = vor.u32 %v16278_v60, %v12451_v55 }
 0x3bb   :  { %v13856_v32 = vor.u32 %v16613_v5, %v13853_v7  ;;  %7632 = vmatpush.bf16.msrb.mxu2 %v12832_v24  ;;  %7651 = vmatpush.bf16.msra.mxu0 %v11684_v33  ;;  %v16790_v5 = vld [vmem:[#allocation2 + $0x1de4] sm:$0xf0]  ;;  %v11428_v7 = vor.u32 %v16022_v54, %v11427_v53  ;;  %v7400_v33 = vpop.f32.mrf.mxu0 }
 0x3bc   :  { %7620 = vmatmul.bf16.vlgmr.msrb.gmra.mxu1 %v17298_v25  ;;  %v12323_v16 = vld [vmem:[#allocation2 + $0xc68] sm:$0xf]  ;;  %v14500_v20 = vor.u32 %v16790_v5, %v14499_v4 }
 0x3bd   :  { %7645 = vmatpush.bf16.msrb.mxu3 %v13856_v32  ;;  %7664 = vmatpush.bf16.msra.mxu1 %v12708_v34  ;;  %v16246_v17 = vld [vmem:[#allocation2 + $0xce4] sm:$0xf0]  ;;  %v11300_v32 = vor.u32 %v15990_v14, %v11299_v41 }
 0x3be   :  { %7633 = vmatmul.bf16.vlgmr.msrb.gmra.mxu2 %v17283_v8  ;;  %v13347_v22 = vld [vmem:[#allocation2 + $0x1468] sm:$0xf]  ;;  %v12324_v34 = vor.u32 %v16246_v17, %v12323_v16 }
 0x3bf   :  { %7677 = vmatpush.bf16.msra.mxu2 %v13732_v35  ;;  %7652 = vmatpush.bf16.msra.mxu0 %v11556_v49  ;;  %v16502_v24 = vld [vmem:[#allocation2 + $0x14e4] sm:$0xf0] }
 0x3c0   :  { %7646 = vmatmul.bf16.vlgmr.msrb.gmra.mxu3 %v17290_v15  ;;  %v14371_v27 = vld [vmem:[#allocation2 + $0x1c68] sm:$0xf]  ;;  %v13348_v35 = vor.u32 %v16502_v24, %v13347_v22 }
 0x3c1   :  { %7690 = vmatpush.bf16.msra.mxu3 %v14756_v39  ;;  %7665 = vmatpush.bf16.msra.mxu1 %v12580_v51  ;;  %v16758_v28 = vld [vmem:[#allocation2 + $0x1ce4] sm:$0xf0]  ;;  %v7401_v39 = vadd.f32 %v7400_v33, %v1136_v19  ;;  %v7415_v33 = vpop.f32.mrf.mxu1 }
 0x3c2   :  { %v11171_v36 = vld [vmem:[#allocation2 + $0x368] sm:$0xf]  ;;  %v14372_v44 = vor.u32 %v16758_v28, %v14371_v27  ;;  %v11557_v33 = vld [vmem:[#allocation2 + $0x6e8] sm:$0xf0] }
 0x3c3   :  { %7678 = vmatpush.bf16.msra.mxu2 %v13604_v52  ;;  %7653 = vmatpush.bf16.msra.mxu0 %v11428_v7  ;;  %v15958_v13 = vld [vmem:[#allocation2 + $0x3e4] sm:$0xf0]  ;;  %v7414_v52 = vadd.f32 %v7413_v40, %v7401_v39  ;;  %v7402_v17 = vpop.f32.mrf.mxu0 }
 0x3c4   :  { %v12195_v37 = vld [vmem:[#allocation2 + $0xb68] sm:$0xf]  ;;  %v11172_v53 = vor.u32 %v15958_v13, %v11171_v36  ;;  %v14757_v17 = vld [vmem:[#allocation2 + $0x1fe8] sm:$0xf0] }
 0x3c5   :  { %7691 = vmatpush.bf16.msra.mxu3 %v14628_v58  ;;  %7666 = vmatpush.bf16.msra.mxu1 %v12452_v10  ;;  %v16214_v45 = vld [vmem:[#allocation2 + $0xbe4] sm:$0xf0]  ;;  %v7427_v10 = vadd.f32 %v7426_v1, %v7414_v52  ;;  %v16070_v1 = vld [vmem:[#allocation2 + $0x76c] sm:$0xf] }
 0x3c6   :  { %v13219_v18 = vld [vmem:[#allocation2 + $0x1368] sm:$0xf]  ;;  %v12196_v54 = vor.u32 %v16214_v45, %v12195_v37 }
 0x3c7   :  { %7679 = vmatpush.bf16.msra.mxu2 %v13476_v12  ;;  %v16470_v48 = vld [vmem:[#allocation2 + $0x13e4] sm:$0xf0]  ;;  %7654 = vmatpush.bf16.msra.mxu0 %v11300_v32  ;;  %v7439_v12 = vpop.f32.mrf.mxu3 }
 0x3c8   :  { %v14243_v49 = vld [vmem:[#allocation2 + $0x1b68] sm:$0xf]  ;;  %v13220_v55 = vor.u32 %v16470_v48, %v13219_v18 }
 0x3c9   :  { %7692 = vmatpush.bf16.msra.mxu3 %v14500_v20  ;;  %v16726_v51 = vld [vmem:[#allocation2 + $0x1be4] sm:$0xf0]  ;;  %7667 = vmatpush.bf16.msra.mxu1 %v12324_v34  ;;  %v17495_v20 = vadd.f32 %v7439_v12, %v7427_v10  ;;  %v16582_v10 = vld [vmem:[#allocation2 + $0x176c] sm:$0xf] }
 0x3ca   :  { %v11043_v58 = vld [vmem:[#allocation2 + $0x268] sm:$0xf]  ;;  %v14244_v4 = vor.u32 %v16726_v51, %v14243_v49  ;;  %v13733_v12 = vld [vmem:[#allocation2 + $0x17e8] sm:$0xf0] }
 0x3cb   :  { %7680 = vmatpush.bf16.msra.mxu2 %v13348_v35  ;;  %v15926_v60 = vld [vmem:[#allocation2 + $0x2e4] sm:$0xf0]  ;;  %7655 = vmatpush.bf16.msra.mxu0 %v11172_v53  ;;  %v7428_v53 = vpop.f32.mrf.mxu2 }
 0x3cc   :  { %v12067_v63 = vld [vmem:[#allocation2 + $0xa68] sm:$0xf]  ;;  %v11044_v19 = vor.u32 %v15926_v60, %v11043_v58  ;;  %v12453_v53 = vld [vmem:[#allocation2 + $0xde8] sm:$0xf0] }
 0x3cd   :  { %7693 = vmatpush.bf16.msra.mxu3 %v14372_v44  ;;  %v16182_v5 = vld [vmem:[#allocation2 + $0xae4] sm:$0xf0]  ;;  %7668 = vmatpush.bf16.msra.mxu1 %v12196_v54 }
 0x3ce   :  { %v13091_v7 = vld [vmem:[#allocation2 + $0x1268] sm:$0xf]  ;;  %v12068_v22 = vor.u32 %v16182_v5, %v12067_v63  ;;  %v16326_v5 = vld [vmem:[#allocation2 + $0xf6c] sm:$0xf] }
 0x3cf   :  { %v16438_v41 = vld [vmem:[#allocation2 + $0x12e4] sm:$0xf0]  ;;  %7681 = vmatpush.bf16.msra.mxu2 %v13220_v55  ;;  %7656 = vmatpush.bf16.msra.mxu0 %v11044_v19  ;;  %v7441_v63 = vpop.f32.mrf.mxu3  ;;  %v16838_v19 = vld [vmem:[#allocation2 + $0x1f6c] sm:$0xf] }
 0x3d0   :  { %v14115_v14 = vld [vmem:[#allocation2 + $0x1a68] sm:$0xf]  ;;  %v13092_v24 = vor.u32 %v16438_v41, %v13091_v7  ;;  %v12709_v41 = vld [vmem:[#allocation2 + $0xfe8] sm:$0xf0] }
 0x3d1   :  { %v16694_v16 = vld [vmem:[#allocation2 + $0x1ae4] sm:$0xf0]  ;;  %7694 = vmatpush.bf16.msra.mxu3 %v14244_v4  ;;  %7669 = vmatpush.bf16.msra.mxu1 %v12068_v22  ;;  %v11685_v4 = vld [vmem:[#allocation2 + $0x7e8] sm:$0xf0] }
 0x3d2   :  { %v10915_v27 = vld [vmem:[#allocation2 + $0x168] sm:$0xf]  ;;  %v14116_v34 = vor.u32 %v16694_v16, %v14115_v14 }
 0x3d3   :  { %v15894_v28 = vld [vmem:[#allocation2 + $0x1e4] sm:$0xf0]  ;;  %7682 = vmatpush.bf16.msra.mxu2 %v13092_v24  ;;  %v11688_v24 = vor.u32 %v16070_v1, %v11685_v4  ;;  %v15974_v1 = vld [vmem:[#allocation2 + $0x46c] sm:$0xf] }
 0x3d4   :  { %v11939_v32 = vld [vmem:[#allocation2 + $0x968] sm:$0xf]  ;;  %v10916_v40 = vor.u32 %v15894_v28, %v10915_v27  ;;  %v12712_v27 = vor.u32 %v16326_v5, %v12709_v41  ;;  %v13736_v28 = vor.u32 %v16582_v10, %v13733_v12  ;;  %v16230_v41 = vld [vmem:[#allocation2 + $0xc6c] sm:$0xf]  ;;  %v1137_v10 = vperm.slane %v17485_v30, 6 }
 0x3d5   :  { %v16150_v35 = vld [vmem:[#allocation2 + $0x9e4] sm:$0xf0]  ;;  %7695 = vmatpush.bf16.msra.mxu3 %v14116_v34  ;;  %v16294_v34 = vld [vmem:[#allocation2 + $0xe6c] sm:$0xf] }
 0x3d6   :  { %v12963_v36 = vld [vmem:[#allocation2 + $0x1168] sm:$0xf]  ;;  %v11940_v18 = vor.u32 %v16150_v35, %v11939_v32  ;;  %7657 = vmatpush.bf16.msra.mxu0 %v10916_v40  ;;  %v16038_v32 = vld [vmem:[#allocation2 + $0x66c] sm:$0xf]  ;;  %v14760_v35 = vor.u32 %v16838_v19, %v14757_v17 }
 0x3d7   :  { %v16406_v13 = vld [vmem:[#allocation2 + $0x11e4] sm:$0xf0]  ;;  %v14629_v40 = vld [vmem:[#allocation2 + $0x1ee8] sm:$0xf0] }
 0x3d8   :  { %v13987_v37 = vld [vmem:[#allocation2 + $0x1968] sm:$0xf]  ;;  %v12964_v48 = vor.u32 %v16406_v13, %v12963_v36  ;;  %7670 = vmatpush.bf16.msra.mxu1 %v11940_v18  ;;  %v12581_v36 = vld [vmem:[#allocation2 + $0xee8] sm:$0xf0] }
 0x3d9   :  { %v16662_v39 = vld [vmem:[#allocation2 + $0x19e4] sm:$0xf0]  ;;  %v16550_v13 = vld [vmem:[#allocation2 + $0x166c] sm:$0xf] }
 0x3da   :  { %v10787_v44 = vld [vmem:[#allocation2 + $0x68] sm:$0xf]  ;;  %v13988_v54 = vor.u32 %v16662_v39, %v13987_v37  ;;  %7683 = vmatpush.bf16.msra.mxu2 %v12964_v48  ;;  %v13605_v37 = vld [vmem:[#allocation2 + $0x16e8] sm:$0xf0] }
 0x3db   :  { %v15862_v45 = vld [vmem:[#allocation2 + $0xe4] sm:$0xf0]  ;;  %v16806_v39 = vld [vmem:[#allocation2 + $0x1e6c] sm:$0xf]  ;;  %v13608_v18 = vor.u32 %v16550_v13, %v13605_v37  ;;  %v7465_v13 = vpop.f32.mrf.mxu1 }
 0x3dc   :  { %v11811_v49 = vld [vmem:[#allocation2 + $0x868] sm:$0xf]  ;;  %v10788_v7 = vor.u32 %v15862_v45, %v10787_v44  ;;  %7696 = vmatpush.bf16.msra.mxu3 %v13988_v54  ;;  %v11560_v44 = vor.u32 %v16038_v32, %v11557_v33  ;;  %v12584_v45 = vor.u32 %v16294_v34, %v12581_v36  ;;  %v16006_v48 = vld [vmem:[#allocation2 + $0x56c] sm:$0xf] }
 0x3dd   :  { %v16118_v51 = vld [vmem:[#allocation2 + $0x8e4] sm:$0xf0]  ;;  %v16518_v54 = vld [vmem:[#allocation2 + $0x156c] sm:$0xf] }
 0x3de   :  { %v12835_v52 = vld [vmem:[#allocation2 + $0x1068] sm:$0xf]  ;;  %v11812_v14 = vor.u32 %v16118_v51, %v11811_v49  ;;  %7658 = vmatpush.bf16.msra.mxu0 %v10788_v7  ;;  %v11429_v49 = vld [vmem:[#allocation2 + $0x5e8] sm:$0xf0] }
 0x3df   :  { %v16374_v55 = vld [vmem:[#allocation2 + $0x10e4] sm:$0xf0]  ;;  %v16262_v51 = vld [vmem:[#allocation2 + $0xd6c] sm:$0xf]  ;;  %v11432_v63 = vor.u32 %v16006_v48, %v11429_v49 }
 0x3e0   :  { %v13859_v58 = vld [vmem:[#allocation2 + $0x1868] sm:$0xf]  ;;  %v12836_v16 = vor.u32 %v16374_v55, %v12835_v52  ;;  %7671 = vmatpush.bf16.msra.mxu1 %v11812_v14  ;;  %v14632_v52 = vor.u32 %v16806_v39, %v14629_v40  ;;  %v13477_v55 = vld [vmem:[#allocation2 + $0x15e8] sm:$0xf0]  ;;  %v12456_v4 = vor.u32 %v16262_v51, %v12453_v53 }
 0x3e1   :  { %v16630_v60 = vld [vmem:[#allocation2 + $0x18e4] sm:$0xf0]  ;;  %7659 = vmatmul.bf16.vlgmr.msra.gmra.mxu0 %v17285_v9  ;;  %v13480_v5 = vor.u32 %v16518_v54, %v13477_v55  ;;  %v11301_v7 = vld [vmem:[#allocation2 + $0x4e8] sm:$0xf0] }
 0x3e2   :  { %v13860_v22 = vor.u32 %v16630_v60, %v13859_v58  ;;  %7684 = vmatpush.bf16.msra.mxu2 %v12836_v16  ;;  %7703 = vmatpush.bf16.msrb.mxu0 %v11688_v24  ;;  %v16774_v58 = vld [vmem:[#allocation2 + $0x1d6c] sm:$0xf]  ;;  %v11304_v24 = vor.u32 %v15974_v1, %v11301_v7  ;;  %v7491_v7 = vpop.f32.mrf.mxu3 }
 0x3e3   :  { %v14501_v60 = vld [vmem:[#allocation2 + $0x1de8] sm:$0xf0]  ;;  %7672 = vmatmul.bf16.vlgmr.msra.gmra.mxu1 %v17298_v25 }
 0x3e4   :  { %7697 = vmatpush.bf16.msra.mxu3 %v13860_v22  ;;  %7716 = vmatpush.bf16.msrb.mxu1 %v12712_v27  ;;  %v14504_v12 = vor.u32 %v16774_v58, %v14501_v60  ;;  %v12325_v14 = vld [vmem:[#allocation2 + $0xce8] sm:$0xf0]  ;;  %v7452_v27 = vpop.f32.mrf.mxu0  ;;  %v7478_v58 = vpop.f32.mrf.mxu2 }
 0x3e5   :  { %7685 = vmatmul.bf16.vlgmr.msra.gmra.mxu2 %v17283_v8  ;;  %v16486_v16 = vld [vmem:[#allocation2 + $0x146c] sm:$0xf]  ;;  %v7453_v36 = vadd.f32 %v7452_v27, %v1137_v10 }
 0x3e6   :  { %7729 = vmatpush.bf16.msrb.mxu2 %v13736_v28  ;;  %7704 = vmatpush.bf16.msrb.mxu0 %v11560_v44  ;;  %v13349_v19 = vld [vmem:[#allocation2 + $0x14e8] sm:$0xf0]  ;;  %v12328_v28 = vor.u32 %v16230_v41, %v12325_v14 }
 0x3e7   :  { %7698 = vmatmul.bf16.vlgmr.msra.gmra.mxu3 %v17290_v15  ;;  %v16742_v17 = vld [vmem:[#allocation2 + $0x1c6c] sm:$0xf]  ;;  %v13352_v32 = vor.u32 %v16486_v16, %v13349_v19  ;;  %v7466_v48 = vadd.f32 %v7465_v13, %v7453_v36 }
 0x3e8   :  { %7742 = vmatpush.bf16.msrb.mxu3 %v14760_v35  ;;  %7717 = vmatpush.bf16.msrb.mxu1 %v12584_v45  ;;  %v14373_v22 = vld [vmem:[#allocation2 + $0x1ce8] sm:$0xf0] }
 0x3e9   :  { %v15942_v33 = vld [vmem:[#allocation2 + $0x36c] sm:$0xf]  ;;  %v14376_v37 = vor.u32 %v16742_v17, %v14373_v22 }
 0x3ea   :  { %7730 = vmatpush.bf16.msrb.mxu2 %v13608_v18  ;;  %7705 = vmatpush.bf16.msrb.mxu0 %v11432_v63  ;;  %v11173_v34 = vld [vmem:[#allocation2 + $0x3e8] sm:$0xf0] }
 0x3eb   :  { %v16198_v35 = vld [vmem:[#allocation2 + $0xb6c] sm:$0xf]  ;;  %v11176_v49 = vor.u32 %v15942_v33, %v11173_v34 }
 0x3ec   :  { %7743 = vmatpush.bf16.msrb.mxu3 %v14632_v52  ;;  %7718 = vmatpush.bf16.msrb.mxu1 %v12456_v4  ;;  %v12197_v39 = vld [vmem:[#allocation2 + $0xbe8] sm:$0xf0]  ;;  %v7454_v16 = vpop.f32.mrf.mxu0 }
 0x3ed   :  { %v16454_v40 = vld [vmem:[#allocation2 + $0x136c] sm:$0xf]  ;;  %v12200_v51 = vor.u32 %v16198_v35, %v12197_v39  ;;  %v14763_v16 = vld [vmem:[#allocation2 + $0x1f70] sm:$0xf] }
 0x3ee   :  { %7731 = vmatpush.bf16.msrb.mxu2 %v13480_v5  ;;  %v13221_v44 = vld [vmem:[#allocation2 + $0x13e8] sm:$0xf0]  ;;  %7706 = vmatpush.bf16.msrb.mxu0 %v11304_v24  ;;  %v7479_v5 = vadd.f32 %v7478_v58, %v7466_v48  ;;  %v7493_v58 = vpop.f32.mrf.mxu3 }
 0x3ef   :  { %v16710_v45 = vld [vmem:[#allocation2 + $0x1b6c] sm:$0xf]  ;;  %v13224_v52 = vor.u32 %v16454_v40, %v13221_v44  ;;  %v16791_v58 = vld [vmem:[#allocation2 + $0x1dec] sm:$0xf0] }
 0x3f0   :  { %7744 = vmatpush.bf16.msrb.mxu3 %v14504_v12  ;;  %v14245_v18 = vld [vmem:[#allocation2 + $0x1be8] sm:$0xf0]  ;;  %7719 = vmatpush.bf16.msrb.mxu1 %v12328_v28  ;;  %v17502_v14 = vadd.f32 %v7491_v7, %v7479_v5  ;;  %v7467_v28 = vpop.f32.mrf.mxu1  ;;  %v16343_v5 = vld [vmem:[#allocation2 + $0xfec] sm:$0xf0] }
 0x3f1   :  { %v15910_v53 = vld [vmem:[#allocation2 + $0x26c] sm:$0xf]  ;;  %v14248_v60 = vor.u32 %v16710_v45, %v14245_v18  ;;  %v13739_v7 = vld [vmem:[#allocation2 + $0x1770] sm:$0xf] }
 0x3f2   :  { %7732 = vmatpush.bf16.msrb.mxu2 %v13352_v32  ;;  %v11045_v54 = vld [vmem:[#allocation2 + $0x2e8] sm:$0xf0]  ;;  %7707 = vmatpush.bf16.msrb.mxu0 %v11176_v49  ;;  %v11563_v28 = vld [vmem:[#allocation2 + $0x670] sm:$0xf] }
 0x3f3   :  { %v16166_v55 = vld [vmem:[#allocation2 + $0xa6c] sm:$0xf]  ;;  %v11048_v12 = vor.u32 %v15910_v53, %v11045_v54 }
 0x3f4   :  { %7745 = vmatpush.bf16.msrb.mxu3 %v14376_v37  ;;  %v12069_v63 = vld [vmem:[#allocation2 + $0xae8] sm:$0xf0]  ;;  %7720 = vmatpush.bf16.msrb.mxu1 %v12200_v51  ;;  %v7480_v51 = vpop.f32.mrf.mxu2 }
 0x3f5   :  { %v16422_v1 = vld [vmem:[#allocation2 + $0x126c] sm:$0xf]  ;;  %v12072_v19 = vor.u32 %v16166_v55, %v12069_v63  ;;  %v16087_v63 = vld [vmem:[#allocation2 + $0x7ec] sm:$0xf0] }
 0x3f6   :  { %v13093_v4 = vld [vmem:[#allocation2 + $0x12e8] sm:$0xf0]  ;;  %7733 = vmatpush.bf16.msrb.mxu2 %v13224_v52  ;;  %7708 = vmatpush.bf16.msrb.mxu0 %v11048_v12 }
 0x3f7   :  { %v16678_v41 = vld [vmem:[#allocation2 + $0x1a6c] sm:$0xf]  ;;  %v13096_v17 = vor.u32 %v16422_v1, %v13093_v4  ;;  %v12715_v1 = vld [vmem:[#allocation2 + $0xf70] sm:$0xf] }
 0x3f8   :  { %v14117_v10 = vld [vmem:[#allocation2 + $0x1ae8] sm:$0xf0]  ;;  %7746 = vmatpush.bf16.msrb.mxu3 %v14248_v60  ;;  %7721 = vmatpush.bf16.msrb.mxu1 %v12072_v19  ;;  %v11691_v60 = vld [vmem:[#allocation2 + $0x770] sm:$0xf] }
 0x3f9   :  { %v15878_v22 = vld [vmem:[#allocation2 + $0x16c] sm:$0xf]  ;;  %v14120_v32 = vor.u32 %v16678_v41, %v14117_v10  ;;  %v16599_v41 = vld [vmem:[#allocation2 + $0x17ec] sm:$0xf0] }
 0x3fa   :  { %v10917_v24 = vld [vmem:[#allocation2 + $0x1e8] sm:$0xf0]  ;;  %7734 = vmatpush.bf16.msrb.mxu2 %v13096_v17  ;;  %v16855_v19 = vld [vmem:[#allocation2 + $0x1fec] sm:$0xf0] }
 0x3fb   :  { %v16134_v27 = vld [vmem:[#allocation2 + $0x96c] sm:$0xf]  ;;  %v10920_v37 = vor.u32 %v15878_v22, %v10917_v24  ;;  %v11692_v22 = vor.u32 %v16087_v63, %v11691_v60  ;;  %v12716_v24 = vor.u32 %v16343_v5, %v12715_v1  ;;  %v11307_v63 = vld [vmem:[#allocation2 + $0x470] sm:$0xf] }
 0x3fc   :  { %v11941_v33 = vld [vmem:[#allocation2 + $0x9e8] sm:$0xf0]  ;;  %7747 = vmatpush.bf16.msrb.mxu3 %v14120_v32  ;;  %v16055_v32 = vld [vmem:[#allocation2 + $0x6ec] sm:$0xf0] }
 0x3fd   :  { %v16390_v34 = vld [vmem:[#allocation2 + $0x116c] sm:$0xf]  ;;  %v11944_v44 = vor.u32 %v16134_v27, %v11941_v33  ;;  %7709 = vmatpush.bf16.msrb.mxu0 %v10920_v37  ;;  %v13740_v27 = vor.u32 %v16599_v41, %v13739_v7  ;;  %v12587_v33 = vld [vmem:[#allocation2 + $0xe70] sm:$0xf]  ;;  %v1138_v41 = vperm.slane %v17485_v30, 7 }
 0x3fe   :  { %v12965_v35 = vld [vmem:[#allocation2 + $0x11e8] sm:$0xf0]  ;;  %v14635_v37 = vld [vmem:[#allocation2 + $0x1e70] sm:$0xf] }
 0x3ff   :  { %v16646_v36 = vld [vmem:[#allocation2 + $0x196c] sm:$0xf]  ;;  %v12968_v45 = vor.u32 %v16390_v34, %v12965_v35  ;;  %7722 = vmatpush.bf16.msrb.mxu1 %v11944_v44  ;;  %v14764_v34 = vor.u32 %v16855_v19, %v14763_v16  ;;  %v16311_v35 = vld [vmem:[#allocation2 + $0xeec] sm:$0xf0] }
 0x400   :  { %v13989_v13 = vld [vmem:[#allocation2 + $0x19e8] sm:$0xf0]  ;;  %v12588_v44 = vor.u32 %v16311_v35, %v12587_v33  ;;  %v15991_v5 = vld [vmem:[#allocation2 + $0x4ec] sm:$0xf0] }
 0x401   :  { %v15846_v39 = vld [vmem:[#allocation2 + $0x6c] sm:$0xf]  ;;  %v13992_v52 = vor.u32 %v16646_v36, %v13989_v13  ;;  %7735 = vmatpush.bf16.msrb.mxu2 %v12968_v45  ;;  %v13611_v36 = vld [vmem:[#allocation2 + $0x1670] sm:$0xf] }
 0x402   :  { %v10789_v40 = vld [vmem:[#allocation2 + $0xe8] sm:$0xf0]  ;;  %v16567_v13 = vld [vmem:[#allocation2 + $0x16ec] sm:$0xf0] }
 0x403   :  { %v16102_v18 = vld [vmem:[#allocation2 + $0x86c] sm:$0xf]  ;;  %v10792_v4 = vor.u32 %v15846_v39, %v10789_v40  ;;  %7748 = vmatpush.bf16.msrb.mxu3 %v13992_v52  ;;  %v16823_v39 = vld [vmem:[#allocation2 + $0x1eec] sm:$0xf0]  ;;  %v11564_v40 = vor.u32 %v16055_v32, %v11563_v28  ;;  %v13612_v45 = vor.u32 %v16567_v13, %v13611_v36  ;;  %v7517_v13 = vpop.f32.mrf.mxu1 }
 0x404   :  { %v11813_v48 = vld [vmem:[#allocation2 + $0x8e8] sm:$0xf0]  ;;  %v14636_v51 = vor.u32 %v16823_v39, %v14635_v37  ;;  %v16279_v52 = vld [vmem:[#allocation2 + $0xdec] sm:$0xf0] }
 0x405   :  { %v16358_v49 = vld [vmem:[#allocation2 + $0x106c] sm:$0xf]  ;;  %v11816_v10 = vor.u32 %v16102_v18, %v11813_v48  ;;  %7710 = vmatpush.bf16.msrb.mxu0 %v10792_v4  ;;  %v11435_v18 = vld [vmem:[#allocation2 + $0x570] sm:$0xf] }
 0x406   :  { %v12837_v53 = vld [vmem:[#allocation2 + $0x10e8] sm:$0xf0]  ;;  %v16023_v48 = vld [vmem:[#allocation2 + $0x5ec] sm:$0xf0] }
 0x407   :  { %v16614_v54 = vld [vmem:[#allocation2 + $0x186c] sm:$0xf]  ;;  %v12840_v12 = vor.u32 %v16358_v49, %v12837_v53  ;;  %7723 = vmatpush.bf16.msrb.mxu1 %v11816_v10  ;;  %v12459_v49 = vld [vmem:[#allocation2 + $0xd70] sm:$0xf]  ;;  %v11436_v60 = vor.u32 %v16023_v48, %v11435_v18 }
 0x408   :  { %v13861_v55 = vld [vmem:[#allocation2 + $0x18e8] sm:$0xf0]  ;;  %v13483_v53 = vld [vmem:[#allocation2 + $0x1570] sm:$0xf]  ;;  %7711 = vmatmul.bf16.vlgmr.msrb.gmra.mxu0 %v17285_v9  ;;  %v12460_v1 = vor.u32 %v16279_v52, %v12459_v49 }
 0x409   :  { %v13864_v17 = vor.u32 %v16614_v54, %v13861_v55  ;;  %7736 = vmatpush.bf16.msrb.mxu2 %v12840_v12  ;;  %7755 = vmatpush.bf16.msra.mxu0 %v11692_v22  ;;  %v16535_v54 = vld [vmem:[#allocation2 + $0x15ec] sm:$0xf0] }
 0x40a   :  { %v14507_v55 = vld [vmem:[#allocation2 + $0x1d70] sm:$0xf]  ;;  %7724 = vmatmul.bf16.vlgmr.msrb.gmra.mxu1 %v17298_v25  ;;  %v13484_v4 = vor.u32 %v16535_v54, %v13483_v53 }
 0x40b   :  { %7749 = vmatpush.bf16.msrb.mxu3 %v13864_v17  ;;  %7768 = vmatpush.bf16.msra.mxu1 %v12716_v24  ;;  %v12331_v7 = vld [vmem:[#allocation2 + $0xc70] sm:$0xf]  ;;  %v14508_v10 = vor.u32 %v16791_v58, %v14507_v55  ;;  %v11308_v24 = vor.u32 %v15991_v5, %v11307_v63  ;;  %v7530_v55 = vpop.f32.mrf.mxu2  ;;  %v7543_v5 = vpop.f32.mrf.mxu3 }
 0x40c   :  { %7737 = vmatmul.bf16.vlgmr.msrb.gmra.mxu2 %v17283_v8  ;;  %v16247_v12 = vld [vmem:[#allocation2 + $0xcec] sm:$0xf0] }
 0x40d   :  { %7781 = vmatpush.bf16.msra.mxu2 %v13740_v27  ;;  %7756 = vmatpush.bf16.msra.mxu0 %v11564_v40  ;;  %v13355_v16 = vld [vmem:[#allocation2 + $0x1470] sm:$0xf]  ;;  %v7504_v27 = vpop.f32.mrf.mxu0  ;;  %v12332_v28 = vor.u32 %v16247_v12, %v12331_v7 }
 0x40e   :  { %7750 = vmatmul.bf16.vlgmr.msrb.gmra.mxu3 %v17290_v15  ;;  %v16503_v19 = vld [vmem:[#allocation2 + $0x14ec] sm:$0xf0]  ;;  %v7505_v36 = vadd.f32 %v7504_v27, %v1138_v41 }
 0x40f   :  { %7794 = vmatpush.bf16.msra.mxu3 %v14764_v34  ;;  %7769 = vmatpush.bf16.msra.mxu1 %v12588_v44  ;;  %v14379_v17 = vld [vmem:[#allocation2 + $0x1c70] sm:$0xf]  ;;  %v13356_v32 = vor.u32 %v16503_v19, %v13355_v16 }
 0x410   :  { %v16759_v22 = vld [vmem:[#allocation2 + $0x1cec] sm:$0xf0]  ;;  %v7518_v18 = vadd.f32 %v7517_v13, %v7505_v36 }
 0x411   :  { %7782 = vmatpush.bf16.msra.mxu2 %v13612_v45  ;;  %7757 = vmatpush.bf16.msra.mxu0 %v11436_v60  ;;  %v11179_v33 = vld [vmem:[#allocation2 + $0x370] sm:$0xf]  ;;  %v14380_v30 = vor.u32 %v16759_v22, %v14379_v17 }
 0x412   :  { %v15959_v34 = vld [vmem:[#allocation2 + $0x3ec] sm:$0xf0] }
 0x413   :  { %7795 = vmatpush.bf16.msra.mxu3 %v14636_v51  ;;  %7770 = vmatpush.bf16.msra.mxu1 %v12460_v1  ;;  %v12203_v35 = vld [vmem:[#allocation2 + $0xb70] sm:$0xf]  ;;  %v11180_v48 = vor.u32 %v15959_v34, %v11179_v33 }
 0x414   :  { %v16215_v37 = vld [vmem:[#allocation2 + $0xbec] sm:$0xf0] }
 0x415   :  { %7783 = vmatpush.bf16.msra.mxu2 %v13484_v4  ;;  %v13227_v39 = vld [vmem:[#allocation2 + $0x1370] sm:$0xf]  ;;  %7758 = vmatpush.bf16.msra.mxu0 %v11308_v24  ;;  %v12204_v49 = vor.u32 %v16215_v37, %v12203_v35  ;;  %v7531_v4 = vadd.f32 %v7530_v55, %v7518_v18  ;;  %v7506_v16 = vpop.f32.mrf.mxu0  ;;  %v7545_v55 = vpop.f32.mrf.mxu3 }
 0x416   :  { %v16471_v40 = vld [vmem:[#allocation2 + $0x13ec] sm:$0xf0]  ;;  %v16839_v16 = vld [vmem:[#allocation2 + $0x1f74] sm:$0xf] }
 0x417   :  { %7796 = vmatpush.bf16.msra.mxu3 %v14508_v10  ;;  %v14251_v44 = vld [vmem:[#allocation2 + $0x1b70] sm:$0xf]  ;;  %7771 = vmatpush.bf16.msra.mxu1 %v12332_v28  ;;  %v13228_v51 = vor.u32 %v16471_v40, %v13227_v39  ;;  %v17509_v12 = vadd.f32 %v7543_v5, %v7531_v4  ;;  %v7519_v28 = vpop.f32.mrf.mxu1  ;;  %v12717_v4 = vld [vmem:[#allocation2 + $0xff0] sm:$0xf0] }
 0x418   :  { %v16727_v45 = vld [vmem:[#allocation2 + $0x1bec] sm:$0xf0]  ;;  %v16583_v5 = vld [vmem:[#allocation2 + $0x1774] sm:$0xf] }
 0x419   :  { %7784 = vmatpush.bf16.msra.mxu2 %v13356_v32  ;;  %v11051_v52 = vld [vmem:[#allocation2 + $0x270] sm:$0xf]  ;;  %v14252_v58 = vor.u32 %v16727_v45, %v14251_v44  ;;  %7759 = vmatpush.bf16.msra.mxu0 %v11180_v48  ;;  %v16039_v28 = vld [vmem:[#allocation2 + $0x674] sm:$0xf] }
 0x41a   :  { %v15927_v53 = vld [vmem:[#allocation2 + $0x2ec] sm:$0xf0]  ;;  %v16775_v55 = vld [vmem:[#allocation2 + $0x1d74] sm:$0xf] }
 0x41b   :  { %v12075_v54 = vld [vmem:[#allocation2 + $0xa70] sm:$0xf]  ;;  %7797 = vmatpush.bf16.msra.mxu3 %v14380_v30  ;;  %v11052_v10 = vor.u32 %v15927_v53, %v11051_v52  ;;  %7772 = vmatpush.bf16.msra.mxu1 %v12204_v49  ;;  %v7532_v49 = vpop.f32.mrf.mxu2 }
 0x41c   :  { %v16183_v60 = vld [vmem:[#allocation2 + $0xaec] sm:$0xf0]  ;;  %v12461_v49 = vld [vmem:[#allocation2 + $0xdf0] sm:$0xf0] }
 0x41d   :  { %v13099_v63 = vld [vmem:[#allocation2 + $0x1270] sm:$0xf]  ;;  %7785 = vmatpush.bf16.msra.mxu2 %v13228_v51  ;;  %v12076_v19 = vor.u32 %v16183_v60, %v12075_v54  ;;  %7760 = vmatpush.bf16.msra.mxu0 %v11052_v10  ;;  %v11693_v60 = vld [vmem:[#allocation2 + $0x7f0] sm:$0xf0] }
 0x41e   :  { %v16439_v1 = vld [vmem:[#allocation2 + $0x12ec] sm:$0xf0] }
 0x41f   :  { %v14123_v7 = vld [vmem:[#allocation2 + $0x1a70] sm:$0xf]  ;;  %v13100_v17 = vor.u32 %v16439_v1, %v13099_v63  ;;  %7798 = vmatpush.bf16.msra.mxu3 %v14252_v58  ;;  %7773 = vmatpush.bf16.msra.mxu1 %v12076_v19  ;;  %v16071_v58 = vld [vmem:[#allocation2 + $0x774] sm:$0xf] }
 0x420   :  { %v16695_v41 = vld [vmem:[#allocation2 + $0x1aec] sm:$0xf0]  ;;  %v16327_v63 = vld [vmem:[#allocation2 + $0xf74] sm:$0xf] }
 0x421   :  { %v10923_v22 = vld [vmem:[#allocation2 + $0x170] sm:$0xf]  ;;  %v14124_v32 = vor.u32 %v16695_v41, %v14123_v7  ;;  %7786 = vmatpush.bf16.msra.mxu2 %v13100_v17  ;;  %v13741_v7 = vld [vmem:[#allocation2 + $0x17f0] sm:$0xf0] }
 0x422   :  { %v15895_v24 = vld [vmem:[#allocation2 + $0x1ec] sm:$0xf0]  ;;  %v14765_v19 = vld [vmem:[#allocation2 + $0x1ff0] sm:$0xf0] }
 0x423   :  { %v11947_v27 = vld [vmem:[#allocation2 + $0x970] sm:$0xf]  ;;  %v10924_v30 = vor.u32 %v15895_v24, %v10923_v22  ;;  %7799 = vmatpush.bf16.msra.mxu3 %v14124_v32  ;;  %v11696_v22 = vor.u32 %v16071_v58, %v11693_v60  ;;  %v12720_v24 = vor.u32 %v16327_v63, %v12717_v4  ;;  %v11565_v32 = vld [vmem:[#allocation2 + $0x6f0] sm:$0xf0] }
 0x424   :  { %v16151_v33 = vld [vmem:[#allocation2 + $0x9ec] sm:$0xf0]  ;;  %v14509_v58 = vld [vmem:[#allocation2 + $0x1df0] sm:$0xf0] }
 0x425   :  { %v12971_v34 = vld [vmem:[#allocation2 + $0x1170] sm:$0xf]  ;;  %v11948_v40 = vor.u32 %v16151_v33, %v11947_v27  ;;  %7761 = vmatpush.bf16.msra.mxu0 %v10924_v30  ;;  %v13744_v27 = vor.u32 %v16583_v5, %v13741_v7  ;;  %v16295_v33 = vld [vmem:[#allocation2 + $0xe74] sm:$0xf] }
 0x426   :  { %v16407_v35 = vld [vmem:[#allocation2 + $0x11ec] sm:$0xf0]  ;;  %v16807_v30 = vld [vmem:[#allocation2 + $0x1e74] sm:$0xf] }
 0x427   :  { %v13995_v36 = vld [vmem:[#allocation2 + $0x1970] sm:$0xf]  ;;  %v12972_v44 = vor.u32 %v16407_v35, %v12971_v34  ;;  %7774 = vmatpush.bf16.msra.mxu1 %v11948_v40  ;;  %v14768_v34 = vor.u32 %v16839_v16, %v14765_v19  ;;  %v12589_v35 = vld [vmem:[#allocation2 + $0xef0] sm:$0xf0] }
 0x428   :  { %v16663_v13 = vld [vmem:[#allocation2 + $0x19ec] sm:$0xf0]  ;;  %v16007_v40 = vld [vmem:[#allocation2 + $0x574] sm:$0xf] }
 0x429   :  { %v10795_v37 = vld [vmem:[#allocation2 + $0x70] sm:$0xf]  ;;  %v13996_v51 = vor.u32 %v16663_v13, %v13995_v36  ;;  %7787 = vmatpush.bf16.msra.mxu2 %v12972_v44  ;;  %v16551_v36 = vld [vmem:[#allocation2 + $0x1674] sm:$0xf]  ;;  %v12592_v44 = vor.u32 %v16295_v33, %v12589_v35 }
 0x42a   :  { %v15863_v39 = vld [vmem:[#allocation2 + $0xec] sm:$0xf0]  ;;  %v13613_v13 = vld [vmem:[#allocation2 + $0x16f0] sm:$0xf0] }
 0x42b   :  { %v11819_v45 = vld [vmem:[#allocation2 + $0x870] sm:$0xf]  ;;  %v10796_v1 = vor.u32 %v15863_v39, %v10795_v37  ;;  %7800 = vmatpush.bf16.msra.mxu3 %v13996_v51  ;;  %v14637_v37 = vld [vmem:[#allocation2 + $0x1ef0] sm:$0xf0]  ;;  %v11568_v39 = vor.u32 %v16039_v28, %v11565_v32  ;;  %v7556_v28 = vpop.f32.mrf.mxu0 }
 0x42c   :  { %v16119_v18 = vld [vmem:[#allocation2 + $0x8ec] sm:$0xf0]  ;;  %v14640_v51 = vor.u32 %v16807_v30, %v14637_v37  ;;  %v15975_v63 = vld [vmem:[#allocation2 + $0x474] sm:$0xf]  ;;  %v7569_v30 = vpop.f32.mrf.mxu1 }
 0x42d   :  { %v12843_v48 = vld [vmem:[#allocation2 + $0x1070] sm:$0xf]  ;;  %v11820_v41 = vor.u32 %v16119_v18, %v11819_v45  ;;  %7762 = vmatpush.bf16.msra.mxu0 %v10796_v1  ;;  %v13616_v45 = vor.u32 %v16551_v36, %v13613_v13  ;;  %v11437_v18 = vld [vmem:[#allocation2 + $0x5f0] sm:$0xf0] }
 0x42e   :  { %v16375_v52 = vld [vmem:[#allocation2 + $0x10ec] sm:$0xf0]  ;;  %v11440_v60 = vor.u32 %v16007_v40, %v11437_v18  ;;  %v11309_v5 = vld [vmem:[#allocation2 + $0x4f0] sm:$0xf0] }
 0x42f   :  { %v13867_v53 = vld [vmem:[#allocation2 + $0x1870] sm:$0xf]  ;;  %v12844_v10 = vor.u32 %v16375_v52, %v12843_v48  ;;  %7775 = vmatpush.bf16.msra.mxu1 %v11820_v41  ;;  %v16263_v48 = vld [vmem:[#allocation2 + $0xd74] sm:$0xf] }
 0x430   :  { %v16631_v54 = vld [vmem:[#allocation2 + $0x18ec] sm:$0xf0]  ;;  %v16519_v52 = vld [vmem:[#allocation2 + $0x1574] sm:$0xf]  ;;  %7763 = vmatmul.bf16.vlgmr.msra.gmra.mxu0 %v17285_v9  ;;  %v12464_v1 = vor.u32 %v16263_v48, %v12461_v49 }
 0x431   :  { %v13868_v17 = vor.u32 %v16631_v54, %v13867_v53  ;;  %7788 = vmatpush.bf16.msra.mxu2 %v12844_v10  ;;  %7807 = vmatpush.bf16.msrb.mxu0 %v11696_v22  ;;  %v13485_v53 = vld [vmem:[#allocation2 + $0x15f0] sm:$0xf0]  ;;  %v17515_v54 = vld [vmem:[%s17691_s2 + $0x18] sm:$0xff]  ;;  %v14512_v10 = vor.u32 %v16775_v55, %v14509_v58 }
 0x432   :  { %7776 = vmatmul.bf16.vlgmr.msra.gmra.mxu1 %v17298_v25  ;;  %v13488_v4 = vor.u32 %v16519_v52, %v13485_v53  ;;  %v16231_v7 = vld [vmem:[#allocation2 + $0xc74] sm:$0xf]  ;;  %v1139_v41 = vperm.slane %v17515_v54, 0 }
 0x433   :  { %7801 = vmatpush.bf16.msra.mxu3 %v13868_v17  ;;  %7820 = vmatpush.bf16.msrb.mxu1 %v12720_v24  ;;  %v12333_v16 = vld [vmem:[#allocation2 + $0xcf0] sm:$0xf0] }
 0x434   :  { %7789 = vmatmul.bf16.vlgmr.msra.gmra.mxu2 %v17283_v8  ;;  %v16487_v19 = vld [vmem:[#allocation2 + $0x1474] sm:$0xf]  ;;  %v12336_v32 = vor.u32 %v16231_v7, %v12333_v16  ;;  %v7557_v13 = vadd.f32 %v7556_v28, %v1139_v41  ;;  %v7595_v41 = vpop.f32.mrf.mxu3 }
 0x435   :  { %7833 = vmatpush.bf16.msrb.mxu2 %v13744_v27  ;;  %7808 = vmatpush.bf16.msrb.mxu0 %v11568_v39  ;;  %v13357_v17 = vld [vmem:[#allocation2 + $0x14f0] sm:$0xf0]  ;;  %v11312_v27 = vor.u32 %v15975_v63, %v11309_v5 }
 0x436   :  { %7802 = vmatmul.bf16.vlgmr.msra.gmra.mxu3 %v17290_v15  ;;  %v16743_v22 = vld [vmem:[#allocation2 + $0x1c74] sm:$0xf]  ;;  %v13360_v33 = vor.u32 %v16487_v19, %v13357_v17  ;;  %v7570_v48 = vadd.f32 %v7569_v30, %v7557_v13 }
 0x437   :  { %7846 = vmatpush.bf16.msrb.mxu3 %v14768_v34  ;;  %7821 = vmatpush.bf16.msrb.mxu1 %v12592_v44  ;;  %v14381_v24 = vld [vmem:[#allocation2 + $0x1cf0] sm:$0xf0] }
 0x438   :  { %v15943_v34 = vld [vmem:[#allocation2 + $0x374] sm:$0xf]  ;;  %v14384_v37 = vor.u32 %v16743_v22, %v14381_v24  ;;  %v7558_v22 = vpop.f32.mrf.mxu0 }
 0x439   :  { %7834 = vmatpush.bf16.msrb.mxu2 %v13616_v45  ;;  %7809 = vmatpush.bf16.msrb.mxu0 %v11440_v60  ;;  %v11181_v35 = vld [vmem:[#allocation2 + $0x3f0] sm:$0xf0]  ;;  %v7582_v60 = vpop.f32.mrf.mxu2 }
 0x43a   :  { %v16199_v36 = vld [vmem:[#allocation2 + $0xb74] sm:$0xf]  ;;  %v11184_v49 = vor.u32 %v15943_v34, %v11181_v35  ;;  %v7583_v7 = vadd.f32 %v7582_v60, %v7570_v48  ;;  %v7571_v34 = vpop.f32.mrf.mxu1 }
 0x43b   :  { %7847 = vmatpush.bf16.msrb.mxu3 %v14640_v51  ;;  %7822 = vmatpush.bf16.msrb.mxu1 %v12464_v1  ;;  %v12205_v39 = vld [vmem:[#allocation2 + $0xbf0] sm:$0xf0] }
 0x43c   :  { %v16455_v40 = vld [vmem:[#allocation2 + $0x1374] sm:$0xf]  ;;  %v12208_v51 = vor.u32 %v16199_v36, %v12205_v39  ;;  %v17521_v17 = vadd.f32 %v7595_v41, %v7583_v7  ;;  %v12723_v7 = vld [vmem:[#allocation2 + $0xf78] sm:$0xf] }
 0x43d   :  { %7835 = vmatpush.bf16.msrb.mxu2 %v13488_v4  ;;  %v13229_v44 = vld [vmem:[#allocation2 + $0x13f0] sm:$0xf0]  ;;  %7810 = vmatpush.bf16.msrb.mxu0 %v11312_v27 }
 0x43e   :  { %v16711_v45 = vld [vmem:[#allocation2 + $0x1b74] sm:$0xf]  ;;  %v13232_v52 = vor.u32 %v16455_v40, %v13229_v44 }
 0x43f   :  { %7848 = vmatpush.bf16.msrb.mxu3 %v14512_v10  ;;  %v14253_v18 = vld [vmem:[#allocation2 + $0x1bf0] sm:$0xf0]  ;;  %7823 = vmatpush.bf16.msrb.mxu1 %v12336_v32 }
 0x440   :  { %v15911_v53 = vld [vmem:[#allocation2 + $0x274] sm:$0xf]  ;;  %v14256_v63 = vor.u32 %v16711_v45, %v14253_v18 }
 0x441   :  { %7836 = vmatpush.bf16.msrb.mxu2 %v13360_v33  ;;  %v11053_v55 = vld [vmem:[#allocation2 + $0x2f0] sm:$0xf0]  ;;  %7811 = vmatpush.bf16.msrb.mxu0 %v11184_v49 }
 0x442   :  { %v16167_v58 = vld [vmem:[#allocation2 + $0xa74] sm:$0xf]  ;;  %v11056_v19 = vor.u32 %v15911_v53, %v11053_v55  ;;  %v7584_v53 = vpop.f32.mrf.mxu2 }
 0x443   :  { %7849 = vmatpush.bf16.msrb.mxu3 %v14384_v37  ;;  %v12077_v1 = vld [vmem:[#allocation2 + $0xaf0] sm:$0xf0]  ;;  %7824 = vmatpush.bf16.msrb.mxu1 %v12208_v51  ;;  %v16024_v53 = vld [vmem:[#allocation2 + $0x5f4] sm:$0xf0] }
 0x444   :  { %v16423_v4 = vld [vmem:[#allocation2 + $0x1274] sm:$0xf]  ;;  %v12080_v24 = vor.u32 %v16167_v58, %v12077_v1  ;;  %v7597_v1 = vpop.f32.mrf.mxu3 }
 0x445   :  { %v13101_v5 = vld [vmem:[#allocation2 + $0x12f0] sm:$0xf0]  ;;  %7837 = vmatpush.bf16.msrb.mxu2 %v13232_v52  ;;  %7812 = vmatpush.bf16.msrb.mxu0 %v11056_v19  ;;  %v16600_v19 = vld [vmem:[#allocation2 + $0x17f4] sm:$0xf0] }
 0x446   :  { %v16679_v10 = vld [vmem:[#allocation2 + $0x1a74] sm:$0xf]  ;;  %v13104_v27 = vor.u32 %v16423_v4, %v13101_v5  ;;  %v11699_v4 = vld [vmem:[#allocation2 + $0x778] sm:$0xf] }
 0x447   :  { %v14125_v16 = vld [vmem:[#allocation2 + $0x1af0] sm:$0xf0]  ;;  %7850 = vmatpush.bf16.msrb.mxu3 %v14256_v63  ;;  %7825 = vmatpush.bf16.msrb.mxu1 %v12080_v24  ;;  %v16088_v5 = vld [vmem:[#allocation2 + $0x7f4] sm:$0xf0] }
 0x448   :  { %v15879_v28 = vld [vmem:[#allocation2 + $0x174] sm:$0xf]  ;;  %v14128_v35 = vor.u32 %v16679_v10, %v14125_v16  ;;  %v16344_v10 = vld [vmem:[#allocation2 + $0xff4] sm:$0xf0] }
 0x449   :  { %v10925_v32 = vld [vmem:[#allocation2 + $0x1f0] sm:$0xf0]  ;;  %7838 = vmatpush.bf16.msrb.mxu2 %v13104_v27  ;;  %v13747_v16 = vld [vmem:[#allocation2 + $0x1778] sm:$0xf]  ;;  %v12724_v34 = vor.u32 %v16344_v10, %v12723_v7 }
 0x44a   :  { %v16135_v33 = vld [vmem:[#allocation2 + $0x974] sm:$0xf]  ;;  %v10928_v40 = vor.u32 %v15879_v28, %v10925_v32  ;;  %v14771_v27 = vld [vmem:[#allocation2 + $0x1f78] sm:$0xf] }
 0x44b   :  { %v11949_v36 = vld [vmem:[#allocation2 + $0x9f0] sm:$0xf0]  ;;  %7851 = vmatpush.bf16.msrb.mxu3 %v14128_v35  ;;  %v16856_v28 = vld [vmem:[#allocation2 + $0x1ff4] sm:$0xf0]  ;;  %v13748_v35 = vor.u32 %v16600_v19, %v13747_v16 }
 0x44c   :  { %v16391_v13 = vld [vmem:[#allocation2 + $0x1174] sm:$0xf]  ;;  %v11952_v18 = vor.u32 %v16135_v33, %v11949_v36  ;;  %7813 = vmatpush.bf16.msrb.mxu0 %v10928_v40  ;;  %v11700_v33 = vor.u32 %v16088_v5, %v11699_v4  ;;  %v11571_v36 = vld [vmem:[#allocation2 + $0x678] sm:$0xf] }
 0x44d   :  { %v12973_v30 = vld [vmem:[#allocation2 + $0x11f0] sm:$0xf0]  ;;  %v13619_v40 = vld [vmem:[#allocation2 + $0x1678] sm:$0xf] }
 0x44e   :  { %v16647_v37 = vld [vmem:[#allocation2 + $0x1974] sm:$0xf]  ;;  %v12976_v48 = vor.u32 %v16391_v13, %v12973_v30  ;;  %7826 = vmatpush.bf16.msrb.mxu1 %v11952_v18  ;;  %v16056_v13 = vld [vmem:[#allocation2 + $0x6f4] sm:$0xf0] }
 0x44f   :  { %v13997_v39 = vld [vmem:[#allocation2 + $0x19f0] sm:$0xf0]  ;;  %v12595_v30 = vld [vmem:[#allocation2 + $0xe78] sm:$0xf] }
 0x450   :  { %v15847_v44 = vld [vmem:[#allocation2 + $0x74] sm:$0xf]  ;;  %v14000_v55 = vor.u32 %v16647_v37, %v13997_v39  ;;  %7839 = vmatpush.bf16.msrb.mxu2 %v12976_v48  ;;  %v14772_v37 = vor.u32 %v16856_v28, %v14771_v27  ;;  %v16312_v39 = vld [vmem:[#allocation2 + $0xef4] sm:$0xf0]  ;;  %v11572_v48 = vor.u32 %v16056_v13, %v11571_v36  ;;  %v7608_v13 = vpop.f32.mrf.mxu0 }
 0x451   :  { %v10797_v45 = vld [vmem:[#allocation2 + $0xf0] sm:$0xf0]  ;;  %v16824_v18 = vld [vmem:[#allocation2 + $0x1ef4] sm:$0xf0] }
 0x452   :  { %v16103_v49 = vld [vmem:[#allocation2 + $0x874] sm:$0xf]  ;;  %v10800_v41 = vor.u32 %v15847_v44, %v10797_v45  ;;  %7852 = vmatpush.bf16.msrb.mxu3 %v14000_v55  ;;  %v16568_v44 = vld [vmem:[#allocation2 + $0x16f4] sm:$0xf0] }
 0x453   :  { %v11821_v51 = vld [vmem:[#allocation2 + $0x8f0] sm:$0xf0]  ;;  %v14643_v45 = vld [vmem:[#allocation2 + $0x1e78] sm:$0xf] }
 0x454   :  { %v16359_v52 = vld [vmem:[#allocation2 + $0x1074] sm:$0xf]  ;;  %v11824_v22 = vor.u32 %v16103_v49, %v11821_v51  ;;  %7814 = vmatpush.bf16.msrb.mxu0 %v10800_v41  ;;  %v12596_v49 = vor.u32 %v16312_v39, %v12595_v30  ;;  %v13620_v51 = vor.u32 %v16568_v44, %v13619_v40  ;;  %v12467_v55 = vld [vmem:[#allocation2 + $0xd78] sm:$0xf] }
 0x455   :  { %v12845_v58 = vld [vmem:[#allocation2 + $0x10f0] sm:$0xf0]  ;;  %v16536_v1 = vld [vmem:[#allocation2 + $0x15f4] sm:$0xf0] }
 0x456   :  { %v16615_v60 = vld [vmem:[#allocation2 + $0x1874] sm:$0xf]  ;;  %v12848_v24 = vor.u32 %v16359_v52, %v12845_v58  ;;  %7827 = vmatpush.bf16.msrb.mxu1 %v11824_v22  ;;  %v11443_v52 = vld [vmem:[#allocation2 + $0x578] sm:$0xf]  ;;  %v14644_v58 = vor.u32 %v16824_v18, %v14643_v45  ;;  %v7621_v18 = vpop.f32.mrf.mxu1 }
 0x457   :  { %v13869_v63 = vld [vmem:[#allocation2 + $0x18f0] sm:$0xf0]  ;;  %v14515_v4 = vld [vmem:[#allocation2 + $0x1d78] sm:$0xf]  ;;  %7815 = vmatmul.bf16.vlgmr.msrb.gmra.mxu0 %v17285_v9  ;;  %v11444_v7 = vor.u32 %v16024_v53, %v11443_v52 }
 0x458   :  { %v13872_v32 = vor.u32 %v16615_v60, %v13869_v63  ;;  %7840 = vmatpush.bf16.msrb.mxu2 %v12848_v24  ;;  %7859 = vmatpush.bf16.msra.mxu0 %v11700_v33  ;;  %v16280_v60 = vld [vmem:[#allocation2 + $0xdf4] sm:$0xf0]  ;;  %v1140_v24 = vperm.slane %v17515_v54, 1 }
 0x459   :  { %v13491_v63 = vld [vmem:[#allocation2 + $0x1578] sm:$0xf]  ;;  %7828 = vmatmul.bf16.vlgmr.msrb.gmra.mxu1 %v17298_v25  ;;  %v12468_v10 = vor.u32 %v16280_v60, %v12467_v55 }
 0x45a   :  { %7853 = vmatpush.bf16.msrb.mxu3 %v13872_v32  ;;  %7872 = vmatpush.bf16.msra.mxu1 %v12724_v34  ;;  %v16792_v5 = vld [vmem:[#allocation2 + $0x1df4] sm:$0xf0]  ;;  %v13492_v16 = vor.u32 %v16536_v1, %v13491_v63  ;;  %v7609_v45 = vadd.f32 %v7608_v13, %v1140_v24 }
 0x45b   :  { %7841 = vmatmul.bf16.vlgmr.msrb.gmra.mxu2 %v17283_v8  ;;  %v11315_v41 = vld [vmem:[#allocation2 + $0x478] sm:$0xf]  ;;  %v14516_v27 = vor.u32 %v16792_v5, %v14515_v4 }
 0x45c   :  { %7885 = vmatpush.bf16.msra.mxu2 %v13748_v35  ;;  %7860 = vmatpush.bf16.msra.mxu0 %v11572_v48  ;;  %v15992_v19 = vld [vmem:[#allocation2 + $0x4f4] sm:$0xf0] }
 0x45d   :  { %7854 = vmatmul.bf16.vlgmr.msrb.gmra.mxu3 %v17290_v15  ;;  %v12339_v22 = vld [vmem:[#allocation2 + $0xc78] sm:$0xf]  ;;  %v11316_v36 = vor.u32 %v15992_v19, %v11315_v41  ;;  %v7634_v41 = vpop.f32.mrf.mxu2 }
 0x45e   :  { %7898 = vmatpush.bf16.msra.mxu3 %v14772_v37  ;;  %7873 = vmatpush.bf16.msra.mxu1 %v12596_v49  ;;  %v16248_v28 = vld [vmem:[#allocation2 + $0xcf4] sm:$0xf0] }
 0x45f   :  { %v13363_v32 = vld [vmem:[#allocation2 + $0x1478] sm:$0xf]  ;;  %v12340_v30 = vor.u32 %v16248_v28, %v12339_v22 }
 0x460   :  { %7886 = vmatpush.bf16.msra.mxu2 %v13620_v51  ;;  %v16504_v33 = vld [vmem:[#allocation2 + $0x14f4] sm:$0xf0]  ;;  %7861 = vmatpush.bf16.msra.mxu0 %v11444_v7 }
 0x461   :  { %v14387_v34 = vld [vmem:[#allocation2 + $0x1c78] sm:$0xf]  ;;  %v13364_v37 = vor.u32 %v16504_v33, %v13363_v32 }
 0x462   :  { %7899 = vmatpush.bf16.msra.mxu3 %v14644_v58  ;;  %v16760_v35 = vld [vmem:[#allocation2 + $0x1cf4] sm:$0xf0]  ;;  %7874 = vmatpush.bf16.msra.mxu1 %v12468_v10  ;;  %v7622_v58 = vadd.f32 %v7621_v18, %v7609_v45 }
 0x463   :  { %v11187_v39 = vld [vmem:[#allocation2 + $0x378] sm:$0xf]  ;;  %v14388_v48 = vor.u32 %v16760_v35, %v14387_v34  ;;  %v7610_v35 = vpop.f32.mrf.mxu0 }
 0x464   :  { %7887 = vmatpush.bf16.msra.mxu2 %v13492_v16  ;;  %v15960_v40 = vld [vmem:[#allocation2 + $0x3f4] sm:$0xf0]  ;;  %7862 = vmatpush.bf16.msra.mxu0 %v11316_v36  ;;  %v7635_v24 = vadd.f32 %v7634_v41, %v7622_v58  ;;  %v13749_v35 = vld [vmem:[#allocation2 + $0x17f8] sm:$0xf0] }
 0x465   :  { %v12211_v44 = vld [vmem:[#allocation2 + $0xb78] sm:$0xf]  ;;  %v11188_v60 = vor.u32 %v15960_v40, %v11187_v39  ;;  %v7623_v40 = vpop.f32.mrf.mxu1 }
 0x466   :  { %7900 = vmatpush.bf16.msra.mxu3 %v14516_v27  ;;  %v16216_v49 = vld [vmem:[#allocation2 + $0xbf4] sm:$0xf0]  ;;  %7875 = vmatpush.bf16.msra.mxu1 %v12340_v30  ;;  %v7647_v27 = vpop.f32.mrf.mxu3 }
 0x467   :  { %v13235_v51 = vld [vmem:[#allocation2 + $0x1378] sm:$0xf]  ;;  %v12212_v63 = vor.u32 %v16216_v49, %v12211_v44  ;;  %v17528_v34 = vadd.f32 %v7647_v27, %v7635_v24  ;;  %v11701_v24 = vld [vmem:[#allocation2 + $0x7f8] sm:$0xf0] }
 0x468   :  { %v16472_v52 = vld [vmem:[#allocation2 + $0x13f4] sm:$0xf0]  ;;  %7888 = vmatpush.bf16.msra.mxu2 %v13364_v37  ;;  %7863 = vmatpush.bf16.msra.mxu0 %v11188_v60  ;;  %v16328_v27 = vld [vmem:[#allocation2 + $0xf7c] sm:$0xf] }
 0x469   :  { %v14259_v53 = vld [vmem:[#allocation2 + $0x1b78] sm:$0xf]  ;;  %v13236_v1 = vor.u32 %v16472_v52, %v13235_v51 }
 0x46a   :  { %v16728_v55 = vld [vmem:[#allocation2 + $0x1bf4] sm:$0xf0]  ;;  %7901 = vmatpush.bf16.msra.mxu3 %v14388_v48  ;;  %7876 = vmatpush.bf16.msra.mxu1 %v12212_v63 }
 0x46b   :  { %v11059_v4 = vld [vmem:[#allocation2 + $0x278] sm:$0xf]  ;;  %v14260_v10 = vor.u32 %v16728_v55, %v14259_v53 }
 0x46c   :  { %v15928_v5 = vld [vmem:[#allocation2 + $0x2f4] sm:$0xf0]  ;;  %7889 = vmatpush.bf16.msra.mxu2 %v13236_v1 }
 0x46d   :  { %v12083_v7 = vld [vmem:[#allocation2 + $0xa78] sm:$0xf]  ;;  %v11060_v33 = vor.u32 %v15928_v5, %v11059_v4  ;;  %v7636_v5 = vpop.f32.mrf.mxu2 }
 0x46e   :  { %v16184_v16 = vld [vmem:[#allocation2 + $0xaf4] sm:$0xf0]  ;;  %7902 = vmatpush.bf16.msra.mxu3 %v14260_v10  ;;  %v16008_v5 = vld [vmem:[#allocation2 + $0x57c] sm:$0xf] }
 0x46f   :  { %v13107_v19 = vld [vmem:[#allocation2 + $0x1278] sm:$0xf]  ;;  %v12084_v36 = vor.u32 %v16184_v16, %v12083_v7  ;;  %7864 = vmatpush.bf16.msra.mxu0 %v11060_v33  ;;  %v16584_v33 = vld [vmem:[#allocation2 + $0x177c] sm:$0xf] }
 0x470   :  { %v16440_v22 = vld [vmem:[#allocation2 + $0x12f4] sm:$0xf0] }
 0x471   :  { %v14131_v28 = vld [vmem:[#allocation2 + $0x1a78] sm:$0xf]  ;;  %v13108_v13 = vor.u32 %v16440_v22, %v13107_v19  ;;  %7877 = vmatpush.bf16.msra.mxu1 %v12084_v36  ;;  %v7649_v19 = vpop.f32.mrf.mxu3  ;;  %v16072_v22 = vld [vmem:[#allocation2 + $0x77c] sm:$0xf] }
 0x472   :  { %v16696_v32 = vld [vmem:[#allocation2 + $0x1af4] sm:$0xf0]  ;;  %v11704_v40 = vor.u32 %v16072_v22, %v11701_v24  ;;  %v16520_v19 = vld [vmem:[#allocation2 + $0x157c] sm:$0xf] }
 0x473   :  { %v10931_v30 = vld [vmem:[#allocation2 + $0x178] sm:$0xf]  ;;  %v14132_v44 = vor.u32 %v16696_v32, %v14131_v28  ;;  %7890 = vmatpush.bf16.msra.mxu2 %v13108_v13  ;;  %v12725_v32 = vld [vmem:[#allocation2 + $0xff8] sm:$0xf0] }
 0x474   :  { %v15896_v37 = vld [vmem:[#allocation2 + $0x1f4] sm:$0xf0]  ;;  %v13493_v22 = vld [vmem:[#allocation2 + $0x15f8] sm:$0xf0] }
 0x475   :  { %v11955_v39 = vld [vmem:[#allocation2 + $0x978] sm:$0xf]  ;;  %v10932_v52 = vor.u32 %v15896_v37, %v10931_v30  ;;  %7903 = vmatpush.bf16.msra.mxu3 %v14132_v44  ;;  %v16840_v30 = vld [vmem:[#allocation2 + $0x1f7c] sm:$0xf]  ;;  %v12728_v44 = vor.u32 %v16328_v27, %v12725_v32 }
 0x476   :  { %v16152_v45 = vld [vmem:[#allocation2 + $0x9f4] sm:$0xf0]  ;;  %v14773_v37 = vld [vmem:[#allocation2 + $0x1ff8] sm:$0xf0] }
 0x477   :  { %v12979_v18 = vld [vmem:[#allocation2 + $0x1178] sm:$0xf]  ;;  %v11956_v58 = vor.u32 %v16152_v45, %v11955_v39  ;;  %7865 = vmatpush.bf16.msra.mxu0 %v10932_v52  ;;  %v13752_v45 = vor.u32 %v16584_v33, %v13749_v35  ;;  %v12597_v52 = vld [vmem:[#allocation2 + $0xef8] sm:$0xf0]  ;;  %v13496_v35 = vor.u32 %v16520_v19, %v13493_v22 }
 0x478   :  { %v16408_v48 = vld [vmem:[#allocation2 + $0x11f4] sm:$0xf0]  ;;  %v16776_v24 = vld [vmem:[#allocation2 + $0x1d7c] sm:$0xf] }
 0x479   :  { %v14003_v49 = vld [vmem:[#allocation2 + $0x1978] sm:$0xf]  ;;  %v12980_v60 = vor.u32 %v16408_v48, %v12979_v18  ;;  %7878 = vmatpush.bf16.msra.mxu1 %v11956_v58  ;;  %v16040_v18 = vld [vmem:[#allocation2 + $0x67c] sm:$0xf] }
 0x47a   :  { %v16664_v51 = vld [vmem:[#allocation2 + $0x19f4] sm:$0xf0]  ;;  %v11573_v48 = vld [vmem:[#allocation2 + $0x6f8] sm:$0xf0] }
 0x47b   :  { %v10803_v53 = vld [vmem:[#allocation2 + $0x78] sm:$0xf]  ;;  %v14004_v7 = vor.u32 %v16664_v51, %v14003_v49  ;;  %7891 = vmatpush.bf16.msra.mxu2 %v12980_v60  ;;  %v16296_v49 = vld [vmem:[#allocation2 + $0xe7c] sm:$0xf]  ;;  %v14776_v51 = vor.u32 %v16840_v30, %v14773_v37  ;;  %v1141_v30 = vperm.slane %v17515_v54, 2 }
 0x47c   :  { %v15864_v55 = vld [vmem:[#allocation2 + $0xf4] sm:$0xf0]  ;;  %v16808_v58 = vld [vmem:[#allocation2 + $0x1e7c] sm:$0xf] }
 0x47d   :  { %v11827_v63 = vld [vmem:[#allocation2 + $0x878] sm:$0xf]  ;;  %v10804_v28 = vor.u32 %v15864_v55, %v10803_v53  ;;  %7904 = vmatpush.bf16.msra.mxu3 %v14004_v7  ;;  %v16552_v53 = vld [vmem:[#allocation2 + $0x167c] sm:$0xf] }
 0x47e   :  { %v16120_v1 = vld [vmem:[#allocation2 + $0x8f4] sm:$0xf0]  ;;  %v13621_v55 = vld [vmem:[#allocation2 + $0x16f8] sm:$0xf0] }
 0x47f   :  { %v12851_v4 = vld [vmem:[#allocation2 + $0x1078] sm:$0xf]  ;;  %v11828_v36 = vor.u32 %v16120_v1, %v11827_v63  ;;  %7866 = vmatpush.bf16.msra.mxu0 %v10804_v28  ;;  %v14645_v60 = vld [vmem:[#allocation2 + $0x1ef8] sm:$0xf0]  ;;  %v11576_v63 = vor.u32 %v16040_v18, %v11573_v48  ;;  %v12600_v1 = vor.u32 %v16296_v49, %v12597_v52  ;;  %v7660_v49 = vpop.f32.mrf.mxu0 }
 0x480   :  { %v16376_v41 = vld [vmem:[#allocation2 + $0x10f4] sm:$0xf0]  ;;  %v11445_v7 = vld [vmem:[#allocation2 + $0x5f8] sm:$0xf0] }
 0x481   :  { %v13875_v10 = vld [vmem:[#allocation2 + $0x1878] sm:$0xf]  ;;  %v12852_v13 = vor.u32 %v16376_v41, %v12851_v4  ;;  %7879 = vmatpush.bf16.msra.mxu1 %v11828_v36  ;;  %v13624_v4 = vor.u32 %v16552_v53, %v13621_v55  ;;  %v16264_v41 = vld [vmem:[#allocation2 + $0xd7c] sm:$0xf]  ;;  %v11448_v28 = vor.u32 %v16008_v5, %v11445_v7 }
 0x482   :  { %v16632_v16 = vld [vmem:[#allocation2 + $0x18f4] sm:$0xf0]  ;;  %v14517_v27 = vld [vmem:[#allocation2 + $0x1df8] sm:$0xf0]  ;;  %7867 = vmatmul.bf16.vlgmr.msra.gmra.mxu0 %v17285_v9 }
 0x483   :  { %v13876_v39 = vor.u32 %v16632_v16, %v13875_v10  ;;  %7892 = vmatpush.bf16.msra.mxu2 %v12852_v13  ;;  %7911 = vmatpush.bf16.msrb.mxu0 %v11704_v40  ;;  %v14648_v10 = vor.u32 %v16808_v58, %v14645_v60  ;;  %v12469_v16 = vld [vmem:[#allocation2 + $0xdf8] sm:$0xf0]  ;;  %v14520_v37 = vor.u32 %v16776_v24, %v14517_v27 }
 0x484   :  { %v15976_v32 = vld [vmem:[#allocation2 + $0x47c] sm:$0xf]  ;;  %7880 = vmatmul.bf16.vlgmr.msra.gmra.mxu1 %v17298_v25  ;;  %v12472_v33 = vor.u32 %v16264_v41, %v12469_v16  ;;  %v7661_v60 = vadd.f32 %v7660_v49, %v1141_v30 }
 0x485   :  { %7905 = vmatpush.bf16.msra.mxu3 %v13876_v39  ;;  %7924 = vmatpush.bf16.msrb.mxu1 %v12728_v44  ;;  %v11317_v36 = vld [vmem:[#allocation2 + $0x4f8] sm:$0xf0] }
 0x486   :  { %7893 = vmatmul.bf16.vlgmr.msra.gmra.mxu2 %v17283_v8  ;;  %v16232_v13 = vld [vmem:[#allocation2 + $0xc7c] sm:$0xf]  ;;  %v11320_v48 = vor.u32 %v15976_v32, %v11317_v36 }
 0x487   :  { %7937 = vmatpush.bf16.msrb.mxu2 %v13752_v45  ;;  %7912 = vmatpush.bf16.msrb.mxu0 %v11576_v63  ;;  %v12341_v39 = vld [vmem:[#allocation2 + $0xcf8] sm:$0xf0]  ;;  %v7673_v63 = vpop.f32.mrf.mxu1 }
 0x488   :  { %7906 = vmatmul.bf16.vlgmr.msra.gmra.mxu3 %v17290_v15  ;;  %v16488_v40 = vld [vmem:[#allocation2 + $0x147c] sm:$0xf]  ;;  %v7674_v16 = vadd.f32 %v7673_v63, %v7661_v60 }
 0x489   :  { %7950 = vmatpush.bf16.msrb.mxu3 %v14776_v51  ;;  %7925 = vmatpush.bf16.msrb.mxu1 %v12600_v1  ;;  %v13365_v44 = vld [vmem:[#allocation2 + $0x14f8] sm:$0xf0]  ;;  %v12344_v51 = vor.u32 %v16232_v13, %v12341_v39  ;;  %v7699_v39 = vpop.f32.mrf.mxu3 }
 0x48a   :  { %v16744_v45 = vld [vmem:[#allocation2 + $0x1c7c] sm:$0xf]  ;;  %v13368_v52 = vor.u32 %v16488_v40, %v13365_v44 }
 0x48b   :  { %7938 = vmatpush.bf16.msrb.mxu2 %v13624_v4  ;;  %v14389_v18 = vld [vmem:[#allocation2 + $0x1cf8] sm:$0xf0]  ;;  %7913 = vmatpush.bf16.msrb.mxu0 %v11448_v28 }
 0x48c   :  { %v15944_v53 = vld [vmem:[#allocation2 + $0x37c] sm:$0xf]  ;;  %v14392_v1 = vor.u32 %v16744_v45, %v14389_v18 }
 0x48d   :  { %7951 = vmatpush.bf16.msrb.mxu3 %v14648_v10  ;;  %7926 = vmatpush.bf16.msrb.mxu1 %v12472_v33  ;;  %v11189_v55 = vld [vmem:[#allocation2 + $0x3f8] sm:$0xf0]  ;;  %v7686_v33 = vpop.f32.mrf.mxu2 }
 0x48e   :  { %v16200_v58 = vld [vmem:[#allocation2 + $0xb7c] sm:$0xf]  ;;  %v11192_v19 = vor.u32 %v15944_v53, %v11189_v55 }
 0x48f   :  { %7939 = vmatpush.bf16.msrb.mxu2 %v13496_v35  ;;  %v12213_v4 = vld [vmem:[#allocation2 + $0xbf8] sm:$0xf0]  ;;  %7914 = vmatpush.bf16.msrb.mxu0 %v11320_v48  ;;  %v7662_v48 = vpop.f32.mrf.mxu0 }
 0x490   :  { %v16456_v5 = vld [vmem:[#allocation2 + $0x137c] sm:$0xf]  ;;  %v12216_v22 = vor.u32 %v16200_v58, %v12213_v4  ;;  %v7675_v58 = vpop.f32.mrf.mxu1 }
 0x491   :  { %7952 = vmatpush.bf16.msrb.mxu3 %v14520_v37  ;;  %v13237_v7 = vld [vmem:[#allocation2 + $0x13f8] sm:$0xf0]  ;;  %7927 = vmatpush.bf16.msrb.mxu1 %v12344_v51  ;;  %v7687_v37 = vadd.f32 %v7686_v33, %v7674_v16  ;;  %v16887_v58 = vld [vmem:[#allocation4 + $0xf0] sm:$0xff] }
 0x492   :  { %v16712_v41 = vld [vmem:[#allocation2 + $0x1b7c] sm:$0xf]  ;;  %v13240_v24 = vor.u32 %v16456_v5, %v13237_v7 }
 0x493   :  { %v14261_v10 = vld [vmem:[#allocation2 + $0x1bf8] sm:$0xf0]  ;;  %7940 = vmatpush.bf16.msrb.mxu2 %v13368_v52  ;;  %7915 = vmatpush.bf16.msrb.mxu0 %v11192_v19  ;;  %v17535_v18 = vadd.f32 %v7699_v39, %v7687_v37 }
 0x494   :  { %v15912_v27 = vld [vmem:[#allocation2 + $0x27c] sm:$0xf]  ;;  %v14264_v35 = vor.u32 %v16712_v41, %v14261_v10 }
 0x495   :  { %v11061_v28 = vld [vmem:[#allocation2 + $0x2f8] sm:$0xf0]  ;;  %7953 = vmatpush.bf16.msrb.mxu3 %v14392_v1  ;;  %7928 = vmatpush.bf16.msrb.mxu1 %v12216_v22 }
 0x496   :  { %v16168_v32 = vld [vmem:[#allocation2 + $0xa7c] sm:$0xf]  ;;  %v11064_v45 = vor.u32 %v15912_v27, %v11061_v28  ;;  %v7688_v27 = vpop.f32.mrf.mxu2 }
 0x497   :  { %v12085_v36 = vld [vmem:[#allocation2 + $0xaf8] sm:$0xf0]  ;;  %7941 = vmatpush.bf16.msrb.mxu2 %v13240_v24 }
 0x498   :  { %v16424_v13 = vld [vmem:[#allocation2 + $0x127c] sm:$0xf]  ;;  %v12088_v49 = vor.u32 %v16168_v32, %v12085_v36  ;;  %7916 = vmatpush.bf16.msrb.mxu0 %v11064_v45  ;;  %v7701_v36 = vpop.f32.mrf.mxu3 }
 0x499   :  { %v13109_v30 = vld [vmem:[#allocation2 + $0x12f8] sm:$0xf0]  ;;  %7954 = vmatpush.bf16.msrb.mxu3 %v14264_v35 }
 0x49a   :  { %v16680_v40 = vld [vmem:[#allocation2 + $0x1a7c] sm:$0xf]  ;;  %v13112_v51 = vor.u32 %v16424_v13, %v13109_v30  ;;  %7929 = vmatpush.bf16.msrb.mxu1 %v12088_v49 }
 0x49b   :  { %v14133_v44 = vld [vmem:[#allocation2 + $0x1af8] sm:$0xf0] }
 0x49c   :  { %v15880_v52 = vld [vmem:[#allocation2 + $0x17c] sm:$0xf]  ;;  %v14136_v60 = vor.u32 %v16680_v40, %v14133_v44  ;;  %7942 = vmatpush.bf16.msrb.mxu2 %v13112_v51 }
 0x49d   :  { %v10933_v53 = vld [vmem:[#allocation2 + $0x1f8] sm:$0xf0] }
 0x49e   :  { %v16136_v55 = vld [vmem:[#allocation2 + $0x97c] sm:$0xf]  ;;  %v10936_v41 = vor.u32 %v15880_v52, %v10933_v53  ;;  %7955 = vmatpush.bf16.msrb.mxu3 %v14136_v60  ;;  %v16863_v52 = vld [vmem:[#allocation4 + $0x30] sm:$0xff]  ;;  %v16862_v60 = vld [vmem:[#allocation4 + $0x28] sm:$0xff] }
 0x49f   :  { %v11957_v63 = vld [vmem:[#allocation2 + $0x9f8] sm:$0xf0]  ;;  %v16871_v53 = vld [vmem:[#allocation4 + $0x70] sm:$0xff] }
 0x4a0   :  { %v16392_v1 = vld [vmem:[#allocation2 + $0x117c] sm:$0xf]  ;;  %v11960_v10 = vor.u32 %v16136_v55, %v11957_v63  ;;  %7917 = vmatpush.bf16.msrb.mxu0 %v10936_v41  ;;  %v16879_v55 = vld [vmem:[#allocation4 + $0xb0] sm:$0xff]  ;;  %v16870_v63 = vld [vmem:[#allocation4 + $0x68] sm:$0xff]  ;;  %v7712_v41 = vpop.f32.mrf.mxu0 }
 0x4a1   :  { %v12981_v4 = vld [vmem:[#allocation2 + $0x11f8] sm:$0xf0] }
 0x4a2   :  { %v16648_v5 = vld [vmem:[#allocation2 + $0x197c] sm:$0xf]  ;;  %v12984_v16 = vor.u32 %v16392_v1, %v12981_v4  ;;  %7930 = vmatpush.bf16.msrb.mxu1 %v11960_v10  ;;  %v16878_v1 = vld [vmem:[#allocation4 + $0xa8] sm:$0xff]  ;;  %v1142_v4 = vperm.slane %v17515_v54, 3  ;;  %v7725_v10 = vpop.f32.mrf.mxu1 }
 0x4a3   :  { %v14005_v7 = vld [vmem:[#allocation2 + $0x19f8] sm:$0xf0] }
 0x4a4   :  { %v15848_v19 = vld [vmem:[#allocation2 + $0x7c] sm:$0xf]  ;;  %v14008_v28 = vor.u32 %v16648_v5, %v14005_v7  ;;  %7943 = vmatpush.bf16.msrb.mxu2 %v12984_v16  ;;  %v16886_v5 = vld [vmem:[#allocation4 + $0xe8] sm:$0xff]  ;;  %v16861_v7 = vld [vmem:[#allocation4 + $0x20] sm:$0xff] }
 0x4a5   :  { %v10805_v22 = vld [vmem:[#allocation2 + $0xf8] sm:$0xf0]  ;;  %v16885_v16 = vld [vmem:[#allocation4 + $0xe0] sm:$0xff] }
 0x4a6   :  { %v16104_v24 = vld [vmem:[#allocation2 + $0x87c] sm:$0xf]  ;;  %v10808_v37 = vor.u32 %v15848_v19, %v10805_v22  ;;  %7956 = vmatpush.bf16.msrb.mxu3 %v14008_v28 }
 0x4a7   :  { %v11829_v32 = vld [vmem:[#allocation2 + $0x8f8] sm:$0xf0] }
 0x4a8   :  { %v16360_v33 = vld [vmem:[#allocation2 + $0x107c] sm:$0xf]  ;;  %v11832_v39 = vor.u32 %v16104_v24, %v11829_v32  ;;  %7918 = vmatpush.bf16.msrb.mxu0 %v10808_v37  ;;  %v7738_v24 = vpop.f32.mrf.mxu2  ;;  %v7751_v32 = vpop.f32.mrf.mxu3 }
 0x4a9   :  { %v12853_v35 = vld [vmem:[#allocation2 + $0x10f8] sm:$0xf0]  ;;  %v7714_v36 = vpop.f32.mrf.mxu0 }
 0x4aa   :  { %v16616_v13 = vld [vmem:[#allocation2 + $0x187c] sm:$0xf]  ;;  %v12856_v40 = vor.u32 %v16360_v33, %v12853_v35  ;;  %7931 = vmatpush.bf16.msrb.mxu1 %v11832_v39  ;;  %v16859_v33 = vld [vmem:[#allocation4 + $0x10] sm:$0xff]  ;;  %v7727_v37 = vpop.f32.mrf.mxu1  ;;  %v16918_v36 = vld [vmem:[#allocation4 + $0x1e8] sm:$0xff] }
 0x4ab   :  { %v13877_v30 = vld [vmem:[#allocation2 + $0x18f8] sm:$0xf0]  ;;  %7919 = vmatmul.bf16.vlgmr.msrb.gmra.mxu0 %v17285_v9  ;;  %v16869_v9 = vld [vmem:[#allocation4 + $0x60] sm:$0xff]  ;;  %v16883_v39 = vld [vmem:[#allocation4 + $0xd0] sm:$0xff] }
 0x4ac   :  { %v13880_v44 = vor.u32 %v16616_v13, %v13877_v30  ;;  %v16864_v45 = vld [vmem:[#allocation4 + $0x38] sm:$0xff]  ;;  %7944 = vmatpush.bf16.msrb.mxu2 %v12856_v40  ;;  %v16867_v13 = vld [vmem:[#allocation4 + $0x50] sm:$0xff]  ;;  %v16858_v40 = vld [vmem:[#allocation4 + $0x8] sm:$0xff] }
 0x4ad   :  { %v16872_v48 = vld [vmem:[#allocation4 + $0x78] sm:$0xff]  ;;  %10143 = vmatpush.bf16.msra.mxu0 %v16864_v45  ;;  %7932 = vmatmul.bf16.vlgmr.msrb.gmra.mxu1 %v17298_v25  ;;  %v16877_v25 = vld [vmem:[#allocation4 + $0xa0] sm:$0xff]  ;;  %v16875_v30 = vld [vmem:[#allocation4 + $0x90] sm:$0xff] }
 0x4ae   :  { %v16880_v49 = vld [vmem:[#allocation4 + $0xb8] sm:$0xff]  ;;  %7957 = vmatpush.bf16.msrb.mxu3 %v13880_v44  ;;  %10156 = vmatpush.bf16.msra.mxu1 %v16872_v48  ;;  %v16866_v44 = vld [vmem:[#allocation4 + $0x48] sm:$0xff]  ;;  %v16901_v37 = vld [vmem:[#allocation4 + $0x160] sm:$0xff] }
 0x4af   :  { %v16888_v51 = vld [vmem:[#allocation4 + $0xf8] sm:$0xff]  ;;  %7945 = vmatmul.bf16.vlgmr.msrb.gmra.mxu2 %v17283_v8  ;;  %v7713_v8 = vadd.f32 %v7712_v41, %v1142_v4  ;;  %v16874_v45 = vld [vmem:[#allocation4 + $0x88] sm:$0xff]  ;;  %v16881_v4 = vld [vmem:[#allocation4 + $0xc0] sm:$0xff] }
 0x4b0   :  { %10169 = vmatpush.bf16.msra.mxu2 %v16880_v49  ;;  %v16860_v19 = vld [vmem:[#allocation4 + $0x18] sm:$0xff]  ;;  %v7740_v48 = vpop.f32.mrf.mxu2  ;;  %v16882_v49 = vld [vmem:[#allocation4 + $0xc8] sm:$0xff] }
 0x4b1   :  { %10144 = vmatpush.bf16.msra.mxu0 %v16863_v52  ;;  %7958 = vmatmul.bf16.vlgmr.msrb.gmra.mxu3 %v17290_v15  ;;  %v7726_v15 = vadd.f32 %v7725_v10, %v7713_v8  ;;  %v16868_v22 = vld [vmem:[#allocation4 + $0x58] sm:$0xff]  ;;  %v7995_v52 = vmul.f32 0.01, %v17323_v38 }
 0x4b2   :  { %10182 = vmatpush.bf16.msra.mxu3 %v16888_v51  ;;  %10157 = vmatpush.bf16.msra.mxu1 %v16871_v53  ;;  %v16876_v54 = vld [vmem:[#allocation4 + $0x98] sm:$0xff]  ;;  %v7753_v51 = vpop.f32.mrf.mxu3  ;;  %v7996_v53 = vmul.f32 0.01, %v17330_v6 }
 0x4b3   :  { %v16884_v27 = vld [vmem:[#allocation4 + $0xd8] sm:$0xff]  ;;  %v7739_v28 = vadd.f32 %v7738_v24, %v7726_v15  ;;  %v16911_v24 = vld [vmem:[#allocation4 + $0x1b0] sm:$0xff] }
 0x4b4   :  { %10170 = vmatpush.bf16.msra.mxu2 %v16879_v55  ;;  %v7997_v55 = vmul.f32 0.01, %v17337_v0  ;;  %v16904_v41 = vld [vmem:[#allocation4 + $0x178] sm:$0xff] }
 0x4b5   :  { %10145 = vmatpush.bf16.msra.mxu0 %v16862_v60  ;;  %v17542_v35 = vadd.f32 %v7751_v32, %v7739_v28  ;;  %v7998_v60 = vmul.f32 0.01, %v17344_v59  ;;  %v16920_v10 = vld [vmem:[#allocation4 + $0x1f8] sm:$0xff]  ;;  %v16910_v28 = vld [vmem:[#allocation4 + $0x1a8] sm:$0xff] }
 0x4b6   :  { %10183 = vmatpush.bf16.msra.mxu3 %v16887_v58  ;;  %10158 = vmatpush.bf16.msra.mxu1 %v16870_v63  ;;  %v16857_v58 = vld [vmem:[#allocation4] sm:$0xff]  ;;  %v8029_v8 = vsel %vm7965_vm2, %v17337_v0, %v7997_v55  ;;  %v16894_v0 = vld [vmem:[#allocation4 + $0x128] sm:$0xff]  ;;  %v17561_v32 = vld [vmem:[%s17691_s2 + $0x18] sm:$0xff]  ;;  %vm7981_vm2 = vcmp.ge.f32.partialorder %v17469_v62, 0.0 }
 0x4b7   :  { %v16865_v63 = vld [vmem:[#allocation4 + $0x40] sm:$0xff]  ;;  %v16900_v51 = vld [vmem:[#allocation4 + $0x158] sm:$0xff] }
 0x4b8   :  { %10171 = vmatpush.bf16.msra.mxu2 %v16878_v1  ;;  %v16873_v1 = vld [vmem:[#allocation4 + $0x80] sm:$0xff]  ;;  %v16916_v55 = vld [vmem:[#allocation4 + $0x1d8] sm:$0xff] }
 0x4b9   :  { %10146 = vmatpush.bf16.msra.mxu0 %v16861_v7  ;;  %v8027_v7 = vsel %vm7963_vm0, %v17323_v38, %v7995_v52  ;;  %v16903_v38 = vld [vmem:[#allocation4 + $0x170] sm:$0xff]  ;;  %v16908_v52 = vld [vmem:[#allocation4 + $0x198] sm:$0xff]  ;;  %vm7979_vm0 = vcmp.ge.f32.partialorder %v17455_v46, 0.0 }
 0x4ba   :  { %10184 = vmatpush.bf16.msra.mxu3 %v16886_v5  ;;  %10159 = vmatpush.bf16.msra.mxu1 %v16869_v9  ;;  %v16896_v5 = vld [vmem:[#allocation4 + $0x138] sm:$0xff]  ;;  %v8059_v15 = vpack.c.bf16 %v8027_v7, %v8027_v7  ;;  %v16907_v7 = vld [vmem:[#allocation4 + $0x190] sm:$0xff] }
 0x4bb   :  { %v16912_v9 = vld [vmem:[#allocation4 + $0x1b8] sm:$0xff] }
 0x4bc   :  { %10172 = vmatpush.bf16.msra.mxu2 %v16877_v25  ;;  %v8028_v25 = vsel %vm7964_vm1, %v17330_v6, %v7996_v53  ;;  %v16919_v6 = vld [vmem:[#allocation4 + $0x1f0] sm:$0xff]  ;;  %v7790_v53 = vpop.f32.mrf.mxu2  ;;  %vm7980_vm1 = vcmp.ge.f32.partialorder %v17462_v26, 0.0 }
 0x4bd   :  { %10147 = vmatpush.bf16.msra.mxu0 %v16860_v19  ;;  %v16895_v19 = vld [vmem:[#allocation4 + $0x130] sm:$0xff] }
 0x4be   :  { %10185 = vmatpush.bf16.msra.mxu3 %v16885_v16  ;;  %10160 = vmatpush.bf16.msra.mxu1 %v16868_v22  ;;  %v8030_v16 = vsel %vm7966_vm3, %v17344_v59, %v7998_v60  ;;  %v8060_v22 = vpack.c.bf16 %v8028_v25, %v8028_v25  ;;  %v16902_v59 = vld [vmem:[#allocation4 + $0x168] sm:$0xff]  ;;  %v7803_v60 = vpop.f32.mrf.mxu3  ;;  %vm7982_vm3 = vcmp.ge.f32.partialorder %v17476_v43, 0.0 }
 0x4bf   :  { %v16890_v25 = vld [vmem:[#allocation4 + $0x108] sm:$0xff] }
 0x4c0   :  { %10173 = vmatpush.bf16.msra.mxu2 %v16876_v54  ;;  %v8061_v54 = vpack.c.bf16 %v8029_v8, %v8029_v8  ;;  %v16898_v8 = vld [vmem:[#allocation4 + $0x148] sm:$0xff] }
 0x4c1   :  { %10148 = vmatpush.bf16.msra.mxu0 %v16859_v33  ;;  %v1143_v33 = vperm.slane %v17561_v32, 4 }
 0x4c2   :  { %10186 = vmatpush.bf16.msra.mxu3 %v16884_v27  ;;  %10161 = vmatpush.bf16.msra.mxu1 %v16867_v13  ;;  %v8062_v27 = vpack.c.bf16 %v8030_v16, %v8030_v16  ;;  %v16893_v13 = vld [vmem:[#allocation4 + $0x120] sm:$0xff] }
 0x4c4   :  { %10174 = vmatpush.bf16.msra.mxu2 %v16875_v30  ;;  %v7764_v30 = vpop.f32.mrf.mxu0  ;;  %v7792_v16 = vpop.f32.mrf.mxu2 }
 0x4c5   :  { %10149 = vmatpush.bf16.msra.mxu0 %v16858_v40  ;;  %v7765_v40 = vadd.f32 %v7764_v30, %v1143_v33  ;;  %v16940_v16 = vld [vmem:[#allocation4 + $0x298] sm:$0xff] }
 0x4c6   :  { %10187 = vmatpush.bf16.msra.mxu3 %v16883_v39  ;;  %10162 = vmatpush.bf16.msra.mxu1 %v16866_v44  ;;  %v16909_v39 = vld [vmem:[#allocation4 + $0x1a0] sm:$0xff]  ;;  %v7777_v44 = vpop.f32.mrf.mxu1 }
 0x4c7   :  { %v7778_v48 = vadd.f32 %v7777_v44, %v7765_v40 }
 0x4c8   :  { %10175 = vmatpush.bf16.msra.mxu2 %v16874_v45  ;;  %v16917_v45 = vld [vmem:[#allocation4 + $0x1e0] sm:$0xff] }
 0x4c9   :  { %10150 = vmatpush.bf16.msra.mxu0 %v16857_v58  ;;  %v7791_v58 = vadd.f32 %v7790_v53, %v7778_v48  ;;  %v16942_v53 = vld [vmem:[#allocation4 + $0x2a8] sm:$0xff] }
 0x4ca   :  { %10188 = vmatpush.bf16.msra.mxu3 %v16882_v49  ;;  %10163 = vmatpush.bf16.msra.mxu1 %v16865_v63  ;;  %v16892_v49 = vld [vmem:[#allocation4 + $0x118] sm:$0xff]  ;;  %v16891_v63 = vld [vmem:[#allocation4 + $0x110] sm:$0xff] }
 0x4cc   :  { %10176 = vmatpush.bf16.msra.mxu2 %v16873_v1  ;;  %10151 = vmatmul.bf16.vlgmr.msra.gmra.mxu0 %v8059_v15  ;;  %v17564_v1 = vadd.f32 %v7803_v60, %v7791_v58  ;;  %v16914_v15 = vld [vmem:[#allocation4 + $0x1c8] sm:$0xff]  ;;  %v16925_v60 = vld [vmem:[#allocation4 + $0x220] sm:$0xff] }
 0x4cd   :  { %10195 = vmatpush.bf16.msrb.mxu0 %v16896_v5  ;;  %10164 = vmatmul.bf16.vlgmr.msra.gmra.mxu1 %v8060_v22  ;;  %v16899_v5 = vld [vmem:[#allocation4 + $0x150] sm:$0xff]  ;;  %v7999_v22 = vmul.f32 0.01, %v17356_v56  ;;  %v16950_v58 = vld [vmem:[#allocation4 + $0x2e8] sm:$0xff] }
 0x4ce   :  { %10189 = vmatpush.bf16.msra.mxu3 %v16881_v4  ;;  %10208 = vmatpush.bf16.msrb.mxu1 %v16904_v41  ;;  %v7766_v4 = vpop.f32.mrf.mxu0  ;;  %v7779_v41 = vpop.f32.mrf.mxu1 }
 0x4cf   :  { %10177 = vmatmul.bf16.vlgmr.msra.gmra.mxu2 %v8061_v54  ;;  %v8000_v54 = vmul.f32 0.01, %v17363_v57  ;;  %v8031_v33 = vsel %vm7967_vm4, %v17356_v56, %v7999_v22  ;;  %v16935_v56 = vld [vmem:[#allocation4 + $0x270] sm:$0xff]  ;;  %v16933_v4 = vld [vmem:[#allocation4 + $0x260] sm:$0xff]  ;;  %vm7983_vm4 = vcmp.ge.f32.partialorder %v17488_v31, 0.0 }
 0x4d0   :  { %10221 = vmatpush.bf16.msrb.mxu2 %v16912_v9  ;;  %v16915_v9 = vld [vmem:[#allocation4 + $0x1d0] sm:$0xff]  ;;  %v8063_v44 = vpack.c.bf16 %v8031_v33, %v8031_v33  ;;  %v16922_v33 = vld [vmem:[#allocation4 + $0x208] sm:$0xff] }
 0x4d1   :  { %10190 = vmatmul.bf16.vlgmr.msra.gmra.mxu3 %v8062_v27  ;;  %10196 = vmatpush.bf16.msrb.mxu0 %v16895_v19  ;;  %v7805_v19 = vpop.f32.mrf.mxu3  ;;  %v8002_v27 = vmul.f32 0.01, %v17377_v2  ;;  %v8032_v30 = vsel %vm7968_vm5, %v17363_v57, %v8000_v54  ;;  %v16951_v57 = vld [vmem:[#allocation4 + $0x2f0] sm:$0xff]  ;;  %vm7984_vm5 = vcmp.ge.f32.partialorder %v17495_v20, 0.0 }
 0x4d2   :  { %10234 = vmatpush.bf16.msrb.mxu3 %v16920_v10  ;;  %10209 = vmatpush.bf16.msrb.mxu1 %v16903_v38  ;;  %v16906_v10 = vld [vmem:[#allocation4 + $0x188] sm:$0xff]  ;;  %v8001_v38 = vmul.f32 0.01, %v17370_v61  ;;  %v8064_v48 = vpack.c.bf16 %v8032_v30, %v8032_v30  ;;  %v16948_v19 = vld [vmem:[#allocation4 + $0x2d8] sm:$0xff] }
 0x4d3   :  { %v8034_v40 = vsel %vm7970_vm7, %v17377_v2, %v8002_v27  ;;  %v16934_v2 = vld [vmem:[#allocation4 + $0x268] sm:$0xff]  ;;  %vm7986_vm7 = vcmp.ge.f32.partialorder %v17509_v12, 0.0 }
 0x4d4   :  { %10222 = vmatpush.bf16.msrb.mxu2 %v16911_v24  ;;  %v16889_v24 = vld [vmem:[#allocation4 + $0x100] sm:$0xff] }
 0x4d5   :  { %10197 = vmatpush.bf16.msrb.mxu0 %v16894_v0  ;;  %v16905_v0 = vld [vmem:[#allocation4 + $0x180] sm:$0xff] }
 0x4d6   :  { %10235 = vmatpush.bf16.msrb.mxu3 %v16919_v6  ;;  %10210 = vmatpush.bf16.msrb.mxu1 %v16902_v59  ;;  %v16897_v6 = vld [vmem:[#allocation4 + $0x140] sm:$0xff]  ;;  %v7829_v41 = vpop.f32.mrf.mxu1 }
 0x4d7   :  { %v16913_v59 = vld [vmem:[#allocation4 + $0x1c0] sm:$0xff] }
 0x4d8   :  { %10223 = vmatpush.bf16.msrb.mxu2 %v16910_v28  ;;  %v16928_v28 = vld [vmem:[#allocation4 + $0x238] sm:$0xff] }
 0x4d9   :  { %10198 = vmatpush.bf16.msrb.mxu0 %v16893_v13  ;;  %v16944_v13 = vld [vmem:[#allocation4 + $0x2b8] sm:$0xff] }
 0x4da   :  { %10236 = vmatpush.bf16.msrb.mxu3 %v16918_v36  ;;  %10211 = vmatpush.bf16.msrb.mxu1 %v16901_v37  ;;  %v16936_v36 = vld [vmem:[#allocation4 + $0x278] sm:$0xff]  ;;  %v8033_v37 = vsel %vm7969_vm6, %v17370_v61, %v8001_v38  ;;  %v16926_v61 = vld [vmem:[#allocation4 + $0x228] sm:$0xff]  ;;  %v16923_v38 = vld [vmem:[#allocation4 + $0x210] sm:$0xff]  ;;  %vm7985_vm6 = vcmp.ge.f32.partialorder %v17502_v14, 0.0 }
 0x4dc   :  { %10224 = vmatpush.bf16.msrb.mxu2 %v16909_v39  ;;  %v16952_v39 = vld [vmem:[#allocation4 + $0x2f8] sm:$0xff] }
 0x4dd   :  { %10199 = vmatpush.bf16.msrb.mxu0 %v16892_v49  ;;  %v8065_v49 = vpack.c.bf16 %v8033_v37, %v8033_v37  ;;  %v16946_v37 = vld [vmem:[#allocation4 + $0x2c8] sm:$0xff] }
 0x4de   :  { %10237 = vmatpush.bf16.msrb.mxu3 %v16917_v45  ;;  %10212 = vmatpush.bf16.msrb.mxu1 %v16900_v51  ;;  %v16927_v45 = vld [vmem:[#allocation4 + $0x230] sm:$0xff] }
 0x4df   :  { %v16943_v51 = vld [vmem:[#allocation4 + $0x2b0] sm:$0xff] }
 0x4e0   :  { %10225 = vmatpush.bf16.msrb.mxu2 %v16908_v52  ;;  %v8066_v52 = vpack.c.bf16 %v8034_v40, %v8034_v40  ;;  %v7855_v54 = vpop.f32.mrf.mxu3  ;;  %v8003_v40 = vmul.f32 0.01, %v17389_v11 }
 0x4e1   :  { %10200 = vmatpush.bf16.msrb.mxu0 %v16891_v63  ;;  %v7816_v63 = vpop.f32.mrf.mxu0 }
 0x4e2   :  { %10238 = vmatpush.bf16.msrb.mxu3 %v16916_v55  ;;  %10213 = vmatpush.bf16.msrb.mxu1 %v16899_v5  ;;  %v1144_v55 = vperm.slane %v17561_v32, 5  ;;  %v16941_v5 = vld [vmem:[#allocation4 + $0x2a0] sm:$0xff] }
 0x4e4   :  { %10226 = vmatpush.bf16.msrb.mxu2 %v16907_v7  ;;  %v7817_v7 = vadd.f32 %v7816_v63, %v1144_v55 }
 0x4e5   :  { %10201 = vmatpush.bf16.msrb.mxu0 %v16890_v25 }
 0x4e6   :  { %10239 = vmatpush.bf16.msrb.mxu3 %v16915_v9  ;;  %10214 = vmatpush.bf16.msrb.mxu1 %v16898_v8  ;;  %v16949_v9 = vld [vmem:[#allocation4 + $0x2e0] sm:$0xff]  ;;  %v7830_v25 = vadd.f32 %v7829_v41, %v7817_v7  ;;  %v16924_v8 = vld [vmem:[#allocation4 + $0x218] sm:$0xff] }
 0x4e8   :  { %10227 = vmatpush.bf16.msrb.mxu2 %v16906_v10  ;;  %v16932_v10 = vld [vmem:[#allocation4 + $0x258] sm:$0xff] }
 0x4e9   :  { %10202 = vmatpush.bf16.msrb.mxu0 %v16889_v24  ;;  %v7818_v27 = vpop.f32.mrf.mxu0 }
 0x4ea   :  { %10240 = vmatpush.bf16.msrb.mxu3 %v16914_v15  ;;  %10215 = vmatpush.bf16.msrb.mxu1 %v16897_v6  ;;  %v7842_v15 = vpop.f32.mrf.mxu2  ;;  %v16931_v6 = vld [vmem:[#allocation4 + $0x250] sm:$0xff] }
 0x4eb   :  { %v7843_v22 = vadd.f32 %v7842_v15, %v7830_v25  ;;  %v16957_v15 = vld [vmem:[#allocation4 + $0x320] sm:$0xff] }
 0x4ec   :  { %10228 = vmatpush.bf16.msrb.mxu2 %v16905_v0  ;;  %10203 = vmatmul.bf16.vlgmr.msrb.gmra.mxu0 %v8063_v44  ;;  %v16939_v0 = vld [vmem:[#allocation4 + $0x290] sm:$0xff]  ;;  %v8004_v44 = vmul.f32 0.01, %v17396_v23 }
 0x4ed   :  { %10247 = vmatpush.bf16.msra.mxu0 %v16928_v28  ;;  %10216 = vmatmul.bf16.vlgmr.msrb.gmra.mxu1 %v8064_v48  ;;  %v17581_v24 = vadd.f32 %v7855_v54, %v7843_v22  ;;  %v16947_v28 = vld [vmem:[#allocation4 + $0x2d0] sm:$0xff]  ;;  %v16921_v48 = vld [vmem:[#allocation4 + $0x200] sm:$0xff] }
 0x4ee   :  { %10241 = vmatpush.bf16.msrb.mxu3 %v16913_v59  ;;  %10260 = vmatpush.bf16.msra.mxu1 %v16936_v36  ;;  %v7831_v59 = vpop.f32.mrf.mxu1  ;;  %v16930_v36 = vld [vmem:[#allocation4 + $0x248] sm:$0xff]  ;;  %v8036_v55 = vsel %vm7972_vm9, %v17396_v23, %v8004_v44  ;;  %v16983_v23 = vld [vmem:[#allocation4 + $0x3f0] sm:$0xff]  ;;  %v16965_v22 = vld [vmem:[#allocation4 + $0x360] sm:$0xff]  ;;  %vm7988_vm9 = vcmp.ge.f32.partialorder %v17528_v34, 0.0 }
 0x4ef   :  { %10229 = vmatmul.bf16.vlgmr.msrb.gmra.mxu2 %v8065_v49  ;;  %v8006_v49 = vmul.f32 0.01, %v17410_v47  ;;  %v8068_v7 = vpack.c.bf16 %v8036_v55, %v8036_v55  ;;  %v16973_v54 = vld [vmem:[#allocation4 + $0x3a0] sm:$0xff]  ;;  %v16956_v59 = vld [vmem:[#allocation4 + $0x318] sm:$0xff]  ;;  %v8007_v55 = vmul.f32 0.01, %v17422_v3 }
 0x4f0   :  { %10273 = vmatpush.bf16.msra.mxu2 %v16944_v13  ;;  %v16938_v13 = vld [vmem:[#allocation4 + $0x288] sm:$0xff] }
 0x4f1   :  { %10242 = vmatmul.bf16.vlgmr.msrb.gmra.mxu3 %v8066_v52  ;;  %10248 = vmatpush.bf16.msra.mxu0 %v16927_v45  ;;  %v8005_v45 = vmul.f32 0.01, %v17403_v42  ;;  %v16945_v52 = vld [vmem:[#allocation4 + $0x2c0] sm:$0xff]  ;;  %v8038_v63 = vsel %vm7974_vm11, %v17410_v47, %v8006_v49  ;;  %v16966_v47 = vld [vmem:[#allocation4 + $0x368] sm:$0xff]  ;;  %vm7990_vm11 = vcmp.ge.f32.partialorder %v17542_v35, 0.0 }
 0x4f2   :  { %10286 = vmatpush.bf16.msra.mxu3 %v16952_v39  ;;  %10261 = vmatpush.bf16.msra.mxu1 %v16935_v56  ;;  %v7844_v30 = vpop.f32.mrf.mxu2  ;;  %v7857_v39 = vpop.f32.mrf.mxu3  ;;  %v16929_v56 = vld [vmem:[#allocation4 + $0x240] sm:$0xff]  ;;  %v8070_v25 = vpack.c.bf16 %v8038_v63, %v8038_v63 }
 0x4f3   :  { %v16955_v39 = vld [vmem:[#allocation4 + $0x310] sm:$0xff]  ;;  %v16953_v63 = vld [vmem:[#allocation4 + $0x300] sm:$0xff] }
 0x4f4   :  { %10274 = vmatpush.bf16.msra.mxu2 %v16943_v51  ;;  %v16937_v51 = vld [vmem:[#allocation4 + $0x280] sm:$0xff] }
 0x4f5   :  { %10249 = vmatpush.bf16.msra.mxu0 %v16926_v61  ;;  %v8035_v61 = vsel %vm7971_vm8, %v17389_v11, %v8003_v40  ;;  %v16967_v11 = vld [vmem:[#allocation4 + $0x370] sm:$0xff]  ;;  %vm7987_vm8 = vcmp.ge.f32.partialorder %v17521_v17, 0.0 }
 0x4f6   :  { %10287 = vmatpush.bf16.msra.mxu3 %v16951_v57  ;;  %10262 = vmatpush.bf16.msra.mxu1 %v16934_v2  ;;  %v16960_v57 = vld [vmem:[#allocation4 + $0x338] sm:$0xff] }
 0x4f7   :  { %v16968_v2 = vld [vmem:[#allocation4 + $0x378] sm:$0xff] }
 0x4f8   :  { %10275 = vmatpush.bf16.msra.mxu2 %v16942_v53  ;;  %v16976_v53 = vld [vmem:[#allocation4 + $0x3b8] sm:$0xff] }
 0x4f9   :  { %10250 = vmatpush.bf16.msra.mxu0 %v16925_v60  ;;  %v16984_v60 = vld [vmem:[#allocation4 + $0x3f8] sm:$0xff] }
 0x4fa   :  { %10288 = vmatpush.bf16.msra.mxu3 %v16950_v58  ;;  %10263 = vmatpush.bf16.msra.mxu1 %v16933_v4  ;;  %v8037_v58 = vsel %vm7973_vm10, %v17403_v42, %v8005_v45  ;;  %v8067_v4 = vpack.c.bf16 %v8035_v61, %v8035_v61  ;;  %v16958_v42 = vld [vmem:[#allocation4 + $0x328] sm:$0xff]  ;;  %v16963_v45 = vld [vmem:[#allocation4 + $0x350] sm:$0xff]  ;;  %vm7989_vm10 = vcmp.ge.f32.partialorder %v17535_v18, 0.0 }
 0x4fb   :  { %v8069_v41 = vpack.c.bf16 %v8037_v58, %v8037_v58  ;;  %v8008_v58 = vmul.f32 0.01, %v17429_v29 }
 0x4fc   :  { %10276 = vmatpush.bf16.msra.mxu2 %v16941_v5  ;;  %v16959_v5 = vld [vmem:[#allocation4 + $0x330] sm:$0xff] }
 0x4fd   :  { %10251 = vmatpush.bf16.msra.mxu0 %v16924_v8  ;;  %v16974_v8 = vld [vmem:[#allocation4 + $0x3a8] sm:$0xff] }
 0x4fe   :  { %10289 = vmatpush.bf16.msra.mxu3 %v16949_v9  ;;  %10264 = vmatpush.bf16.msra.mxu1 %v16932_v10  ;;  %v16975_v9 = vld [vmem:[#allocation4 + $0x3b0] sm:$0xff]  ;;  %v1145_v10 = vperm.slane %v17561_v32, 6 }
 0x500   :  { %10277 = vmatpush.bf16.msra.mxu2 %v16940_v16  ;;  %v16982_v16 = vld [vmem:[#allocation4 + $0x3e8] sm:$0xff] }
 0x501   :  { %10252 = vmatpush.bf16.msra.mxu0 %v16923_v38  ;;  %v7881_v27 = vpop.f32.mrf.mxu1 }
 0x502   :  { %10290 = vmatpush.bf16.msra.mxu3 %v16948_v19  ;;  %10265 = vmatpush.bf16.msra.mxu1 %v16931_v6  ;;  %v7868_v19 = vpop.f32.mrf.mxu0  ;;  %v16981_v6 = vld [vmem:[#allocation4 + $0x3e0] sm:$0xff] }
 0x503   :  { %v7869_v38 = vadd.f32 %v7868_v19, %v1145_v10 }
 0x504   :  { %10278 = vmatpush.bf16.msra.mxu2 %v16939_v0 }
 0x505   :  { %10253 = vmatpush.bf16.msra.mxu0 %v16922_v33  ;;  %v7882_v0 = vadd.f32 %v7881_v27, %v7869_v38  ;;  %v16972_v33 = vld [vmem:[#allocation4 + $0x398] sm:$0xff]  ;;  %v16998_v27 = vld [vmem:[#allocation4 + $0x468] sm:$0xff] }
 0x506   :  { %10291 = vmatpush.bf16.msra.mxu3 %v16947_v28  ;;  %10266 = vmatpush.bf16.msra.mxu1 %v16930_v36  ;;  %v16964_v28 = vld [vmem:[#allocation4 + $0x358] sm:$0xff] }
 0x508   :  { %10279 = vmatpush.bf16.msra.mxu2 %v16938_v13  ;;  %v16980_v13 = vld [vmem:[#allocation4 + $0x3d8] sm:$0xff] }
 0x509   :  { %10254 = vmatpush.bf16.msra.mxu0 %v16921_v48  ;;  %v7894_v36 = vpop.f32.mrf.mxu2  ;;  %v16971_v48 = vld [vmem:[#allocation4 + $0x390] sm:$0xff]  ;;  %v7883_v49 = vpop.f32.mrf.mxu1 }
 0x50a   :  { %10292 = vmatpush.bf16.msra.mxu3 %v16946_v37  ;;  %10267 = vmatpush.bf16.msra.mxu1 %v16929_v56  ;;  %v7895_v30 = vadd.f32 %v7894_v36, %v7882_v0  ;;  %v7870_v44 = vpop.f32.mrf.mxu0  ;;  %v16979_v56 = vld [vmem:[#allocation4 + $0x3d0] sm:$0xff]  ;;  %v17014_v0 = vld [vmem:[#allocation4 + $0x4e8] sm:$0xff] }
 0x50b   :  { %v7907_v37 = vpop.f32.mrf.mxu3  ;;  %v16996_v44 = vld [vmem:[#allocation4 + $0x458] sm:$0xff] }
 0x50c   :  { %10280 = vmatpush.bf16.msra.mxu2 %v16937_v51  ;;  %10255 = vmatmul.bf16.vlgmr.msra.gmra.mxu0 %v8067_v4  ;;  %v17598_v40 = vadd.f32 %v7907_v37, %v7895_v30  ;;  %v16954_v51 = vld [vmem:[#allocation4 + $0x308] sm:$0xff]  ;;  %v8010_v4 = vmul.f32 0.01, %v17443_v21  ;;  %v17005_v30 = vld [vmem:[#allocation4 + $0x4a0] sm:$0xff] }
 0x50d   :  { %10299 = vmatpush.bf16.msrb.mxu0 %v16960_v57  ;;  %10268 = vmatmul.bf16.vlgmr.msra.gmra.mxu1 %v8068_v7  ;;  %v16970_v57 = vld [vmem:[#allocation4 + $0x388] sm:$0xff]  ;;  %v16969_v7 = vld [vmem:[#allocation4 + $0x380] sm:$0xff] }
 0x50e   :  { %10293 = vmatpush.bf16.msra.mxu3 %v16945_v52  ;;  %10312 = vmatpush.bf16.msrb.mxu1 %v16968_v2  ;;  %v16962_v52 = vld [vmem:[#allocation4 + $0x348] sm:$0xff]  ;;  %v8042_v10 = vsel %vm7978_vm15, %v17443_v21, %v8010_v4  ;;  %v1146_v21 = vperm.slane %v17561_v32, 7  ;;  %v17013_v37 = vld [vmem:[#allocation4 + $0x4e0] sm:$0xff]  ;;  %v16988_v32 = vld [vmem:[#allocation4 + $0x418] sm:$0xff] }
 0x50f   :  { %10281 = vmatmul.bf16.vlgmr.msra.gmra.mxu2 %v8069_v41  ;;  %v16978_v2 = vld [vmem:[#allocation4 + $0x3c8] sm:$0xff]  ;;  %v16977_v41 = vld [vmem:[#allocation4 + $0x3c0] sm:$0xff]  ;;  %v8074_v38 = vpack.c.bf16 %v8042_v10, %v8042_v10 }
 0x510   :  { %10325 = vmatpush.bf16.msrb.mxu2 %v16976_v53  ;;  %v17002_v4 = vld [vmem:[#allocation4 + $0x488] sm:$0xff]  ;;  %v17009_v10 = vld [vmem:[#allocation4 + $0x4c0] sm:$0xff] }
 0x511   :  { %10294 = vmatmul.bf16.vlgmr.msra.gmra.mxu3 %v8070_v25  ;;  %10300 = vmatpush.bf16.msrb.mxu0 %v16959_v5  ;;  %v7896_v61 = vpop.f32.mrf.mxu2  ;;  %v16961_v5 = vld [vmem:[#allocation4 + $0x340] sm:$0xff]  ;;  %v17000_v25 = vld [vmem:[#allocation4 + $0x478] sm:$0xff] }
 0x512   :  { %10338 = vmatpush.bf16.msrb.mxu3 %v16984_v60  ;;  %10313 = vmatpush.bf16.msrb.mxu1 %v16967_v11  ;;  %v8009_v60 = vmul.f32 0.01, %v17436_v50  ;;  %v16992_v11 = vld [vmem:[#allocation4 + $0x438] sm:$0xff] }
 0x513   :  { %v7909_v53 = vpop.f32.mrf.mxu3 }
 0x514   :  { %10326 = vmatpush.bf16.msrb.mxu2 %v16975_v9  ;;  %v8039_v9 = vsel %vm7975_vm12, %v17422_v3, %v8007_v55  ;;  %v16999_v3 = vld [vmem:[#allocation4 + $0x470] sm:$0xff]  ;;  %vm7991_vm12 = vcmp.ge.f32.partialorder %v17564_v1, 0.0 }
 0x515   :  { %10301 = vmatpush.bf16.msrb.mxu0 %v16958_v42  ;;  %v8040_v42 = vsel %vm7976_vm13, %v17429_v29, %v8008_v58  ;;  %v17015_v29 = vld [vmem:[#allocation4 + $0x4f0] sm:$0xff]  ;;  %vm7992_vm13 = vcmp.ge.f32.partialorder %v17581_v24, 0.0 }
 0x516   :  { %10339 = vmatpush.bf16.msrb.mxu3 %v16983_v23  ;;  %10314 = vmatpush.bf16.msrb.mxu1 %v16966_v47  ;;  %v17008_v23 = vld [vmem:[#allocation4 + $0x4b8] sm:$0xff]  ;;  %v8041_v47 = vsel %vm7977_vm14, %v17436_v50, %v8009_v60  ;;  %v8072_v19 = vpack.c.bf16 %v8040_v42, %v8040_v42  ;;  %v16990_v50 = vld [vmem:[#allocation4 + $0x428] sm:$0xff]  ;;  %v17003_v53 = vld [vmem:[#allocation4 + $0x490] sm:$0xff]  ;;  %v8014_v42 = vmul.f32 0.01, %v17476_v43  ;;  %vm7993_vm14 = vcmp.ge.f32.partialorder %v17598_v40, 0.0 }
 0x517   :  { %v17011_v58 = vld [vmem:[#allocation4 + $0x4d0] sm:$0xff]  ;;  %v16986_v60 = vld [vmem:[#allocation4 + $0x408] sm:$0xff] }
 0x518   :  { %10327 = vmatpush.bf16.msrb.mxu2 %v16974_v8  ;;  %v17016_v8 = vld [vmem:[#allocation4 + $0x4f8] sm:$0xff] }
 0x519   :  { %10302 = vmatpush.bf16.msrb.mxu0 %v16957_v15  ;;  %v16991_v15 = vld [vmem:[#allocation4 + $0x430] sm:$0xff] }
 0x51a   :  { %10340 = vmatpush.bf16.msrb.mxu3 %v16982_v16  ;;  %10315 = vmatpush.bf16.msrb.mxu1 %v16965_v22  ;;  %v8071_v16 = vpack.c.bf16 %v8039_v9, %v8039_v9  ;;  %v8073_v22 = vpack.c.bf16 %v8041_v47, %v8041_v47  ;;  %v8012_v9 = vmul.f32 0.01, %v17462_v26  ;;  %v16993_v47 = vld [vmem:[#allocation4 + $0x440] sm:$0xff] }
 0x51c   :  { %10328 = vmatpush.bf16.msrb.mxu2 %v16973_v54  ;;  %v17007_v54 = vld [vmem:[#allocation4 + $0x4b0] sm:$0xff] }
 0x51d   :  { %10303 = vmatpush.bf16.msrb.mxu0 %v16956_v59 }
 0x51e   :  { %10341 = vmatpush.bf16.msrb.mxu3 %v16981_v6  ;;  %10316 = vmatpush.bf16.msrb.mxu1 %v16964_v28  ;;  %v17006_v6 = vld [vmem:[#allocation4 + $0x4a8] sm:$0xff]  ;;  %v16989_v28 = vld [vmem:[#allocation4 + $0x420] sm:$0xff] }
 0x520   :  { %10329 = vmatpush.bf16.msrb.mxu2 %v16972_v33 }
 0x521   :  { %10304 = vmatpush.bf16.msrb.mxu0 %v16955_v39 }
 0x522   :  { %10342 = vmatpush.bf16.msrb.mxu3 %v16980_v13  ;;  %10317 = vmatpush.bf16.msrb.mxu1 %v16963_v45  ;;  %v16997_v13 = vld [vmem:[#allocation4 + $0x460] sm:$0xff]  ;;  %v17004_v45 = vld [vmem:[#allocation4 + $0x498] sm:$0xff] }
 0x524   :  { %10330 = vmatpush.bf16.msrb.mxu2 %v16971_v48  ;;  %v17012_v48 = vld [vmem:[#allocation4 + $0x4d8] sm:$0xff] }
 0x525   :  { %10305 = vmatpush.bf16.msrb.mxu0 %v16954_v51 }
 0x526   :  { %10343 = vmatpush.bf16.msrb.mxu3 %v16979_v56  ;;  %10318 = vmatpush.bf16.msrb.mxu1 %v16962_v52 }
 0x528   :  { %10331 = vmatpush.bf16.msrb.mxu2 %v16970_v57  ;;  %v7920_v59 = vpop.f32.mrf.mxu0  ;;  %v16987_v57 = vld [vmem:[#allocation4 + $0x410] sm:$0xff] }
 0x529   :  { %10306 = vmatpush.bf16.msrb.mxu0 %v16953_v63  ;;  %v7921_v33 = vadd.f32 %v7920_v59, %v1146_v21  ;;  %v16994_v63 = vld [vmem:[#allocation4 + $0x448] sm:$0xff]  ;;  %v17023_v21 = vld [vmem:[#allocation4 + $0x530] sm:$0xff] }
 0x52a   :  { %10344 = vmatpush.bf16.msrb.mxu3 %v16978_v2  ;;  %10319 = vmatpush.bf16.msrb.mxu1 %v16961_v5  ;;  %v7933_v36 = vpop.f32.mrf.mxu1  ;;  %v16995_v2 = vld [vmem:[#allocation4 + $0x450] sm:$0xff]  ;;  %v17010_v5 = vld [vmem:[#allocation4 + $0x4c8] sm:$0xff] }
 0x52b   :  { %v7934_v39 = vadd.f32 %v7933_v36, %v7921_v33  ;;  %v17038_v33 = vld [vmem:[#allocation4 + $0x5a8] sm:$0xff] }
 0x52c   :  { %10332 = vmatpush.bf16.msrb.mxu2 %v16969_v7  ;;  %10307 = vmatmul.bf16.vlgmr.msrb.gmra.mxu0 %v8071_v16  ;;  %v17024_v16 = vld [vmem:[#allocation4 + $0x538] sm:$0xff]  ;;  %v17046_v36 = vld [vmem:[#allocation4 + $0x5e8] sm:$0xff] }
 0x52d   :  { %10351 = vmatpush.bf16.msra.mxu0 %v16992_v11  ;;  %10320 = vmatmul.bf16.vlgmr.msrb.gmra.mxu1 %v8072_v19  ;;  %v17032_v19 = vld [vmem:[#allocation4 + $0x578] sm:$0xff] }
 0x52e   :  { %10345 = vmatpush.bf16.msrb.mxu3 %v16977_v41  ;;  %10364 = vmatpush.bf16.msra.mxu1 %v17000_v25  ;;  %v8011_v41 = vmul.f32 0.01, %v17455_v46  ;;  %v8013_v25 = vmul.f32 0.01, %v17469_v62 }
 0x52f   :  { %10333 = vmatmul.bf16.vlgmr.msrb.gmra.mxu2 %v8073_v22  ;;  %v17040_v22 = vld [vmem:[#allocation4 + $0x5b8] sm:$0xff] }
 0x530   :  { %10377 = vmatpush.bf16.msra.mxu2 %v17008_v23  ;;  %v7922_v52 = vpop.f32.mrf.mxu0  ;;  %v16985_v23 = vld [vmem:[#allocation4 + $0x400] sm:$0xff] }
 0x531   :  { %10346 = vmatmul.bf16.vlgmr.msrb.gmra.mxu3 %v8074_v38  ;;  %10352 = vmatpush.bf16.msra.mxu0 %v16991_v15  ;;  %v8043_v15 = vsel %vm7979_vm0, %v17455_v46, %v8011_v41  ;;  %v17048_v38 = vld [vmem:[#allocation4 + $0x5f8] sm:$0xff]  ;;  %v17031_v46 = vld [vmem:[#allocation4 + $0x570] sm:$0xff]  ;;  %v17018_v41 = vld [vmem:[#allocation4 + $0x508] sm:$0xff] }
 0x532   :  { %10390 = vmatpush.bf16.msra.mxu3 %v17016_v8  ;;  %10365 = vmatpush.bf16.msra.mxu1 %v16999_v3  ;;  %v7946_v49 = vpop.f32.mrf.mxu2  ;;  %v7935_v61 = vpop.f32.mrf.mxu1  ;;  %v17001_v8 = vld [vmem:[#allocation4 + $0x480] sm:$0xff]  ;;  %v8044_v3 = vsel %vm7980_vm1, %v17462_v26, %v8012_v9  ;;  %v17047_v26 = vld [vmem:[#allocation4 + $0x5f0] sm:$0xff]  ;;  %v17044_v52 = vld [vmem:[#allocation4 + $0x5d8] sm:$0xff] }
 0x533   :  { %v7947_v56 = vadd.f32 %v7946_v49, %v7934_v39  ;;  %v17021_v39 = vld [vmem:[#allocation4 + $0x520] sm:$0xff]  ;;  %v17020_v49 = vld [vmem:[#allocation4 + $0x518] sm:$0xff]  ;;  %v17034_v9 = vld [vmem:[#allocation4 + $0x588] sm:$0xff] }
 0x534   :  { %10378 = vmatpush.bf16.msra.mxu2 %v17007_v54  ;;  %v7959_v51 = vpop.f32.mrf.mxu3  ;;  %v8045_v54 = vsel %vm7981_vm2, %v17469_v62, %v8013_v25  ;;  %v17022_v62 = vld [vmem:[#allocation4 + $0x528] sm:$0xff] }
 0x535   :  { %10353 = vmatpush.bf16.msra.mxu0 %v16990_v50  ;;  %v17615_v55 = vadd.f32 %v7959_v51, %v7947_v56  ;;  %v8075_v50 = vpack.c.bf16 %v8043_v15, %v8043_v15  ;;  %v17028_v56 = vld [vmem:[#allocation4 + $0x558] sm:$0xff]  ;;  %v17042_v25 = vld [vmem:[#allocation4 + $0x5c8] sm:$0xff]  ;;  %v8018_v15 = vmul.f32 0.01, %v17509_v12 }
 0x536   :  { %10391 = vmatpush.bf16.msra.mxu3 %v17015_v29  ;;  %10366 = vmatpush.bf16.msra.mxu1 %v16998_v27  ;;  %v8046_v29 = vsel %vm7982_vm3, %v17476_v43, %v8014_v42  ;;  %v8076_v27 = vpack.c.bf16 %v8044_v3, %v8044_v3  ;;  %v17128_v43 = vld [vmem:[%s17693_s4] ss:$0 sm:$0xff]  ;;  %v17036_v51 = vld [vmem:[#allocation4 + $0x598] sm:$0xff]  ;;  %v8015_v42 = vmul.f32 0.01, %v17488_v31 }
 0x537   :  { %v8078_v59 = vpack.c.bf16 %v8046_v29, %v8046_v29  ;;  %v17041_v3 = vld [vmem:[#allocation4 + $0x5c0] sm:$0xff]  ;;  %v17064_v29 = vld [vmem:[#allocation4 + $0x678] sm:$0xff]  ;;  %vm7994_vm15 = vcmp.ge.f32.partialorder %v17615_v55, 0.0 }
 0x538   :  { %10379 = vmatpush.bf16.msra.mxu2 %v17006_v6  ;;  %v8077_v6 = vpack.c.bf16 %v8045_v54, %v8045_v54  ;;  %v17056_v54 = vld [vmem:[#allocation4 + $0x638] sm:$0xff] }
 0x539   :  { %10354 = vmatpush.bf16.msra.mxu0 %v16989_v28  ;;  %v17030_v28 = vld [vmem:[#allocation4 + $0x568] sm:$0xff] }
 0x53a   :  { %10392 = vmatpush.bf16.msra.mxu3 %v17014_v0  ;;  %10367 = vmatpush.bf16.msra.mxu1 %v16997_v13  ;;  %v7948_v7 = vpop.f32.mrf.mxu2  ;;  %v17039_v0 = vld [vmem:[#allocation4 + $0x5b0] sm:$0xff] }
 0x53b   :  { %v17043_v7 = vld [vmem:[#allocation4 + $0x5d0] sm:$0xff] }
 0x53c   :  { %10380 = vmatpush.bf16.msra.mxu2 %v17005_v30  ;;  %v7961_v11 = vpop.f32.mrf.mxu3 }
 0x53d   :  { %10355 = vmatpush.bf16.msra.mxu0 %v16988_v32  ;;  %v17029_v32 = vld [vmem:[#allocation4 + $0x560] sm:$0xff]  ;;  %v17026_v11 = vld [vmem:[#allocation4 + $0x548] sm:$0xff] }
 0x53e   :  { %10393 = vmatpush.bf16.msra.mxu3 %v17013_v37  ;;  %10368 = vmatpush.bf16.msra.mxu1 %v16996_v44  ;;  %v17037_v44 = vld [vmem:[#allocation4 + $0x5a0] sm:$0xff] }
 0x540   :  { %10381 = vmatpush.bf16.msra.mxu2 %v17004_v45 }
 0x541   :  { %10356 = vmatpush.bf16.msra.mxu0 %v16987_v57 }
 0x542   :  { %10394 = vmatpush.bf16.msra.mxu3 %v17012_v48  ;;  %10369 = vmatpush.bf16.msra.mxu1 %v16995_v2  ;;  %v17045_v48 = vld [vmem:[#allocation4 + $0x5e0] sm:$0xff] }
 0x544   :  { %10382 = vmatpush.bf16.msra.mxu2 %v17003_v53 }
 0x545   :  { %10357 = vmatpush.bf16.msra.mxu0 %v16986_v60  ;;  %v17019_v60 = vld [vmem:[#allocation4 + $0x510] sm:$0xff] }
 0x546   :  { %10395 = vmatpush.bf16.msra.mxu3 %v17011_v58  ;;  %10370 = vmatpush.bf16.msra.mxu1 %v16994_v63 }
 0x548   :  { %10383 = vmatpush.bf16.msra.mxu2 %v17002_v4  ;;  %v17027_v4 = vld [vmem:[#allocation4 + $0x550] sm:$0xff] }
 0x549   :  { %10358 = vmatpush.bf16.msra.mxu0 %v16985_v23  ;;  %v10152_v13 = vpop.f32.mrf.mxu0 }
 0x54a   :  { %10396 = vmatpush.bf16.msra.mxu3 %v17010_v5  ;;  %10371 = vmatpush.bf16.msra.mxu1 %v16993_v47  ;;  %v10153_v30 = vadd.f32 %v17128_v43, %v10152_v13  ;;  %v10165_v37 = vpop.f32.mrf.mxu1  ;;  %v17035_v5 = vld [vmem:[#allocation4 + $0x590] sm:$0xff] }
 0x54b   :  { %v17071_v43 = vld [vmem:[#allocation4 + $0x6b0] sm:$0xff] }
 0x54c   :  { %10384 = vmatpush.bf16.msra.mxu2 %v17001_v8  ;;  %10359 = vmatmul.bf16.vlgmr.msra.gmra.mxu0 %v8075_v50  ;;  %v10166_v45 = vadd.f32 %v10165_v37, %v10153_v30  ;;  %v8016_v8 = vmul.f32 0.01, %v17495_v20  ;;  %v17072_v50 = vld [vmem:[#allocation4 + $0x6b8] sm:$0xff] }
 0x54d   :  { %10403 = vmatpush.bf16.msrb.mxu0 %v17024_v16  ;;  %10372 = vmatmul.bf16.vlgmr.msra.gmra.mxu1 %v8076_v27  ;;  %v17017_v16 = vld [vmem:[#allocation4 + $0x500] sm:$0xff] }
 0x54e   :  { %10397 = vmatpush.bf16.msra.mxu3 %v17009_v10  ;;  %10416 = vmatpush.bf16.msrb.mxu1 %v17032_v19  ;;  %v8017_v10 = vmul.f32 0.01, %v17502_v14  ;;  %v17025_v19 = vld [vmem:[#allocation4 + $0x540] sm:$0xff] }
 0x54f   :  { %10385 = vmatmul.bf16.vlgmr.msra.gmra.mxu2 %v8077_v6  ;;  %v17080_v6 = vld [vmem:[#allocation4 + $0x6f8] sm:$0xff] }
 0x550   :  { %10429 = vmatpush.bf16.msrb.mxu2 %v17040_v22  ;;  %v17033_v22 = vld [vmem:[#allocation4 + $0x580] sm:$0xff]  ;;  %v8049_v27 = vsel %vm7985_vm6, %v17502_v14, %v8017_v10  ;;  %v17054_v14 = vld [vmem:[#allocation4 + $0x628] sm:$0xff]  ;;  %v8021_v10 = vmul.f32 0.01, %v17535_v18 }
 0x551   :  { %10398 = vmatmul.bf16.vlgmr.msra.gmra.mxu3 %v8078_v59  ;;  %10404 = vmatpush.bf16.msrb.mxu0 %v17023_v21  ;;  %v10154_v53 = vpop.f32.mrf.mxu0  ;;  %v8048_v21 = vsel %vm7984_vm5, %v17495_v20, %v8016_v8  ;;  %v17055_v59 = vld [vmem:[#allocation4 + $0x630] sm:$0xff]  ;;  %v8020_v8 = vmul.f32 0.01, %v17528_v34 }
 0x552   :  { %10442 = vmatpush.bf16.msrb.mxu3 %v17048_v38  ;;  %10417 = vmatpush.bf16.msrb.mxu1 %v17031_v46  ;;  %v10178_v57 = vpop.f32.mrf.mxu2  ;;  %v10167_v58 = vpop.f32.mrf.mxu1  ;;  %v8047_v38 = vsel %vm7983_vm4, %v17488_v31, %v8015_v42  ;;  %v8050_v46 = vsel %vm7986_vm7, %v17509_v12, %v8018_v15  ;;  %v17063_v31 = vld [vmem:[#allocation4 + $0x670] sm:$0xff]  ;;  %v17062_v12 = vld [vmem:[#allocation4 + $0x668] sm:$0xff]  ;;  %v8019_v42 = vmul.f32 0.01, %v17521_v17  ;;  %v8022_v15 = vmul.f32 0.01, %v17542_v35 }
 0x553   :  { %v10179_v61 = vadd.f32 %v10178_v57, %v10166_v45  ;;  %v17079_v20 = vld [vmem:[#allocation4 + $0x6f0] sm:$0xff] }
 0x554   :  { %10430 = vmatpush.bf16.msrb.mxu2 %v17039_v0  ;;  %v10191_v2 = vpop.f32.mrf.mxu3  ;;  %v8079_v0 = vpack.c.bf16 %v8047_v38, %v8047_v38  ;;  %v8051_v38 = vsel %vm7987_vm8, %v17521_v17, %v8019_v42  ;;  %v17095_v17 = vld [vmem:[#allocation4 + $0x770] sm:$0xff]  ;;  %v8026_v42 = vmul.f32 0.01, %v17615_v55 }
 0x555   :  { %10405 = vmatpush.bf16.msrb.mxu0 %v17022_v62  ;;  %v17634_v63 = vadd.f32 %v10191_v2, %v10179_v61  ;;  %v8081_v62 = vpack.c.bf16 %v8049_v27, %v8049_v27  ;;  %v8053_v27 = vsel %vm7989_vm10, %v17535_v18, %v8021_v10  ;;  %v17086_v18 = vld [vmem:[#allocation4 + $0x728] sm:$0xff]  ;;  %v17097_v10 = vld [vmem:[#allocation4 + $0x780] sm:$0xff] }
 0x556   :  { %10443 = vmatpush.bf16.msrb.mxu3 %v17047_v26  ;;  %10418 = vmatpush.bf16.msrb.mxu1 %v17030_v28  ;;  %v8080_v26 = vpack.c.bf16 %v8048_v21, %v8048_v21  ;;  %v8082_v28 = vpack.c.bf16 %v8050_v46, %v8050_v46  ;;  %v8052_v21 = vsel %vm7988_vm9, %v17528_v34, %v8020_v8  ;;  %v17111_v34 = vld [vmem:[#allocation4 + $0x7f0] sm:$0xff]  ;;  %v17089_v8 = vld [vmem:[#allocation4 + $0x740] sm:$0xff] }
 0x557   :  { %v8054_v46 = vsel %vm7990_vm11, %v17542_v35, %v8022_v15  ;;  %v17094_v35 = vld [vmem:[#allocation4 + $0x768] sm:$0xff]  ;;  %v17105_v15 = vld [vmem:[#allocation4 + $0x7c0] sm:$0xff] }
 0x558   :  { %10431 = vmatpush.bf16.msrb.mxu2 %v17038_v33  ;;  %v17070_v33 = vld [vmem:[#allocation4 + $0x6a8] sm:$0xff] }
 0x559   :  { %10406 = vmatpush.bf16.msrb.mxu0 %v17021_v39  ;;  %v17053_v39 = vld [vmem:[#allocation4 + $0x620] sm:$0xff] }
 0x55a   :  { %10444 = vmatpush.bf16.msrb.mxu3 %v17046_v36  ;;  %10419 = vmatpush.bf16.msrb.mxu1 %v17029_v32  ;;  %v10180_v23 = vpop.f32.mrf.mxu2  ;;  %v17078_v36 = vld [vmem:[#allocation4 + $0x6e8] sm:$0xff]  ;;  %v17061_v32 = vld [vmem:[#allocation4 + $0x660] sm:$0xff] }
 0x55c   :  { %10432 = vmatpush.bf16.msrb.mxu2 %v17037_v44  ;;  %v10193_v47 = vpop.f32.mrf.mxu3  ;;  %v17069_v44 = vld [vmem:[#allocation4 + $0x6a0] sm:$0xff] }
 0x55d   :  { %10407 = vmatpush.bf16.msrb.mxu0 %v17020_v49  ;;  %v17052_v49 = vld [vmem:[#allocation4 + $0x618] sm:$0xff] }
 0x55e   :  { %10445 = vmatpush.bf16.msrb.mxu3 %v17045_v48  ;;  %10420 = vmatpush.bf16.msrb.mxu1 %v17028_v56  ;;  %v17077_v48 = vld [vmem:[#allocation4 + $0x6e0] sm:$0xff]  ;;  %v17060_v56 = vld [vmem:[#allocation4 + $0x658] sm:$0xff] }
 0x560   :  { %10433 = vmatpush.bf16.msrb.mxu2 %v17036_v51  ;;  %v17068_v51 = vld [vmem:[#allocation4 + $0x698] sm:$0xff] }
 0x561   :  { %10408 = vmatpush.bf16.msrb.mxu0 %v17019_v60  ;;  %v17051_v60 = vld [vmem:[#allocation4 + $0x610] sm:$0xff] }
 0x562   :  { %10446 = vmatpush.bf16.msrb.mxu3 %v17044_v52  ;;  %10421 = vmatpush.bf16.msrb.mxu1 %v17027_v4  ;;  %v17076_v52 = vld [vmem:[#allocation4 + $0x6d8] sm:$0xff]  ;;  %v17059_v4 = vld [vmem:[#allocation4 + $0x650] sm:$0xff] }
 0x564   :  { %10434 = vmatpush.bf16.msrb.mxu2 %v17035_v5  ;;  %v17067_v5 = vld [vmem:[#allocation4 + $0x690] sm:$0xff] }
 0x565   :  { %10409 = vmatpush.bf16.msrb.mxu0 %v17018_v41  ;;  %v17050_v41 = vld [vmem:[#allocation4 + $0x608] sm:$0xff] }
 0x566   :  { %10447 = vmatpush.bf16.msrb.mxu3 %v17043_v7  ;;  %10422 = vmatpush.bf16.msrb.mxu1 %v17026_v11  ;;  %v17075_v7 = vld [vmem:[#allocation4 + $0x6d0] sm:$0xff]  ;;  %v17058_v11 = vld [vmem:[#allocation4 + $0x648] sm:$0xff] }
 0x568   :  { %10435 = vmatpush.bf16.msrb.mxu2 %v17034_v9  ;;  %v17066_v9 = vld [vmem:[#allocation4 + $0x688] sm:$0xff] }
 0x569   :  { %10410 = vmatpush.bf16.msrb.mxu0 %v17017_v16  ;;  %v10204_v13 = vpop.f32.mrf.mxu0  ;;  %v17049_v16 = vld [vmem:[#allocation4 + $0x600] sm:$0xff] }
 0x56a   :  { %10448 = vmatpush.bf16.msrb.mxu3 %v17042_v25  ;;  %10423 = vmatpush.bf16.msrb.mxu1 %v17025_v19  ;;  %v10205_v30 = vadd.f32 %v10204_v13, %v17634_v63  ;;  %v10217_v37 = vpop.f32.mrf.mxu1  ;;  %v17074_v25 = vld [vmem:[#allocation4 + $0x6c8] sm:$0xff]  ;;  %v17057_v19 = vld [vmem:[#allocation4 + $0x640] sm:$0xff] }
 0x56b   :  { %v17093_v13 = vld [vmem:[#allocation4 + $0x760] sm:$0xff] }
 0x56c   :  { %10436 = vmatpush.bf16.msrb.mxu2 %v17033_v22  ;;  %10411 = vmatmul.bf16.vlgmr.msrb.gmra.mxu0 %v8079_v0  ;;  %v10218_v45 = vadd.f32 %v10217_v37, %v10205_v30  ;;  %v17065_v22 = vld [vmem:[#allocation4 + $0x680] sm:$0xff]  ;;  %v8083_v0 = vpack.c.bf16 %v8051_v38, %v8051_v38 }
 0x56d   :  { %10455 = vmatpush.bf16.msra.mxu0 %v17056_v54  ;;  %10424 = vmatmul.bf16.vlgmr.msrb.gmra.mxu1 %v8080_v26  ;;  %v17088_v54 = vld [vmem:[#allocation4 + $0x738] sm:$0xff]  ;;  %v8084_v26 = vpack.c.bf16 %v8052_v21, %v8052_v21  ;;  %v17101_v30 = vld [vmem:[#allocation4 + $0x7a0] sm:$0xff] }
 0x56e   :  { %10449 = vmatpush.bf16.msrb.mxu3 %v17041_v3  ;;  %10468 = vmatpush.bf16.msra.mxu1 %v17064_v29  ;;  %v17073_v3 = vld [vmem:[#allocation4 + $0x6c0] sm:$0xff]  ;;  %v17096_v29 = vld [vmem:[#allocation4 + $0x778] sm:$0xff] }
 0x56f   :  { %10437 = vmatmul.bf16.vlgmr.msrb.gmra.mxu2 %v8081_v62  ;;  %v8085_v62 = vpack.c.bf16 %v8053_v27, %v8053_v27 }
 0x570   :  { %10481 = vmatpush.bf16.msra.mxu2 %v17072_v50  ;;  %v17104_v50 = vld [vmem:[#allocation4 + $0x7b8] sm:$0xff] }
 0x571   :  { %10450 = vmatmul.bf16.vlgmr.msrb.gmra.mxu3 %v8082_v28  ;;  %10456 = vmatpush.bf16.msra.mxu0 %v17055_v59  ;;  %v10206_v53 = vpop.f32.mrf.mxu0  ;;  %v17087_v59 = vld [vmem:[#allocation4 + $0x730] sm:$0xff]  ;;  %v17102_v28 = vld [vmem:[#allocation4 + $0x7a8] sm:$0xff] }
 0x572   :  { %10494 = vmatpush.bf16.msra.mxu3 %v17080_v6  ;;  %10469 = vmatpush.bf16.msra.mxu1 %v17063_v31  ;;  %v10230_v57 = vpop.f32.mrf.mxu2  ;;  %v10219_v58 = vpop.f32.mrf.mxu1  ;;  %v17112_v6 = vld [vmem:[#allocation4 + $0x7f8] sm:$0xff]  ;;  %v17103_v31 = vld [vmem:[#allocation4 + $0x7b0] sm:$0xff] }
 0x573   :  { %v10231_v61 = vadd.f32 %v10230_v57, %v10218_v45  ;;  %v17100_v45 = vld [vmem:[#allocation4 + $0x798] sm:$0xff]  ;;  %v17091_v53 = vld [vmem:[#allocation4 + $0x750] sm:$0xff] }
 0x574   :  { %10482 = vmatpush.bf16.msra.mxu2 %v17071_v43  ;;  %v10243_v2 = vpop.f32.mrf.mxu3  ;;  %v8086_v43 = vpack.c.bf16 %v8054_v46, %v8054_v46  ;;  %v17099_v58 = vld [vmem:[#allocation4 + $0x790] sm:$0xff] }
 0x575   :  { %10457 = vmatpush.bf16.msra.mxu0 %v17054_v14  ;;  %v17651_v63 = vadd.f32 %v10243_v2, %v10231_v61  ;;  %v17083_v61 = vld [vmem:[#allocation4 + $0x710] sm:$0xff] }
 0x576   :  { %10495 = vmatpush.bf16.msra.mxu3 %v17079_v20  ;;  %10470 = vmatpush.bf16.msra.mxu1 %v17062_v12  ;;  %v17110_v20 = vld [vmem:[#allocation4 + $0x7e8] sm:$0xff] }
 0x578   :  { %10483 = vmatpush.bf16.msra.mxu2 %v17070_v33 }
 0x579   :  { %10458 = vmatpush.bf16.msra.mxu0 %v17053_v39  ;;  %v17109_v39 = vld [vmem:[#allocation4 + $0x7e0] sm:$0xff] }
 0x57a   :  { %10496 = vmatpush.bf16.msra.mxu3 %v17078_v36  ;;  %10471 = vmatpush.bf16.msra.mxu1 %v17061_v32  ;;  %v10232_v23 = vpop.f32.mrf.mxu2  ;;  %v17085_v36 = vld [vmem:[#allocation4 + $0x720] sm:$0xff]  ;;  %v17084_v32 = vld [vmem:[#allocation4 + $0x718] sm:$0xff] }
 0x57c   :  { %10484 = vmatpush.bf16.msra.mxu2 %v17069_v44  ;;  %v10245_v47 = vpop.f32.mrf.mxu3  ;;  %v17092_v44 = vld [vmem:[#allocation4 + $0x758] sm:$0xff] }
 0x57d   :  { %10459 = vmatpush.bf16.msra.mxu0 %v17052_v49  ;;  %v17081_v47 = vld [vmem:[#allocation4 + $0x700] sm:$0xff] }
 0x57e   :  { %10497 = vmatpush.bf16.msra.mxu3 %v17077_v48  ;;  %10472 = vmatpush.bf16.msra.mxu1 %v17060_v56  ;;  %v17108_v48 = vld [vmem:[#allocation4 + $0x7d8] sm:$0xff] }
 0x580   :  { %10485 = vmatpush.bf16.msra.mxu2 %v17068_v51 }
 0x581   :  { %10460 = vmatpush.bf16.msra.mxu0 %v17051_v60  ;;  %v17107_v60 = vld [vmem:[#allocation4 + $0x7d0] sm:$0xff] }
 0x582   :  { %10498 = vmatpush.bf16.msra.mxu3 %v17076_v52  ;;  %10473 = vmatpush.bf16.msra.mxu1 %v17059_v4  ;;  %v17090_v4 = vld [vmem:[#allocation4 + $0x748] sm:$0xff] }
 0x584   :  { %10486 = vmatpush.bf16.msra.mxu2 %v17067_v5  ;;  %v17098_v5 = vld [vmem:[#allocation4 + $0x788] sm:$0xff] }
 0x585   :  { %10461 = vmatpush.bf16.msra.mxu0 %v17050_v41  ;;  %v17106_v41 = vld [vmem:[#allocation4 + $0x7c8] sm:$0xff] }
 0x586   :  { %10499 = vmatpush.bf16.msra.mxu3 %v17075_v7  ;;  %10474 = vmatpush.bf16.msra.mxu1 %v17058_v11  ;;  %v8023_v7 = vmul.f32 0.01, %v17564_v1 }
 0x588   :  { %10487 = vmatpush.bf16.msra.mxu2 %v17066_v9  ;;  %v8024_v9 = vmul.f32 0.01, %v17581_v24 }
 0x589   :  { %10462 = vmatpush.bf16.msra.mxu0 %v17049_v16  ;;  %v10256_v14 = vpop.f32.mrf.mxu0  ;;  %v8055_v16 = vsel %vm7991_vm12, %v17564_v1, %v8023_v7  ;;  %v17114_v7 = vld [vmem:[#allocation6 + $0x8] sm:$0xff] }
 0x58a   :  { %10500 = vmatpush.bf16.msra.mxu3 %v17074_v25  ;;  %10475 = vmatpush.bf16.msra.mxu1 %v17057_v19  ;;  %v10257_v12 = vadd.f32 %v10256_v14, %v17651_v63  ;;  %v10269_v33 = vpop.f32.mrf.mxu1  ;;  %v17082_v63 = vld [vmem:[#allocation4 + $0x708] sm:$0xff]  ;;  %v8025_v25 = vmul.f32 0.01, %v17598_v40  ;;  %v8056_v19 = vsel %vm7992_vm13, %v17581_v24, %v8024_v9  ;;  %v17113_v9 = vld [vmem:[#allocation6] sm:$0xff] }
 0x58b   :  { %v8088_v38 = vpack.c.bf16 %v8056_v19, %v8056_v19 }
 0x58c   :  { %10488 = vmatpush.bf16.msra.mxu2 %v17065_v22  ;;  %10463 = vmatmul.bf16.vlgmr.msra.gmra.mxu0 %v8083_v0  ;;  %v10270_v37 = vadd.f32 %v10269_v33, %v10257_v12  ;;  %v8057_v22 = vsel %vm7993_vm14, %v17598_v40, %v8025_v25 }
 0x58d   :  { %10507 = vmatpush.bf16.msrb.mxu0 %v17088_v54  ;;  %10476 = vmatmul.bf16.vlgmr.msra.gmra.mxu1 %v8084_v26  ;;  %v8087_v54 = vpack.c.bf16 %v8055_v16, %v8055_v16 }
 0x58e   :  { %10501 = vmatpush.bf16.msra.mxu3 %v17073_v3  ;;  %10520 = vmatpush.bf16.msrb.mxu1 %v17096_v29  ;;  %v8058_v3 = vsel %vm7994_vm15, %v17615_v55, %v8026_v42  ;;  %v8089_v29 = vpack.c.bf16 %v8057_v22, %v8057_v22 }
 0x58f   :  { %10489 = vmatmul.bf16.vlgmr.msra.gmra.mxu2 %v8085_v62 }
 0x590   :  { %10533 = vmatpush.bf16.msrb.mxu2 %v17104_v50  ;;  %v8090_v50 = vpack.c.bf16 %v8058_v3, %v8058_v3 }
 0x591   :  { %10502 = vmatmul.bf16.vlgmr.msra.gmra.mxu3 %v8086_v43  ;;  %10508 = vmatpush.bf16.msrb.mxu0 %v17087_v59  ;;  %v10258_v52 = vpop.f32.mrf.mxu0 }
 0x592   :  { %10546 = vmatpush.bf16.msrb.mxu3 %v17112_v6  ;;  %10521 = vmatpush.bf16.msrb.mxu1 %v17095_v17  ;;  %v10282_v49 = vpop.f32.mrf.mxu2  ;;  %v10271_v57 = vpop.f32.mrf.mxu1  ;;  %v17117_v52 = vld [vmem:[#allocation6 + $0x20] sm:$0xff] }
 0x593   :  { %v10283_v56 = vadd.f32 %v10282_v49, %v10270_v37 }
 0x594   :  { %10534 = vmatpush.bf16.msrb.mxu2 %v17103_v31  ;;  %v10295_v51 = vpop.f32.mrf.mxu3 }
 0x595   :  { %10509 = vmatpush.bf16.msrb.mxu0 %v17086_v18  ;;  %v10296_v2 = vadd.f32 %v10295_v51, %v10283_v56  ;;  %v17119_v56 = vld [vmem:[#allocation6 + $0x30] sm:$0xff]  ;;  %v17118_v51 = vld [vmem:[#allocation6 + $0x28] sm:$0xff] }
 0x596   :  { %10547 = vmatpush.bf16.msrb.mxu3 %v17111_v34  ;;  %10522 = vmatpush.bf16.msrb.mxu1 %v17094_v35 }
 0x598   :  { %10535 = vmatpush.bf16.msrb.mxu2 %v17102_v28 }
 0x599   :  { %10510 = vmatpush.bf16.msrb.mxu0 %v17085_v36 }
 0x59a   :  { %10548 = vmatpush.bf16.msrb.mxu3 %v17110_v20  ;;  %10523 = vmatpush.bf16.msrb.mxu1 %v17093_v13  ;;  %v10284_v11 = vpop.f32.mrf.mxu2 }
 0x59c   :  { %10536 = vmatpush.bf16.msrb.mxu2 %v17101_v30  ;;  %v10297_v23 = vpop.f32.mrf.mxu3 }
 0x59d   :  { %10511 = vmatpush.bf16.msrb.mxu0 %v17084_v32 }
 0x59e   :  { %10549 = vmatpush.bf16.msrb.mxu3 %v17109_v39  ;;  %10524 = vmatpush.bf16.msrb.mxu1 %v17092_v44 }
 0x5a0   :  { %10537 = vmatpush.bf16.msrb.mxu2 %v17100_v45  ;;  %v17120_v45 = vld [vmem:[#allocation6 + $0x38] sm:$0xff] }
 0x5a1   :  { %10512 = vmatpush.bf16.msrb.mxu0 %v17083_v61  ;;  %v17116_v61 = vld [vmem:[#allocation6 + $0x18] sm:$0xff] }
 0x5a2   :  { %10550 = vmatpush.bf16.msrb.mxu3 %v17108_v48  ;;  %10525 = vmatpush.bf16.msrb.mxu1 %v17091_v53  ;;  %v17115_v53 = vld [vmem:[#allocation6 + $0x10] sm:$0xff] }
 0x5a4   :  { %10538 = vmatpush.bf16.msrb.mxu2 %v17099_v58 }
 0x5a5   :  { %10513 = vmatpush.bf16.msrb.mxu0 %v17082_v63 }
 0x5a6   :  { %10551 = vmatpush.bf16.msrb.mxu3 %v17107_v60  ;;  %10526 = vmatpush.bf16.msrb.mxu1 %v17090_v4 }
 0x5a8   :  { %10539 = vmatpush.bf16.msrb.mxu2 %v17098_v5 }
 0x5a9   :  { %10514 = vmatpush.bf16.msrb.mxu0 %v17081_v47  ;;  %v10308_v1 = vpop.f32.mrf.mxu0 }
 0x5aa   :  { %10552 = vmatpush.bf16.msrb.mxu3 %v17106_v41  ;;  %10527 = vmatpush.bf16.msrb.mxu1 %v17089_v8  ;;  %v10309_v21 = vadd.f32 %v10308_v1, %v10296_v2  ;;  %v10321_v27 = vpop.f32.mrf.mxu1 }
 0x5ac   :  { %10540 = vmatpush.bf16.msrb.mxu2 %v17097_v10  ;;  %10515 = vmatmul.bf16.vlgmr.msrb.gmra.mxu0 %v8087_v54  ;;  %v10322_v24 = vadd.f32 %v10321_v27, %v10309_v21 }
 0x5ad   :  { %10528 = vmatmul.bf16.vlgmr.msrb.gmra.mxu1 %v8088_v38  ;;  %10630 = vmatpush.bf16.msra.mxu0 %v17120_v45 }
 0x5ae   :  { %10553 = vmatpush.bf16.msrb.mxu3 %v17105_v15 }
 0x5af   :  { %10541 = vmatmul.bf16.vlgmr.msrb.gmra.mxu2 %v8089_v29 }
 0x5b1   :  { %10554 = vmatmul.bf16.vlgmr.msrb.gmra.mxu3 %v8090_v50  ;;  %v10310_v55 = vpop.f32.mrf.mxu0  ;;  %10631 = vmatpush.bf16.msra.mxu0 %v17119_v56 }
 0x5b2   :  { %v10334_v6 = vpop.f32.mrf.mxu2  ;;  %v10323_v0 = vpop.f32.mrf.mxu1 }
 0x5b3   :  { %v10335_v40 = vadd.f32 %v10334_v6, %v10322_v24  ;;  %v17129_v0 = vld [vmem:[%s17695_s6] ss:$0 sm:$0xff] }
 0x5b4   :  { %v10347_v46 = vpop.f32.mrf.mxu3 }
 0x5b5   :  { %v10348_v59 = vadd.f32 %v10347_v46, %v10335_v40  ;;  %10632 = vmatpush.bf16.msra.mxu0 %v17118_v51  ;;  %v10643_v46 = vlaneseq }
 0x5b7   :  { %v10644_v55 = vand.u32 127, %v10643_v46 }
 0x5b9   :  { %10633 = vmatpush.bf16.msra.mxu0 %v17117_v52  ;;  %vm10645_vm0 = vcmp.lt.s32.totalorder %v10644_v55, 10 }
 0x5ba   :  { %v10336_v26 = vpop.f32.mrf.mxu2 }
 0x5bc   :  { %v10349_v62 = vpop.f32.mrf.mxu3 }
 0x5bd   :  { %10634 = vmatpush.bf16.msra.mxu0 %v17116_v61 }
 0x5c1   :  { %10635 = vmatpush.bf16.msra.mxu0 %v17115_v53 }
 0x5c5   :  { %10636 = vmatpush.bf16.msra.mxu0 %v17114_v7 }
 0x5c9   :  { %v10360_v17 = vpop.f32.mrf.mxu0  ;;  %10637 = vmatpush.bf16.msra.mxu0 %v17113_v9 }
 0x5ca   :  { %v10361_v31 = vadd.f32 %v10360_v17, %v10348_v59  ;;  %v10373_v43 = vpop.f32.mrf.mxu1 }
 0x5cc   :  { %v10374_v34 = vadd.f32 %v10373_v43, %v10361_v31 }
 0x5d1   :  { %v10362_v20 = vpop.f32.mrf.mxu0 }
 0x5d2   :  { %v10386_v18 = vpop.f32.mrf.mxu2  ;;  %v10375_v14 = vpop.f32.mrf.mxu1 }
 0x5d3   :  { %v10387_v35 = vadd.f32 %v10386_v18, %v10374_v34 }
 0x5d4   :  { %v10399_v28 = vpop.f32.mrf.mxu3 }
 0x5d5   :  { %v10400_v12 = vadd.f32 %v10399_v28, %v10387_v35 }
 0x5da   :  { %v10388_v33 = vpop.f32.mrf.mxu2 }
 0x5dc   :  { %v10401_v36 = vpop.f32.mrf.mxu3 }
 0x5e9   :  { %v10412_v13 = vpop.f32.mrf.mxu0 }
 0x5ea   :  { %v10425_v30 = vpop.f32.mrf.mxu1  ;;  %v10413_v58 = vadd.f32 %v10412_v13, %v10400_v12 }
 0x5ec   :  { %v10426_v41 = vadd.f32 %v10425_v30, %v10413_v58 }
 0x5f1   :  { %v10414_v32 = vpop.f32.mrf.mxu0 }
 0x5f2   :  { %v10438_v37 = vpop.f32.mrf.mxu2  ;;  %v10427_v44 = vpop.f32.mrf.mxu1 }
 0x5f3   :  { %v10439_v11 = vadd.f32 %v10438_v37, %v10426_v41 }
 0x5f4   :  { %v10451_v39 = vpop.f32.mrf.mxu3 }
 0x5f5   :  { %v10452_v42 = vadd.f32 %v10451_v39, %v10439_v11 }
 0x5fa   :  { %v10440_v48 = vpop.f32.mrf.mxu2 }
 0x5fc   :  { %v10453_v49 = vpop.f32.mrf.mxu3 }
 0x609   :  { %v10464_v57 = vpop.f32.mrf.mxu0 }
 0x60a   :  { %v10477_v2 = vpop.f32.mrf.mxu1  ;;  %v10465_v47 = vadd.f32 %v10464_v57, %v10452_v42 }
 0x60c   :  { %v10478_v8 = vadd.f32 %v10477_v2, %v10465_v47 }
 0x611   :  { %v10466_v4 = vpop.f32.mrf.mxu0 }
 0x612   :  { %v10490_v60 = vpop.f32.mrf.mxu2  ;;  %v10479_v5 = vpop.f32.mrf.mxu1 }
 0x613   :  { %v10491_v10 = vadd.f32 %v10490_v60, %v10478_v8 }
 0x614   :  { %v10503_v63 = vpop.f32.mrf.mxu3 }
 0x615   :  { %v10504_v16 = vadd.f32 %v10503_v63, %v10491_v10 }
 0x61a   :  { %v10492_v25 = vpop.f32.mrf.mxu2 }
 0x61c   :  { %v10505_v23 = vpop.f32.mrf.mxu3 }
 0x629   :  { %v10516_v15 = vpop.f32.mrf.mxu0 }
 0x62a   :  { %v10529_v19 = vpop.f32.mrf.mxu1  ;;  %v10517_v22 = vadd.f32 %v10516_v15, %v10504_v16 }
 0x62c   :  { %v10530_v3 = vadd.f32 %v10529_v19, %v10517_v22 }
 0x631   :  { %v10518_v50 = vpop.f32.mrf.mxu0 }
 0x632   :  { %v10542_v54 = vpop.f32.mrf.mxu2  ;;  %v10531_v1 = vpop.f32.mrf.mxu1 }
 0x633   :  { %v10543_v38 = vadd.f32 %v10542_v54, %v10530_v3 }
 0x634   :  { %v10555_v29 = vpop.f32.mrf.mxu3 }
 0x635   :  { %v10556_v21 = vadd.f32 %v10555_v29, %v10543_v38 }
 0x637   :  { %10559 = vst [vmem:[%s17696_s7] sm:$0xff] %v10556_v21  ;;  %17130 = vtanh.f32 %v10556_v21 }
 0x63a   :  { %v10544_v27 = vpop.f32.mrf.mxu2 }
 0x63c   :  { %v10557_v24 = vpop.f32.mrf.mxu3 }
 0x63d   :  { %v17131_v6 = vpop.eup %17130 }
 0x63e   :  { %v10561_v40 = vpack.c.bf16 %v17131_v6, %v17131_v6 }
 0x640   :  { %10638 = vmatmul.bf16.vlgmr.msra.gmra.mxu0 %v10561_v40 }
 0x6bd   :  { %v10639_v59 = vpop.f32.mrf.mxu0 }
 0x6be   :  { %v10640_v26 = vadd.f32 %v17129_v0, %v10639_v59 }
 0x6c0   :  { %v10646_v62 = vsel %vm10645_vm0, %v10640_v26, -1e+30 }
 0x6c1   :  { %10647 = vmax.xlane.f32.xlu0 %v10646_v62 }
 0x6c5   :  { %v10641_v17 = vpop.f32.mrf.mxu0 }
 0x734   :  { %v10648_v31 = vpop.xlane.xlu0 %10647 }
 0x735   :  { %v10649_v43 = vsub.f32 %v10646_v62, %v10648_v31 }
 0x737   :  { %v10650_v34 = vmul.f32 1.442695, %v10649_v43 }
 0x739   :  { %17132 = vpow2.f32 %v10650_v34 }
 0x73f   :  { %v17133_v18 = vpop.eup %17132 }
 0x740   :  { %v10652_v35 = vsel %vm10645_vm0, %v17133_v18, 0.0 }
 0x741   :  { %10653 = vadd.xlane.f32.xlu0 %v10652_v35 }
 0x7b4   :  { %v10654_v28 = vpop.xlane.xlu0 %10653 }
 0x7b5   :  { %17134 = vrcp.f32 %v10654_v28  ;;  %v10666_v33 = vand.u32 2147483648, %v10654_v28  ;;  %v10664_v13 = vand.u32 2147483647, %v10654_v28  ;;  %vm10660_vm2 = vweird.f32 %v10654_v28 }
 0x7b7   :  { %v10667_v37 = vor.u32 1.1754944e-38, %v10666_v33  ;;  %vm10665_vm4 = vcmp.eq.f32.partialorder %v10664_v13, 8.507059e+37 }
 0x7bb   :  { %v17135_v20 = vpop.eup %17134 }
 0x7bc   :  { %v10656_v14 = vmul.f32 %v17135_v20, %v10654_v28  ;;  %vm10661_vm1 = vweird.f32 %v17135_v20 }
 0x7bd   :  { %vm10662_vm3 = vmor %vm10660_vm2, %vm10661_vm1 }
 0x7be   :  { %v10657_v12 = vsub.f32 1.0, %v10656_v14 }
 0x7c0   :  { %v10658_v36 = vmul.f32 %v17135_v20, %v10657_v12 }
 0x7c2   :  { %v10659_v30 = vadd.f32 %v17135_v20, %v10658_v36 }
 0x7c4   :  { %v10663_v39 = vsel %vm10662_vm3, %v17135_v20, %v10659_v30 }
 0x7c5   :  { %v10668_v32 = vsel %vm10665_vm4, %v10667_v37, %v10663_v39 }
 0x7c6   :  { %v10669_v44 = vmul.f32 %v10668_v32, %v10652_v35 }
 0x7c8   :  { %10670 = vst [vmem:[%s17697_s8] sm:$0xff] %v10669_v44 }
 0x7c9   :  { %10679 = vsyncpa [#allocation3], 1 }
 0x7ca   :  { %10680 = vsyncpa [#allocation5], 1 }

</bundles_post_ra>
